<compile_context>
chip_gen: v7x
topology: tpu7x:2x2x1
jax: 0.10.0
libtpu: 0.0.40
codegen_flags: <defaults>
</compile_context>

<pallas_src>
import functools

import numpy as np

import jax
import jax.numpy as jnp
from jax.experimental import pallas as pl
from jax.experimental.pallas import tpu as pltpu

BN_EPS = 1e-5
LANES = 128


# --------------------------------------------------------------------------
# The fused Pallas kernel
# --------------------------------------------------------------------------
def _lenet_kernel(p1_ref, mask2_ref, w1_ref, g1_ref, bt1_ref,
                  w2_ref, g2_ref, bt2_ref,
                  wf1_ref, bf1_ref, wf2_ref, bf2_ref, wf3_ref, bf3_ref,
                  o_ref, pool1_s, y2_s, *, batch):
    B = batch
    R1 = 196 * B      # pool1 rows: (h1*14 + w1)*B + b, h1,w1 in [0,14)
    R2 = 136 * B      # conv2 row window: covers (h2*14 + w2)*B + b, h2 in [0,10)

    # ---------------- stage 1: conv1 with parity-folded K=128 ----------------
    y1 = jnp.dot(p1_ref[...], w1_ref[...],
                 preferred_element_type=jnp.float32)           # (R1, 128)

    # BN1 training-mode stats over all B*28*28 conv1 outputs.  The 4 pooling
    # parities live in 32-lane groups, so a cyclic 3-roll reduce folds them
    # (every lane ends up holding the per-channel total, replicated).
    s1 = jnp.sum(y1, axis=0, keepdims=True)
    s2 = jnp.sum(y1 * y1, axis=0, keepdims=True)
    s1 = s1 + pltpu.roll(s1, 32, 1) + pltpu.roll(s1, 64, 1) + pltpu.roll(s1, 96, 1)
    s2 = s2 + pltpu.roll(s2, 32, 1) + pltpu.roll(s2, 64, 1) + pltpu.roll(s2, 96, 1)
    n1 = jnp.float32(4 * R1)
    mean1 = s1 / n1
    var1 = s2 / n1 - mean1 * mean1
    scale1 = g1_ref[...] * jax.lax.rsqrt(var1 + BN_EPS)
    shift1 = bt1_ref[...] - mean1 * scale1

    # 2x2 maxpool == max over the 4 parity lane-groups (cyclic lane rolls hit
    # the XLU slot).  Pool BEFORE the affine + ReLU; exact for either sign of
    # gamma by selecting the window max or min per channel.
    r32 = pltpu.roll(y1, 32, 1)
    r64 = pltpu.roll(y1, 64, 1)
    r96 = pltpu.roll(y1, 96, 1)
    mx1 = jnp.maximum(jnp.maximum(y1, r32), jnp.maximum(r64, r96))
    mn1 = jnp.minimum(jnp.minimum(y1, r32), jnp.minimum(r64, r96))
    pooled1 = jnp.where(scale1 >= 0.0, mx1, mn1)
    a1 = jnp.maximum(pooled1 * scale1 + shift1, 0.0)
    pool1_s[...] = a1.astype(pool1_s.dtype)                    # (R1, 128) bf16

    # ---------------- stage 2: conv2 as 25 shifted-row tap matmuls -----------
    # pool1 rows are (h1*14 + w1)*B + b, so tap (i, j) is just the contiguous
    # row window starting at (i*14 + j)*B.  Rows with w2 >= 10 are junk and
    # are excluded from the BN2 stats / second pool below.
    for t in range(25):
        i, j = divmod(t, 5)
        off = (i * 14 + j) * B
        acc = jnp.dot(pool1_s[off:off + R2, :], w2_ref[t],
                      preferred_element_type=jnp.float32)      # (R2, 128)
        if t == 0:
            y2_s[...] = acc
        else:
            y2_s[...] += acc

    # BN2 training-mode stats over the B*10*10 valid conv2 outputs.
    y2 = y2_s[...]
    ym = y2 * mask2_ref[...]
    s1b = jnp.sum(ym, axis=0, keepdims=True)
    s2b = jnp.sum(ym * ym, axis=0, keepdims=True)
    n2 = jnp.float32(100 * B)
    mean2 = s1b / n2
    var2 = s2b / n2 - mean2 * mean2
    scale2 = g2_ref[...] * jax.lax.rsqrt(var2 + BN_EPS)
    shift2 = bt2_ref[...] - mean2 * scale2

    # ---------- pool2 + BN2 affine + ReLU fused with the fc1 input build -----
    # Pool window parities sit at row offsets {0, B, 14B, 15B} from each base.
    acts = []
    for p in range(25):
        ho, wo = divmod(p, 5)
        base = (2 * ho * 14 + 2 * wo) * B
        w00 = y2_s[base:base + B, :]
        w01 = y2_s[base + B:base + 2 * B, :]
        w10 = y2_s[base + 14 * B:base + 15 * B, :]
        w11 = y2_s[base + 15 * B:base + 16 * B, :]
        wmx = jnp.maximum(jnp.maximum(w00, w01), jnp.maximum(w10, w11))
        wmn = jnp.minimum(jnp.minimum(w00, w01), jnp.minimum(w10, w11))
        pooled2 = jnp.where(scale2 >= 0.0, wmx, wmn)
        acts.append(jnp.maximum(pooled2 * scale2 + shift2, 0.0)
                    .astype(jnp.bfloat16))
    fc1_in = jnp.concatenate(acts, axis=1)                     # (B, 3200) bf16

    # ------------------------------ fc1 / fc2 / fc3 --------------------------
    h = jnp.dot(fc1_in, wf1_ref[...],
                preferred_element_type=jnp.float32) + bf1_ref[...]
    h = jnp.maximum(h, 0.0)
    h = jnp.dot(h.astype(jnp.bfloat16), wf2_ref[...],
                preferred_element_type=jnp.float32) + bf2_ref[...]
    h = jnp.maximum(h, 0.0)
    out = jnp.dot(h.astype(jnp.bfloat16), wf3_ref[...],
                  preferred_element_type=jnp.float32) + bf3_ref[...]
    o_ref[...] = out


# --------------------------------------------------------------------------
# pallas_call wrapper (grid-less: everything resident in VMEM)
# --------------------------------------------------------------------------
def _vmem_spec():
    return pl.BlockSpec(memory_space=pltpu.MemorySpace.VMEM)


def _run_lenet(p1, mask2, kp, batch):
    R1, R2 = 196 * batch, 136 * batch
    args = (p1, mask2, kp["w1"], kp["g1"], kp["bt1"],
            kp["w2"], kp["g2"], kp["bt2"],
            kp["wf1"], kp["bf1"], kp["wf2"], kp["bf2"], kp["wf3"], kp["bf3"])
    flops = 2 * (R1 * 128 * 128 + 25 * R2 * 128 * 128
                 + batch * 3200 * 128 + 2 * batch * 128 * 128)
    bytes_accessed = sum(int(np.prod(a.shape)) * a.dtype.itemsize for a in args)
    bytes_accessed += batch * LANES * 4
    return pl.pallas_call(
        functools.partial(_lenet_kernel, batch=batch),
        out_shape=jax.ShapeDtypeStruct((batch, LANES), jnp.float32),
        in_specs=[_vmem_spec() for _ in range(len(args))],
        out_specs=_vmem_spec(),
        scratch_shapes=[pltpu.VMEM((R1, LANES), jnp.bfloat16),   # pool1
                        pltpu.VMEM((R2, LANES), jnp.float32)],   # conv2 acc
        cost_estimate=pl.CostEstimate(flops=flops, transcendentals=256,
                                      bytes_accessed=bytes_accessed),
    )(*args)


# --------------------------------------------------------------------------
# Host-side glue: conv1 patch extraction (one conv + a few reshapes)
# --------------------------------------------------------------------------
def build_conv1_patches(x_nchw):
    """x: (B,1,32,32) f32 -> (B*196, 128) bf16 parity-folded conv1 patches.

    Row = (ho*14 + wo)*B + b over the pooled 14x14 grid; lane = g*32 + t with
    g = dh*2 + dw the pooling parity and t = i*5 + j the filter tap (25->32).
    """
    B = x_nchw.shape[0]
    pat = jax.lax.conv_general_dilated_patches(
        x_nchw, filter_shape=(5, 5), window_strides=(1, 1), padding="VALID",
        dimension_numbers=("NCHW", "OIHW", "NCHW"))            # (B, 25, 28, 28)
    pat = pat.reshape(B, 25, 14, 2, 14, 2)                     # (b,t,ho,dh,wo,dw)
    pat = jnp.transpose(pat, (2, 4, 0, 3, 5, 1))               # (ho,wo,b,dh,dw,t)
    pat = jnp.pad(pat, ((0, 0),) * 5 + ((0, 7),))              # taps 25 -> 32
    return pat.reshape(196 * B, LANES).astype(jnp.bfloat16)


def build_bn2_row_mask(batch):
    """Validity mask (136*B, 1) f32 for conv2 rows (h2*14 + w2)*B + b: w2 < 10."""
    q = np.arange(136 * batch) // batch
    mask = (q % 14 < 10).astype(np.float32).reshape(-1, 1)
    return jnp.asarray(mask)


# --------------------------------------------------------------------------
# Parameters: PyTorch-layout init + one-time conversion to kernel layout
# --------------------------------------------------------------------------
def init_params(key):
    def uniform(k, shape, fan_in):
        bound = 1.0 / jnp.sqrt(float(fan_in))
        return jax.random.uniform(k, shape, jnp.float32, -bound, bound)

    ks = jax.random.split(key, 10)
    return {
        "conv1_w": uniform(ks[0], (10, 1, 5, 5), 25),
        "conv1_b": uniform(ks[1], (10,), 25),
        "bn1_g": jnp.ones((10,), jnp.float32),
        "bn1_b": jnp.zeros((10,), jnp.float32),
        "conv2_w": uniform(ks[2], (20, 10, 5, 5), 250),
        "conv2_b": uniform(ks[3], (20,), 250),
        "bn2_g": jnp.ones((20,), jnp.float32),
        "bn2_b": jnp.zeros((20,), jnp.float32),
        "fc1_w": uniform(ks[4], (120, 500), 500),
        "fc1_b": uniform(ks[5], (120,), 500),
        "fc2_w": uniform(ks[6], (84, 120), 120),
        "fc2_b": uniform(ks[7], (84,), 120),
        "fc3_w": uniform(ks[8], (10, 84), 84),
        "fc3_b": uniform(ks[9], (10,), 84),
    }


def _vec_row(v, cols=LANES):
    return jnp.pad(v.reshape(1, -1).astype(jnp.float32),
                   ((0, 0), (0, cols - v.shape[0])))


def prepare_kernel_params(p):
    """One-time conversion to padded, lane-dense kernel layouts.

    Conv biases are intentionally dropped: training-mode BN mean subtraction
    cancels a per-channel pre-BN bias exactly, so they never affect the output.
    """
    kp = {}
    # conv1 -> (128,128) block-diagonal: block g maps taps g*32+t -> ch g*32+oc.
    w1 = p["conv1_w"].reshape(10, 25).T                         # (t, oc)
    blk = jnp.zeros((32, 32), jnp.float32).at[:25, :10].set(w1)
    kp["w1"] = jnp.kron(jnp.eye(4, dtype=jnp.float32), blk).astype(jnp.bfloat16)
    kp["g1"] = _vec_row(p["bn1_g"])
    kp["bt1"] = _vec_row(p["bn1_b"])
    # conv2 -> 25 per-tap (128,128) blocks: [t][c, oc].
    w2 = jnp.transpose(p["conv2_w"], (2, 3, 1, 0)).reshape(25, 10, 20)
    kp["w2"] = (jnp.zeros((25, 128, 128), jnp.float32)
                .at[:, :10, :20].set(w2).astype(jnp.bfloat16))
    kp["g2"] = _vec_row(p["bn2_g"])
    kp["bt2"] = _vec_row(p["bn2_b"])
    # fc1 -> (3200,128): row p*128 + c corresponds to torch flatten index c*25+p.
    wf1 = p["fc1_w"].T.reshape(20, 25, 120)                     # (c, p, n)
    wf1 = jnp.transpose(wf1, (1, 0, 2))                         # (p, c, n)
    kp["wf1"] = (jnp.zeros((25, 128, 128), jnp.float32)
                 .at[:, :20, :120].set(wf1)
                 .reshape(3200, 128).astype(jnp.bfloat16))
    kp["bf1"] = _vec_row(p["fc1_b"])
    kp["wf2"] = (jnp.zeros((128, 128), jnp.float32)
                 .at[:120, :84].set(p["fc2_w"].T).astype(jnp.bfloat16))
    kp["bf2"] = _vec_row(p["fc2_b"])
    kp["wf3"] = (jnp.zeros((128, 128), jnp.float32)
                 .at[:84, :10].set(p["fc3_w"].T).astype(jnp.bfloat16))
    kp["bf3"] = _vec_row(p["fc3_b"])
    return kp


# --------------------------------------------------------------------------
# Forward pass (one fused kernel + ~8 host-side layout ops)
# --------------------------------------------------------------------------
def custom_lenet_forward(x_nchw, kp):
    B = x_nchw.shape[0]
    p1 = build_conv1_patches(x_nchw)          # (B*196, 128) bf16
    mask2 = build_bn2_row_mask(B)             # (B*136, 1) f32 (trace-time const)
    out_pad = _run_lenet(p1, mask2, kp, B)    # (B, 128) f32
    return out_pad[:, :10]


# --------------------------------------------------------------------------
# Pure-JAX reference (PyTorch semantics: conv+bias, train-mode BN, ReLU, pool)
# --------------------------------------------------------------------------
def reference_forward(x, p):
    dn = ("NCHW", "OIHW", "NCHW")

    def bn(y, g, b):
        mean = jnp.mean(y, axis=(0, 2, 3), keepdims=True)
        var = jnp.mean((y - mean) ** 2, axis=(0, 2, 3), keepdims=True)
        return ((y - mean) * jax.lax.rsqrt(var + BN_EPS)
                * g.reshape(1, -1, 1, 1) + b.reshape(1, -1, 1, 1))

    def pool2(y):
        b, c, h, w = y.shape
        return jnp.max(y.reshape(b, c, h // 2, 2, w // 2, 2), axis=(3, 5))

    y = jax.lax.conv_general_dilated(x, p["conv1_w"], (1, 1), "VALID",
                                     dimension_numbers=dn)
    y = y + p["conv1_b"].reshape(1, -1, 1, 1)
    y = pool2(jnp.maximum(bn(y, p["bn1_g"], p["bn1_b"]), 0.0))
    y = jax.lax.conv_general_dilated(y, p["conv2_w"], (1, 1), "VALID",
                                     dimension_numbers=dn)
    y = y + p["conv2_b"].reshape(1, -1, 1, 1)
    y = pool2(jnp.maximum(bn(y, p["bn2_g"], p["bn2_b"]), 0.0))
    y = y.reshape(y.shape[0], -1)
    y = jnp.maximum(y @ p["fc1_w"].T + p["fc1_b"], 0.0)
    y = jnp.maximum(y @ p["fc2_w"].T + p["fc2_b"], 0.0)
    return y @ p["fc3_w"].T + p["fc3_b"]


if __name__ == "__main__":
    key = jax.random.PRNGKey(0)
    k_params, k_x = jax.random.split(key)

    # Input geometry implied by fc1 (20*5*5): 32x32, single channel, NCHW.
    x = jax.random.normal(k_x, (2, 1, 32, 32), jnp.float32)
    params = init_params(k_params)
    kparams = prepare_kernel_params(params)   # one-time weight re-layout

    fwd = jax.jit(custom_lenet_forward)
    out = fwd(x, kparams)
    jax.block_until_ready(out)

    assert out.shape == (2, 10) and out.dtype == jnp.float32
    assert bool(jnp.all(jnp.isfinite(out)))
    ref = reference_forward(x, params)
    err = float(jnp.max(jnp.abs(out - ref)))
    assert err < 0.05, f"mismatch vs reference: max abs diff {err}"
    print("KERNEL_OK")
</pallas_src>

<mosaic_0001>
module attributes {stable_mosaic.version = 11 : i64} {
  func.func @_lenet_kernel(%arg0: memref<392x128xbf16, #tpu.memory_space<vmem>>, %arg1: memref<272x1xf32, #tpu.memory_space<vmem>>, %arg2: memref<128x128xbf16, #tpu.memory_space<vmem>>, %arg3: memref<1x128xf32, #tpu.memory_space<vmem>>, %arg4: memref<1x128xf32, #tpu.memory_space<vmem>>, %arg5: memref<25x128x128xbf16, #tpu.memory_space<vmem>>, %arg6: memref<1x128xf32, #tpu.memory_space<vmem>>, %arg7: memref<1x128xf32, #tpu.memory_space<vmem>>, %arg8: memref<3200x128xbf16, #tpu.memory_space<vmem>>, %arg9: memref<1x128xf32, #tpu.memory_space<vmem>>, %arg10: memref<128x128xbf16, #tpu.memory_space<vmem>>, %arg11: memref<1x128xf32, #tpu.memory_space<vmem>>, %arg12: memref<128x128xbf16, #tpu.memory_space<vmem>>, %arg13: memref<1x128xf32, #tpu.memory_space<vmem>>, %arg14: memref<2x128xf32, #tpu.memory_space<vmem>>, %arg15: memref<392x128xbf16, #tpu.memory_space<vmem>>, %arg16: memref<272x128xf32, #tpu.memory_space<vmem>>) attributes {dimension_semantics = [], scalar_prefetch = 0 : i64, scratch_operands = 2 : i64, tpu.core_type = #tpu.core_type<tc>} {
    %c0 = arith.constant 0 : index
    %c0_0 = arith.constant 0 : index
    %0 = vector.load %arg0[%c0, %c0_0] : memref<392x128xbf16, #tpu.memory_space<vmem>>, vector<392x128xbf16>
    %c0_1 = arith.constant 0 : index
    %c0_2 = arith.constant 0 : index
    %1 = vector.load %arg2[%c0_1, %c0_2] : memref<128x128xbf16, #tpu.memory_space<vmem>>, vector<128x128xbf16>
    %cst = arith.constant dense<0.000000e+00> : vector<392x128xf32>
    %2 = tpu.matmul %0, %1, %cst {dimension_numbers = #tpu.dot_dimension_numbers<[1], [0], [0], [1], [0, 0, 1, 1], [], []>} : vector<392x128xbf16>, vector<128x128xbf16>, vector<392x128xf32> -> vector<392x128xf32>
    %cst_3 = arith.constant dense<0.000000e+00> : vector<128xf32>
    %3 = vector.multi_reduction <add>, %2, %cst_3 [0] : vector<392x128xf32> to vector<128xf32>
    %4 = vector.shape_cast %3 : vector<128xf32> to vector<1x128xf32>
    %5 = arith.mulf %2, %2 : vector<392x128xf32>
    %cst_4 = arith.constant dense<0.000000e+00> : vector<128xf32>
    %6 = vector.multi_reduction <add>, %5, %cst_4 [0] : vector<392x128xf32> to vector<128xf32>
    %7 = vector.shape_cast %6 : vector<128xf32> to vector<1x128xf32>
    %c32_i32 = arith.constant 32 : i32
    %8 = tpu.dynamic_rotate %4 by %c32_i32 dim 1 : vector<1x128xf32>, i32 -> vector<1x128xf32>
    %9 = arith.addf %4, %8 : vector<1x128xf32>
    %c64_i32 = arith.constant 64 : i32
    %10 = tpu.dynamic_rotate %4 by %c64_i32 dim 1 : vector<1x128xf32>, i32 -> vector<1x128xf32>
    %11 = arith.addf %9, %10 : vector<1x128xf32>
    %c96_i32 = arith.constant 96 : i32
    %12 = tpu.dynamic_rotate %4 by %c96_i32 dim 1 : vector<1x128xf32>, i32 -> vector<1x128xf32>
    %13 = arith.addf %11, %12 : vector<1x128xf32>
    %c32_i32_5 = arith.constant 32 : i32
    %14 = tpu.dynamic_rotate %7 by %c32_i32_5 dim 1 : vector<1x128xf32>, i32 -> vector<1x128xf32>
    %15 = arith.addf %7, %14 : vector<1x128xf32>
    %c64_i32_6 = arith.constant 64 : i32
    %16 = tpu.dynamic_rotate %7 by %c64_i32_6 dim 1 : vector<1x128xf32>, i32 -> vector<1x128xf32>
    %17 = arith.addf %15, %16 : vector<1x128xf32>
    %c96_i32_7 = arith.constant 96 : i32
    %18 = tpu.dynamic_rotate %7 by %c96_i32_7 dim 1 : vector<1x128xf32>, i32 -> vector<1x128xf32>
    %19 = arith.addf %17, %18 : vector<1x128xf32>
    %cst_8 = arith.constant 1.568000e+03 : f32
    %20 = vector.broadcast %cst_8 : f32 to vector<1x128xf32>
    %21 = arith.divf %13, %20 : vector<1x128xf32>
    %cst_9 = arith.constant 1.568000e+03 : f32
    %22 = vector.broadcast %cst_9 : f32 to vector<1x128xf32>
    %23 = arith.divf %19, %22 : vector<1x128xf32>
    %24 = arith.mulf %21, %21 : vector<1x128xf32>
    %25 = arith.subf %23, %24 : vector<1x128xf32>
    %c0_10 = arith.constant 0 : index
    %c0_11 = arith.constant 0 : index
    %26 = vector.load %arg3[%c0_10, %c0_11] : memref<1x128xf32, #tpu.memory_space<vmem>>, vector<1x128xf32>
    %cst_12 = arith.constant 9.99999974E-6 : f32
    %27 = vector.broadcast %cst_12 : f32 to vector<1x128xf32>
    %28 = arith.addf %25, %27 : vector<1x128xf32>
    %29 = math.rsqrt %28 : vector<1x128xf32>
    %30 = arith.mulf %26, %29 : vector<1x128xf32>
    %c0_13 = arith.constant 0 : index
    %c0_14 = arith.constant 0 : index
    %31 = vector.load %arg4[%c0_13, %c0_14] : memref<1x128xf32, #tpu.memory_space<vmem>>, vector<1x128xf32>
    %32 = arith.mulf %21, %30 : vector<1x128xf32>
    %33 = arith.subf %31, %32 : vector<1x128xf32>
    %c32_i32_15 = arith.constant 32 : i32
    %34 = tpu.dynamic_rotate %2 by %c32_i32_15 dim 1 : vector<392x128xf32>, i32 -> vector<392x128xf32>
    %c64_i32_16 = arith.constant 64 : i32
    %35 = tpu.dynamic_rotate %2 by %c64_i32_16 dim 1 : vector<392x128xf32>, i32 -> vector<392x128xf32>
    %c96_i32_17 = arith.constant 96 : i32
    %36 = tpu.dynamic_rotate %2 by %c96_i32_17 dim 1 : vector<392x128xf32>, i32 -> vector<392x128xf32>
    %37 = arith.maximumf %2, %34 : vector<392x128xf32>
    %38 = arith.maximumf %35, %36 : vector<392x128xf32>
    %39 = arith.maximumf %37, %38 : vector<392x128xf32>
    %40 = arith.minimumf %2, %34 : vector<392x128xf32>
    %41 = arith.minimumf %35, %36 : vector<392x128xf32>
    %42 = arith.minimumf %40, %41 : vector<392x128xf32>
    %cst_18 = arith.constant 0.000000e+00 : f32
    %43 = vector.broadcast %cst_18 : f32 to vector<1x128xf32>
    %44 = arith.cmpf oge, %30, %43 : vector<1x128xf32>
    %45 = vector.shape_cast %44 : vector<1x128xi1> to vector<1x128xi1>
    %46 = vector.broadcast %45 : vector<1x128xi1> to vector<392x128xi1>
    %47 = arith.select %46, %39, %42 : vector<392x128xi1>, vector<392x128xf32>
    %48 = vector.broadcast %30 : vector<1x128xf32> to vector<392x128xf32>
    %49 = arith.mulf %47, %48 : vector<392x128xf32>
    %50 = vector.broadcast %33 : vector<1x128xf32> to vector<392x128xf32>
    %51 = arith.addf %49, %50 : vector<392x128xf32>
    %cst_19 = arith.constant 0.000000e+00 : f32
    %52 = vector.broadcast %cst_19 : f32 to vector<392x128xf32>
    %53 = arith.maximumf %51, %52 : vector<392x128xf32>
    %54 = arith.truncf %53 : vector<392x128xf32> to vector<392x128xbf16>
    %c0_20 = arith.constant 0 : index
    %c0_21 = arith.constant 0 : index
    %55 = vector.load %arg15[%c0_20, %c0_21] : memref<392x128xbf16, #tpu.memory_space<vmem>>, vector<392x128xbf16>
    tpu.vector_store %arg15[%c0_20, %c0_21], %54 {strides = array<i32>} : memref<392x128xbf16, #tpu.memory_space<vmem>>, vector<392x128xbf16>,
    %c0_22 = arith.constant 0 : index
    %c0_23 = arith.constant 0 : index
    %56 = vector.load %arg15[%c0_22, %c0_23] : memref<392x128xbf16, #tpu.memory_space<vmem>>, vector<272x128xbf16>
    %c0_24 = arith.constant 0 : index
    %c0_25 = arith.constant 0 : index
    %c0_26 = arith.constant 0 : index
    %57 = vector.load %arg5[%c0_24, %c0_25, %c0_26] : memref<25x128x128xbf16, #tpu.memory_space<vmem>>, vector<1x128x128xbf16>
    %58 = vector.shape_cast %57 : vector<1x128x128xbf16> to vector<128x128xbf16>
    %cst_27 = arith.constant dense<0.000000e+00> : vector<272x128xf32>
    %59 = tpu.matmul %56, %58, %cst_27 {dimension_numbers = #tpu.dot_dimension_numbers<[1], [0], [0], [1], [0, 0, 1, 1], [], []>} : vector<272x128xbf16>, vector<128x128xbf16>, vector<272x128xf32> -> vector<272x128xf32>
    %c0_28 = arith.constant 0 : index
    %c0_29 = arith.constant 0 : index
    %60 = vector.load %arg16[%c0_28, %c0_29] : memref<272x128xf32, #tpu.memory_space<vmem>>, vector<272x128xf32>
    tpu.vector_store %arg16[%c0_28, %c0_29], %59 {strides = array<i32>} : memref<272x128xf32, #tpu.memory_space<vmem>>, vector<272x128xf32>,
    %c2 = arith.constant 2 : index
    %c0_30 = arith.constant 0 : index
    %61 = vector.load %arg15[%c2, %c0_30] : memref<392x128xbf16, #tpu.memory_space<vmem>>, vector<272x128xbf16>
    %c1 = arith.constant 1 : index
    %c0_31 = arith.constant 0 : index
    %c0_32 = arith.constant 0 : index
    %62 = vector.load %arg5[%c1, %c0_31, %c0_32] : memref<25x128x128xbf16, #tpu.memory_space<vmem>>, vector<1x128x128xbf16>
    %63 = vector.shape_cast %62 : vector<1x128x128xbf16> to vector<128x128xbf16>
    %cst_33 = arith.constant dense<0.000000e+00> : vector<272x128xf32>
    %64 = tpu.matmul %61, %63, %cst_33 {dimension_numbers = #tpu.dot_dimension_numbers<[1], [0], [0], [1], [0, 0, 1, 1], [], []>} : vector<272x128xbf16>, vector<128x128xbf16>, vector<272x128xf32> -> vector<272x128xf32>
    %c0_34 = arith.constant 0 : index
    %c0_35 = arith.constant 0 : index
    %65 = vector.load %arg16[%c0_34, %c0_35] : memref<272x128xf32, #tpu.memory_space<vmem>>, vector<272x128xf32>
    %66 = arith.addf %65, %64 : vector<272x128xf32>
    %c0_36 = arith.constant 0 : index
    %c0_37 = arith.constant 0 : index
    %67 = vector.load %arg16[%c0_36, %c0_37] : memref<272x128xf32, #tpu.memory_space<vmem>>, vector<272x128xf32>
    tpu.vector_store %arg16[%c0_36, %c0_37], %66 {strides = array<i32>} : memref<272x128xf32, #tpu.memory_space<vmem>>, vector<272x128xf32>,
    %c4 = arith.constant 4 : index
    %c0_38 = arith.constant 0 : index
    %68 = vector.load %arg15[%c4, %c0_38] : memref<392x128xbf16, #tpu.memory_space<vmem>>, vector<272x128xbf16>
    %c2_39 = arith.constant 2 : index
    %c0_40 = arith.constant 0 : index
    %c0_41 = arith.constant 0 : index
    %69 = vector.load %arg5[%c2_39, %c0_40, %c0_41] : memref<25x128x128xbf16, #tpu.memory_space<vmem>>, vector<1x128x128xbf16>
    %70 = vector.shape_cast %69 : vector<1x128x128xbf16> to vector<128x128xbf16>
    %cst_42 = arith.constant dense<0.000000e+00> : vector<272x128xf32>
    %71 = tpu.matmul %68, %70, %cst_42 {dimension_numbers = #tpu.dot_dimension_numbers<[1], [0], [0], [1], [0, 0, 1, 1], [], []>} : vector<272x128xbf16>, vector<128x128xbf16>, vector<272x128xf32> -> vector<272x128xf32>
    %c0_43 = arith.constant 0 : index
    %c0_44 = arith.constant 0 : index
    %72 = vector.load %arg16[%c0_43, %c0_44] : memref<272x128xf32, #tpu.memory_space<vmem>>, vector<272x128xf32>
    %73 = arith.addf %72, %71 : vector<272x128xf32>
    %c0_45 = arith.constant 0 : index
    %c0_46 = arith.constant 0 : index
    %74 = vector.load %arg16[%c0_45, %c0_46] : memref<272x128xf32, #tpu.memory_space<vmem>>, vector<272x128xf32>
    tpu.vector_store %arg16[%c0_45, %c0_46], %73 {strides = array<i32>} : memref<272x128xf32, #tpu.memory_space<vmem>>, vector<272x128xf32>,
    %c6 = arith.constant 6 : index
    %c0_47 = arith.constant 0 : index
    %75 = vector.load %arg15[%c6, %c0_47] : memref<392x128xbf16, #tpu.memory_space<vmem>>, vector<272x128xbf16>
    %c3 = arith.constant 3 : index
    %c0_48 = arith.constant 0 : index
    %c0_49 = arith.constant 0 : index
    %76 = vector.load %arg5[%c3, %c0_48, %c0_49] : memref<25x128x128xbf16, #tpu.memory_space<vmem>>, vector<1x128x128xbf16>
    %77 = vector.shape_cast %76 : vector<1x128x128xbf16> to vector<128x128xbf16>
    %cst_50 = arith.constant dense<0.000000e+00> : vector<272x128xf32>
    %78 = tpu.matmul %75, %77, %cst_50 {dimension_numbers = #tpu.dot_dimension_numbers<[1], [0], [0], [1], [0, 0, 1, 1], [], []>} : vector<272x128xbf16>, vector<128x128xbf16>, vector<272x128xf32> -> vector<272x128xf32>
    %c0_51 = arith.constant 0 : index
    %c0_52 = arith.constant 0 : index
    %79 = vector.load %arg16[%c0_51, %c0_52] : memref<272x128xf32, #tpu.memory_space<vmem>>, vector<272x128xf32>
    %80 = arith.addf %79, %78 : vector<272x128xf32>
    %c0_53 = arith.constant 0 : index
    %c0_54 = arith.constant 0 : index
    %81 = vector.load %arg16[%c0_53, %c0_54] : memref<272x128xf32, #tpu.memory_space<vmem>>, vector<272x128xf32>
    tpu.vector_store %arg16[%c0_53, %c0_54], %80 {strides = array<i32>} : memref<272x128xf32, #tpu.memory_space<vmem>>, vector<272x128xf32>,
    %c8 = arith.constant 8 : index
    %c0_55 = arith.constant 0 : index
    %82 = vector.load %arg15[%c8, %c0_55] : memref<392x128xbf16, #tpu.memory_space<vmem>>, vector<272x128xbf16>
    %c4_56 = arith.constant 4 : index
    %c0_57 = arith.constant 0 : index
    %c0_58 = arith.constant 0 : index
    %83 = vector.load %arg5[%c4_56, %c0_57, %c0_58] : memref<25x128x128xbf16, #tpu.memory_space<vmem>>, vector<1x128x128xbf16>
    %84 = vector.shape_cast %83 : vector<1x128x128xbf16> to vector<128x128xbf16>
    %cst_59 = arith.constant dense<0.000000e+00> : vector<272x128xf32>
    %85 = tpu.matmul %82, %84, %cst_59 {dimension_numbers = #tpu.dot_dimension_numbers<[1], [0], [0], [1], [0, 0, 1, 1], [], []>} : vector<272x128xbf16>, vector<128x128xbf16>, vector<272x128xf32> -> vector<272x128xf32>
    %c0_60 = arith.constant 0 : index
    %c0_61 = arith.constant 0 : index
    %86 = vector.load %arg16[%c0_60, %c0_61] : memref<272x128xf32, #tpu.memory_space<vmem>>, vector<272x128xf32>
    %87 = arith.addf %86, %85 : vector<272x128xf32>
    %c0_62 = arith.constant 0 : index
    %c0_63 = arith.constant 0 : index
    %88 = vector.load %arg16[%c0_62, %c0_63] : memref<272x128xf32, #tpu.memory_space<vmem>>, vector<272x128xf32>
    tpu.vector_store %arg16[%c0_62, %c0_63], %87 {strides = array<i32>} : memref<272x128xf32, #tpu.memory_space<vmem>>, vector<272x128xf32>,
    %c28 = arith.constant 28 : index
    %c0_64 = arith.constant 0 : index
    %89 = vector.load %arg15[%c28, %c0_64] : memref<392x128xbf16, #tpu.memory_space<vmem>>, vector<272x128xbf16>
    %c5 = arith.constant 5 : index
    %c0_65 = arith.constant 0 : index
    %c0_66 = arith.constant 0 : index
    %90 = vector.load %arg5[%c5, %c0_65, %c0_66] : memref<25x128x128xbf16, #tpu.memory_space<vmem>>, vector<1x128x128xbf16>
    %91 = vector.shape_cast %90 : vector<1x128x128xbf16> to vector<128x128xbf16>
    %cst_67 = arith.constant dense<0.000000e+00> : vector<272x128xf32>
    %92 = tpu.matmul %89, %91, %cst_67 {dimension_numbers = #tpu.dot_dimension_numbers<[1], [0], [0], [1], [0, 0, 1, 1], [], []>} : vector<272x128xbf16>, vector<128x128xbf16>, vector<272x128xf32> -> vector<272x128xf32>
    %c0_68 = arith.constant 0 : index
    %c0_69 = arith.constant 0 : index
    %93 = vector.load %arg16[%c0_68, %c0_69] : memref<272x128xf32, #tpu.memory_space<vmem>>, vector<272x128xf32>
    %94 = arith.addf %93, %92 : vector<272x128xf32>
    %c0_70 = arith.constant 0 : index
    %c0_71 = arith.constant 0 : index
    %95 = vector.load %arg16[%c0_70, %c0_71] : memref<272x128xf32, #tpu.memory_space<vmem>>, vector<272x128xf32>
    tpu.vector_store %arg16[%c0_70, %c0_71], %94 {strides = array<i32>} : memref<272x128xf32, #tpu.memory_space<vmem>>, vector<272x128xf32>,
    %c30 = arith.constant 30 : index
    %c0_72 = arith.constant 0 : index
    %96 = vector.load %arg15[%c30, %c0_72] : memref<392x128xbf16, #tpu.memory_space<vmem>>, vector<272x128xbf16>
    %c6_73 = arith.constant 6 : index
    %c0_74 = arith.constant 0 : index
    %c0_75 = arith.constant 0 : index
    %97 = vector.load %arg5[%c6_73, %c0_74, %c0_75] : memref<25x128x128xbf16, #tpu.memory_space<vmem>>, vector<1x128x128xbf16>
    %98 = vector.shape_cast %97 : vector<1x128x128xbf16> to vector<128x128xbf16>
    %cst_76 = arith.constant dense<0.000000e+00> : vector<272x128xf32>
    %99 = tpu.matmul %96, %98, %cst_76 {dimension_numbers = #tpu.dot_dimension_numbers<[1], [0], [0], [1], [0, 0, 1, 1], [], []>} : vector<272x128xbf16>, vector<128x128xbf16>, vector<272x128xf32> -> vector<272x128xf32>
    %c0_77 = arith.constant 0 : index
    %c0_78 = arith.constant 0 : index
    %100 = vector.load %arg16[%c0_77, %c0_78] : memref<272x128xf32, #tpu.memory_space<vmem>>, vector<272x128xf32>
    %101 = arith.addf %100, %99 : vector<272x128xf32>
    %c0_79 = arith.constant 0 : index
    %c0_80 = arith.constant 0 : index
    %102 = vector.load %arg16[%c0_79, %c0_80] : memref<272x128xf32, #tpu.memory_space<vmem>>, vector<272x128xf32>
    tpu.vector_store %arg16[%c0_79, %c0_80], %101 {strides = array<i32>} : memref<272x128xf32, #tpu.memory_space<vmem>>, vector<272x128xf32>,
    %c32 = arith.constant 32 : index
    %c0_81 = arith.constant 0 : index
    %103 = vector.load %arg15[%c32, %c0_81] : memref<392x128xbf16, #tpu.memory_space<vmem>>, vector<272x128xbf16>
    %c7 = arith.constant 7 : index
    %c0_82 = arith.constant 0 : index
    %c0_83 = arith.constant 0 : index
    %104 = vector.load %arg5[%c7, %c0_82, %c0_83] : memref<25x128x128xbf16, #tpu.memory_space<vmem>>, vector<1x128x128xbf16>
    %105 = vector.shape_cast %104 : vector<1x128x128xbf16> to vector<128x128xbf16>
    %cst_84 = arith.constant dense<0.000000e+00> : vector<272x128xf32>
    %106 = tpu.matmul %103, %105, %cst_84 {dimension_numbers = #tpu.dot_dimension_numbers<[1], [0], [0], [1], [0, 0, 1, 1], [], []>} : vector<272x128xbf16>, vector<128x128xbf16>, vector<272x128xf32> -> vector<272x128xf32>
    %c0_85 = arith.constant 0 : index
    %c0_86 = arith.constant 0 : index
    %107 = vector.load %arg16[%c0_85, %c0_86] : memref<272x128xf32, #tpu.memory_space<vmem>>, vector<272x128xf32>
    %108 = arith.addf %107, %106 : vector<272x128xf32>
    %c0_87 = arith.constant 0 : index
    %c0_88 = arith.constant 0 : index
    %109 = vector.load %arg16[%c0_87, %c0_88] : memref<272x128xf32, #tpu.memory_space<vmem>>, vector<272x128xf32>
    tpu.vector_store %arg16[%c0_87, %c0_88], %108 {strides = array<i32>} : memref<272x128xf32, #tpu.memory_space<vmem>>, vector<272x128xf32>,
    %c34 = arith.constant 34 : index
    %c0_89 = arith.constant 0 : index
    %110 = vector.load %arg15[%c34, %c0_89] : memref<392x128xbf16, #tpu.memory_space<vmem>>, vector<272x128xbf16>
    %c8_90 = arith.constant 8 : index
    %c0_91 = arith.constant 0 : index
    %c0_92 = arith.constant 0 : index
    %111 = vector.load %arg5[%c8_90, %c0_91, %c0_92] : memref<25x128x128xbf16, #tpu.memory_space<vmem>>, vector<1x128x128xbf16>
    %112 = vector.shape_cast %111 : vector<1x128x128xbf16> to vector<128x128xbf16>
    %cst_93 = arith.constant dense<0.000000e+00> : vector<272x128xf32>
    %113 = tpu.matmul %110, %112, %cst_93 {dimension_numbers = #tpu.dot_dimension_numbers<[1], [0], [0], [1], [0, 0, 1, 1], [], []>} : vector<272x128xbf16>, vector<128x128xbf16>, vector<272x128xf32> -> vector<272x128xf32>
    %c0_94 = arith.constant 0 : index
    %c0_95 = arith.constant 0 : index
    %114 = vector.load %arg16[%c0_94, %c0_95] : memref<272x128xf32, #tpu.memory_space<vmem>>, vector<272x128xf32>
    %115 = arith.addf %114, %113 : vector<272x128xf32>
    %c0_96 = arith.constant 0 : index
    %c0_97 = arith.constant 0 : index
    %116 = vector.load %arg16[%c0_96, %c0_97] : memref<272x128xf32, #tpu.memory_space<vmem>>, vector<272x128xf32>
    tpu.vector_store %arg16[%c0_96, %c0_97], %115 {strides = array<i32>} : memref<272x128xf32, #tpu.memory_space<vmem>>, vector<272x128xf32>,
    %c36 = arith.constant 36 : index
    %c0_98 = arith.constant 0 : index
    %117 = vector.load %arg15[%c36, %c0_98] : memref<392x128xbf16, #tpu.memory_space<vmem>>, vector<272x128xbf16>
    %c9 = arith.constant 9 : index
    %c0_99 = arith.constant 0 : index
    %c0_100 = arith.constant 0 : index
    %118 = vector.load %arg5[%c9, %c0_99, %c0_100] : memref<25x128x128xbf16, #tpu.memory_space<vmem>>, vector<1x128x128xbf16>
    %119 = vector.shape_cast %118 : vector<1x128x128xbf16> to vector<128x128xbf16>
    %cst_101 = arith.constant dense<0.000000e+00> : vector<272x128xf32>
    %120 = tpu.matmul %117, %119, %cst_101 {dimension_numbers = #tpu.dot_dimension_numbers<[1], [0], [0], [1], [0, 0, 1, 1], [], []>} : vector<272x128xbf16>, vector<128x128xbf16>, vector<272x128xf32> -> vector<272x128xf32>
    %c0_102 = arith.constant 0 : index
    %c0_103 = arith.constant 0 : index
    %121 = vector.load %arg16[%c0_102, %c0_103] : memref<272x128xf32, #tpu.memory_space<vmem>>, vector<272x128xf32>
    %122 = arith.addf %121, %120 : vector<272x128xf32>
    %c0_104 = arith.constant 0 : index
    %c0_105 = arith.constant 0 : index
    %123 = vector.load %arg16[%c0_104, %c0_105] : memref<272x128xf32, #tpu.memory_space<vmem>>, vector<272x128xf32>
    tpu.vector_store %arg16[%c0_104, %c0_105], %122 {strides = array<i32>} : memref<272x128xf32, #tpu.memory_space<vmem>>, vector<272x128xf32>,
    %c56 = arith.constant 56 : index
    %c0_106 = arith.constant 0 : index
    %124 = vector.load %arg15[%c56, %c0_106] : memref<392x128xbf16, #tpu.memory_space<vmem>>, vector<272x128xbf16>
    %c10 = arith.constant 10 : index
    %c0_107 = arith.constant 0 : index
    %c0_108 = arith.constant 0 : index
    %125 = vector.load %arg5[%c10, %c0_107, %c0_108] : memref<25x128x128xbf16, #tpu.memory_space<vmem>>, vector<1x128x128xbf16>
    %126 = vector.shape_cast %125 : vector<1x128x128xbf16> to vector<128x128xbf16>
    %cst_109 = arith.constant dense<0.000000e+00> : vector<272x128xf32>
    %127 = tpu.matmul %124, %126, %cst_109 {dimension_numbers = #tpu.dot_dimension_numbers<[1], [0], [0], [1], [0, 0, 1, 1], [], []>} : vector<272x128xbf16>, vector<128x128xbf16>, vector<272x128xf32> -> vector<272x128xf32>
    %c0_110 = arith.constant 0 : index
    %c0_111 = arith.constant 0 : index
    %128 = vector.load %arg16[%c0_110, %c0_111] : memref<272x128xf32, #tpu.memory_space<vmem>>, vector<272x128xf32>
    %129 = arith.addf %128, %127 : vector<272x128xf32>
    %c0_112 = arith.constant 0 : index
    %c0_113 = arith.constant 0 : index
    %130 = vector.load %arg16[%c0_112, %c0_113] : memref<272x128xf32, #tpu.memory_space<vmem>>, vector<272x128xf32>
    tpu.vector_store %arg16[%c0_112, %c0_113], %129 {strides = array<i32>} : memref<272x128xf32, #tpu.memory_space<vmem>>, vector<272x128xf32>,
    %c58 = arith.constant 58 : index
    %c0_114 = arith.constant 0 : index
    %131 = vector.load %arg15[%c58, %c0_114] : memref<392x128xbf16, #tpu.memory_space<vmem>>, vector<272x128xbf16>
    %c11 = arith.constant 11 : index
    %c0_115 = arith.constant 0 : index
    %c0_116 = arith.constant 0 : index
    %132 = vector.load %arg5[%c11, %c0_115, %c0_116] : memref<25x128x128xbf16, #tpu.memory_space<vmem>>, vector<1x128x128xbf16>
    %133 = vector.shape_cast %132 : vector<1x128x128xbf16> to vector<128x128xbf16>
    %cst_117 = arith.constant dense<0.000000e+00> : vector<272x128xf32>
    %134 = tpu.matmul %131, %133, %cst_117 {dimension_numbers = #tpu.dot_dimension_numbers<[1], [0], [0], [1], [0, 0, 1, 1], [], []>} : vector<272x128xbf16>, vector<128x128xbf16>, vector<272x128xf32> -> vector<272x128xf32>
    %c0_118 = arith.constant 0 : index
    %c0_119 = arith.constant 0 : index
    %135 = vector.load %arg16[%c0_118, %c0_119] : memref<272x128xf32, #tpu.memory_space<vmem>>, vector<272x128xf32>
    %136 = arith.addf %135, %134 : vector<272x128xf32>
    %c0_120 = arith.constant 0 : index
    %c0_121 = arith.constant 0 : index
    %137 = vector.load %arg16[%c0_120, %c0_121] : memref<272x128xf32, #tpu.memory_space<vmem>>, vector<272x128xf32>
    tpu.vector_store %arg16[%c0_120, %c0_121], %136 {strides = array<i32>} : memref<272x128xf32, #tpu.memory_space<vmem>>, vector<272x128xf32>,
    %c60 = arith.constant 60 : index
    %c0_122 = arith.constant 0 : index
    %138 = vector.load %arg15[%c60, %c0_122] : memref<392x128xbf16, #tpu.memory_space<vmem>>, vector<272x128xbf16>
    %c12 = arith.constant 12 : index
    %c0_123 = arith.constant 0 : index
    %c0_124 = arith.constant 0 : index
    %139 = vector.load %arg5[%c12, %c0_123, %c0_124] : memref<25x128x128xbf16, #tpu.memory_space<vmem>>, vector<1x128x128xbf16>
    %140 = vector.shape_cast %139 : vector<1x128x128xbf16> to vector<128x128xbf16>
    %cst_125 = arith.constant dense<0.000000e+00> : vector<272x128xf32>
    %141 = tpu.matmul %138, %140, %cst_125 {dimension_numbers = #tpu.dot_dimension_numbers<[1], [0], [0], [1], [0, 0, 1, 1], [], []>} : vector<272x128xbf16>, vector<128x128xbf16>, vector<272x128xf32> -> vector<272x128xf32>
    %c0_126 = arith.constant 0 : index
    %c0_127 = arith.constant 0 : index
    %142 = vector.load %arg16[%c0_126, %c0_127] : memref<272x128xf32, #tpu.memory_space<vmem>>, vector<272x128xf32>
    %143 = arith.addf %142, %141 : vector<272x128xf32>
    %c0_128 = arith.constant 0 : index
    %c0_129 = arith.constant 0 : index
    %144 = vector.load %arg16[%c0_128, %c0_129] : memref<272x128xf32, #tpu.memory_space<vmem>>, vector<272x128xf32>
    tpu.vector_store %arg16[%c0_128, %c0_129], %143 {strides = array<i32>} : memref<272x128xf32, #tpu.memory_space<vmem>>, vector<272x128xf32>,
    %c62 = arith.constant 62 : index
    %c0_130 = arith.constant 0 : index
    %145 = vector.load %arg15[%c62, %c0_130] : memref<392x128xbf16, #tpu.memory_space<vmem>>, vector<272x128xbf16>
    %c13 = arith.constant 13 : index
    %c0_131 = arith.constant 0 : index
    %c0_132 = arith.constant 0 : index
    %146 = vector.load %arg5[%c13, %c0_131, %c0_132] : memref<25x128x128xbf16, #tpu.memory_space<vmem>>, vector<1x128x128xbf16>
    %147 = vector.shape_cast %146 : vector<1x128x128xbf16> to vector<128x128xbf16>
    %cst_133 = arith.constant dense<0.000000e+00> : vector<272x128xf32>
    %148 = tpu.matmul %145, %147, %cst_133 {dimension_numbers = #tpu.dot_dimension_numbers<[1], [0], [0], [1], [0, 0, 1, 1], [], []>} : vector<272x128xbf16>, vector<128x128xbf16>, vector<272x128xf32> -> vector<272x128xf32>
    %c0_134 = arith.constant 0 : index
    %c0_135 = arith.constant 0 : index
    %149 = vector.load %arg16[%c0_134, %c0_135] : memref<272x128xf32, #tpu.memory_space<vmem>>, vector<272x128xf32>
    %150 = arith.addf %149, %148 : vector<272x128xf32>
    %c0_136 = arith.constant 0 : index
    %c0_137 = arith.constant 0 : index
    %151 = vector.load %arg16[%c0_136, %c0_137] : memref<272x128xf32, #tpu.memory_space<vmem>>, vector<272x128xf32>
    tpu.vector_store %arg16[%c0_136, %c0_137], %150 {strides = array<i32>} : memref<272x128xf32, #tpu.memory_space<vmem>>, vector<272x128xf32>,
    %c64 = arith.constant 64 : index
    %c0_138 = arith.constant 0 : index
    %152 = vector.load %arg15[%c64, %c0_138] : memref<392x128xbf16, #tpu.memory_space<vmem>>, vector<272x128xbf16>
    %c14 = arith.constant 14 : index
    %c0_139 = arith.constant 0 : index
    %c0_140 = arith.constant 0 : index
    %153 = vector.load %arg5[%c14, %c0_139, %c0_140] : memref<25x128x128xbf16, #tpu.memory_space<vmem>>, vector<1x128x128xbf16>
    %154 = vector.shape_cast %153 : vector<1x128x128xbf16> to vector<128x128xbf16>
    %cst_141 = arith.constant dense<0.000000e+00> : vector<272x128xf32>
    %155 = tpu.matmul %152, %154, %cst_141 {dimension_numbers = #tpu.dot_dimension_numbers<[1], [0], [0], [1], [0, 0, 1, 1], [], []>} : vector<272x128xbf16>, vector<128x128xbf16>, vector<272x128xf32> -> vector<272x128xf32>
    %c0_142 = arith.constant 0 : index
    %c0_143 = arith.constant 0 : index
    %156 = vector.load %arg16[%c0_142, %c0_143] : memref<272x128xf32, #tpu.memory_space<vmem>>, vector<272x128xf32>
    %157 = arith.addf %156, %155 : vector<272x128xf32>
    %c0_144 = arith.constant 0 : index
    %c0_145 = arith.constant 0 : index
    %158 = vector.load %arg16[%c0_144, %c0_145] : memref<272x128xf32, #tpu.memory_space<vmem>>, vector<272x128xf32>
    tpu.vector_store %arg16[%c0_144, %c0_145], %157 {strides = array<i32>} : memref<272x128xf32, #tpu.memory_space<vmem>>, vector<272x128xf32>,
    %c84 = arith.constant 84 : index
    %c0_146 = arith.constant 0 : index
    %159 = vector.load %arg15[%c84, %c0_146] : memref<392x128xbf16, #tpu.memory_space<vmem>>, vector<272x128xbf16>
    %c15 = arith.constant 15 : index
    %c0_147 = arith.constant 0 : index
    %c0_148 = arith.constant 0 : index
    %160 = vector.load %arg5[%c15, %c0_147, %c0_148] : memref<25x128x128xbf16, #tpu.memory_space<vmem>>, vector<1x128x128xbf16>
    %161 = vector.shape_cast %160 : vector<1x128x128xbf16> to vector<128x128xbf16>
    %cst_149 = arith.constant dense<0.000000e+00> : vector<272x128xf32>
    %162 = tpu.matmul %159, %161, %cst_149 {dimension_numbers = #tpu.dot_dimension_numbers<[1], [0], [0], [1], [0, 0, 1, 1], [], []>} : vector<272x128xbf16>, vector<128x128xbf16>, vector<272x128xf32> -> vector<272x128xf32>
    %c0_150 = arith.constant 0 : index
    %c0_151 = arith.constant 0 : index
    %163 = vector.load %arg16[%c0_150, %c0_151] : memref<272x128xf32, #tpu.memory_space<vmem>>, vector<272x128xf32>
    %164 = arith.addf %163, %162 : vector<272x128xf32>
    %c0_152 = arith.constant 0 : index
    %c0_153 = arith.constant 0 : index
    %165 = vector.load %arg16[%c0_152, %c0_153] : memref<272x128xf32, #tpu.memory_space<vmem>>, vector<272x128xf32>
    tpu.vector_store %arg16[%c0_152, %c0_153], %164 {strides = array<i32>} : memref<272x128xf32, #tpu.memory_space<vmem>>, vector<272x128xf32>,
    %c86 = arith.constant 86 : index
    %c0_154 = arith.constant 0 : index
    %166 = vector.load %arg15[%c86, %c0_154] : memref<392x128xbf16, #tpu.memory_space<vmem>>, vector<272x128xbf16>
    %c16 = arith.constant 16 : index
    %c0_155 = arith.constant 0 : index
    %c0_156 = arith.constant 0 : index
    %167 = vector.load %arg5[%c16, %c0_155, %c0_156] : memref<25x128x128xbf16, #tpu.memory_space<vmem>>, vector<1x128x128xbf16>
    %168 = vector.shape_cast %167 : vector<1x128x128xbf16> to vector<128x128xbf16>
    %cst_157 = arith.constant dense<0.000000e+00> : vector<272x128xf32>
    %169 = tpu.matmul %166, %168, %cst_157 {dimension_numbers = #tpu.dot_dimension_numbers<[1], [0], [0], [1], [0, 0, 1, 1], [], []>} : vector<272x128xbf16>, vector<128x128xbf16>, vector<272x128xf32> -> vector<272x128xf32>
    %c0_158 = arith.constant 0 : index
    %c0_159 = arith.constant 0 : index
    %170 = vector.load %arg16[%c0_158, %c0_159] : memref<272x128xf32, #tpu.memory_space<vmem>>, vector<272x128xf32>
    %171 = arith.addf %170, %169 : vector<272x128xf32>
    %c0_160 = arith.constant 0 : index
    %c0_161 = arith.constant 0 : index
    %172 = vector.load %arg16[%c0_160, %c0_161] : memref<272x128xf32, #tpu.memory_space<vmem>>, vector<272x128xf32>
    tpu.vector_store %arg16[%c0_160, %c0_161], %171 {strides = array<i32>} : memref<272x128xf32, #tpu.memory_space<vmem>>, vector<272x128xf32>,
    %c88 = arith.constant 88 : index
    %c0_162 = arith.constant 0 : index
    %173 = vector.load %arg15[%c88, %c0_162] : memref<392x128xbf16, #tpu.memory_space<vmem>>, vector<272x128xbf16>
    %c17 = arith.constant 17 : index
    %c0_163 = arith.constant 0 : index
    %c0_164 = arith.constant 0 : index
    %174 = vector.load %arg5[%c17, %c0_163, %c0_164] : memref<25x128x128xbf16, #tpu.memory_space<vmem>>, vector<1x128x128xbf16>
    %175 = vector.shape_cast %174 : vector<1x128x128xbf16> to vector<128x128xbf16>
    %cst_165 = arith.constant dense<0.000000e+00> : vector<272x128xf32>
    %176 = tpu.matmul %173, %175, %cst_165 {dimension_numbers = #tpu.dot_dimension_numbers<[1], [0], [0], [1], [0, 0, 1, 1], [], []>} : vector<272x128xbf16>, vector<128x128xbf16>, vector<272x128xf32> -> vector<272x128xf32>
    %c0_166 = arith.constant 0 : index
    %c0_167 = arith.constant 0 : index
    %177 = vector.load %arg16[%c0_166, %c0_167] : memref<272x128xf32, #tpu.memory_space<vmem>>, vector<272x128xf32>
    %178 = arith.addf %177, %176 : vector<272x128xf32>
    %c0_168 = arith.constant 0 : index
    %c0_169 = arith.constant 0 : index
    %179 = vector.load %arg16[%c0_168, %c0_169] : memref<272x128xf32, #tpu.memory_space<vmem>>, vector<272x128xf32>
    tpu.vector_store %arg16[%c0_168, %c0_169], %178 {strides = array<i32>} : memref<272x128xf32, #tpu.memory_space<vmem>>, vector<272x128xf32>,
    %c90 = arith.constant 90 : index
    %c0_170 = arith.constant 0 : index
    %180 = vector.load %arg15[%c90, %c0_170] : memref<392x128xbf16, #tpu.memory_space<vmem>>, vector<272x128xbf16>
    %c18 = arith.constant 18 : index
    %c0_171 = arith.constant 0 : index
    %c0_172 = arith.constant 0 : index
    %181 = vector.load %arg5[%c18, %c0_171, %c0_172] : memref<25x128x128xbf16, #tpu.memory_space<vmem>>, vector<1x128x128xbf16>
    %182 = vector.shape_cast %181 : vector<1x128x128xbf16> to vector<128x128xbf16>
    %cst_173 = arith.constant dense<0.000000e+00> : vector<272x128xf32>
    %183 = tpu.matmul %180, %182, %cst_173 {dimension_numbers = #tpu.dot_dimension_numbers<[1], [0], [0], [1], [0, 0, 1, 1], [], []>} : vector<272x128xbf16>, vector<128x128xbf16>, vector<272x128xf32> -> vector<272x128xf32>
    %c0_174 = arith.constant 0 : index
    %c0_175 = arith.constant 0 : index
    %184 = vector.load %arg16[%c0_174, %c0_175] : memref<272x128xf32, #tpu.memory_space<vmem>>, vector<272x128xf32>
    %185 = arith.addf %184, %183 : vector<272x128xf32>
    %c0_176 = arith.constant 0 : index
    %c0_177 = arith.constant 0 : index
    %186 = vector.load %arg16[%c0_176, %c0_177] : memref<272x128xf32, #tpu.memory_space<vmem>>, vector<272x128xf32>
    tpu.vector_store %arg16[%c0_176, %c0_177], %185 {strides = array<i32>} : memref<272x128xf32, #tpu.memory_space<vmem>>, vector<272x128xf32>,
    %c92 = arith.constant 92 : index
    %c0_178 = arith.constant 0 : index
    %187 = vector.load %arg15[%c92, %c0_178] : memref<392x128xbf16, #tpu.memory_space<vmem>>, vector<272x128xbf16>
    %c19 = arith.constant 19 : index
    %c0_179 = arith.constant 0 : index
    %c0_180 = arith.constant 0 : index
    %188 = vector.load %arg5[%c19, %c0_179, %c0_180] : memref<25x128x128xbf16, #tpu.memory_space<vmem>>, vector<1x128x128xbf16>
    %189 = vector.shape_cast %188 : vector<1x128x128xbf16> to vector<128x128xbf16>
    %cst_181 = arith.constant dense<0.000000e+00> : vector<272x128xf32>
    %190 = tpu.matmul %187, %189, %cst_181 {dimension_numbers = #tpu.dot_dimension_numbers<[1], [0], [0], [1], [0, 0, 1, 1], [], []>} : vector<272x128xbf16>, vector<128x128xbf16>, vector<272x128xf32> -> vector<272x128xf32>
    %c0_182 = arith.constant 0 : index
    %c0_183 = arith.constant 0 : index
    %191 = vector.load %arg16[%c0_182, %c0_183] : memref<272x128xf32, #tpu.memory_space<vmem>>, vector<272x128xf32>
    %192 = arith.addf %191, %190 : vector<272x128xf32>
    %c0_184 = arith.constant 0 : index
    %c0_185 = arith.constant 0 : index
    %193 = vector.load %arg16[%c0_184, %c0_185] : memref<272x128xf32, #tpu.memory_space<vmem>>, vector<272x128xf32>
    tpu.vector_store %arg16[%c0_184, %c0_185], %192 {strides = array<i32>} : memref<272x128xf32, #tpu.memory_space<vmem>>, vector<272x128xf32>,
    %c112 = arith.constant 112 : index
    %c0_186 = arith.constant 0 : index
    %194 = vector.load %arg15[%c112, %c0_186] : memref<392x128xbf16, #tpu.memory_space<vmem>>, vector<272x128xbf16>
    %c20 = arith.constant 20 : index
    %c0_187 = arith.constant 0 : index
    %c0_188 = arith.constant 0 : index
    %195 = vector.load %arg5[%c20, %c0_187, %c0_188] : memref<25x128x128xbf16, #tpu.memory_space<vmem>>, vector<1x128x128xbf16>
    %196 = vector.shape_cast %195 : vector<1x128x128xbf16> to vector<128x128xbf16>
    %cst_189 = arith.constant dense<0.000000e+00> : vector<272x128xf32>
    %197 = tpu.matmul %194, %196, %cst_189 {dimension_numbers = #tpu.dot_dimension_numbers<[1], [0], [0], [1], [0, 0, 1, 1], [], []>} : vector<272x128xbf16>, vector<128x128xbf16>, vector<272x128xf32> -> vector<272x128xf32>
    %c0_190 = arith.constant 0 : index
    %c0_191 = arith.constant 0 : index
    %198 = vector.load %arg16[%c0_190, %c0_191] : memref<272x128xf32, #tpu.memory_space<vmem>>, vector<272x128xf32>
    %199 = arith.addf %198, %197 : vector<272x128xf32>
    %c0_192 = arith.constant 0 : index
    %c0_193 = arith.constant 0 : index
    %200 = vector.load %arg16[%c0_192, %c0_193] : memref<272x128xf32, #tpu.memory_space<vmem>>, vector<272x128xf32>
    tpu.vector_store %arg16[%c0_192, %c0_193], %199 {strides = array<i32>} : memref<272x128xf32, #tpu.memory_space<vmem>>, vector<272x128xf32>,
    %c114 = arith.constant 114 : index
    %c0_194 = arith.constant 0 : index
    %201 = vector.load %arg15[%c114, %c0_194] : memref<392x128xbf16, #tpu.memory_space<vmem>>, vector<272x128xbf16>
    %c21 = arith.constant 21 : index
    %c0_195 = arith.constant 0 : index
    %c0_196 = arith.constant 0 : index
    %202 = vector.load %arg5[%c21, %c0_195, %c0_196] : memref<25x128x128xbf16, #tpu.memory_space<vmem>>, vector<1x128x128xbf16>
    %203 = vector.shape_cast %202 : vector<1x128x128xbf16> to vector<128x128xbf16>
    %cst_197 = arith.constant dense<0.000000e+00> : vector<272x128xf32>
    %204 = tpu.matmul %201, %203, %cst_197 {dimension_numbers = #tpu.dot_dimension_numbers<[1], [0], [0], [1], [0, 0, 1, 1], [], []>} : vector<272x128xbf16>, vector<128x128xbf16>, vector<272x128xf32> -> vector<272x128xf32>
    %c0_198 = arith.constant 0 : index
    %c0_199 = arith.constant 0 : index
    %205 = vector.load %arg16[%c0_198, %c0_199] : memref<272x128xf32, #tpu.memory_space<vmem>>, vector<272x128xf32>
    %206 = arith.addf %205, %204 : vector<272x128xf32>
    %c0_200 = arith.constant 0 : index
    %c0_201 = arith.constant 0 : index
    %207 = vector.load %arg16[%c0_200, %c0_201] : memref<272x128xf32, #tpu.memory_space<vmem>>, vector<272x128xf32>
    tpu.vector_store %arg16[%c0_200, %c0_201], %206 {strides = array<i32>} : memref<272x128xf32, #tpu.memory_space<vmem>>, vector<272x128xf32>,
    %c116 = arith.constant 116 : index
    %c0_202 = arith.constant 0 : index
    %208 = vector.load %arg15[%c116, %c0_202] : memref<392x128xbf16, #tpu.memory_space<vmem>>, vector<272x128xbf16>
    %c22 = arith.constant 22 : index
    %c0_203 = arith.constant 0 : index
    %c0_204 = arith.constant 0 : index
    %209 = vector.load %arg5[%c22, %c0_203, %c0_204] : memref<25x128x128xbf16, #tpu.memory_space<vmem>>, vector<1x128x128xbf16>
    %210 = vector.shape_cast %209 : vector<1x128x128xbf16> to vector<128x128xbf16>
    %cst_205 = arith.constant dense<0.000000e+00> : vector<272x128xf32>
    %211 = tpu.matmul %208, %210, %cst_205 {dimension_numbers = #tpu.dot_dimension_numbers<[1], [0], [0], [1], [0, 0, 1, 1], [], []>} : vector<272x128xbf16>, vector<128x128xbf16>, vector<272x128xf32> -> vector<272x128xf32>
    %c0_206 = arith.constant 0 : index
    %c0_207 = arith.constant 0 : index
    %212 = vector.load %arg16[%c0_206, %c0_207] : memref<272x128xf32, #tpu.memory_space<vmem>>, vector<272x128xf32>
    %213 = arith.addf %212, %211 : vector<272x128xf32>
    %c0_208 = arith.constant 0 : index
    %c0_209 = arith.constant 0 : index
    %214 = vector.load %arg16[%c0_208, %c0_209] : memref<272x128xf32, #tpu.memory_space<vmem>>, vector<272x128xf32>
    tpu.vector_store %arg16[%c0_208, %c0_209], %213 {strides = array<i32>} : memref<272x128xf32, #tpu.memory_space<vmem>>, vector<272x128xf32>,
    %c118 = arith.constant 118 : index
    %c0_210 = arith.constant 0 : index
    %215 = vector.load %arg15[%c118, %c0_210] : memref<392x128xbf16, #tpu.memory_space<vmem>>, vector<272x128xbf16>
    %c23 = arith.constant 23 : index
    %c0_211 = arith.constant 0 : index
    %c0_212 = arith.constant 0 : index
    %216 = vector.load %arg5[%c23, %c0_211, %c0_212] : memref<25x128x128xbf16, #tpu.memory_space<vmem>>, vector<1x128x128xbf16>
    %217 = vector.shape_cast %216 : vector<1x128x128xbf16> to vector<128x128xbf16>
    %cst_213 = arith.constant dense<0.000000e+00> : vector<272x128xf32>
    %218 = tpu.matmul %215, %217, %cst_213 {dimension_numbers = #tpu.dot_dimension_numbers<[1], [0], [0], [1], [0, 0, 1, 1], [], []>} : vector<272x128xbf16>, vector<128x128xbf16>, vector<272x128xf32> -> vector<272x128xf32>
    %c0_214 = arith.constant 0 : index
    %c0_215 = arith.constant 0 : index
    %219 = vector.load %arg16[%c0_214, %c0_215] : memref<272x128xf32, #tpu.memory_space<vmem>>, vector<272x128xf32>
    %220 = arith.addf %219, %218 : vector<272x128xf32>
    %c0_216 = arith.constant 0 : index
    %c0_217 = arith.constant 0 : index
    %221 = vector.load %arg16[%c0_216, %c0_217] : memref<272x128xf32, #tpu.memory_space<vmem>>, vector<272x128xf32>
    tpu.vector_store %arg16[%c0_216, %c0_217], %220 {strides = array<i32>} : memref<272x128xf32, #tpu.memory_space<vmem>>, vector<272x128xf32>,
    %c120 = arith.constant 120 : index
    %c0_218 = arith.constant 0 : index
    %222 = vector.load %arg15[%c120, %c0_218] : memref<392x128xbf16, #tpu.memory_space<vmem>>, vector<272x128xbf16>
    %c24 = arith.constant 24 : index
    %c0_219 = arith.constant 0 : index
    %c0_220 = arith.constant 0 : index
    %223 = vector.load %arg5[%c24, %c0_219, %c0_220] : memref<25x128x128xbf16, #tpu.memory_space<vmem>>, vector<1x128x128xbf16>
    %224 = vector.shape_cast %223 : vector<1x128x128xbf16> to vector<128x128xbf16>
    %cst_221 = arith.constant dense<0.000000e+00> : vector<272x128xf32>
    %225 = tpu.matmul %222, %224, %cst_221 {dimension_numbers = #tpu.dot_dimension_numbers<[1], [0], [0], [1], [0, 0, 1, 1], [], []>} : vector<272x128xbf16>, vector<128x128xbf16>, vector<272x128xf32> -> vector<272x128xf32>
    %c0_222 = arith.constant 0 : index
    %c0_223 = arith.constant 0 : index
    %226 = vector.load %arg16[%c0_222, %c0_223] : memref<272x128xf32, #tpu.memory_space<vmem>>, vector<272x128xf32>
    %227 = arith.addf %226, %225 : vector<272x128xf32>
    %c0_224 = arith.constant 0 : index
    %c0_225 = arith.constant 0 : index
    %228 = vector.load %arg16[%c0_224, %c0_225] : memref<272x128xf32, #tpu.memory_space<vmem>>, vector<272x128xf32>
    tpu.vector_store %arg16[%c0_224, %c0_225], %227 {strides = array<i32>} : memref<272x128xf32, #tpu.memory_space<vmem>>, vector<272x128xf32>,
    %c0_226 = arith.constant 0 : index
    %c0_227 = arith.constant 0 : index
    %229 = vector.load %arg16[%c0_226, %c0_227] : memref<272x128xf32, #tpu.memory_space<vmem>>, vector<272x128xf32>
    %c0_228 = arith.constant 0 : index
    %c0_229 = arith.constant 0 : index
    %230 = vector.load %arg1[%c0_228, %c0_229] : memref<272x1xf32, #tpu.memory_space<vmem>>, vector<272x1xf32>
    %231 = vector.broadcast %230 : vector<272x1xf32> to vector<272x128xf32>
    %232 = arith.mulf %229, %231 : vector<272x128xf32>
    %cst_230 = arith.constant dense<0.000000e+00> : vector<128xf32>
    %233 = vector.multi_reduction <add>, %232, %cst_230 [0] : vector<272x128xf32> to vector<128xf32>
    %234 = vector.shape_cast %233 : vector<128xf32> to vector<1x128xf32>
    %235 = arith.mulf %232, %232 : vector<272x128xf32>
    %cst_231 = arith.constant dense<0.000000e+00> : vector<128xf32>
    %236 = vector.multi_reduction <add>, %235, %cst_231 [0] : vector<272x128xf32> to vector<128xf32>
    %237 = vector.shape_cast %236 : vector<128xf32> to vector<1x128xf32>
    %cst_232 = arith.constant 2.000000e+02 : f32
    %238 = vector.broadcast %cst_232 : f32 to vector<1x128xf32>
    %239 = arith.divf %234, %238 : vector<1x128xf32>
    %cst_233 = arith.constant 2.000000e+02 : f32
    %240 = vector.broadcast %cst_233 : f32 to vector<1x128xf32>
    %241 = arith.divf %237, %240 : vector<1x128xf32>
    %242 = arith.mulf %239, %239 : vector<1x128xf32>
    %243 = arith.subf %241, %242 : vector<1x128xf32>
    %c0_234 = arith.constant 0 : index
    %c0_235 = arith.constant 0 : index
    %244 = vector.load %arg6[%c0_234, %c0_235] : memref<1x128xf32, #tpu.memory_space<vmem>>, vector<1x128xf32>
    %cst_236 = arith.constant 9.99999974E-6 : f32
    %245 = vector.broadcast %cst_236 : f32 to vector<1x128xf32>
    %246 = arith.addf %243, %245 : vector<1x128xf32>
    %247 = math.rsqrt %246 : vector<1x128xf32>
    %248 = arith.mulf %244, %247 : vector<1x128xf32>
    %c0_237 = arith.constant 0 : index
    %c0_238 = arith.constant 0 : index
    %249 = vector.load %arg7[%c0_237, %c0_238] : memref<1x128xf32, #tpu.memory_space<vmem>>, vector<1x128xf32>
    %250 = arith.mulf %239, %248 : vector<1x128xf32>
    %251 = arith.subf %249, %250 : vector<1x128xf32>
    %c0_239 = arith.constant 0 : index
    %c0_240 = arith.constant 0 : index
    %252 = vector.load %arg16[%c0_239, %c0_240] : memref<272x128xf32, #tpu.memory_space<vmem>>, vector<2x128xf32>
    %c2_241 = arith.constant 2 : index
    %c0_242 = arith.constant 0 : index
    %253 = vector.load %arg16[%c2_241, %c0_242] : memref<272x128xf32, #tpu.memory_space<vmem>>, vector<2x128xf32>
    %c28_243 = arith.constant 28 : index
    %c0_244 = arith.constant 0 : index
    %254 = vector.load %arg16[%c28_243, %c0_244] : memref<272x128xf32, #tpu.memory_space<vmem>>, vector<2x128xf32>
    %c30_245 = arith.constant 30 : index
    %c0_246 = arith.constant 0 : index
    %255 = vector.load %arg16[%c30_245, %c0_246] : memref<272x128xf32, #tpu.memory_space<vmem>>, vector<2x128xf32>
    %256 = arith.maximumf %252, %253 : vector<2x128xf32>
    %257 = arith.maximumf %254, %255 : vector<2x128xf32>
    %258 = arith.maximumf %256, %257 : vector<2x128xf32>
    %259 = arith.minimumf %252, %253 : vector<2x128xf32>
    %260 = arith.minimumf %254, %255 : vector<2x128xf32>
    %261 = arith.minimumf %259, %260 : vector<2x128xf32>
    %cst_247 = arith.constant 0.000000e+00 : f32
    %262 = vector.broadcast %cst_247 : f32 to vector<1x128xf32>
    %263 = arith.cmpf oge, %248, %262 : vector<1x128xf32>
    %264 = vector.shape_cast %263 : vector<1x128xi1> to vector<1x128xi1>
    %265 = vector.broadcast %264 : vector<1x128xi1> to vector<2x128xi1>
    %266 = arith.select %265, %258, %261 : vector<2x128xi1>, vector<2x128xf32>
    %267 = vector.broadcast %248 : vector<1x128xf32> to vector<2x128xf32>
    %268 = arith.mulf %266, %267 : vector<2x128xf32>
    %269 = vector.broadcast %251 : vector<1x128xf32> to vector<2x128xf32>
    %270 = arith.addf %268, %269 : vector<2x128xf32>
    %cst_248 = arith.constant 0.000000e+00 : f32
    %271 = vector.broadcast %cst_248 : f32 to vector<2x128xf32>
    %272 = arith.maximumf %270, %271 : vector<2x128xf32>
    %273 = arith.truncf %272 : vector<2x128xf32> to vector<2x128xbf16>
    %c4_249 = arith.constant 4 : index
    %c0_250 = arith.constant 0 : index
    %274 = vector.load %arg16[%c4_249, %c0_250] : memref<272x128xf32, #tpu.memory_space<vmem>>, vector<2x128xf32>
    %c6_251 = arith.constant 6 : index
    %c0_252 = arith.constant 0 : index
    %275 = vector.load %arg16[%c6_251, %c0_252] : memref<272x128xf32, #tpu.memory_space<vmem>>, vector<2x128xf32>
    %c32_253 = arith.constant 32 : index
    %c0_254 = arith.constant 0 : index
    %276 = vector.load %arg16[%c32_253, %c0_254] : memref<272x128xf32, #tpu.memory_space<vmem>>, vector<2x128xf32>
    %c34_255 = arith.constant 34 : index
    %c0_256 = arith.constant 0 : index
    %277 = vector.load %arg16[%c34_255, %c0_256] : memref<272x128xf32, #tpu.memory_space<vmem>>, vector<2x128xf32>
    %278 = arith.maximumf %274, %275 : vector<2x128xf32>
    %279 = arith.maximumf %276, %277 : vector<2x128xf32>
    %280 = arith.maximumf %278, %279 : vector<2x128xf32>
    %281 = arith.minimumf %274, %275 : vector<2x128xf32>
    %282 = arith.minimumf %276, %277 : vector<2x128xf32>
    %283 = arith.minimumf %281, %282 : vector<2x128xf32>
    %cst_257 = arith.constant 0.000000e+00 : f32
    %284 = vector.broadcast %cst_257 : f32 to vector<1x128xf32>
    %285 = arith.cmpf oge, %248, %284 : vector<1x128xf32>
    %286 = vector.shape_cast %285 : vector<1x128xi1> to vector<1x128xi1>
    %287 = vector.broadcast %286 : vector<1x128xi1> to vector<2x128xi1>
    %288 = arith.select %287, %280, %283 : vector<2x128xi1>, vector<2x128xf32>
    %289 = vector.broadcast %248 : vector<1x128xf32> to vector<2x128xf32>
    %290 = arith.mulf %288, %289 : vector<2x128xf32>
    %291 = vector.broadcast %251 : vector<1x128xf32> to vector<2x128xf32>
    %292 = arith.addf %290, %291 : vector<2x128xf32>
    %cst_258 = arith.constant 0.000000e+00 : f32
    %293 = vector.broadcast %cst_258 : f32 to vector<2x128xf32>
    %294 = arith.maximumf %292, %293 : vector<2x128xf32>
    %295 = arith.truncf %294 : vector<2x128xf32> to vector<2x128xbf16>
    %c8_259 = arith.constant 8 : index
    %c0_260 = arith.constant 0 : index
    %296 = vector.load %arg16[%c8_259, %c0_260] : memref<272x128xf32, #tpu.memory_space<vmem>>, vector<2x128xf32>
    %c10_261 = arith.constant 10 : index
    %c0_262 = arith.constant 0 : index
    %297 = vector.load %arg16[%c10_261, %c0_262] : memref<272x128xf32, #tpu.memory_space<vmem>>, vector<2x128xf32>
    %c36_263 = arith.constant 36 : index
    %c0_264 = arith.constant 0 : index
    %298 = vector.load %arg16[%c36_263, %c0_264] : memref<272x128xf32, #tpu.memory_space<vmem>>, vector<2x128xf32>
    %c38 = arith.constant 38 : index
    %c0_265 = arith.constant 0 : index
    %299 = vector.load %arg16[%c38, %c0_265] : memref<272x128xf32, #tpu.memory_space<vmem>>, vector<2x128xf32>
    %300 = arith.maximumf %296, %297 : vector<2x128xf32>
    %301 = arith.maximumf %298, %299 : vector<2x128xf32>
    %302 = arith.maximumf %300, %301 : vector<2x128xf32>
    %303 = arith.minimumf %296, %297 : vector<2x128xf32>
    %304 = arith.minimumf %298, %299 : vector<2x128xf32>
    %305 = arith.minimumf %303, %304 : vector<2x128xf32>
    %cst_266 = arith.constant 0.000000e+00 : f32
    %306 = vector.broadcast %cst_266 : f32 to vector<1x128xf32>
    %307 = arith.cmpf oge, %248, %306 : vector<1x128xf32>
    %308 = vector.shape_cast %307 : vector<1x128xi1> to vector<1x128xi1>
    %309 = vector.broadcast %308 : vector<1x128xi1> to vector<2x128xi1>
    %310 = arith.select %309, %302, %305 : vector<2x128xi1>, vector<2x128xf32>
    %311 = vector.broadcast %248 : vector<1x128xf32> to vector<2x128xf32>
    %312 = arith.mulf %310, %311 : vector<2x128xf32>
    %313 = vector.broadcast %251 : vector<1x128xf32> to vector<2x128xf32>
    %314 = arith.addf %312, %313 : vector<2x128xf32>
    %cst_267 = arith.constant 0.000000e+00 : f32
    %315 = vector.broadcast %cst_267 : f32 to vector<2x128xf32>
    %316 = arith.maximumf %314, %315 : vector<2x128xf32>
    %317 = arith.truncf %316 : vector<2x128xf32> to vector<2x128xbf16>
    %c12_268 = arith.constant 12 : index
    %c0_269 = arith.constant 0 : index
    %318 = vector.load %arg16[%c12_268, %c0_269] : memref<272x128xf32, #tpu.memory_space<vmem>>, vector<2x128xf32>
    %c14_270 = arith.constant 14 : index
    %c0_271 = arith.constant 0 : index
    %319 = vector.load %arg16[%c14_270, %c0_271] : memref<272x128xf32, #tpu.memory_space<vmem>>, vector<2x128xf32>
    %c40 = arith.constant 40 : index
    %c0_272 = arith.constant 0 : index
    %320 = vector.load %arg16[%c40, %c0_272] : memref<272x128xf32, #tpu.memory_space<vmem>>, vector<2x128xf32>
    %c42 = arith.constant 42 : index
    %c0_273 = arith.constant 0 : index
    %321 = vector.load %arg16[%c42, %c0_273] : memref<272x128xf32, #tpu.memory_space<vmem>>, vector<2x128xf32>
    %322 = arith.maximumf %318, %319 : vector<2x128xf32>
    %323 = arith.maximumf %320, %321 : vector<2x128xf32>
    %324 = arith.maximumf %322, %323 : vector<2x128xf32>
    %325 = arith.minimumf %318, %319 : vector<2x128xf32>
    %326 = arith.minimumf %320, %321 : vector<2x128xf32>
    %327 = arith.minimumf %325, %326 : vector<2x128xf32>
    %cst_274 = arith.constant 0.000000e+00 : f32
    %328 = vector.broadcast %cst_274 : f32 to vector<1x128xf32>
    %329 = arith.cmpf oge, %248, %328 : vector<1x128xf32>
    %330 = vector.shape_cast %329 : vector<1x128xi1> to vector<1x128xi1>
    %331 = vector.broadcast %330 : vector<1x128xi1> to vector<2x128xi1>
    %332 = arith.select %331, %324, %327 : vector<2x128xi1>, vector<2x128xf32>
    %333 = vector.broadcast %248 : vector<1x128xf32> to vector<2x128xf32>
    %334 = arith.mulf %332, %333 : vector<2x128xf32>
    %335 = vector.broadcast %251 : vector<1x128xf32> to vector<2x128xf32>
    %336 = arith.addf %334, %335 : vector<2x128xf32>
    %cst_275 = arith.constant 0.000000e+00 : f32
    %337 = vector.broadcast %cst_275 : f32 to vector<2x128xf32>
    %338 = arith.maximumf %336, %337 : vector<2x128xf32>
    %339 = arith.truncf %338 : vector<2x128xf32> to vector<2x128xbf16>
    %c16_276 = arith.constant 16 : index
    %c0_277 = arith.constant 0 : index
    %340 = vector.load %arg16[%c16_276, %c0_277] : memref<272x128xf32, #tpu.memory_space<vmem>>, vector<2x128xf32>
    %c18_278 = arith.constant 18 : index
    %c0_279 = arith.constant 0 : index
    %341 = vector.load %arg16[%c18_278, %c0_279] : memref<272x128xf32, #tpu.memory_space<vmem>>, vector<2x128xf32>
    %c44 = arith.constant 44 : index
    %c0_280 = arith.constant 0 : index
    %342 = vector.load %arg16[%c44, %c0_280] : memref<272x128xf32, #tpu.memory_space<vmem>>, vector<2x128xf32>
    %c46 = arith.constant 46 : index
    %c0_281 = arith.constant 0 : index
    %343 = vector.load %arg16[%c46, %c0_281] : memref<272x128xf32, #tpu.memory_space<vmem>>, vector<2x128xf32>
    %344 = arith.maximumf %340, %341 : vector<2x128xf32>
    %345 = arith.maximumf %342, %343 : vector<2x128xf32>
    %346 = arith.maximumf %344, %345 : vector<2x128xf32>
    %347 = arith.minimumf %340, %341 : vector<2x128xf32>
    %348 = arith.minimumf %342, %343 : vector<2x128xf32>
    %349 = arith.minimumf %347, %348 : vector<2x128xf32>
    %cst_282 = arith.constant 0.000000e+00 : f32
    %350 = vector.broadcast %cst_282 : f32 to vector<1x128xf32>
    %351 = arith.cmpf oge, %248, %350 : vector<1x128xf32>
    %352 = vector.shape_cast %351 : vector<1x128xi1> to vector<1x128xi1>
    %353 = vector.broadcast %352 : vector<1x128xi1> to vector<2x128xi1>
    %354 = arith.select %353, %346, %349 : vector<2x128xi1>, vector<2x128xf32>
    %355 = vector.broadcast %248 : vector<1x128xf32> to vector<2x128xf32>
    %356 = arith.mulf %354, %355 : vector<2x128xf32>
    %357 = vector.broadcast %251 : vector<1x128xf32> to vector<2x128xf32>
    %358 = arith.addf %356, %357 : vector<2x128xf32>
    %cst_283 = arith.constant 0.000000e+00 : f32
    %359 = vector.broadcast %cst_283 : f32 to vector<2x128xf32>
    %360 = arith.maximumf %358, %359 : vector<2x128xf32>
    %361 = arith.truncf %360 : vector<2x128xf32> to vector<2x128xbf16>
    %c56_284 = arith.constant 56 : index
    %c0_285 = arith.constant 0 : index
    %362 = vector.load %arg16[%c56_284, %c0_285] : memref<272x128xf32, #tpu.memory_space<vmem>>, vector<2x128xf32>
    %c58_286 = arith.constant 58 : index
    %c0_287 = arith.constant 0 : index
    %363 = vector.load %arg16[%c58_286, %c0_287] : memref<272x128xf32, #tpu.memory_space<vmem>>, vector<2x128xf32>
    %c84_288 = arith.constant 84 : index
    %c0_289 = arith.constant 0 : index
    %364 = vector.load %arg16[%c84_288, %c0_289] : memref<272x128xf32, #tpu.memory_space<vmem>>, vector<2x128xf32>
    %c86_290 = arith.constant 86 : index
    %c0_291 = arith.constant 0 : index
    %365 = vector.load %arg16[%c86_290, %c0_291] : memref<272x128xf32, #tpu.memory_space<vmem>>, vector<2x128xf32>
    %366 = arith.maximumf %362, %363 : vector<2x128xf32>
    %367 = arith.maximumf %364, %365 : vector<2x128xf32>
    %368 = arith.maximumf %366, %367 : vector<2x128xf32>
    %369 = arith.minimumf %362, %363 : vector<2x128xf32>
    %370 = arith.minimumf %364, %365 : vector<2x128xf32>
    %371 = arith.minimumf %369, %370 : vector<2x128xf32>
    %cst_292 = arith.constant 0.000000e+00 : f32
    %372 = vector.broadcast %cst_292 : f32 to vector<1x128xf32>
    %373 = arith.cmpf oge, %248, %372 : vector<1x128xf32>
    %374 = vector.shape_cast %373 : vector<1x128xi1> to vector<1x128xi1>
    %375 = vector.broadcast %374 : vector<1x128xi1> to vector<2x128xi1>
    %376 = arith.select %375, %368, %371 : vector<2x128xi1>, vector<2x128xf32>
    %377 = vector.broadcast %248 : vector<1x128xf32> to vector<2x128xf32>
    %378 = arith.mulf %376, %377 : vector<2x128xf32>
    %379 = vector.broadcast %251 : vector<1x128xf32> to vector<2x128xf32>
    %380 = arith.addf %378, %379 : vector<2x128xf32>
    %cst_293 = arith.constant 0.000000e+00 : f32
    %381 = vector.broadcast %cst_293 : f32 to vector<2x128xf32>
    %382 = arith.maximumf %380, %381 : vector<2x128xf32>
    %383 = arith.truncf %382 : vector<2x128xf32> to vector<2x128xbf16>
    %c60_294 = arith.constant 60 : index
    %c0_295 = arith.constant 0 : index
    %384 = vector.load %arg16[%c60_294, %c0_295] : memref<272x128xf32, #tpu.memory_space<vmem>>, vector<2x128xf32>
    %c62_296 = arith.constant 62 : index
    %c0_297 = arith.constant 0 : index
    %385 = vector.load %arg16[%c62_296, %c0_297] : memref<272x128xf32, #tpu.memory_space<vmem>>, vector<2x128xf32>
    %c88_298 = arith.constant 88 : index
    %c0_299 = arith.constant 0 : index
    %386 = vector.load %arg16[%c88_298, %c0_299] : memref<272x128xf32, #tpu.memory_space<vmem>>, vector<2x128xf32>
    %c90_300 = arith.constant 90 : index
    %c0_301 = arith.constant 0 : index
    %387 = vector.load %arg16[%c90_300, %c0_301] : memref<272x128xf32, #tpu.memory_space<vmem>>, vector<2x128xf32>
    %388 = arith.maximumf %384, %385 : vector<2x128xf32>
    %389 = arith.maximumf %386, %387 : vector<2x128xf32>
    %390 = arith.maximumf %388, %389 : vector<2x128xf32>
    %391 = arith.minimumf %384, %385 : vector<2x128xf32>
    %392 = arith.minimumf %386, %387 : vector<2x128xf32>
    %393 = arith.minimumf %391, %392 : vector<2x128xf32>
    %cst_302 = arith.constant 0.000000e+00 : f32
    %394 = vector.broadcast %cst_302 : f32 to vector<1x128xf32>
    %395 = arith.cmpf oge, %248, %394 : vector<1x128xf32>
    %396 = vector.shape_cast %395 : vector<1x128xi1> to vector<1x128xi1>
    %397 = vector.broadcast %396 : vector<1x128xi1> to vector<2x128xi1>
    %398 = arith.select %397, %390, %393 : vector<2x128xi1>, vector<2x128xf32>
    %399 = vector.broadcast %248 : vector<1x128xf32> to vector<2x128xf32>
    %400 = arith.mulf %398, %399 : vector<2x128xf32>
    %401 = vector.broadcast %251 : vector<1x128xf32> to vector<2x128xf32>
    %402 = arith.addf %400, %401 : vector<2x128xf32>
    %cst_303 = arith.constant 0.000000e+00 : f32
    %403 = vector.broadcast %cst_303 : f32 to vector<2x128xf32>
    %404 = arith.maximumf %402, %403 : vector<2x128xf32>
    %405 = arith.truncf %404 : vector<2x128xf32> to vector<2x128xbf16>
    %c64_304 = arith.constant 64 : index
    %c0_305 = arith.constant 0 : index
    %406 = vector.load %arg16[%c64_304, %c0_305] : memref<272x128xf32, #tpu.memory_space<vmem>>, vector<2x128xf32>
    %c66 = arith.constant 66 : index
    %c0_306 = arith.constant 0 : index
    %407 = vector.load %arg16[%c66, %c0_306] : memref<272x128xf32, #tpu.memory_space<vmem>>, vector<2x128xf32>
    %c92_307 = arith.constant 92 : index
    %c0_308 = arith.constant 0 : index
    %408 = vector.load %arg16[%c92_307, %c0_308] : memref<272x128xf32, #tpu.memory_space<vmem>>, vector<2x128xf32>
    %c94 = arith.constant 94 : index
    %c0_309 = arith.constant 0 : index
    %409 = vector.load %arg16[%c94, %c0_309] : memref<272x128xf32, #tpu.memory_space<vmem>>, vector<2x128xf32>
    %410 = arith.maximumf %406, %407 : vector<2x128xf32>
    %411 = arith.maximumf %408, %409 : vector<2x128xf32>
    %412 = arith.maximumf %410, %411 : vector<2x128xf32>
    %413 = arith.minimumf %406, %407 : vector<2x128xf32>
    %414 = arith.minimumf %408, %409 : vector<2x128xf32>
    %415 = arith.minimumf %413, %414 : vector<2x128xf32>
    %cst_310 = arith.constant 0.000000e+00 : f32
    %416 = vector.broadcast %cst_310 : f32 to vector<1x128xf32>
    %417 = arith.cmpf oge, %248, %416 : vector<1x128xf32>
    %418 = vector.shape_cast %417 : vector<1x128xi1> to vector<1x128xi1>
    %419 = vector.broadcast %418 : vector<1x128xi1> to vector<2x128xi1>
    %420 = arith.select %419, %412, %415 : vector<2x128xi1>, vector<2x128xf32>
    %421 = vector.broadcast %248 : vector<1x128xf32> to vector<2x128xf32>
    %422 = arith.mulf %420, %421 : vector<2x128xf32>
    %423 = vector.broadcast %251 : vector<1x128xf32> to vector<2x128xf32>
    %424 = arith.addf %422, %423 : vector<2x128xf32>
    %cst_311 = arith.constant 0.000000e+00 : f32
    %425 = vector.broadcast %cst_311 : f32 to vector<2x128xf32>
    %426 = arith.maximumf %424, %425 : vector<2x128xf32>
    %427 = arith.truncf %426 : vector<2x128xf32> to vector<2x128xbf16>
    %c68 = arith.constant 68 : index
    %c0_312 = arith.constant 0 : index
    %428 = vector.load %arg16[%c68, %c0_312] : memref<272x128xf32, #tpu.memory_space<vmem>>, vector<2x128xf32>
    %c70 = arith.constant 70 : index
    %c0_313 = arith.constant 0 : index
    %429 = vector.load %arg16[%c70, %c0_313] : memref<272x128xf32, #tpu.memory_space<vmem>>, vector<2x128xf32>
    %c96 = arith.constant 96 : index
    %c0_314 = arith.constant 0 : index
    %430 = vector.load %arg16[%c96, %c0_314] : memref<272x128xf32, #tpu.memory_space<vmem>>, vector<2x128xf32>
    %c98 = arith.constant 98 : index
    %c0_315 = arith.constant 0 : index
    %431 = vector.load %arg16[%c98, %c0_315] : memref<272x128xf32, #tpu.memory_space<vmem>>, vector<2x128xf32>
    %432 = arith.maximumf %428, %429 : vector<2x128xf32>
    %433 = arith.maximumf %430, %431 : vector<2x128xf32>
    %434 = arith.maximumf %432, %433 : vector<2x128xf32>
    %435 = arith.minimumf %428, %429 : vector<2x128xf32>
    %436 = arith.minimumf %430, %431 : vector<2x128xf32>
    %437 = arith.minimumf %435, %436 : vector<2x128xf32>
    %cst_316 = arith.constant 0.000000e+00 : f32
    %438 = vector.broadcast %cst_316 : f32 to vector<1x128xf32>
    %439 = arith.cmpf oge, %248, %438 : vector<1x128xf32>
    %440 = vector.shape_cast %439 : vector<1x128xi1> to vector<1x128xi1>
    %441 = vector.broadcast %440 : vector<1x128xi1> to vector<2x128xi1>
    %442 = arith.select %441, %434, %437 : vector<2x128xi1>, vector<2x128xf32>
    %443 = vector.broadcast %248 : vector<1x128xf32> to vector<2x128xf32>
    %444 = arith.mulf %442, %443 : vector<2x128xf32>
    %445 = vector.broadcast %251 : vector<1x128xf32> to vector<2x128xf32>
    %446 = arith.addf %444, %445 : vector<2x128xf32>
    %cst_317 = arith.constant 0.000000e+00 : f32
    %447 = vector.broadcast %cst_317 : f32 to vector<2x128xf32>
    %448 = arith.maximumf %446, %447 : vector<2x128xf32>
    %449 = arith.truncf %448 : vector<2x128xf32> to vector<2x128xbf16>
    %c72 = arith.constant 72 : index
    %c0_318 = arith.constant 0 : index
    %450 = vector.load %arg16[%c72, %c0_318] : memref<272x128xf32, #tpu.memory_space<vmem>>, vector<2x128xf32>
    %c74 = arith.constant 74 : index
    %c0_319 = arith.constant 0 : index
    %451 = vector.load %arg16[%c74, %c0_319] : memref<272x128xf32, #tpu.memory_space<vmem>>, vector<2x128xf32>
    %c100 = arith.constant 100 : index
    %c0_320 = arith.constant 0 : index
    %452 = vector.load %arg16[%c100, %c0_320] : memref<272x128xf32, #tpu.memory_space<vmem>>, vector<2x128xf32>
    %c102 = arith.constant 102 : index
    %c0_321 = arith.constant 0 : index
    %453 = vector.load %arg16[%c102, %c0_321] : memref<272x128xf32, #tpu.memory_space<vmem>>, vector<2x128xf32>
    %454 = arith.maximumf %450, %451 : vector<2x128xf32>
    %455 = arith.maximumf %452, %453 : vector<2x128xf32>
    %456 = arith.maximumf %454, %455 : vector<2x128xf32>
    %457 = arith.minimumf %450, %451 : vector<2x128xf32>
    %458 = arith.minimumf %452, %453 : vector<2x128xf32>
    %459 = arith.minimumf %457, %458 : vector<2x128xf32>
    %cst_322 = arith.constant 0.000000e+00 : f32
    %460 = vector.broadcast %cst_322 : f32 to vector<1x128xf32>
    %461 = arith.cmpf oge, %248, %460 : vector<1x128xf32>
    %462 = vector.shape_cast %461 : vector<1x128xi1> to vector<1x128xi1>
    %463 = vector.broadcast %462 : vector<1x128xi1> to vector<2x128xi1>
    %464 = arith.select %463, %456, %459 : vector<2x128xi1>, vector<2x128xf32>
    %465 = vector.broadcast %248 : vector<1x128xf32> to vector<2x128xf32>
    %466 = arith.mulf %464, %465 : vector<2x128xf32>
    %467 = vector.broadcast %251 : vector<1x128xf32> to vector<2x128xf32>
    %468 = arith.addf %466, %467 : vector<2x128xf32>
    %cst_323 = arith.constant 0.000000e+00 : f32
    %469 = vector.broadcast %cst_323 : f32 to vector<2x128xf32>
    %470 = arith.maximumf %468, %469 : vector<2x128xf32>
    %471 = arith.truncf %470 : vector<2x128xf32> to vector<2x128xbf16>
    %c112_324 = arith.constant 112 : index
    %c0_325 = arith.constant 0 : index
    %472 = vector.load %arg16[%c112_324, %c0_325] : memref<272x128xf32, #tpu.memory_space<vmem>>, vector<2x128xf32>
    %c114_326 = arith.constant 114 : index
    %c0_327 = arith.constant 0 : index
    %473 = vector.load %arg16[%c114_326, %c0_327] : memref<272x128xf32, #tpu.memory_space<vmem>>, vector<2x128xf32>
    %c140 = arith.constant 140 : index
    %c0_328 = arith.constant 0 : index
    %474 = vector.load %arg16[%c140, %c0_328] : memref<272x128xf32, #tpu.memory_space<vmem>>, vector<2x128xf32>
    %c142 = arith.constant 142 : index
    %c0_329 = arith.constant 0 : index
    %475 = vector.load %arg16[%c142, %c0_329] : memref<272x128xf32, #tpu.memory_space<vmem>>, vector<2x128xf32>
    %476 = arith.maximumf %472, %473 : vector<2x128xf32>
    %477 = arith.maximumf %474, %475 : vector<2x128xf32>
    %478 = arith.maximumf %476, %477 : vector<2x128xf32>
    %479 = arith.minimumf %472, %473 : vector<2x128xf32>
    %480 = arith.minimumf %474, %475 : vector<2x128xf32>
    %481 = arith.minimumf %479, %480 : vector<2x128xf32>
    %cst_330 = arith.constant 0.000000e+00 : f32
    %482 = vector.broadcast %cst_330 : f32 to vector<1x128xf32>
    %483 = arith.cmpf oge, %248, %482 : vector<1x128xf32>
    %484 = vector.shape_cast %483 : vector<1x128xi1> to vector<1x128xi1>
    %485 = vector.broadcast %484 : vector<1x128xi1> to vector<2x128xi1>
    %486 = arith.select %485, %478, %481 : vector<2x128xi1>, vector<2x128xf32>
    %487 = vector.broadcast %248 : vector<1x128xf32> to vector<2x128xf32>
    %488 = arith.mulf %486, %487 : vector<2x128xf32>
    %489 = vector.broadcast %251 : vector<1x128xf32> to vector<2x128xf32>
    %490 = arith.addf %488, %489 : vector<2x128xf32>
    %cst_331 = arith.constant 0.000000e+00 : f32
    %491 = vector.broadcast %cst_331 : f32 to vector<2x128xf32>
    %492 = arith.maximumf %490, %491 : vector<2x128xf32>
    %493 = arith.truncf %492 : vector<2x128xf32> to vector<2x128xbf16>
    %c116_332 = arith.constant 116 : index
    %c0_333 = arith.constant 0 : index
    %494 = vector.load %arg16[%c116_332, %c0_333] : memref<272x128xf32, #tpu.memory_space<vmem>>, vector<2x128xf32>
    %c118_334 = arith.constant 118 : index
    %c0_335 = arith.constant 0 : index
    %495 = vector.load %arg16[%c118_334, %c0_335] : memref<272x128xf32, #tpu.memory_space<vmem>>, vector<2x128xf32>
    %c144 = arith.constant 144 : index
    %c0_336 = arith.constant 0 : index
    %496 = vector.load %arg16[%c144, %c0_336] : memref<272x128xf32, #tpu.memory_space<vmem>>, vector<2x128xf32>
    %c146 = arith.constant 146 : index
    %c0_337 = arith.constant 0 : index
    %497 = vector.load %arg16[%c146, %c0_337] : memref<272x128xf32, #tpu.memory_space<vmem>>, vector<2x128xf32>
    %498 = arith.maximumf %494, %495 : vector<2x128xf32>
    %499 = arith.maximumf %496, %497 : vector<2x128xf32>
    %500 = arith.maximumf %498, %499 : vector<2x128xf32>
    %501 = arith.minimumf %494, %495 : vector<2x128xf32>
    %502 = arith.minimumf %496, %497 : vector<2x128xf32>
    %503 = arith.minimumf %501, %502 : vector<2x128xf32>
    %cst_338 = arith.constant 0.000000e+00 : f32
    %504 = vector.broadcast %cst_338 : f32 to vector<1x128xf32>
    %505 = arith.cmpf oge, %248, %504 : vector<1x128xf32>
    %506 = vector.shape_cast %505 : vector<1x128xi1> to vector<1x128xi1>
    %507 = vector.broadcast %506 : vector<1x128xi1> to vector<2x128xi1>
    %508 = arith.select %507, %500, %503 : vector<2x128xi1>, vector<2x128xf32>
    %509 = vector.broadcast %248 : vector<1x128xf32> to vector<2x128xf32>
    %510 = arith.mulf %508, %509 : vector<2x128xf32>
    %511 = vector.broadcast %251 : vector<1x128xf32> to vector<2x128xf32>
    %512 = arith.addf %510, %511 : vector<2x128xf32>
    %cst_339 = arith.constant 0.000000e+00 : f32
    %513 = vector.broadcast %cst_339 : f32 to vector<2x128xf32>
    %514 = arith.maximumf %512, %513 : vector<2x128xf32>
    %515 = arith.truncf %514 : vector<2x128xf32> to vector<2x128xbf16>
    %c120_340 = arith.constant 120 : index
    %c0_341 = arith.constant 0 : index
    %516 = vector.load %arg16[%c120_340, %c0_341] : memref<272x128xf32, #tpu.memory_space<vmem>>, vector<2x128xf32>
    %c122 = arith.constant 122 : index
    %c0_342 = arith.constant 0 : index
    %517 = vector.load %arg16[%c122, %c0_342] : memref<272x128xf32, #tpu.memory_space<vmem>>, vector<2x128xf32>
    %c148 = arith.constant 148 : index
    %c0_343 = arith.constant 0 : index
    %518 = vector.load %arg16[%c148, %c0_343] : memref<272x128xf32, #tpu.memory_space<vmem>>, vector<2x128xf32>
    %c150 = arith.constant 150 : index
    %c0_344 = arith.constant 0 : index
    %519 = vector.load %arg16[%c150, %c0_344] : memref<272x128xf32, #tpu.memory_space<vmem>>, vector<2x128xf32>
    %520 = arith.maximumf %516, %517 : vector<2x128xf32>
    %521 = arith.maximumf %518, %519 : vector<2x128xf32>
    %522 = arith.maximumf %520, %521 : vector<2x128xf32>
    %523 = arith.minimumf %516, %517 : vector<2x128xf32>
    %524 = arith.minimumf %518, %519 : vector<2x128xf32>
    %525 = arith.minimumf %523, %524 : vector<2x128xf32>
    %cst_345 = arith.constant 0.000000e+00 : f32
    %526 = vector.broadcast %cst_345 : f32 to vector<1x128xf32>
    %527 = arith.cmpf oge, %248, %526 : vector<1x128xf32>
    %528 = vector.shape_cast %527 : vector<1x128xi1> to vector<1x128xi1>
    %529 = vector.broadcast %528 : vector<1x128xi1> to vector<2x128xi1>
    %530 = arith.select %529, %522, %525 : vector<2x128xi1>, vector<2x128xf32>
    %531 = vector.broadcast %248 : vector<1x128xf32> to vector<2x128xf32>
    %532 = arith.mulf %530, %531 : vector<2x128xf32>
    %533 = vector.broadcast %251 : vector<1x128xf32> to vector<2x128xf32>
    %534 = arith.addf %532, %533 : vector<2x128xf32>
    %cst_346 = arith.constant 0.000000e+00 : f32
    %535 = vector.broadcast %cst_346 : f32 to vector<2x128xf32>
    %536 = arith.maximumf %534, %535 : vector<2x128xf32>
    %537 = arith.truncf %536 : vector<2x128xf32> to vector<2x128xbf16>
    %c124 = arith.constant 124 : index
    %c0_347 = arith.constant 0 : index
    %538 = vector.load %arg16[%c124, %c0_347] : memref<272x128xf32, #tpu.memory_space<vmem>>, vector<2x128xf32>
    %c126 = arith.constant 126 : index
    %c0_348 = arith.constant 0 : index
    %539 = vector.load %arg16[%c126, %c0_348] : memref<272x128xf32, #tpu.memory_space<vmem>>, vector<2x128xf32>
    %c152 = arith.constant 152 : index
    %c0_349 = arith.constant 0 : index
    %540 = vector.load %arg16[%c152, %c0_349] : memref<272x128xf32, #tpu.memory_space<vmem>>, vector<2x128xf32>
    %c154 = arith.constant 154 : index
    %c0_350 = arith.constant 0 : index
    %541 = vector.load %arg16[%c154, %c0_350] : memref<272x128xf32, #tpu.memory_space<vmem>>, vector<2x128xf32>
    %542 = arith.maximumf %538, %539 : vector<2x128xf32>
    %543 = arith.maximumf %540, %541 : vector<2x128xf32>
    %544 = arith.maximumf %542, %543 : vector<2x128xf32>
    %545 = arith.minimumf %538, %539 : vector<2x128xf32>
    %546 = arith.minimumf %540, %541 : vector<2x128xf32>
    %547 = arith.minimumf %545, %546 : vector<2x128xf32>
    %cst_351 = arith.constant 0.000000e+00 : f32
    %548 = vector.broadcast %cst_351 : f32 to vector<1x128xf32>
    %549 = arith.cmpf oge, %248, %548 : vector<1x128xf32>
    %550 = vector.shape_cast %549 : vector<1x128xi1> to vector<1x128xi1>
    %551 = vector.broadcast %550 : vector<1x128xi1> to vector<2x128xi1>
    %552 = arith.select %551, %544, %547 : vector<2x128xi1>, vector<2x128xf32>
    %553 = vector.broadcast %248 : vector<1x128xf32> to vector<2x128xf32>
    %554 = arith.mulf %552, %553 : vector<2x128xf32>
    %555 = vector.broadcast %251 : vector<1x128xf32> to vector<2x128xf32>
    %556 = arith.addf %554, %555 : vector<2x128xf32>
    %cst_352 = arith.constant 0.000000e+00 : f32
    %557 = vector.broadcast %cst_352 : f32 to vector<2x128xf32>
    %558 = arith.maximumf %556, %557 : vector<2x128xf32>
    %559 = arith.truncf %558 : vector<2x128xf32> to vector<2x128xbf16>
    %c128 = arith.constant 128 : index
    %c0_353 = arith.constant 0 : index
    %560 = vector.load %arg16[%c128, %c0_353] : memref<272x128xf32, #tpu.memory_space<vmem>>, vector<2x128xf32>
    %c130 = arith.constant 130 : index
    %c0_354 = arith.constant 0 : index
    %561 = vector.load %arg16[%c130, %c0_354] : memref<272x128xf32, #tpu.memory_space<vmem>>, vector<2x128xf32>
    %c156 = arith.constant 156 : index
    %c0_355 = arith.constant 0 : index
    %562 = vector.load %arg16[%c156, %c0_355] : memref<272x128xf32, #tpu.memory_space<vmem>>, vector<2x128xf32>
    %c158 = arith.constant 158 : index
    %c0_356 = arith.constant 0 : index
    %563 = vector.load %arg16[%c158, %c0_356] : memref<272x128xf32, #tpu.memory_space<vmem>>, vector<2x128xf32>
    %564 = arith.maximumf %560, %561 : vector<2x128xf32>
    %565 = arith.maximumf %562, %563 : vector<2x128xf32>
    %566 = arith.maximumf %564, %565 : vector<2x128xf32>
    %567 = arith.minimumf %560, %561 : vector<2x128xf32>
    %568 = arith.minimumf %562, %563 : vector<2x128xf32>
    %569 = arith.minimumf %567, %568 : vector<2x128xf32>
    %cst_357 = arith.constant 0.000000e+00 : f32
    %570 = vector.broadcast %cst_357 : f32 to vector<1x128xf32>
    %571 = arith.cmpf oge, %248, %570 : vector<1x128xf32>
    %572 = vector.shape_cast %571 : vector<1x128xi1> to vector<1x128xi1>
    %573 = vector.broadcast %572 : vector<1x128xi1> to vector<2x128xi1>
    %574 = arith.select %573, %566, %569 : vector<2x128xi1>, vector<2x128xf32>
    %575 = vector.broadcast %248 : vector<1x128xf32> to vector<2x128xf32>
    %576 = arith.mulf %574, %575 : vector<2x128xf32>
    %577 = vector.broadcast %251 : vector<1x128xf32> to vector<2x128xf32>
    %578 = arith.addf %576, %577 : vector<2x128xf32>
    %cst_358 = arith.constant 0.000000e+00 : f32
    %579 = vector.broadcast %cst_358 : f32 to vector<2x128xf32>
    %580 = arith.maximumf %578, %579 : vector<2x128xf32>
    %581 = arith.truncf %580 : vector<2x128xf32> to vector<2x128xbf16>
    %c168 = arith.constant 168 : index
    %c0_359 = arith.constant 0 : index
    %582 = vector.load %arg16[%c168, %c0_359] : memref<272x128xf32, #tpu.memory_space<vmem>>, vector<2x128xf32>
    %c170 = arith.constant 170 : index
    %c0_360 = arith.constant 0 : index
    %583 = vector.load %arg16[%c170, %c0_360] : memref<272x128xf32, #tpu.memory_space<vmem>>, vector<2x128xf32>
    %c196 = arith.constant 196 : index
    %c0_361 = arith.constant 0 : index
    %584 = vector.load %arg16[%c196, %c0_361] : memref<272x128xf32, #tpu.memory_space<vmem>>, vector<2x128xf32>
    %c198 = arith.constant 198 : index
    %c0_362 = arith.constant 0 : index
    %585 = vector.load %arg16[%c198, %c0_362] : memref<272x128xf32, #tpu.memory_space<vmem>>, vector<2x128xf32>
    %586 = arith.maximumf %582, %583 : vector<2x128xf32>
    %587 = arith.maximumf %584, %585 : vector<2x128xf32>
    %588 = arith.maximumf %586, %587 : vector<2x128xf32>
    %589 = arith.minimumf %582, %583 : vector<2x128xf32>
    %590 = arith.minimumf %584, %585 : vector<2x128xf32>
    %591 = arith.minimumf %589, %590 : vector<2x128xf32>
    %cst_363 = arith.constant 0.000000e+00 : f32
    %592 = vector.broadcast %cst_363 : f32 to vector<1x128xf32>
    %593 = arith.cmpf oge, %248, %592 : vector<1x128xf32>
    %594 = vector.shape_cast %593 : vector<1x128xi1> to vector<1x128xi1>
    %595 = vector.broadcast %594 : vector<1x128xi1> to vector<2x128xi1>
    %596 = arith.select %595, %588, %591 : vector<2x128xi1>, vector<2x128xf32>
    %597 = vector.broadcast %248 : vector<1x128xf32> to vector<2x128xf32>
    %598 = arith.mulf %596, %597 : vector<2x128xf32>
    %599 = vector.broadcast %251 : vector<1x128xf32> to vector<2x128xf32>
    %600 = arith.addf %598, %599 : vector<2x128xf32>
    %cst_364 = arith.constant 0.000000e+00 : f32
    %601 = vector.broadcast %cst_364 : f32 to vector<2x128xf32>
    %602 = arith.maximumf %600, %601 : vector<2x128xf32>
    %603 = arith.truncf %602 : vector<2x128xf32> to vector<2x128xbf16>
    %c172 = arith.constant 172 : index
    %c0_365 = arith.constant 0 : index
    %604 = vector.load %arg16[%c172, %c0_365] : memref<272x128xf32, #tpu.memory_space<vmem>>, vector<2x128xf32>
    %c174 = arith.constant 174 : index
    %c0_366 = arith.constant 0 : index
    %605 = vector.load %arg16[%c174, %c0_366] : memref<272x128xf32, #tpu.memory_space<vmem>>, vector<2x128xf32>
    %c200 = arith.constant 200 : index
    %c0_367 = arith.constant 0 : index
    %606 = vector.load %arg16[%c200, %c0_367] : memref<272x128xf32, #tpu.memory_space<vmem>>, vector<2x128xf32>
    %c202 = arith.constant 202 : index
    %c0_368 = arith.constant 0 : index
    %607 = vector.load %arg16[%c202, %c0_368] : memref<272x128xf32, #tpu.memory_space<vmem>>, vector<2x128xf32>
    %608 = arith.maximumf %604, %605 : vector<2x128xf32>
    %609 = arith.maximumf %606, %607 : vector<2x128xf32>
    %610 = arith.maximumf %608, %609 : vector<2x128xf32>
    %611 = arith.minimumf %604, %605 : vector<2x128xf32>
    %612 = arith.minimumf %606, %607 : vector<2x128xf32>
    %613 = arith.minimumf %611, %612 : vector<2x128xf32>
    %cst_369 = arith.constant 0.000000e+00 : f32
    %614 = vector.broadcast %cst_369 : f32 to vector<1x128xf32>
    %615 = arith.cmpf oge, %248, %614 : vector<1x128xf32>
    %616 = vector.shape_cast %615 : vector<1x128xi1> to vector<1x128xi1>
    %617 = vector.broadcast %616 : vector<1x128xi1> to vector<2x128xi1>
    %618 = arith.select %617, %610, %613 : vector<2x128xi1>, vector<2x128xf32>
    %619 = vector.broadcast %248 : vector<1x128xf32> to vector<2x128xf32>
    %620 = arith.mulf %618, %619 : vector<2x128xf32>
    %621 = vector.broadcast %251 : vector<1x128xf32> to vector<2x128xf32>
    %622 = arith.addf %620, %621 : vector<2x128xf32>
    %cst_370 = arith.constant 0.000000e+00 : f32
    %623 = vector.broadcast %cst_370 : f32 to vector<2x128xf32>
    %624 = arith.maximumf %622, %623 : vector<2x128xf32>
    %625 = arith.truncf %624 : vector<2x128xf32> to vector<2x128xbf16>
    %c176 = arith.constant 176 : index
    %c0_371 = arith.constant 0 : index
    %626 = vector.load %arg16[%c176, %c0_371] : memref<272x128xf32, #tpu.memory_space<vmem>>, vector<2x128xf32>
    %c178 = arith.constant 178 : index
    %c0_372 = arith.constant 0 : index
    %627 = vector.load %arg16[%c178, %c0_372] : memref<272x128xf32, #tpu.memory_space<vmem>>, vector<2x128xf32>
    %c204 = arith.constant 204 : index
    %c0_373 = arith.constant 0 : index
    %628 = vector.load %arg16[%c204, %c0_373] : memref<272x128xf32, #tpu.memory_space<vmem>>, vector<2x128xf32>
    %c206 = arith.constant 206 : index
    %c0_374 = arith.constant 0 : index
    %629 = vector.load %arg16[%c206, %c0_374] : memref<272x128xf32, #tpu.memory_space<vmem>>, vector<2x128xf32>
    %630 = arith.maximumf %626, %627 : vector<2x128xf32>
    %631 = arith.maximumf %628, %629 : vector<2x128xf32>
    %632 = arith.maximumf %630, %631 : vector<2x128xf32>
    %633 = arith.minimumf %626, %627 : vector<2x128xf32>
    %634 = arith.minimumf %628, %629 : vector<2x128xf32>
    %635 = arith.minimumf %633, %634 : vector<2x128xf32>
    %cst_375 = arith.constant 0.000000e+00 : f32
    %636 = vector.broadcast %cst_375 : f32 to vector<1x128xf32>
    %637 = arith.cmpf oge, %248, %636 : vector<1x128xf32>
    %638 = vector.shape_cast %637 : vector<1x128xi1> to vector<1x128xi1>
    %639 = vector.broadcast %638 : vector<1x128xi1> to vector<2x128xi1>
    %640 = arith.select %639, %632, %635 : vector<2x128xi1>, vector<2x128xf32>
    %641 = vector.broadcast %248 : vector<1x128xf32> to vector<2x128xf32>
    %642 = arith.mulf %640, %641 : vector<2x128xf32>
    %643 = vector.broadcast %251 : vector<1x128xf32> to vector<2x128xf32>
    %644 = arith.addf %642, %643 : vector<2x128xf32>
    %cst_376 = arith.constant 0.000000e+00 : f32
    %645 = vector.broadcast %cst_376 : f32 to vector<2x128xf32>
    %646 = arith.maximumf %644, %645 : vector<2x128xf32>
    %647 = arith.truncf %646 : vector<2x128xf32> to vector<2x128xbf16>
    %c180 = arith.constant 180 : index
    %c0_377 = arith.constant 0 : index
    %648 = vector.load %arg16[%c180, %c0_377] : memref<272x128xf32, #tpu.memory_space<vmem>>, vector<2x128xf32>
    %c182 = arith.constant 182 : index
    %c0_378 = arith.constant 0 : index
    %649 = vector.load %arg16[%c182, %c0_378] : memref<272x128xf32, #tpu.memory_space<vmem>>, vector<2x128xf32>
    %c208 = arith.constant 208 : index
    %c0_379 = arith.constant 0 : index
    %650 = vector.load %arg16[%c208, %c0_379] : memref<272x128xf32, #tpu.memory_space<vmem>>, vector<2x128xf32>
    %c210 = arith.constant 210 : index
    %c0_380 = arith.constant 0 : index
    %651 = vector.load %arg16[%c210, %c0_380] : memref<272x128xf32, #tpu.memory_space<vmem>>, vector<2x128xf32>
    %652 = arith.maximumf %648, %649 : vector<2x128xf32>
    %653 = arith.maximumf %650, %651 : vector<2x128xf32>
    %654 = arith.maximumf %652, %653 : vector<2x128xf32>
    %655 = arith.minimumf %648, %649 : vector<2x128xf32>
    %656 = arith.minimumf %650, %651 : vector<2x128xf32>
    %657 = arith.minimumf %655, %656 : vector<2x128xf32>
    %cst_381 = arith.constant 0.000000e+00 : f32
    %658 = vector.broadcast %cst_381 : f32 to vector<1x128xf32>
    %659 = arith.cmpf oge, %248, %658 : vector<1x128xf32>
    %660 = vector.shape_cast %659 : vector<1x128xi1> to vector<1x128xi1>
    %661 = vector.broadcast %660 : vector<1x128xi1> to vector<2x128xi1>
    %662 = arith.select %661, %654, %657 : vector<2x128xi1>, vector<2x128xf32>
    %663 = vector.broadcast %248 : vector<1x128xf32> to vector<2x128xf32>
    %664 = arith.mulf %662, %663 : vector<2x128xf32>
    %665 = vector.broadcast %251 : vector<1x128xf32> to vector<2x128xf32>
    %666 = arith.addf %664, %665 : vector<2x128xf32>
    %cst_382 = arith.constant 0.000000e+00 : f32
    %667 = vector.broadcast %cst_382 : f32 to vector<2x128xf32>
    %668 = arith.maximumf %666, %667 : vector<2x128xf32>
    %669 = arith.truncf %668 : vector<2x128xf32> to vector<2x128xbf16>
    %c184 = arith.constant 184 : index
    %c0_383 = arith.constant 0 : index
    %670 = vector.load %arg16[%c184, %c0_383] : memref<272x128xf32, #tpu.memory_space<vmem>>, vector<2x128xf32>
    %c186 = arith.constant 186 : index
    %c0_384 = arith.constant 0 : index
    %671 = vector.load %arg16[%c186, %c0_384] : memref<272x128xf32, #tpu.memory_space<vmem>>, vector<2x128xf32>
    %c212 = arith.constant 212 : index
    %c0_385 = arith.constant 0 : index
    %672 = vector.load %arg16[%c212, %c0_385] : memref<272x128xf32, #tpu.memory_space<vmem>>, vector<2x128xf32>
    %c214 = arith.constant 214 : index
    %c0_386 = arith.constant 0 : index
    %673 = vector.load %arg16[%c214, %c0_386] : memref<272x128xf32, #tpu.memory_space<vmem>>, vector<2x128xf32>
    %674 = arith.maximumf %670, %671 : vector<2x128xf32>
    %675 = arith.maximumf %672, %673 : vector<2x128xf32>
    %676 = arith.maximumf %674, %675 : vector<2x128xf32>
    %677 = arith.minimumf %670, %671 : vector<2x128xf32>
    %678 = arith.minimumf %672, %673 : vector<2x128xf32>
    %679 = arith.minimumf %677, %678 : vector<2x128xf32>
    %cst_387 = arith.constant 0.000000e+00 : f32
    %680 = vector.broadcast %cst_387 : f32 to vector<1x128xf32>
    %681 = arith.cmpf oge, %248, %680 : vector<1x128xf32>
    %682 = vector.shape_cast %681 : vector<1x128xi1> to vector<1x128xi1>
    %683 = vector.broadcast %682 : vector<1x128xi1> to vector<2x128xi1>
    %684 = arith.select %683, %676, %679 : vector<2x128xi1>, vector<2x128xf32>
    %685 = vector.broadcast %248 : vector<1x128xf32> to vector<2x128xf32>
    %686 = arith.mulf %684, %685 : vector<2x128xf32>
    %687 = vector.broadcast %251 : vector<1x128xf32> to vector<2x128xf32>
    %688 = arith.addf %686, %687 : vector<2x128xf32>
    %cst_388 = arith.constant 0.000000e+00 : f32
    %689 = vector.broadcast %cst_388 : f32 to vector<2x128xf32>
    %690 = arith.maximumf %688, %689 : vector<2x128xf32>
    %691 = arith.truncf %690 : vector<2x128xf32> to vector<2x128xbf16>
    %c224 = arith.constant 224 : index
    %c0_389 = arith.constant 0 : index
    %692 = vector.load %arg16[%c224, %c0_389] : memref<272x128xf32, #tpu.memory_space<vmem>>, vector<2x128xf32>
    %c226 = arith.constant 226 : index
    %c0_390 = arith.constant 0 : index
    %693 = vector.load %arg16[%c226, %c0_390] : memref<272x128xf32, #tpu.memory_space<vmem>>, vector<2x128xf32>
    %c252 = arith.constant 252 : index
    %c0_391 = arith.constant 0 : index
    %694 = vector.load %arg16[%c252, %c0_391] : memref<272x128xf32, #tpu.memory_space<vmem>>, vector<2x128xf32>
    %c254 = arith.constant 254 : index
    %c0_392 = arith.constant 0 : index
    %695 = vector.load %arg16[%c254, %c0_392] : memref<272x128xf32, #tpu.memory_space<vmem>>, vector<2x128xf32>
    %696 = arith.maximumf %692, %693 : vector<2x128xf32>
    %697 = arith.maximumf %694, %695 : vector<2x128xf32>
    %698 = arith.maximumf %696, %697 : vector<2x128xf32>
    %699 = arith.minimumf %692, %693 : vector<2x128xf32>
    %700 = arith.minimumf %694, %695 : vector<2x128xf32>
    %701 = arith.minimumf %699, %700 : vector<2x128xf32>
    %cst_393 = arith.constant 0.000000e+00 : f32
    %702 = vector.broadcast %cst_393 : f32 to vector<1x128xf32>
    %703 = arith.cmpf oge, %248, %702 : vector<1x128xf32>
    %704 = vector.shape_cast %703 : vector<1x128xi1> to vector<1x128xi1>
    %705 = vector.broadcast %704 : vector<1x128xi1> to vector<2x128xi1>
    %706 = arith.select %705, %698, %701 : vector<2x128xi1>, vector<2x128xf32>
    %707 = vector.broadcast %248 : vector<1x128xf32> to vector<2x128xf32>
    %708 = arith.mulf %706, %707 : vector<2x128xf32>
    %709 = vector.broadcast %251 : vector<1x128xf32> to vector<2x128xf32>
    %710 = arith.addf %708, %709 : vector<2x128xf32>
    %cst_394 = arith.constant 0.000000e+00 : f32
    %711 = vector.broadcast %cst_394 : f32 to vector<2x128xf32>
    %712 = arith.maximumf %710, %711 : vector<2x128xf32>
    %713 = arith.truncf %712 : vector<2x128xf32> to vector<2x128xbf16>
    %c228 = arith.constant 228 : index
    %c0_395 = arith.constant 0 : index
    %714 = vector.load %arg16[%c228, %c0_395] : memref<272x128xf32, #tpu.memory_space<vmem>>, vector<2x128xf32>
    %c230 = arith.constant 230 : index
    %c0_396 = arith.constant 0 : index
    %715 = vector.load %arg16[%c230, %c0_396] : memref<272x128xf32, #tpu.memory_space<vmem>>, vector<2x128xf32>
    %c256 = arith.constant 256 : index
    %c0_397 = arith.constant 0 : index
    %716 = vector.load %arg16[%c256, %c0_397] : memref<272x128xf32, #tpu.memory_space<vmem>>, vector<2x128xf32>
    %c258 = arith.constant 258 : index
    %c0_398 = arith.constant 0 : index
    %717 = vector.load %arg16[%c258, %c0_398] : memref<272x128xf32, #tpu.memory_space<vmem>>, vector<2x128xf32>
    %718 = arith.maximumf %714, %715 : vector<2x128xf32>
    %719 = arith.maximumf %716, %717 : vector<2x128xf32>
    %720 = arith.maximumf %718, %719 : vector<2x128xf32>
    %721 = arith.minimumf %714, %715 : vector<2x128xf32>
    %722 = arith.minimumf %716, %717 : vector<2x128xf32>
    %723 = arith.minimumf %721, %722 : vector<2x128xf32>
    %cst_399 = arith.constant 0.000000e+00 : f32
    %724 = vector.broadcast %cst_399 : f32 to vector<1x128xf32>
    %725 = arith.cmpf oge, %248, %724 : vector<1x128xf32>
    %726 = vector.shape_cast %725 : vector<1x128xi1> to vector<1x128xi1>
    %727 = vector.broadcast %726 : vector<1x128xi1> to vector<2x128xi1>
    %728 = arith.select %727, %720, %723 : vector<2x128xi1>, vector<2x128xf32>
    %729 = vector.broadcast %248 : vector<1x128xf32> to vector<2x128xf32>
    %730 = arith.mulf %728, %729 : vector<2x128xf32>
    %731 = vector.broadcast %251 : vector<1x128xf32> to vector<2x128xf32>
    %732 = arith.addf %730, %731 : vector<2x128xf32>
    %cst_400 = arith.constant 0.000000e+00 : f32
    %733 = vector.broadcast %cst_400 : f32 to vector<2x128xf32>
    %734 = arith.maximumf %732, %733 : vector<2x128xf32>
    %735 = arith.truncf %734 : vector<2x128xf32> to vector<2x128xbf16>
    %c232 = arith.constant 232 : index
    %c0_401 = arith.constant 0 : index
    %736 = vector.load %arg16[%c232, %c0_401] : memref<272x128xf32, #tpu.memory_space<vmem>>, vector<2x128xf32>
    %c234 = arith.constant 234 : index
    %c0_402 = arith.constant 0 : index
    %737 = vector.load %arg16[%c234, %c0_402] : memref<272x128xf32, #tpu.memory_space<vmem>>, vector<2x128xf32>
    %c260 = arith.constant 260 : index
    %c0_403 = arith.constant 0 : index
    %738 = vector.load %arg16[%c260, %c0_403] : memref<272x128xf32, #tpu.memory_space<vmem>>, vector<2x128xf32>
    %c262 = arith.constant 262 : index
    %c0_404 = arith.constant 0 : index
    %739 = vector.load %arg16[%c262, %c0_404] : memref<272x128xf32, #tpu.memory_space<vmem>>, vector<2x128xf32>
    %740 = arith.maximumf %736, %737 : vector<2x128xf32>
    %741 = arith.maximumf %738, %739 : vector<2x128xf32>
    %742 = arith.maximumf %740, %741 : vector<2x128xf32>
    %743 = arith.minimumf %736, %737 : vector<2x128xf32>
    %744 = arith.minimumf %738, %739 : vector<2x128xf32>
    %745 = arith.minimumf %743, %744 : vector<2x128xf32>
    %cst_405 = arith.constant 0.000000e+00 : f32
    %746 = vector.broadcast %cst_405 : f32 to vector<1x128xf32>
    %747 = arith.cmpf oge, %248, %746 : vector<1x128xf32>
    %748 = vector.shape_cast %747 : vector<1x128xi1> to vector<1x128xi1>
    %749 = vector.broadcast %748 : vector<1x128xi1> to vector<2x128xi1>
    %750 = arith.select %749, %742, %745 : vector<2x128xi1>, vector<2x128xf32>
    %751 = vector.broadcast %248 : vector<1x128xf32> to vector<2x128xf32>
    %752 = arith.mulf %750, %751 : vector<2x128xf32>
    %753 = vector.broadcast %251 : vector<1x128xf32> to vector<2x128xf32>
    %754 = arith.addf %752, %753 : vector<2x128xf32>
    %cst_406 = arith.constant 0.000000e+00 : f32
    %755 = vector.broadcast %cst_406 : f32 to vector<2x128xf32>
    %756 = arith.maximumf %754, %755 : vector<2x128xf32>
    %757 = arith.truncf %756 : vector<2x128xf32> to vector<2x128xbf16>
    %c236 = arith.constant 236 : index
    %c0_407 = arith.constant 0 : index
    %758 = vector.load %arg16[%c236, %c0_407] : memref<272x128xf32, #tpu.memory_space<vmem>>, vector<2x128xf32>
    %c238 = arith.constant 238 : index
    %c0_408 = arith.constant 0 : index
    %759 = vector.load %arg16[%c238, %c0_408] : memref<272x128xf32, #tpu.memory_space<vmem>>, vector<2x128xf32>
    %c264 = arith.constant 264 : index
    %c0_409 = arith.constant 0 : index
    %760 = vector.load %arg16[%c264, %c0_409] : memref<272x128xf32, #tpu.memory_space<vmem>>, vector<2x128xf32>
    %c266 = arith.constant 266 : index
    %c0_410 = arith.constant 0 : index
    %761 = vector.load %arg16[%c266, %c0_410] : memref<272x128xf32, #tpu.memory_space<vmem>>, vector<2x128xf32>
    %762 = arith.maximumf %758, %759 : vector<2x128xf32>
    %763 = arith.maximumf %760, %761 : vector<2x128xf32>
    %764 = arith.maximumf %762, %763 : vector<2x128xf32>
    %765 = arith.minimumf %758, %759 : vector<2x128xf32>
    %766 = arith.minimumf %760, %761 : vector<2x128xf32>
    %767 = arith.minimumf %765, %766 : vector<2x128xf32>
    %cst_411 = arith.constant 0.000000e+00 : f32
    %768 = vector.broadcast %cst_411 : f32 to vector<1x128xf32>
    %769 = arith.cmpf oge, %248, %768 : vector<1x128xf32>
    %770 = vector.shape_cast %769 : vector<1x128xi1> to vector<1x128xi1>
    %771 = vector.broadcast %770 : vector<1x128xi1> to vector<2x128xi1>
    %772 = arith.select %771, %764, %767 : vector<2x128xi1>, vector<2x128xf32>
    %773 = vector.broadcast %248 : vector<1x128xf32> to vector<2x128xf32>
    %774 = arith.mulf %772, %773 : vector<2x128xf32>
    %775 = vector.broadcast %251 : vector<1x128xf32> to vector<2x128xf32>
    %776 = arith.addf %774, %775 : vector<2x128xf32>
    %cst_412 = arith.constant 0.000000e+00 : f32
    %777 = vector.broadcast %cst_412 : f32 to vector<2x128xf32>
    %778 = arith.maximumf %776, %777 : vector<2x128xf32>
    %779 = arith.truncf %778 : vector<2x128xf32> to vector<2x128xbf16>
    %c240 = arith.constant 240 : index
    %c0_413 = arith.constant 0 : index
    %780 = vector.load %arg16[%c240, %c0_413] : memref<272x128xf32, #tpu.memory_space<vmem>>, vector<2x128xf32>
    %c242 = arith.constant 242 : index
    %c0_414 = arith.constant 0 : index
    %781 = vector.load %arg16[%c242, %c0_414] : memref<272x128xf32, #tpu.memory_space<vmem>>, vector<2x128xf32>
    %c268 = arith.constant 268 : index
    %c0_415 = arith.constant 0 : index
    %782 = vector.load %arg16[%c268, %c0_415] : memref<272x128xf32, #tpu.memory_space<vmem>>, vector<2x128xf32>
    %c270 = arith.constant 270 : index
    %c0_416 = arith.constant 0 : index
    %783 = vector.load %arg16[%c270, %c0_416] : memref<272x128xf32, #tpu.memory_space<vmem>>, vector<2x128xf32>
    %784 = arith.maximumf %780, %781 : vector<2x128xf32>
    %785 = arith.maximumf %782, %783 : vector<2x128xf32>
    %786 = arith.maximumf %784, %785 : vector<2x128xf32>
    %787 = arith.minimumf %780, %781 : vector<2x128xf32>
    %788 = arith.minimumf %782, %783 : vector<2x128xf32>
    %789 = arith.minimumf %787, %788 : vector<2x128xf32>
    %cst_417 = arith.constant 0.000000e+00 : f32
    %790 = vector.broadcast %cst_417 : f32 to vector<1x128xf32>
    %791 = arith.cmpf oge, %248, %790 : vector<1x128xf32>
    %792 = vector.shape_cast %791 : vector<1x128xi1> to vector<1x128xi1>
    %793 = vector.broadcast %792 : vector<1x128xi1> to vector<2x128xi1>
    %794 = arith.select %793, %786, %789 : vector<2x128xi1>, vector<2x128xf32>
    %795 = vector.broadcast %248 : vector<1x128xf32> to vector<2x128xf32>
    %796 = arith.mulf %794, %795 : vector<2x128xf32>
    %797 = vector.broadcast %251 : vector<1x128xf32> to vector<2x128xf32>
    %798 = arith.addf %796, %797 : vector<2x128xf32>
    %cst_418 = arith.constant 0.000000e+00 : f32
    %799 = vector.broadcast %cst_418 : f32 to vector<2x128xf32>
    %800 = arith.maximumf %798, %799 : vector<2x128xf32>
    %801 = arith.truncf %800 : vector<2x128xf32> to vector<2x128xbf16>
    %802 = tpu.concatenate %273, %295, %317, %339, %361, %383, %405, %427, %449, %471, %493, %515, %537, %559, %581, %603 in 1 : vector<2x128xbf16>, vector<2x128xbf16>, vector<2x128xbf16>, vector<2x128xbf16>, vector<2x128xbf16>, vector<2x128xbf16>, vector<2x128xbf16>, vector<2x128xbf16>, vector<2x128xbf16>, vector<2x128xbf16>, vector<2x128xbf16>, vector<2x128xbf16>, vector<2x128xbf16>, vector<2x128xbf16>, vector<2x128xbf16>, vector<2x128xbf16> -> vector<2x2048xbf16>
    %803 = tpu.concatenate %625, %647, %669, %691, %713, %735, %757, %779, %801 in 1 : vector<2x128xbf16>, vector<2x128xbf16>, vector<2x128xbf16>, vector<2x128xbf16>, vector<2x128xbf16>, vector<2x128xbf16>, vector<2x128xbf16>, vector<2x128xbf16>, vector<2x128xbf16> -> vector<2x1152xbf16>
    %804 = tpu.concatenate %802, %803 in 1 : vector<2x2048xbf16>, vector<2x1152xbf16> -> vector<2x3200xbf16>
    %c0_419 = arith.constant 0 : index
    %c0_420 = arith.constant 0 : index
    %805 = vector.load %arg8[%c0_419, %c0_420] : memref<3200x128xbf16, #tpu.memory_space<vmem>>, vector<3200x128xbf16>
    %cst_421 = arith.constant dense<0.000000e+00> : vector<2x128xf32>
    %806 = tpu.matmul %804, %805, %cst_421 {dimension_numbers = #tpu.dot_dimension_numbers<[1], [0], [0], [1], [0, 0, 1, 1], [], []>} : vector<2x3200xbf16>, vector<3200x128xbf16>, vector<2x128xf32> -> vector<2x128xf32>
    %c0_422 = arith.constant 0 : index
    %c0_423 = arith.constant 0 : index
    %807 = vector.load %arg9[%c0_422, %c0_423] : memref<1x128xf32, #tpu.memory_space<vmem>>, vector<1x128xf32>
    %808 = vector.broadcast %807 : vector<1x128xf32> to vector<2x128xf32>
    %809 = arith.addf %806, %808 : vector<2x128xf32>
    %cst_424 = arith.constant 0.000000e+00 : f32
    %810 = vector.broadcast %cst_424 : f32 to vector<2x128xf32>
    %811 = arith.maximumf %809, %810 : vector<2x128xf32>
    %812 = arith.truncf %811 : vector<2x128xf32> to vector<2x128xbf16>
    %c0_425 = arith.constant 0 : index
    %c0_426 = arith.constant 0 : index
    %813 = vector.load %arg10[%c0_425, %c0_426] : memref<128x128xbf16, #tpu.memory_space<vmem>>, vector<128x128xbf16>
    %cst_427 = arith.constant dense<0.000000e+00> : vector<2x128xf32>
    %814 = tpu.matmul %812, %813, %cst_427 {dimension_numbers = #tpu.dot_dimension_numbers<[1], [0], [0], [1], [0, 0, 1, 1], [], []>} : vector<2x128xbf16>, vector<128x128xbf16>, vector<2x128xf32> -> vector<2x128xf32>
    %c0_428 = arith.constant 0 : index
    %c0_429 = arith.constant 0 : index
    %815 = vector.load %arg11[%c0_428, %c0_429] : memref<1x128xf32, #tpu.memory_space<vmem>>, vector<1x128xf32>
    %816 = vector.broadcast %815 : vector<1x128xf32> to vector<2x128xf32>
    %817 = arith.addf %814, %816 : vector<2x128xf32>
    %cst_430 = arith.constant 0.000000e+00 : f32
    %818 = vector.broadcast %cst_430 : f32 to vector<2x128xf32>
    %819 = arith.maximumf %817, %818 : vector<2x128xf32>
    %820 = arith.truncf %819 : vector<2x128xf32> to vector<2x128xbf16>
    %c0_431 = arith.constant 0 : index
    %c0_432 = arith.constant 0 : index
    %821 = vector.load %arg12[%c0_431, %c0_432] : memref<128x128xbf16, #tpu.memory_space<vmem>>, vector<128x128xbf16>
    %cst_433 = arith.constant dense<0.000000e+00> : vector<2x128xf32>
    %822 = tpu.matmul %820, %821, %cst_433 {dimension_numbers = #tpu.dot_dimension_numbers<[1], [0], [0], [1], [0, 0, 1, 1], [], []>} : vector<2x128xbf16>, vector<128x128xbf16>, vector<2x128xf32> -> vector<2x128xf32>
    %c0_434 = arith.constant 0 : index
    %c0_435 = arith.constant 0 : index
    %823 = vector.load %arg13[%c0_434, %c0_435] : memref<1x128xf32, #tpu.memory_space<vmem>>, vector<1x128xf32>
    %824 = vector.broadcast %823 : vector<1x128xf32> to vector<2x128xf32>
    %825 = arith.addf %822, %824 : vector<2x128xf32>
    %c0_436 = arith.constant 0 : index
    %c0_437 = arith.constant 0 : index
    %826 = vector.load %arg14[%c0_436, %c0_437] : memref<2x128xf32, #tpu.memory_space<vmem>>, vector<2x128xf32>
    tpu.vector_store %arg14[%c0_436, %c0_437], %825 {strides = array<i32>} : memref<2x128xf32, #tpu.memory_space<vmem>>, vector<2x128xf32>,
    return
  }
}

</mosaic_0001>

<bundles_post_ra>
// kernel: custom_lenet_forward.1
= control target key start
LH: loop header
LB: loop body
LE: loop exit
PB: predicated region body
PF: predicated region fallthrough
CT: control target
= control target key end

     0   :  { %v28976_v1 = vmov 0.0   ;;  %vm24672_vm0 = vmmov 0   ;;  %s24674_s28 = smov 64   ;;  %s24675_s29 = smov 96   ;;  %s28961_s0 = inlined_call_operand.vmem [shape: bf16[392,128], index: 0, kind: input, shape index: {}]   ;;  %s28962_s1 = inlined_call_operand.vmem [shape: f32[272,1], index: 1, kind: input, shape index: {}]   ;;  %s28963_s2 = inlined_call_operand.vmem [shape: bf16[128,128], index: 2, kind: input, shape index: {}]   ;;  %s28964_s3 = inlined_call_operand.vmem [shape: f32[1,128], index: 3, kind: input, shape index: {}]   ;;  %s28965_s4 = inlined_call_operand.vmem [shape: f32[1,128], index: 4, kind: input, shape index: {}]   ;;  %s28966_s5 = inlined_call_operand.vmem [shape: bf16[25,128,128], index: 5, kind: input, shape index: {}]   ;;  %s28967_s6 = inlined_call_operand.vmem [shape: f32[1,128], index: 6, kind: input, shape index: {}]   ;;  %s28968_s7 = inlined_call_operand.vmem [shape: f32[1,128], index: 7, kind: input, shape index: {}]   ;;  %s28969_s8 = inlined_call_operand.vmem [shape: bf16[3200,128], index: 8, kind: input, shape index: {}]   ;;  %s28970_s9 = inlined_call_operand.vmem [shape: f32[1,128], index: 9, kind: input, shape index: {}]   ;;  %s28971_s10 = inlined_call_operand.vmem [shape: bf16[128,128], index: 10, kind: input, shape index: {}]   ;;  %s28972_s11 = inlined_call_operand.vmem [shape: f32[1,128], index: 11, kind: input, shape index: {}]   ;;  %s28973_s12 = inlined_call_operand.vmem [shape: bf16[128,128], index: 12, kind: input, shape index: {}]   ;;  %s28974_s13 = inlined_call_operand.vmem [shape: f32[1,128], index: 13, kind: input, shape index: {}]   ;;  %s28975_s14 = inlined_call_operand.hbm [shape: f32[2,128], index: 14, kind: output, shape index: {}]  }
   0x1   :  { %v23752_v0 = vld [vmem:[%s28963_s2] sm:$0xff]   ;;  %19801 = vmatprep.subr.bf16.mxu0 %v28976_v1  ;;  %20757 = vmatprep.subr.bf16.mxu1 %v28976_v1  ;;  %v23753_v2 = vld [vmem:[%s28963_s2 + $0x8] sm:$0xff]   ;;  %v23754_v3 = vld [vmem:[%s28963_s2 + $0x10] sm:$0xff]  }
   0x2   :  { %19802 = vmatpush3.bf16.msra.mxu0 %v23752_v0  ;;  %19817 = vmatprep.mubr.msk.bf16.mxu0 %vm24672_vm0, %v28976_v1  ;;  %v23755_v4 = vld [vmem:[%s28963_s2 + $0x18] sm:$0xff]   ;;  %v23756_v5 = vld [vmem:[%s28963_s2 + $0x20] sm:$0xff]   ;;  %v23757_v6 = vld [vmem:[%s28963_s2 + $0x28] sm:$0xff]  }
   0x3   :  { %19803 = vmatprep.subr.bf16.mxu0 %v28976_v1  ;;  %20773 = vmatprep.mubr.msk.bf16.mxu1 %vm24672_vm0, %v28976_v1  ;;  %v23758_v7 = vld [vmem:[%s28963_s2 + $0x30] sm:$0xff]   ;;  %v23759_v8 = vld [vmem:[%s28963_s2 + $0x38] sm:$0xff]   ;;  %v23760_v9 = vld [vmem:[%s28961_s0] sm:$0xff]  }
   0x4   :  { %v23761_v10 = vld [vmem:[%s28961_s0 + $0x8] sm:$0xff]   ;;  %v23762_v11 = vld [vmem:[%s28961_s0 + $0x10] sm:$0xff]   ;;  %v23763_v12 = vld [vmem:[%s28961_s0 + $0x18] sm:$0xff]  }
   0x5   :  { %v23764_v13 = vld [vmem:[%s28961_s0 + $0x20] sm:$0xff]   ;;  %v23765_v14 = vld [vmem:[%s28961_s0 + $0x28] sm:$0xff]   ;;  %v23766_v15 = vld [vmem:[%s28961_s0 + $0x30] sm:$0xff]  }
   0x6   :  { %19804 = vmatpush3.bf16.msra.mxu0 %v23753_v2  ;;  %v23767_v16 = vld [vmem:[%s28961_s0 + $0x38] sm:$0xff]   ;;  %v23768_v17 = vld [vmem:[%s28961_s0 + $0x40] sm:$0xff]   ;;  %v23769_v18 = vld [vmem:[%s28961_s0 + $0x48] sm:$0xff]  }
   0x7   :  { %19805 = vmatprep.subr.bf16.mxu0 %v28976_v1  ;;  %v23770_v19 = vld [vmem:[%s28961_s0 + $0x50] sm:$0xff]   ;;  %v23771_v20 = vld [vmem:[%s28961_s0 + $0x58] sm:$0xff]   ;;  %v23772_v21 = vld [vmem:[%s28961_s0 + $0x60] sm:$0xff]  }
   0x8   :  { %v23773_v22 = vld [vmem:[%s28961_s0 + $0x68] sm:$0xff]   ;;  %v23774_v23 = vld [vmem:[%s28961_s0 + $0x70] sm:$0xff]   ;;  %v23775_v24 = vld [vmem:[%s28961_s0 + $0x78] sm:$0xff]  }
   0x9   :  { %v23776_v25 = vld [vmem:[%s28961_s0 + $0x80] sm:$0xff]   ;;  %v23777_v26 = vld [vmem:[%s28961_s0 + $0x88] sm:$0xff]   ;;  %v23778_v27 = vld [vmem:[%s28961_s0 + $0x90] sm:$0xff]  }
   0xa   :  { %19806 = vmatpush3.bf16.msra.mxu0 %v23754_v3  ;;  %v23779_v28 = vld [vmem:[%s28961_s0 + $0x98] sm:$0xff]   ;;  %v23780_v29 = vld [vmem:[%s28961_s0 + $0xa0] sm:$0xff]   ;;  %v23781_v30 = vld [vmem:[%s28961_s0 + $0xa8] sm:$0xff]  }
   0xb   :  { %19807 = vmatprep.subr.bf16.mxu0 %v28976_v1  ;;  %v23782_v31 = vld [vmem:[%s28961_s0 + $0xb0] sm:$0xff]   ;;  %v23783_v32 = vld [vmem:[%s28961_s0 + $0xb8] sm:$0xff]   ;;  %v23784_v33 = vld [vmem:[%s28961_s0 + $0xc0] ss:$0 sps:$4 sm:$0xff]   ;;  %s24673_s0 = smov 32  }
   0xe   :  { %19808 = vmatpush3.bf16.msra.mxu0 %v23755_v4 }
   0xf   :  { %19809 = vmatprep.subr.bf16.mxu0 %v28976_v1 }
  0x12   :  { %19810 = vmatpush3.bf16.msra.mxu0 %v23756_v5 }
  0x13   :  { %19811 = vmatprep.subr.bf16.mxu0 %v28976_v1 }
  0x16   :  { %19812 = vmatpush3.bf16.msra.mxu0 %v23757_v6 }
  0x17   :  { %19813 = vmatprep.subr.bf16.mxu0 %v28976_v1 }
  0x1a   :  { %19814 = vmatpush3.bf16.msra.mxu0 %v23758_v7 }
  0x1b   :  { %19815 = vmatprep.subr.bf16.mxu0 %v28976_v1 }
  0x1e   :  { %19816 = vmatpush3.bf16.msra.mxu0 %v23759_v8 }
  0x1f   :  { %19917 = vmatprep.subr.bf16.mxu0 %v28976_v1 }
  0x21   :  { %19818 = vmatmul.mubr.bf16.vlgmr.msra.gmra.mrb[0].mxu0 %v23760_v9 }
  0x22   :  { %19821 = vmatprep.mubr.msk.bf16.mxu0 %vm24672_vm0, %v28976_v1 }
  0x29   :  { %19822 = vmatmul.mubr.bf16.gmra.mrb[4].mxu0 %v23761_v10 }
  0x2a   :  { %19825 = vmatprep.mubr.msk.bf16.mxu0 %vm24672_vm0, %v28976_v1 }
  0x31   :  { %19826 = vmatmul.mubr.bf16.gmra.mrb[8].mxu0 %v23762_v11 }
  0x32   :  { %19829 = vmatprep.mubr.msk.bf16.mxu0 %vm24672_vm0, %v28976_v1 }
  0x39   :  { %19830 = vmatmul.mubr.bf16.gmra.mrb[12].mxu0 %v23763_v12 }
  0x3a   :  { %19833 = vmatprep.mubr.msk.bf16.mxu0 %vm24672_vm0, %v28976_v1 }
  0x41   :  { %19834 = vmatmul.mubr.bf16.gmra.mrb[16].mxu0 %v23764_v13 }
  0x42   :  { %19837 = vmatprep.mubr.msk.bf16.mxu0 %vm24672_vm0, %v28976_v1 }
  0x49   :  { %19838 = vmatmul.mubr.bf16.gmra.mrb[20].mxu0 %v23765_v14 }
  0x4a   :  { %19841 = vmatprep.mubr.msk.bf16.mxu0 %vm24672_vm0, %v28976_v1 }
  0x51   :  { %19842 = vmatmul.mubr.bf16.gmra.mrb[24].mxu0 %v23766_v15 }
  0x52   :  { %19845 = vmatprep.mubr.msk.bf16.mxu0 %vm24672_vm0, %v28976_v1 }
  0x59   :  { %19846 = vmatmul.mubr.bf16.gmra.mrb[28].mxu0 %v23767_v16 }
  0x5a   :  { %19849 = vmatprep.mubr.msk.bf16.mxu0 %vm24672_vm0, %v28976_v1 }
  0x61   :  { %19850 = vmatmul.mubr.bf16.gmra.mrb[32].mxu0 %v23768_v17 }
  0x62   :  { %19853 = vmatprep.mubr.msk.bf16.mxu0 %vm24672_vm0, %v28976_v1 }
  0x69   :  { %19854 = vmatmul.mubr.bf16.gmra.mrb[36].mxu0 %v23769_v18 }
  0x6a   :  { %19857 = vmatprep.mubr.msk.bf16.mxu0 %vm24672_vm0, %v28976_v1 }
  0x71   :  { %19858 = vmatmul.mubr.bf16.gmra.mrb[40].mxu0 %v23770_v19 }
  0x72   :  { %19861 = vmatprep.mubr.msk.bf16.mxu0 %vm24672_vm0, %v28976_v1 }
  0x79   :  { %19862 = vmatmul.mubr.bf16.gmra.mrb[44].mxu0 %v23771_v20 }
  0x7a   :  { %19865 = vmatprep.mubr.msk.bf16.mxu0 %vm24672_vm0, %v28976_v1 }
  0x81   :  { %19866 = vmatmul.mubr.bf16.gmra.mrb[48].mxu0 %v23772_v21 }
  0x82   :  { %19869 = vmatprep.mubr.msk.bf16.mxu0 %vm24672_vm0, %v28976_v1 }
  0x89   :  { %19870 = vmatmul.mubr.bf16.gmra.mrb[52].mxu0 %v23773_v22 }
  0x8a   :  { %19873 = vmatprep.mubr.msk.bf16.mxu0 %vm24672_vm0, %v28976_v1 }
  0x91   :  { %19874 = vmatmul.mubr.bf16.gmra.mrb[56].mxu0 %v23774_v23 }
  0x92   :  { %19877 = vmatprep.mubr.msk.bf16.mxu0 %vm24672_vm0, %v28976_v1 }
  0x99   :  { %19878 = vmatmul.mubr.bf16.gmra.mrb[60].mxu0 %v23775_v24 }
  0x9a   :  { %19881 = vmatprep.mubr.msk.bf16.mxu0 %vm24672_vm0, %v28976_v1 }
  0xa1   :  { %19882 = vmatmul.mubr.bf16.gmra.mrb[64].mxu0 %v23776_v25 }
  0xa2   :  { %19885 = vmatprep.mubr.msk.bf16.mxu0 %vm24672_vm0, %v28976_v1 }
  0xa9   :  { %19886 = vmatmul.mubr.bf16.gmra.mrb[68].mxu0 %v23777_v26 }
  0xaa   :  { %19889 = vmatprep.mubr.msk.bf16.mxu0 %vm24672_vm0, %v28976_v1 }
  0xb1   :  { %19890 = vmatmul.mubr.bf16.gmra.mrb[72].mxu0 %v23778_v27 }
  0xb2   :  { %19893 = vmatprep.mubr.msk.bf16.mxu0 %vm24672_vm0, %v28976_v1 }
  0xb9   :  { %19894 = vmatmul.mubr.bf16.gmra.mrb[76].mxu0 %v23779_v28 }
  0xba   :  { %19897 = vmatprep.mubr.msk.bf16.mxu0 %vm24672_vm0, %v28976_v1 }
  0xc1   :  { %19898 = vmatmul.mubr.bf16.gmra.mrb[80].mxu0 %v23780_v29 }
  0xc2   :  { %19901 = vmatprep.mubr.msk.bf16.mxu0 %vm24672_vm0, %v28976_v1 }
  0xc9   :  { %19902 = vmatmul.mubr.bf16.gmra.mrb[84].mxu0 %v23781_v30 }
  0xca   :  { %19905 = vmatprep.mubr.msk.bf16.mxu0 %vm24672_vm0, %v28976_v1 }
  0xd1   :  { %19906 = vmatmul.mubr.bf16.gmra.mrb[88].mxu0 %v23782_v31 }
  0xd2   :  { %19909 = vmatprep.mubr.msk.bf16.mxu0 %vm24672_vm0, %v28976_v1 }
  0xd9   :  { %19910 = vmatmul.mubr.bf16.gmra.mrb[92].mxu0 %v23783_v32 }
  0xda   :  { %19913 = vmatprep.mubr.msk.bf16.mxu0 %vm24672_vm0, %v28976_v1 }
  0xe1   :  { %19914 = vmatmul.mubr.bf16.gmra.mrb[96].mxu0 %v23784_v33 }
  0xe2   :  { %19933 = vmatprep.mubr.msk.bf16.mxu0 %vm24672_vm0, %v28976_v1 }
  0xf4   :  { %v24916_v34 = vpop.f32.mrb[0].mxu0 }
  0xf5   :  { %29045 = vst [vmem:[#allocation7_spill] sm:$0xff] %v24916_v34  ;;  %v19819_v35 = vpop.f32.mrb[1].mxu0  ;;  %v596_v37 = vmul.f32 %v24916_v34, %v24916_v34 }
  0xf6   :  { %v24918_v36 = vpop.f32.mrb[2].mxu0 }
  0xf7   :  { %29046 = vst [vmem:[#allocation8_spill] sm:$0xff] %v24918_v36  ;;  %v542_v38 = vadd.f32 %v24918_v36, %v24916_v34  ;;  %v597_v39 = vmul.f32 %v24918_v36, %v24918_v36  ;;  %v19820_v40 = vpop.f32.mrb[3].mxu0 }
  0xf9   :  { %v645_v41 = vadd.f32 %v597_v39, %v596_v37 }
  0xfc   :  { %v24926_v42 = vpop.f32.mrb[4].mxu0 }
  0xfd   :  { %29047 = vst [vmem:[#allocation9_spill] sm:$0xff] %v24926_v42  ;;  %v543_v43 = vadd.f32 %v542_v38, %v24926_v42  ;;  %v598_v44 = vmul.f32 %v24926_v42, %v24926_v42  ;;  %v19823_v45 = vpop.f32.mrb[5].mxu0 }
  0xfe   :  { %v24931_v46 = vpop.f32.mrb[6].mxu0 }
  0xff   :  { %29048 = vst [vmem:[#allocation10_spill] sm:$0xff] %v24931_v46  ;;  %v646_v47 = vadd.f32 %v645_v41, %v598_v44  ;;  %v544_v48 = vadd.f32 %v543_v43, %v24931_v46  ;;  %v599_v49 = vmul.f32 %v24931_v46, %v24931_v46  ;;  %v19824_v50 = vpop.f32.mrb[7].mxu0 }
 0x101   :  { %v647_v51 = vadd.f32 %v646_v47, %v599_v49 }
 0x104   :  { %v24936_v52 = vpop.f32.mrb[8].mxu0 }
 0x105   :  { %29049 = vst [vmem:[#allocation11_spill] sm:$0xff] %v24936_v52  ;;  %v545_v53 = vadd.f32 %v544_v48, %v24936_v52  ;;  %v600_v54 = vmul.f32 %v24936_v52, %v24936_v52  ;;  %v19827_v55 = vpop.f32.mrb[9].mxu0 }
 0x106   :  { %v24941_v56 = vpop.f32.mrb[10].mxu0 }
 0x107   :  { %29050 = vst [vmem:[#allocation12_spill] sm:$0xff] %v24941_v56  ;;  %v648_v57 = vadd.f32 %v647_v51, %v600_v54  ;;  %v546_v58 = vadd.f32 %v545_v53, %v24941_v56  ;;  %v601_v59 = vmul.f32 %v24941_v56, %v24941_v56  ;;  %v19828_v60 = vpop.f32.mrb[11].mxu0 }
 0x109   :  { %v649_v61 = vadd.f32 %v648_v57, %v601_v59 }
 0x10c   :  { %v24946_v62 = vpop.f32.mrb[12].mxu0 }
 0x10d   :  { %v547_v63 = vadd.f32 %v546_v58, %v24946_v62  ;;  %v602_v0 = vmul.f32 %v24946_v62, %v24946_v62  ;;  %741 = vrot.lane.b32.xlu0 %v24946_v62, %s24673_s0  ;;  %v19831_v2 = vpop.f32.mrb[13].mxu0 }
 0x10e   :  { %v24953_v3 = vpop.f32.mrb[14].mxu0 }
 0x10f   :  { %v650_v4 = vadd.f32 %v649_v61, %v602_v0  ;;  %v548_v5 = vadd.f32 %v547_v63, %v24953_v3  ;;  %v603_v6 = vmul.f32 %v24953_v3, %v24953_v3  ;;  %743 = vrot.lane.b32.xlu1 %v24953_v3, %s24673_s0  ;;  %v19832_v7 = vpop.f32.mrb[15].mxu0 }
 0x111   :  { %v651_v8 = vadd.f32 %v650_v4, %v603_v6  ;;  %839 = vrot.lane.b32.xlu0 %v24946_v62, %s24674_s28 }
 0x113   :  { %841 = vrot.lane.b32.xlu1 %v24953_v3, %s24674_s28 }
 0x114   :  { %v24964_v9 = vpop.f32.mrb[16].mxu0 }
 0x115   :  { %v549_v10 = vadd.f32 %v548_v5, %v24964_v9  ;;  %v604_v11 = vmul.f32 %v24964_v9, %v24964_v9  ;;  %937 = vrot.lane.b32.xlu0 %v24946_v62, %s24675_s29  ;;  %v19835_v12 = vpop.f32.mrb[17].mxu0 }
 0x116   :  { %v24971_v13 = vpop.f32.mrb[18].mxu0 }
 0x117   :  { %v652_v14 = vadd.f32 %v651_v8, %v604_v11  ;;  %v550_v15 = vadd.f32 %v549_v10, %v24971_v13  ;;  %v605_v16 = vmul.f32 %v24971_v13, %v24971_v13  ;;  %939 = vrot.lane.b32.xlu1 %v24953_v3, %s24675_s29  ;;  %v19836_v17 = vpop.f32.mrb[19].mxu0 }
 0x119   :  { %v653_v18 = vadd.f32 %v652_v14, %v605_v16  ;;  %745 = vrot.lane.b32.xlu0 %v24964_v9, %s24673_s0 }
 0x11b   :  { %747 = vrot.lane.b32.xlu1 %v24971_v13, %s24673_s0 }
 0x11c   :  { %v24982_v19 = vpop.f32.mrb[20].mxu0 }
 0x11d   :  { %v551_v20 = vadd.f32 %v550_v15, %v24982_v19  ;;  %v606_v21 = vmul.f32 %v24982_v19, %v24982_v19  ;;  %843 = vrot.lane.b32.xlu0 %v24964_v9, %s24674_s28  ;;  %v19839_v22 = vpop.f32.mrb[21].mxu0 }
 0x11e   :  { %v24989_v23 = vpop.f32.mrb[22].mxu0 }
 0x11f   :  { %v654_v24 = vadd.f32 %v653_v18, %v606_v21  ;;  %v552_v25 = vadd.f32 %v551_v20, %v24989_v23  ;;  %v607_v26 = vmul.f32 %v24989_v23, %v24989_v23  ;;  %845 = vrot.lane.b32.xlu1 %v24971_v13, %s24674_s28  ;;  %v19840_v27 = vpop.f32.mrb[23].mxu0 }
 0x121   :  { %v655_v28 = vadd.f32 %v654_v24, %v607_v26  ;;  %941 = vrot.lane.b32.xlu0 %v24964_v9, %s24675_s29 }
 0x123   :  { %943 = vrot.lane.b32.xlu1 %v24971_v13, %s24675_s29 }
 0x124   :  { %v25000_v29 = vpop.f32.mrb[24].mxu0 }
 0x125   :  { %v553_v30 = vadd.f32 %v552_v25, %v25000_v29  ;;  %v608_v31 = vmul.f32 %v25000_v29, %v25000_v29  ;;  %749 = vrot.lane.b32.xlu0 %v24982_v19, %s24673_s0  ;;  %v19843_v32 = vpop.f32.mrb[25].mxu0 }
 0x126   :  { %v25007_v33 = vpop.f32.mrb[26].mxu0 }
 0x127   :  { %v656_v35 = vadd.f32 %v655_v28, %v608_v31  ;;  %v554_v37 = vadd.f32 %v553_v30, %v25007_v33  ;;  %v609_v38 = vmul.f32 %v25007_v33, %v25007_v33  ;;  %751 = vrot.lane.b32.xlu1 %v24989_v23, %s24673_s0  ;;  %v19844_v39 = vpop.f32.mrb[27].mxu0 }
 0x129   :  { %v657_v40 = vadd.f32 %v656_v35, %v609_v38  ;;  %847 = vrot.lane.b32.xlu0 %v24982_v19, %s24674_s28 }
 0x12b   :  { %849 = vrot.lane.b32.xlu1 %v24989_v23, %s24674_s28 }
 0x12c   :  { %v25018_v41 = vpop.f32.mrb[28].mxu0 }
 0x12d   :  { %v555_v43 = vadd.f32 %v554_v37, %v25018_v41  ;;  %v610_v44 = vmul.f32 %v25018_v41, %v25018_v41  ;;  %945 = vrot.lane.b32.xlu0 %v24982_v19, %s24675_s29  ;;  %v19847_v45 = vpop.f32.mrb[29].mxu0 }
 0x12e   :  { %v25025_v47 = vpop.f32.mrb[30].mxu0 }
 0x12f   :  { %v658_v48 = vadd.f32 %v657_v40, %v610_v44  ;;  %v556_v49 = vadd.f32 %v555_v43, %v25025_v47  ;;  %v611_v50 = vmul.f32 %v25025_v47, %v25025_v47  ;;  %947 = vrot.lane.b32.xlu1 %v24989_v23, %s24675_s29  ;;  %v19848_v51 = vpop.f32.mrb[31].mxu0 }
 0x131   :  { %v659_v53 = vadd.f32 %v658_v48, %v611_v50  ;;  %753 = vrot.lane.b32.xlu0 %v25000_v29, %s24673_s0 }
 0x133   :  { %755 = vrot.lane.b32.xlu1 %v25007_v33, %s24673_s0 }
 0x134   :  { %v25036_v54 = vpop.f32.mrb[32].mxu0 }
 0x135   :  { %v557_v55 = vadd.f32 %v556_v49, %v25036_v54  ;;  %v612_v57 = vmul.f32 %v25036_v54, %v25036_v54  ;;  %851 = vrot.lane.b32.xlu0 %v25000_v29, %s24674_s28  ;;  %v19851_v58 = vpop.f32.mrb[33].mxu0 }
 0x136   :  { %v25043_v59 = vpop.f32.mrb[34].mxu0 }
 0x137   :  { %v660_v60 = vadd.f32 %v659_v53, %v612_v57  ;;  %v558_v61 = vadd.f32 %v557_v55, %v25043_v59  ;;  %v613_v63 = vmul.f32 %v25043_v59, %v25043_v59  ;;  %853 = vrot.lane.b32.xlu1 %v25007_v33, %s24674_s28  ;;  %v19852_v0 = vpop.f32.mrb[35].mxu0 }
 0x139   :  { %v661_v2 = vadd.f32 %v660_v60, %v613_v63  ;;  %949 = vrot.lane.b32.xlu0 %v25000_v29, %s24675_s29 }
 0x13b   :  { %951 = vrot.lane.b32.xlu1 %v25007_v33, %s24675_s29 }
 0x13c   :  { %v25054_v4 = vpop.f32.mrb[36].mxu0 }
 0x13d   :  { %29051 = vst [vmem:[#allocation13_spill] sm:$0xff] %v25054_v4  ;;  %v559_v5 = vadd.f32 %v558_v61, %v25054_v4  ;;  %v614_v6 = vmul.f32 %v25054_v4, %v25054_v4  ;;  %757 = vrot.lane.b32.xlu0 %v25018_v41, %s24673_s0  ;;  %v19855_v7 = vpop.f32.mrb[37].mxu0 }
 0x13e   :  { %v25061_v8 = vpop.f32.mrb[38].mxu0 }
 0x13f   :  { %29052 = vst [vmem:[#allocation14_spill] sm:$0xff] %v25061_v8  ;;  %v662_v10 = vadd.f32 %v661_v2, %v614_v6  ;;  %v560_v11 = vadd.f32 %v559_v5, %v25061_v8  ;;  %v615_v12 = vmul.f32 %v25061_v8, %v25061_v8  ;;  %759 = vrot.lane.b32.xlu1 %v25025_v47, %s24673_s0  ;;  %v19856_v14 = vpop.f32.mrb[39].mxu0 }
 0x141   :  { %v663_v15 = vadd.f32 %v662_v10, %v615_v12  ;;  %855 = vrot.lane.b32.xlu0 %v25018_v41, %s24674_s28 }
 0x143   :  { %857 = vrot.lane.b32.xlu1 %v25025_v47, %s24674_s28 }
 0x144   :  { %v25072_v16 = vpop.f32.mrb[40].mxu0 }
 0x145   :  { %29053 = vst [vmem:[#allocation15_spill] sm:$0xff] %v25072_v16 }
 0x146   :  { %19 = vsyncpa [#allocation5], 0  ;;  %v561_v17 = vadd.f32 %v560_v11, %v25072_v16  ;;  %v616_v18 = vmul.f32 %v25072_v16, %v25072_v16  ;;  %953 = vrot.lane.b32.xlu0 %v25018_v41, %s24675_s29  ;;  %v19859_v20 = vpop.f32.mrb[41].mxu0  ;;  %vm2321_vm3 = vcmask 1046528   ;;  %vm2833_vm4 = vcmask 1045504  }
 0x147   :  { %v25079_v21 = vpop.f32.mrb[42].mxu0  ;;  %955 = vrot.lane.b32.xlu1 %v25025_v47, %s24675_s29  ;;  %vm3345_vm5 = vcmask 1044480  }
 0x148   :  { %29054 = vst [vmem:[#allocation16_spill] sm:$0xff] %v25079_v21  ;;  %v664_v22 = vadd.f32 %v663_v15, %v616_v18  ;;  %v562_v24 = vadd.f32 %v561_v17, %v25079_v21  ;;  %v617_v25 = vmul.f32 %v25079_v21, %v25079_v21  ;;  %v19860_v26 = vpop.f32.mrb[43].mxu0 }
 0x14a   :  { %v665_v27 = vadd.f32 %v664_v22, %v617_v25  ;;  %761 = vrot.lane.b32.xlu0 %v25036_v54, %s24673_s0 }
 0x14b   :  { %763 = vrot.lane.b32.xlu1 %v25043_v59, %s24673_s0 }
 0x14c   :  { %v25090_v28 = vpop.f32.mrb[44].mxu0 }
 0x14d   :  { %29055 = vst [vmem:[#allocation17_spill] sm:$0xff] %v25090_v28  ;;  %v563_v30 = vadd.f32 %v562_v24, %v25090_v28  ;;  %v618_v31 = vmul.f32 %v25090_v28, %v25090_v28  ;;  %v19863_v32 = vpop.f32.mrb[45].mxu0 }
 0x14e   :  { %v25095_v35 = vpop.f32.mrb[46].mxu0 }
 0x14f   :  { %29056 = vst [vmem:[#allocation18_spill] sm:$0xff] %v25095_v35  ;;  %v666_v37 = vadd.f32 %v665_v27, %v618_v31  ;;  %v564_v38 = vadd.f32 %v563_v30, %v25095_v35  ;;  %v619_v39 = vmul.f32 %v25095_v35, %v25095_v35  ;;  %v19864_v40 = vpop.f32.mrb[47].mxu0 }
 0x151   :  { %v667_v43 = vadd.f32 %v666_v37, %v619_v39 }
 0x154   :  { %v25100_v44 = vpop.f32.mrb[48].mxu0 }
 0x155   :  { %29057 = vst [vmem:[#allocation19_spill] sm:$0xff] %v25100_v44  ;;  %v565_v45 = vadd.f32 %v564_v38, %v25100_v44  ;;  %v620_v48 = vmul.f32 %v25100_v44, %v25100_v44  ;;  %v19867_v49 = vpop.f32.mrb[49].mxu0 }
 0x156   :  { %v25105_v50 = vpop.f32.mrb[50].mxu0 }
 0x157   :  { %29058 = vst [vmem:[#allocation20_spill] sm:$0xff] %v25105_v50  ;;  %v668_v51 = vadd.f32 %v667_v43, %v620_v48  ;;  %v566_v53 = vadd.f32 %v565_v45, %v25105_v50  ;;  %v621_v55 = vmul.f32 %v25105_v50, %v25105_v50  ;;  %v19868_v57 = vpop.f32.mrb[51].mxu0 }
 0x159   :  { %v669_v58 = vadd.f32 %v668_v51, %v621_v55 }
 0x15c   :  { %v25110_v60 = vpop.f32.mrb[52].mxu0 }
 0x15d   :  { %29059 = vst [vmem:[#allocation21_spill] sm:$0xff] %v25110_v60  ;;  %v567_v61 = vadd.f32 %v566_v53, %v25110_v60  ;;  %v622_v63 = vmul.f32 %v25110_v60, %v25110_v60  ;;  %v19871_v0 = vpop.f32.mrb[53].mxu0 }
 0x15e   :  { %v25115_v2 = vpop.f32.mrb[54].mxu0 }
 0x15f   :  { %29060 = vst [vmem:[#allocation22_spill] sm:$0xff] %v25115_v2  ;;  %v670_v5 = vadd.f32 %v669_v58, %v622_v63  ;;  %v568_v6 = vadd.f32 %v567_v61, %v25115_v2  ;;  %v623_v7 = vmul.f32 %v25115_v2, %v25115_v2  ;;  %v19872_v10 = vpop.f32.mrb[55].mxu0 }
 0x161   :  { %v671_v11 = vadd.f32 %v670_v5, %v623_v7 }
 0x164   :  { %v25120_v12 = vpop.f32.mrb[56].mxu0 }
 0x165   :  { %29061 = vst [vmem:[#allocation23_spill] sm:$0xff] %v25120_v12  ;;  %v569_v14 = vadd.f32 %v568_v6, %v25120_v12  ;;  %v624_v15 = vmul.f32 %v25120_v12, %v25120_v12  ;;  %v19875_v17 = vpop.f32.mrb[57].mxu0 }
 0x166   :  { %v25125_v18 = vpop.f32.mrb[58].mxu0 }
 0x167   :  { %29062 = vst [vmem:[#allocation24_spill] sm:$0xff] %v25125_v18  ;;  %v672_v20 = vadd.f32 %v671_v11, %v624_v15  ;;  %v570_v22 = vadd.f32 %v569_v14, %v25125_v18  ;;  %v625_v24 = vmul.f32 %v25125_v18, %v25125_v18  ;;  %v19876_v25 = vpop.f32.mrb[59].mxu0 }
 0x169   :  { %v673_v26 = vadd.f32 %v672_v20, %v625_v24 }
 0x16c   :  { %v25130_v27 = vpop.f32.mrb[60].mxu0 }
 0x16d   :  { %29063 = vst [vmem:[#allocation25_spill] sm:$0xff] %v25130_v27  ;;  %v571_v30 = vadd.f32 %v570_v22, %v25130_v27  ;;  %v626_v31 = vmul.f32 %v25130_v27, %v25130_v27  ;;  %v19879_v32 = vpop.f32.mrb[61].mxu0 }
 0x16e   :  { %v25135_v37 = vpop.f32.mrb[62].mxu0 }
 0x16f   :  { %29064 = vst [vmem:[#allocation26_spill] sm:$0xff] %v25135_v37  ;;  %v674_v38 = vadd.f32 %v673_v26, %v626_v31  ;;  %v572_v39 = vadd.f32 %v571_v30, %v25135_v37  ;;  %v627_v40 = vmul.f32 %v25135_v37, %v25135_v37  ;;  %v19880_v43 = vpop.f32.mrb[63].mxu0 }
 0x171   :  { %v675_v45 = vadd.f32 %v674_v38, %v627_v40 }
 0x174   :  { %v25140_v48 = vpop.f32.mrb[64].mxu0 }
 0x175   :  { %29065 = vst [vmem:[#allocation27_spill] sm:$0xff] %v25140_v48  ;;  %v573_v49 = vadd.f32 %v572_v39, %v25140_v48  ;;  %v628_v51 = vmul.f32 %v25140_v48, %v25140_v48  ;;  %v19883_v53 = vpop.f32.mrb[65].mxu0 }
 0x176   :  { %v25145_v55 = vpop.f32.mrb[66].mxu0 }
 0x177   :  { %29066 = vst [vmem:[#allocation28_spill] sm:$0xff] %v25145_v55  ;;  %v676_v57 = vadd.f32 %v675_v45, %v628_v51  ;;  %v574_v58 = vadd.f32 %v573_v49, %v25145_v55  ;;  %v629_v61 = vmul.f32 %v25145_v55, %v25145_v55  ;;  %v19884_v63 = vpop.f32.mrb[67].mxu0 }
 0x179   :  { %v677_v0 = vadd.f32 %v676_v57, %v629_v61 }
 0x17c   :  { %v25150_v5 = vpop.f32.mrb[68].mxu0 }
 0x17d   :  { %29067 = vst [vmem:[#allocation29_spill] sm:$0xff] %v25150_v5  ;;  %v575_v6 = vadd.f32 %v574_v58, %v25150_v5  ;;  %v630_v7 = vmul.f32 %v25150_v5, %v25150_v5  ;;  %v19887_v10 = vpop.f32.mrb[69].mxu0 }
 0x17e   :  { %v25155_v11 = vpop.f32.mrb[70].mxu0 }
 0x17f   :  { %v678_v14 = vadd.f32 %v677_v0, %v630_v7  ;;  %v576_v15 = vadd.f32 %v575_v6, %v25155_v11  ;;  %v631_v17 = vmul.f32 %v25155_v11, %v25155_v11  ;;  %v19888_v20 = vpop.f32.mrb[71].mxu0 }
 0x181   :  { %v679_v22 = vadd.f32 %v678_v14, %v631_v17 }
 0x184   :  { %v25160_v24 = vpop.f32.mrb[72].mxu0 }
 0x185   :  { %v577_v25 = vadd.f32 %v576_v15, %v25160_v24  ;;  %v632_v26 = vmul.f32 %v25160_v24, %v25160_v24  ;;  %v19891_v30 = vpop.f32.mrb[73].mxu0 }
 0x186   :  { %v25165_v31 = vpop.f32.mrb[74].mxu0 }
 0x187   :  { %v680_v32 = vadd.f32 %v679_v22, %v632_v26  ;;  %v578_v38 = vadd.f32 %v577_v25, %v25165_v31  ;;  %v633_v39 = vmul.f32 %v25165_v31, %v25165_v31  ;;  %v19892_v40 = vpop.f32.mrb[75].mxu0 }
 0x189   :  { %v681_v43 = vadd.f32 %v680_v32, %v633_v39 }
 0x18c   :  { %v25170_v45 = vpop.f32.mrb[76].mxu0 }
 0x18d   :  { %v579_v49 = vadd.f32 %v578_v38, %v25170_v45  ;;  %v634_v51 = vmul.f32 %v25170_v45, %v25170_v45  ;;  %v19895_v53 = vpop.f32.mrb[77].mxu0 }
 0x18e   :  { %v25175_v57 = vpop.f32.mrb[78].mxu0 }
 0x18f   :  { %v682_v58 = vadd.f32 %v681_v43, %v634_v51  ;;  %v580_v61 = vadd.f32 %v579_v49, %v25175_v57  ;;  %v635_v63 = vmul.f32 %v25175_v57, %v25175_v57  ;;  %v19896_v0 = vpop.f32.mrb[79].mxu0 }
 0x191   :  { %v683_v6 = vadd.f32 %v682_v58, %v635_v63 }
 0x194   :  { %v25180_v7 = vpop.f32.mrb[80].mxu0 }
 0x195   :  { %29068 = vst [vmem:[#allocation30_spill] sm:$0xff] %v25180_v7  ;;  %v581_v10 = vadd.f32 %v580_v61, %v25180_v7  ;;  %v636_v14 = vmul.f32 %v25180_v7, %v25180_v7  ;;  %v19899_v15 = vpop.f32.mrb[81].mxu0 }
 0x196   :  { %v25185_v17 = vpop.f32.mrb[82].mxu0 }
 0x197   :  { %29069 = vst [vmem:[#allocation31_spill] sm:$0xff] %v25185_v17  ;;  %v684_v20 = vadd.f32 %v683_v6, %v636_v14  ;;  %v582_v22 = vadd.f32 %v581_v10, %v25185_v17  ;;  %v637_v25 = vmul.f32 %v25185_v17, %v25185_v17  ;;  %v19900_v26 = vpop.f32.mrb[83].mxu0 }
 0x199   :  { %v685_v30 = vadd.f32 %v684_v20, %v637_v25 }
 0x19c   :  { %v25190_v32 = vpop.f32.mrb[84].mxu0 }
 0x19d   :  { %29070 = vst [vmem:[#allocation32_spill] sm:$0xff] %v25190_v32  ;;  %v583_v38 = vadd.f32 %v582_v22, %v25190_v32  ;;  %v638_v39 = vmul.f32 %v25190_v32, %v25190_v32  ;;  %v19903_v40 = vpop.f32.mrb[85].mxu0 }
 0x19e   :  { %v25195_v43 = vpop.f32.mrb[86].mxu0 }
 0x19f   :  { %29071 = vst [vmem:[#allocation33_spill] sm:$0xff] %v25195_v43  ;;  %v686_v49 = vadd.f32 %v685_v30, %v638_v39  ;;  %v584_v51 = vadd.f32 %v583_v38, %v25195_v43  ;;  %v639_v53 = vmul.f32 %v25195_v43, %v25195_v43  ;;  %v19904_v58 = vpop.f32.mrb[87].mxu0 }
 0x1a1   :  { %v687_v61 = vadd.f32 %v686_v49, %v639_v53 }
 0x1a4   :  { %v25200_v63 = vpop.f32.mrb[88].mxu0 }
 0x1a5   :  { %29072 = vst [vmem:[#allocation34_spill] sm:$0xff] %v25200_v63  ;;  %v585_v0 = vadd.f32 %v584_v51, %v25200_v63  ;;  %v640_v6 = vmul.f32 %v25200_v63, %v25200_v63  ;;  %v19907_v10 = vpop.f32.mrb[89].mxu0 }
 0x1a6   :  { %v25205_v14 = vpop.f32.mrb[90].mxu0 }
 0x1a7   :  { %29073 = vst [vmem:[#allocation35_spill] sm:$0xff] %v25205_v14  ;;  %v688_v15 = vadd.f32 %v687_v61, %v640_v6  ;;  %v586_v20 = vadd.f32 %v585_v0, %v25205_v14  ;;  %v641_v22 = vmul.f32 %v25205_v14, %v25205_v14  ;;  %v19908_v25 = vpop.f32.mrb[91].mxu0 }
 0x1a9   :  { %v689_v26 = vadd.f32 %v688_v15, %v641_v22 }
 0x1ac   :  { %v25210_v30 = vpop.f32.mrb[92].mxu0 }
 0x1ad   :  { %29074 = vst [vmem:[#allocation36_spill] sm:$0xff] %v25210_v30  ;;  %v587_v38 = vadd.f32 %v586_v20, %v25210_v30  ;;  %v642_v39 = vmul.f32 %v25210_v30, %v25210_v30  ;;  %v19911_v40 = vpop.f32.mrb[93].mxu0 }
 0x1ae   :  { %v25215_v49 = vpop.f32.mrb[94].mxu0 }
 0x1af   :  { %29075 = vst [vmem:[#allocation37_spill] sm:$0xff] %v25215_v49  ;;  %v643_v51 = vmul.f32 %v25215_v49, %v25215_v49  ;;  %v19912_v53 = vpop.f32.mrb[95].mxu0  ;;  %v588_v58 = vadd.f32 %v587_v38, %v25215_v49  ;;  %v690_v61 = vadd.f32 %v689_v26, %v642_v39 }
 0x1b1   :  { %v691_v0 = vadd.f32 %v690_v61, %v643_v51 }
 0x1b4   :  { %v25220_v6 = vpop.f32.mrb[96].mxu0 }
 0x1b5   :  { %29076 = vst [vmem:[#allocation38_spill] sm:$0xff] %v25220_v6  ;;  %v19915_v10 = vpop.f32.mrb[97].mxu0  ;;  %v589_v15 = vadd.f32 %v588_v58, %v25220_v6  ;;  %v644_v20 = vmul.f32 %v25220_v6, %v25220_v6 }
 0x1b6   :  { %v539_v22 = vpop.f32.mrb[98].mxu0  ;;  %v28986_v10 = vmov 0  }
 0x1b7   :  { %v19916_v25 = vpop.f32.mrb[99].mxu0  ;;  %v590_v40 = vrot.slane %v589_v15, 4  ;;  %v692_v1 = vadd.f32 %v691_v0, %v644_v20  ;;  %23750 = vset.pattern.permute.xlu1 %v28986_v10  ;;  %23751 = vset.pattern.permute.xlu0 %v28986_v10  ;;  %v23787_v20 = vld [vmem:[%s28966_s5 + $0x290] sm:$0xff]  }
 0x1b9   :  { %v591_v30 = vadd.f32 %v590_v40, %v589_v15  ;;  %v693_v63 = vrot.slane %v692_v1, 4  ;;  %v23788_v40 = vld [vmem:[%s28966_s5 + $0x298] sm:$0xff]  }
 0x1bb   :  { %v592_v14 = vrot.slane %v591_v30, 2  ;;  %v694_v53 = vadd.f32 %v693_v63, %v692_v1  ;;  %v23785_v1 = vld [vmem:[%s28966_s5 + $0x280] sm:$0xff]   ;;  %v25256_v63 = vpop.permute.xlu1 %743 }
 0x1bc   :  { %20758 = vmatpush3.bf16.msra.mxu1 %v23785_v1 }
 0x1bd   :  { %v593_v32 = vadd.f32 %v592_v14, %v591_v30  ;;  %v695_v38 = vrot.slane %v694_v53, 2  ;;  %v29077_v14 = vmov 0.0   ;;  %v23786_v30 = vld [vmem:[%s28966_s5 + $0x288] sm:$0xff]  }
 0x1be   :  { %20759 = vmatprep.subr.bf16.mxu1 %v29077_v14 }
 0x1bf   :  { %v594_v26 = vrot.slane %v593_v32, 1  ;;  %v696_v39 = vadd.f32 %v695_v38, %v694_v53  ;;  %v25272_v15 = vpop.permute.xlu1 %841  ;;  %v23789_v53 = vld [vmem:[%s28966_s5 + $0x2a0] sm:$0xff]  }
 0x1c0   :  { %20760 = vmatpush3.bf16.msra.mxu1 %v23786_v30  ;;  %v23791_v30 = vld [vmem:[%s28966_s5 + $0x2b0] sm:$0xff]  }
 0x1c1   :  { %v25225_v51 = vadd.f32 %v594_v26, %v593_v32  ;;  %v697_v61 = vrot.slane %v696_v39, 1  ;;  %v25254_v32 = vpop.permute.xlu0 %741  ;;  %20761 = vmatprep.subr.bf16.mxu1 %v29077_v14 }
 0x1c3   :  { %705 = vrot.lane.b32.xlu1 %v25225_v51, %s24675_s29  ;;  %699 = vrot.lane.b32.xlu0 %v25225_v51, %s24673_s0  ;;  %v25233_v58 = vadd.f32 %v697_v61, %v696_v39  ;;  %v25285_v25 = vpop.permute.xlu1 %939  ;;  %v23790_v39 = vld [vmem:[%s28966_s5 + $0x2a8] sm:$0xff]  }
 0x1c4   :  { %20762 = vmatpush3.bf16.msra.mxu1 %v23787_v20  ;;  %v23792_v20 = vld [vmem:[%s28966_s5 + $0x2b8] sm:$0xff]  }
 0x1c5   :  { %v25270_v0 = vpop.permute.xlu0 %839  ;;  %20763 = vmatprep.subr.bf16.mxu1 %v29077_v14 }
 0x1c7   :  { %708 = vrot.lane.b32.xlu1 %v25233_v58, %s24673_s0  ;;  %702 = vrot.lane.b32.xlu0 %v25225_v51, %s24674_s28  ;;  %v25304_v26 = vpop.permute.xlu1 %747 }
 0x1c8   :  { %20764 = vmatpush3.bf16.msra.mxu1 %v23788_v40 }
 0x1c9   :  { %v25283_v22 = vpop.permute.xlu0 %937  ;;  %20765 = vmatprep.subr.bf16.mxu1 %v29077_v14 }
 0x1cb   :  { %714 = vrot.lane.b32.xlu1 %v25233_v58, %s24675_s29  ;;  %711 = vrot.lane.b32.xlu0 %v25233_v58, %s24674_s28  ;;  %v25317_v1 = vpop.permute.xlu1 %845 }
 0x1cc   :  { %20766 = vmatpush3.bf16.msra.mxu1 %v23789_v53 }
 0x1cd   :  { %v25302_v38 = vpop.permute.xlu0 %745  ;;  %20767 = vmatprep.subr.bf16.mxu1 %v29077_v14 }
 0x1cf   :  { %861 = vrot.lane.b32.xlu1 %v25043_v59, %s24674_s28  ;;  %859 = vrot.lane.b32.xlu0 %v25036_v54, %s24674_s28  ;;  %v25336_v53 = vpop.permute.xlu1 %943 }
 0x1d0   :  { %20768 = vmatpush3.bf16.msra.mxu1 %v23790_v39 }
 0x1d1   :  { %20769 = vmatprep.subr.bf16.mxu1 %v29077_v14  ;;  %v25315_v61 = vpop.permute.xlu0 %843 }
 0x1d3   :  { %959 = vrot.lane.b32.xlu1 %v25043_v59, %s24675_s29  ;;  %957 = vrot.lane.b32.xlu0 %v25036_v54, %s24675_s29 }
 0x1d4   :  { %20770 = vmatpush3.bf16.msra.mxu1 %v23791_v30  ;;  %v25345_v30 = vpop.permute.xlu1 %751 }
 0x1d5   :  { %20771 = vmatprep.subr.bf16.mxu1 %v29077_v14  ;;  %v25334_v40 = vpop.permute.xlu0 %941 }
 0x1d7   :  { %767 = vrot.lane.b32.xlu1 %v25061_v8, %s24673_s0  ;;  %765 = vrot.lane.b32.xlu0 %v25054_v4, %s24673_s0 }
 0x1d8   :  { %20772 = vmatpush3.bf16.msra.mxu1 %v23792_v20  ;;  %v25357_v10 = vpop.permute.xlu1 %849 }
 0x1d9   :  { %20841 = vmatprep.subr.bf16.mxu1 %v29077_v14  ;;  %v25343_v39 = vpop.permute.xlu0 %749 }
 0x1db   :  { %865 = vrot.lane.b32.xlu1 %v25061_v8, %s24674_s28  ;;  %863 = vrot.lane.b32.xlu0 %v25054_v4, %s24674_s28 }
 0x1dc   :  { %v25365_v49 = vpop.permute.xlu1 %947 }
 0x1dd   :  { %v25355_v20 = vpop.permute.xlu0 %847 }
 0x1df   :  { %963 = vrot.lane.b32.xlu1 %v25061_v8, %s24675_s29  ;;  %961 = vrot.lane.b32.xlu0 %v25054_v4, %s24675_s29  ;;  %v1029_v8 = vmax.f32 %v24946_v62, %v25254_v32 }
 0x1e0   :  { %v25377_v52 = vpop.permute.xlu1 %755 }
 0x1e1   :  { %v25363_v6 = vpop.permute.xlu0 %945 }
 0x1e3   :  { %771 = vrot.lane.b32.xlu1 %v25079_v21, %s24673_s0  ;;  %769 = vrot.lane.b32.xlu0 %v25072_v16, %s24673_s0 }
 0x1e4   :  { %v25385_v42 = vpop.permute.xlu1 %853 }
 0x1e5   :  { %v25375_v43 = vpop.permute.xlu0 %753 }
 0x1e7   :  { %869 = vrot.lane.b32.xlu1 %v25079_v21, %s24674_s28  ;;  %867 = vrot.lane.b32.xlu0 %v25072_v16, %s24674_s28 }
 0x1e8   :  { %v25397_v46 = vpop.permute.xlu1 %951 }
 0x1e9   :  { %v25383_v56 = vpop.permute.xlu0 %851 }
 0x1eb   :  { %967 = vrot.lane.b32.xlu1 %v25079_v21, %s24675_s29  ;;  %965 = vrot.lane.b32.xlu0 %v25072_v16, %s24675_s29  ;;  %v1078_v16 = vmax.f32 %v25270_v0, %v25283_v22  ;;  %v1225_v21 = vmin.f32 %v25270_v0, %v25283_v22 }
 0x1ef   :  { %775 = vrot.lane.b32.xlu1 %v25095_v35, %s24673_s0  ;;  %773 = vrot.lane.b32.xlu0 %v25090_v28, %s24673_s0 }
 0x1f3   :  { %873 = vrot.lane.b32.xlu1 %v25095_v35, %s24674_s28  ;;  %871 = vrot.lane.b32.xlu0 %v25090_v28, %s24674_s28 }
 0x1f7   :  { %971 = vrot.lane.b32.xlu1 %v25095_v35, %s24675_s29  ;;  %969 = vrot.lane.b32.xlu0 %v25090_v28, %s24675_s29 }
 0x1fb   :  { %779 = vrot.lane.b32.xlu1 %v25105_v50, %s24673_s0  ;;  %777 = vrot.lane.b32.xlu0 %v25100_v44, %s24673_s0 }
 0x1ff   :  { %877 = vrot.lane.b32.xlu1 %v25105_v50, %s24674_s28  ;;  %875 = vrot.lane.b32.xlu0 %v25100_v44, %s24674_s28 }
 0x203   :  { %975 = vrot.lane.b32.xlu1 %v25105_v50, %s24675_s29  ;;  %973 = vrot.lane.b32.xlu0 %v25100_v44, %s24675_s29  ;;  %v25405_v44 = vpop.permute.xlu1 %759 }
 0x207   :  { %783 = vrot.lane.b32.xlu1 %v25115_v2, %s24673_s0  ;;  %781 = vrot.lane.b32.xlu0 %v25110_v60, %s24673_s0  ;;  %v25417_v50 = vpop.permute.xlu1 %857 }
 0x20b   :  { %881 = vrot.lane.b32.xlu1 %v25115_v2, %s24674_s28  ;;  %879 = vrot.lane.b32.xlu0 %v25110_v60, %s24674_s28  ;;  %v25425_v28 = vpop.permute.xlu1 %955 }
 0x20f   :  { %979 = vrot.lane.b32.xlu1 %v25115_v2, %s24675_s29  ;;  %977 = vrot.lane.b32.xlu0 %v25110_v60, %s24675_s29  ;;  %v25395_v2 = vpop.permute.xlu0 %949  ;;  %v25437_v35 = vpop.permute.xlu1 %763 }
 0x213   :  { %787 = vrot.lane.b32.xlu1 %v25125_v18, %s24673_s0  ;;  %785 = vrot.lane.b32.xlu0 %v25120_v12, %s24673_s0  ;;  %v25403_v60 = vpop.permute.xlu0 %757 }
 0x217   :  { %885 = vrot.lane.b32.xlu1 %v25125_v18, %s24674_s28  ;;  %883 = vrot.lane.b32.xlu0 %v25120_v12, %s24674_s28 }
 0x21b   :  { %983 = vrot.lane.b32.xlu1 %v25125_v18, %s24675_s29  ;;  %981 = vrot.lane.b32.xlu0 %v25120_v12, %s24675_s29  ;;  %v25415_v18 = vpop.permute.xlu0 %855 }
 0x21f   :  { %791 = vrot.lane.b32.xlu1 %v25135_v37, %s24673_s0  ;;  %789 = vrot.lane.b32.xlu0 %v25130_v27, %s24673_s0  ;;  %v25423_v12 = vpop.permute.xlu0 %953 }
 0x223   :  { %889 = vrot.lane.b32.xlu1 %v25135_v37, %s24674_s28  ;;  %887 = vrot.lane.b32.xlu0 %v25130_v27, %s24674_s28 }
 0x227   :  { %987 = vrot.lane.b32.xlu1 %v25135_v37, %s24675_s29  ;;  %985 = vrot.lane.b32.xlu0 %v25130_v27, %s24675_s29  ;;  %v25435_v37 = vpop.permute.xlu0 %761 }
 0x22b   :  { %795 = vrot.lane.b32.xlu1 %v25145_v55, %s24673_s0  ;;  %793 = vrot.lane.b32.xlu0 %v25140_v48, %s24673_s0 }
 0x22f   :  { %893 = vrot.lane.b32.xlu1 %v25145_v55, %s24674_s28  ;;  %891 = vrot.lane.b32.xlu0 %v25140_v48, %s24674_s28 }
 0x233   :  { %991 = vrot.lane.b32.xlu1 %v25145_v55, %s24675_s29  ;;  %989 = vrot.lane.b32.xlu0 %v25140_v48, %s24675_s29 }
 0x235   :  { %v706_v27 = vpop.permute.xlu1 %705  ;;  %v700_v34 = vpop.permute.xlu0 %699 }
 0x236   :  { %v701_v36 = vadd.f32 %v700_v34, %v25225_v51 }
 0x237   :  { %799 = vrot.lane.b32.xlu1 %v25155_v11, %s24673_s0  ;;  %797 = vrot.lane.b32.xlu0 %v25150_v5, %s24673_s0 }
 0x239   :  { %v709_v14 = vpop.permute.xlu1 %708  ;;  %v703_v7 = vpop.permute.xlu0 %702 }
 0x23a   :  { %v704_v17 = vadd.f32 %v703_v7, %v701_v36  ;;  %v710_v48 = vadd.f32 %v709_v14, %v25233_v58  ;;  %v1079_v36 = vmax.f32 %v25272_v15, %v25285_v25  ;;  %v25475_v14 = vmax.f32 %v1029_v8, %v1078_v16 }
 0x23b   :  { %897 = vrot.lane.b32.xlu1 %v25155_v11, %s24674_s28  ;;  %895 = vrot.lane.b32.xlu0 %v25150_v5, %s24674_s28  ;;  %v1031_v16 = vmax.f32 %v24964_v9, %v25302_v38 }
 0x23c   :  { %v707_v55 = vadd.f32 %v706_v27, %v704_v17  ;;  %v1176_v27 = vmin.f32 %v24946_v62, %v25254_v32  ;;  %v1030_v17 = vmax.f32 %v24953_v3, %v25256_v63  ;;  %v1080_v62 = vmax.f32 %v25315_v61, %v25334_v40 }
 0x23d   :  { %v715_v4 = vpop.permute.xlu1 %714  ;;  %v712_v34 = vpop.permute.xlu0 %711  ;;  %v1227_v32 = vmin.f32 %v25315_v61, %v25334_v40  ;;  %v1179_v61 = vmin.f32 %v24971_v13, %v25304_v26 }
 0x23e   :  { %v25459_v7 = vmul.f32 0.0006377551, %v707_v55  ;;  %v713_v51 = vadd.f32 %v712_v34, %v710_v48  ;;  %v1177_v55 = vmin.f32 %v24953_v3, %v25256_v63  ;;  %v1226_v48 = vmin.f32 %v25272_v15, %v25285_v25 }
 0x23f   :  { %995 = vrot.lane.b32.xlu1 %v25155_v11, %s24675_s29  ;;  %993 = vrot.lane.b32.xlu0 %v25150_v5, %s24675_s29  ;;  %v25477_v0 = vmin.f32 %v1176_v27, %v1225_v21  ;;  %v25487_v5 = vmax.f32 %v1030_v17, %v1079_v36  ;;  %v1081_v3 = vmax.f32 %v25317_v1, %v25336_v53 }
 0x240   :  { %v716_v58 = vadd.f32 %v715_v4, %v713_v51  ;;  %v720_v4 = vmul.f32 %v25459_v7, %v25459_v7  ;;  %v1178_v21 = vmin.f32 %v24964_v9, %v25302_v38  ;;  %v1228_v63 = vmin.f32 %v25317_v1, %v25336_v53 }
 0x241   :  { %v25483_v22 = vpop.permute.xlu1 %861  ;;  %v25485_v34 = vpop.permute.xlu0 %859  ;;  %v25503_v15 = vmin.f32 %v1177_v55, %v1226_v48  ;;  %v1032_v25 = vmax.f32 %v24971_v13, %v25304_v26  ;;  %v25509_v36 = vmax.f32 %v1031_v16, %v1080_v62  ;;  %v1082_v38 = vmax.f32 %v25355_v20, %v25363_v6 }
 0x242   :  { %v719_v8 = vmul.f32 0.0006377551, %v716_v58  ;;  %v25511_v9 = vmin.f32 %v1178_v21, %v1227_v32  ;;  %v1229_v1 = vmin.f32 %v25355_v20, %v25363_v6  ;;  %v1083_v13 = vmax.f32 %v25357_v10, %v25365_v49 }
 0x243   :  { %803 = vrot.lane.b32.xlu1 %v25165_v31, %s24673_s0  ;;  %801 = vrot.lane.b32.xlu0 %v25160_v24, %s24673_s0  ;;  %v25521_v27 = vmax.f32 %v1032_v25, %v1081_v3  ;;  %v1230_v26 = vmin.f32 %v25357_v10, %v25365_v49  ;;  %v25527_v55 = vmin.f32 %v1179_v61, %v1228_v63  ;;  %v1319_v21 = vlaneseq }
 0x244   :  { %v721_v40 = vsub.f32 %v719_v8, %v720_v4  ;;  %v1033_v48 = vmax.f32 %v24982_v19, %v25343_v39  ;;  %v1180_v6 = vmin.f32 %v24982_v19, %v25343_v39  ;;  %v1034_v20 = vmax.f32 %v24989_v23, %v25345_v30 }
 0x245   :  { %v25517_v53 = vpop.permute.xlu1 %959  ;;  %v25519_v51 = vpop.permute.xlu0 %957  ;;  %v1181_v49 = vmin.f32 %v24989_v23, %v25345_v30  ;;  %v1084_v10 = vmax.f32 %v25383_v56, %v25395_v2  ;;  %v1231_v19 = vmin.f32 %v25383_v56, %v25395_v2  ;;  %v1085_v39 = vmax.f32 %v25385_v42, %v25397_v46 }
 0x246   :  { %v723_v17 = vadd.f32 1e-05, %v721_v40  ;;  %v25543_v58 = vmax.f32 %v1033_v48, %v1082_v38  ;;  %v25545_v62 = vmin.f32 %v1180_v6, %v1229_v1  ;;  %v25555_v4 = vmax.f32 %v1034_v20, %v1083_v13 }
 0x247   :  { %901 = vrot.lane.b32.xlu1 %v25165_v31, %s24674_s28  ;;  %899 = vrot.lane.b32.xlu0 %v25160_v24, %s24674_s28  ;;  %v25557_v23 = vmin.f32 %v1181_v49, %v1230_v26  ;;  %v1035_v30 = vmax.f32 %v25000_v29, %v25375_v43  ;;  %v1232_v8 = vmin.f32 %v25385_v42, %v25397_v46 }
 0x248   :  { %24643 = vrsqrt.f32 %v723_v17  ;;  %v1182_v56 = vmin.f32 %v25000_v29, %v25375_v43  ;;  %v1036_v2 = vmax.f32 %v25007_v33, %v25377_v52  ;;  %v1086_v16 = vmax.f32 %v25415_v18, %v25423_v12 }
 0x249   :  { %v25551_v32 = vpop.permute.xlu1 %767  ;;  %v25553_v3 = vpop.permute.xlu0 %765  ;;  %v1183_v63 = vmin.f32 %v25007_v33, %v25377_v52  ;;  %v25575_v42 = vmax.f32 %v1035_v30, %v1084_v10  ;;  %v1233_v46 = vmin.f32 %v25415_v18, %v25423_v12  ;;  %v1087_v29 = vmax.f32 %v25417_v50, %v25425_v28 }
 0x24a   :  { %v25581_v43 = vmin.f32 %v1182_v56, %v1231_v19  ;;  %v25583_v25 = vmax.f32 %v1036_v2, %v1085_v39  ;;  %v1037_v61 = vmax.f32 %v25018_v41, %v25403_v60  ;;  %v1234_v40 = vmin.f32 %v25417_v50, %v25425_v28 }
 0x24b   :  { %999 = vrot.lane.b32.xlu1 %v25165_v31, %s24675_s29  ;;  %997 = vrot.lane.b32.xlu0 %v25160_v24, %s24675_s29  ;;  %v25589_v33 = vmin.f32 %v1183_v63, %v1232_v8  ;;  %v1184_v12 = vmin.f32 %v25018_v41, %v25403_v60  ;;  %v1038_v18 = vmax.f32 %v25025_v47, %v25405_v44  ;;  %v1320_v17 = vshrl.u32 %v1319_v21, 7 }
 0x24c   :  { %v1089_v1 = vmax.f32 %v25483_v22, %v25517_v53  ;;  %v1185_v13 = vmin.f32 %v25025_v47, %v25405_v44  ;;  %v25599_v26 = vmax.f32 %v1037_v61, %v1086_v16  ;;  %v1236_v28 = vmin.f32 %v25483_v22, %v25517_v53  ;;  %v722_v47 = vld [vmem:[%s28964_s3] sm:$0x1] }
 0x24d   :  { %v866_v38 = vpop.permute.xlu1 %865  ;;  %v864_v52 = vpop.permute.xlu0 %863  ;;  %v25607_v41 = vmin.f32 %v1184_v12, %v1233_v46  ;;  %v25609_v50 = vmax.f32 %v1038_v18, %v1087_v29  ;;  %v1040_v60 = vmax.f32 %v25043_v59, %v25437_v35  ;;  %v1088_v44 = vmax.f32 %v25485_v34, %v25519_v51  ;;  %v29079_v29 = vld [vmem:[#allocation13_spill] sm:$0xff] }
 0x24e   :  { %v25618_v22 = vmin.f32 %v1185_v13, %v1234_v40  ;;  %v1039_v53 = vmax.f32 %v25036_v54, %v25435_v37  ;;  %v1187_v48 = vmin.f32 %v25043_v59, %v25437_v35  ;;  %v1235_v6 = vmin.f32 %v25485_v34, %v25519_v51  ;;  %v29078_v35 = vld [vmem:[#allocation14_spill] sm:$0xff] }
 0x24f   :  { %807 = vrot.lane.b32.xlu1 %v25175_v57, %s24673_s0  ;;  %805 = vrot.lane.b32.xlu0 %v25170_v45, %s24673_s0  ;;  %v1186_v19 = vmin.f32 %v25036_v54, %v25435_v37  ;;  %v25628_v39 = vmax.f32 %v1040_v60, %v1089_v1  ;;  %v25630_v56 = vsub.s32 0, %v1320_v17  ;;  %v726_v54 = vld [vmem:[%s28965_s4] sm:$0x1]  ;;  %v1042_v37 = vmax.f32 %v29078_v35, %v25551_v32 }
 0x250   :  { %v25632_v16 = vmin.f32 %v1187_v48, %v1236_v28  ;;  %v25641_v59 = vmax.f32 %v1039_v53, %v1088_v44  ;;  %v1189_v34 = vmin.f32 %v29078_v35, %v25551_v32  ;;  %v1041_v61 = vmax.f32 %v29079_v29, %v25553_v3 }
 0x251   :  { %v964_v20 = vpop.permute.xlu1 %963  ;;  %v962_v49 = vpop.permute.xlu0 %961  ;;  %v25648_v46 = vmin.f32 %v1186_v19, %v1235_v6  ;;  %v29080_v12 = vmov 0   ;;  %v1188_v1 = vmin.f32 %v29079_v29, %v25553_v3  ;;  %v29081_v3 = vld [vmem:[#allocation16_spill] sm:$0xff]  ;;  %v29084_v6 = vld [vmem:[#allocation15_spill] sm:$0xff] }
 0x252   :  { %v24644_v10 = vpop.eup %24643  ;;  %v1091_v30 = vmax.f32 %v866_v38, %v964_v20  ;;  %v1238_v8 = vmin.f32 %v866_v38, %v964_v20  ;;  %v1090_v21 = vmax.f32 %v864_v52, %v962_v49  ;;  %v1237_v51 = vmin.f32 %v864_v52, %v962_v49 }
 0x253   :  { %v725_v2 = vmul.f32 %v24644_v10, %v722_v47  ;;  %905 = vrot.lane.b32.xlu1 %v25175_v57, %s24674_s28  ;;  %903 = vrot.lane.b32.xlu0 %v25170_v45, %s24674_s28 }
 0x254   :  { %v25659_v13 = vmax.f32 %v1042_v37, %v1091_v30  ;;  %v25661_v32 = vmin.f32 %v1189_v34, %v1238_v8  ;;  %v25664_v17 = vmax.f32 %v1041_v61, %v1090_v21  ;;  %v25673_v60 = vmin.f32 %v1188_v1, %v1237_v51 }
 0x255   :  { %v727_v63 = vmul.f32 %v725_v2, %v25459_v7  ;;  %vm1317_vm1 = vcmp.ge.f32.partialorder %v725_v2, 0.0  ;;  %v25652_v40 = vpop.permute.xlu1 %771  ;;  %v25654_v38 = vpop.permute.xlu0 %769  ;;  %v25671_v28 = vrot.slane %v725_v2, %v25630_v56 }
 0x256   :  { %v1318_v18 = vsel %vm1317_vm1, 1, %v29080_v12  ;;  %v1044_v47 = vmax.f32 %v29081_v3, %v25652_v40  ;;  %v1191_v44 = vmin.f32 %v29081_v3, %v25652_v40  ;;  %v1043_v20 = vmax.f32 %v29084_v6, %v25654_v38 }
 0x257   :  { %v728_v7 = vsub.f32 %v726_v54, %v727_v63  ;;  %v1322_v52 = vrot.slane %v1318_v18, %v25630_v56  ;;  %1003 = vrot.lane.b32.xlu1 %v25175_v57, %s24675_s29  ;;  %1001 = vrot.lane.b32.xlu0 %v25170_v45, %s24675_s29  ;;  %v1190_v49 = vmin.f32 %v29084_v6, %v25654_v38  ;;  %v23817_v38 = vld [vmem:[%s28966_s5 + $0x10] sm:$0xff]  }
 0x259   :  { %vm25679_vm2 = vcmp.eq.s32.totalorder %v1322_v52, 1  ;;  %v25684_v48 = vrot.slane %v728_v7, %v25630_v56  ;;  %v25690_v10 = vpop.permute.xlu1 %869  ;;  %v25692_v19 = vpop.permute.xlu0 %867 }
 0x25a   :  { %v1330_v30 = vsel %vm25679_vm2, %v25475_v14, %v25477_v0  ;;  %v1331_v8 = vsel %vm25679_vm2, %v25487_v5, %v25503_v15  ;;  %v1332_v2 = vsel %vm25679_vm2, %v25509_v36, %v25511_v9  ;;  %v1333_v21 = vsel %vm25679_vm2, %v25521_v27, %v25527_v55  ;;  %v29085_v36 = vld [vmem:[#allocation31_spill] sm:$0xff] }
 0x25b   :  { %v1334_v14 = vsel %vm25679_vm2, %v25543_v58, %v25545_v62  ;;  %v1335_v5 = vsel %vm25679_vm2, %v25555_v4, %v25557_v23  ;;  %v1336_v0 = vsel %vm25679_vm2, %v25575_v42, %v25581_v43  ;;  %v1337_v15 = vsel %vm25679_vm2, %v25583_v25, %v25589_v33  ;;  %811 = vrot.lane.b32.xlu1 %v29085_v36, %s24673_s0  ;;  %v29086_v62 = vld [vmem:[#allocation30_spill] sm:$0xff] }
 0x25c   :  { %v1338_v9 = vsel %vm25679_vm2, %v25599_v26, %v25607_v41  ;;  %v1339_v27 = vsel %vm25679_vm2, %v25609_v50, %v25618_v22  ;;  %v1385_v55 = vmul.f32 %v25671_v28, %v1330_v30  ;;  %v1386_v58 = vmul.f32 %v25671_v28, %v1331_v8  ;;  %809 = vrot.lane.b32.xlu0 %v29086_v62, %s24673_s0 }
 0x25d   :  { %v1387_v4 = vmul.f32 %v25671_v28, %v1332_v2  ;;  %v1388_v23 = vmul.f32 %v25671_v28, %v1333_v21  ;;  %v1389_v42 = vmul.f32 %v25671_v28, %v1334_v14  ;;  %v1390_v43 = vmul.f32 %v25671_v28, %v1335_v5  ;;  %v25744_v25 = vpop.permute.xlu1 %967  ;;  %v25746_v33 = vpop.permute.xlu0 %965 }
 0x25e   :  { %v1391_v26 = vmul.f32 %v25671_v28, %v1336_v0  ;;  %v1392_v41 = vmul.f32 %v25671_v28, %v1337_v15  ;;  %v1393_v50 = vmul.f32 %v25671_v28, %v1338_v9  ;;  %v1394_v22 = vmul.f32 %v25671_v28, %v1339_v27 }
 0x25f   :  { %v1440_v54 = vadd.f32 %v25684_v48, %v1385_v55  ;;  %v1441_v35 = vadd.f32 %v25684_v48, %v1386_v58  ;;  %v1442_v37 = vadd.f32 %v25684_v48, %v1387_v4  ;;  %v1443_v34 = vadd.f32 %v25684_v48, %v1388_v23  ;;  %909 = vrot.lane.b32.xlu1 %v29085_v36, %s24674_s28  ;;  %v23814_v55 = vld [vmem:[%s28966_s5] sm:$0xff]  }
 0x260   :  { %v1444_v51 = vadd.f32 %v25684_v48, %v1389_v42  ;;  %v1445_v63 = vadd.f32 %v25684_v48, %v1390_v43  ;;  %v1446_v29 = vadd.f32 %v25684_v48, %v1391_v26  ;;  %v1447_v61 = vadd.f32 %v25684_v48, %v1392_v41  ;;  %907 = vrot.lane.b32.xlu0 %v29086_v62, %s24674_s28 }
 0x261   :  { %v1448_v18 = vadd.f32 %v25684_v48, %v1393_v50  ;;  %v1449_v1 = vadd.f32 %v25684_v48, %v1394_v22  ;;  %v1489_v7 = vmax.f32 %v1440_v54, 0.0  ;;  %v1490_v52 = vmax.f32 %v1441_v35, 0.0  ;;  %v25766_v30 = vpop.permute.xlu1 %775  ;;  %v25768_v8 = vpop.permute.xlu0 %773  ;;  %19918 = vmatpush3.bf16.msra.mxu0 %v23814_v55 }
 0x262   :  { %v1491_v2 = vmax.f32 %v1442_v37, 0.0  ;;  %v1492_v21 = vmax.f32 %v1443_v34, 0.0  ;;  %v1493_v14 = vmax.f32 %v1444_v51, 0.0  ;;  %v1494_v5 = vmax.f32 %v1445_v63, 0.0 }
 0x263   :  { %v1495_v0 = vmax.f32 %v1446_v29, 0.0  ;;  %v1496_v15 = vmax.f32 %v1447_v61, 0.0  ;;  %v1497_v9 = vmax.f32 %v1448_v18, 0.0  ;;  %v1498_v27 = vmax.f32 %v1449_v1, 0.0  ;;  %1007 = vrot.lane.b32.xlu1 %v29085_v36, %s24675_s29  ;;  %v29089_v18 = vld [vmem:[#allocation7_spill] sm:$0xff] }
 0x264   :  { %v18727_v58 = vpack.c.bf16 %v1490_v52, %v1489_v7  ;;  %v18732_v4 = vpack.c.bf16 %v1492_v21, %v1491_v2  ;;  %v18737_v23 = vpack.c.bf16 %v1494_v5, %v1493_v14  ;;  %v1341_v42 = vsel %vm25679_vm2, %v25628_v39, %v25632_v16  ;;  %1005 = vrot.lane.b32.xlu0 %v29086_v62, %s24675_s29  ;;  %v23816_v39 = vld [vmem:[%s28966_s5 + $0x8] sm:$0xff]  }
 0x265   :  { %v18742_v43 = vpack.c.bf16 %v1496_v15, %v1495_v0  ;;  %v18747_v26 = vpack.c.bf16 %v1498_v27, %v1497_v9  ;;  %v1396_v41 = vmul.f32 %v25671_v28, %v1341_v42  ;;  %v1340_v50 = vsel %vm25679_vm2, %v25641_v59, %v25648_v46  ;;  %v25786_v22 = vpop.permute.xlu1 %873  ;;  %v25788_v54 = vpop.permute.xlu0 %871  ;;  %v29090_v21 = vld [vmem:[#allocation18_spill] sm:$0xff]  ;;  %v29091_v0 = vld [vmem:[#allocation17_spill] sm:$0xff] }
 0x266   :  { %18831 = vst [vmem:[#allocation2 + $0x18] sm:$0xff] %v18727_v58   ;;  %18832 = vst [vmem:[#allocation2 + $0x20] sm:$0xff] %v18732_v4   ;;  %v1395_v16 = vmul.f32 %v25671_v28, %v1340_v50  ;;  %v1343_v35 = vsel %vm25679_vm2, %v25659_v13, %v25661_v32  ;;  %v1342_v59 = vsel %vm25679_vm2, %v25664_v17, %v25673_v60  ;;  %v29087_v37 = vmov 0.0   ;;  %v29088_v32 = vld [vmem:[#allocation8_spill] sm:$0xff] }
 0x267   :  { %18833 = vst [vmem:[#allocation2 + $0x28] sm:$0xff] %v18737_v23   ;;  %v1093_v46 = vmax.f32 %v25690_v10, %v25744_v25  ;;  %19919 = vmatprep.subr.bf16.mxu0 %v29087_v37  ;;  %18834 = vst [vmem:[#allocation2 + $0x30] sm:$0xff] %v18742_v43   ;;  %v1451_v34 = vadd.f32 %v25684_v48, %v1396_v41  ;;  %v1398_v51 = vmul.f32 %v25671_v28, %v1343_v35 }
 0x268   :  { %18835 = vst [vmem:[#allocation2 + $0x38] sm:$0xff] %v18747_v26   ;;  %v1397_v63 = vmul.f32 %v25671_v28, %v1342_v59  ;;  %v1240_v13 = vmin.f32 %v25690_v10, %v25744_v25  ;;  %731 = vrot.lane.b32.xlu1 %v29088_v32, %s24673_s0  ;;  %v1450_v17 = vadd.f32 %v25684_v48, %v1395_v16 }
 0x269   :  { %v1142_v60 = vmax.f32 %v1044_v47, %v1093_v46  ;;  %v1092_v29 = vmax.f32 %v25692_v19, %v25746_v33  ;;  %v1239_v61 = vmin.f32 %v25692_v19, %v25746_v33  ;;  %729 = vrot.lane.b32.xlu0 %v29089_v18, %s24673_s0  ;;  %v1500_v1 = vmax.f32 %v1451_v34, 0.0  ;;  %v972_v52 = vpop.permute.xlu1 %971  ;;  %v970_v47 = vpop.permute.xlu0 %969  ;;  %19920 = vmatpush3.bf16.msra.mxu0 %v23816_v39 }
 0x26a   :  { %v1453_v10 = vadd.f32 %v25684_v48, %v1398_v51  ;;  %v1452_v25 = vadd.f32 %v25684_v48, %v1397_v63  ;;  %v1289_v7 = vmin.f32 %v1191_v44, %v1240_v13  ;;  %v1499_v2 = vmax.f32 %v1450_v17, 0.0  ;;  %19921 = vmatprep.subr.bf16.mxu0 %v29087_v37  ;;  %v23820_v63 = vld [vmem:[%s28966_s5 + $0x18] sm:$0xff]  }
 0x26b   :  { %v1141_v19 = vmax.f32 %v1043_v20, %v1092_v29  ;;  %v1288_v33 = vmin.f32 %v1190_v49, %v1239_v61  ;;  %v1046_v14 = vmax.f32 %v29090_v21, %v25766_v30  ;;  %v1193_v44 = vmin.f32 %v29090_v21, %v25766_v30  ;;  %v23794_v30 = vld [vmem:[%s28966_s5 + $0x2c0] sm:$0xff]  }
 0x26c   :  { %v1502_v5 = vmax.f32 %v1453_v10, 0.0  ;;  %v1501_v40 = vmax.f32 %v1452_v25, 0.0  ;;  %v1345_v3 = vsel %vm25679_vm2, %v1142_v60, %v1289_v7  ;;  %829 = vrot.lane.b32.xlu1 %v29088_v32, %s24674_s28  ;;  %v18752_v6 = vpack.c.bf16 %v1500_v1, %v1499_v2  ;;  %v23821_v1 = vld [vmem:[%s28966_s5 + $0x20] sm:$0xff]   ;;  %v29094_v2 = vld [vmem:[#allocation10_spill] sm:$0xff] }
 0x26d   :  { %v1400_v20 = vmul.f32 %v25671_v28, %v1345_v3  ;;  %v1344_v49 = vsel %vm25679_vm2, %v1141_v19, %v1288_v33  ;;  %v1045_v15 = vmax.f32 %v29091_v0, %v25768_v8  ;;  %827 = vrot.lane.b32.xlu0 %v29089_v18, %s24674_s28  ;;  %v1192_v55 = vmin.f32 %v29091_v0, %v25768_v8  ;;  %v780_v4 = vpop.permute.xlu1 %779  ;;  %v23793_v23 = vld [vmem:[#allocation2 + $0x1c] sm:$0xff]   ;;  %v778_v42 = vpop.permute.xlu0 %777 }
 0x26e   :  { %v18757_v9 = vpack.c.bf16 %v1502_v5, %v1501_v40  ;;  %v1399_v27 = vmul.f32 %v25671_v28, %v1344_v49  ;;  %v1095_v58 = vmax.f32 %v25786_v22, %v972_v52  ;;  %19922 = vmatpush3.bf16.msra.mxu0 %v23817_v38  ;;  %18836 = vst [vmem:[#allocation2 + $0x40] sm:$0xff] %v18752_v6   ;;  %v29092_v10 = vld [vmem:[#allocation20_spill] sm:$0xff]  ;;  %v23800_v49 = vld [vmem:[%s28966_s5 + $0x2d0] sm:$0xff]  }
 0x26f   :  { %v1455_v43 = vadd.f32 %v25684_v48, %v1400_v20  ;;  %v1242_v26 = vmin.f32 %v25786_v22, %v972_v52  ;;  %v1094_v41 = vmax.f32 %v25788_v54, %v970_v47  ;;  %v1241_v50 = vmin.f32 %v25788_v54, %v970_v47  ;;  %19923 = vmatprep.subr.bf16.mxu0 %v29087_v37  ;;  %v23797_v22 = vld [vmem:[%s28966_s5 + $0x2c8] sm:$0xff]   ;;  %v29093_v52 = vld [vmem:[#allocation19_spill] sm:$0xff] }
 0x270   :  { %18837 = vst [vmem:[#allocation2 + $0x48] sm:$0xff] %v18757_v9   ;;  %v1454_v8 = vadd.f32 %v25684_v48, %v1399_v27  ;;  %v1144_v39 = vmax.f32 %v1046_v14, %v1095_v58  ;;  %20774 = vmatmul.mubr.bf16.vlgmr.msra.gmra.mrb[0].mxu1 %v23793_v23  ;;  %927 = vrot.lane.b32.xlu1 %v29088_v32, %s24675_s29  ;;  %v29095_v14 = vld [vmem:[#allocation9_spill] sm:$0xff] }
 0x271   :  { %v1504_v16 = vmax.f32 %v1455_v43, 0.0  ;;  %v1291_v35 = vmin.f32 %v1193_v44, %v1242_v26  ;;  %v1143_v59 = vmax.f32 %v1045_v15, %v1094_v41  ;;  %v1290_v46 = vmin.f32 %v1192_v55, %v1241_v50  ;;  %20842 = vmatpush3.bf16.msra.mxu1 %v23794_v30  ;;  %925 = vrot.lane.b32.xlu0 %v29089_v18, %s24675_s29  ;;  %v878_v34 = vpop.permute.xlu1 %877  ;;  %v876_v51 = vpop.permute.xlu0 %875  ;;  %v23795_v40 = vld [vmem:[#allocation2 + $0x24] sm:$0xff]  }
 0x272   :  { %v1503_v54 = vmax.f32 %v1454_v8, 0.0  ;;  %20777 = vmatprep.mubr.msk.bf16.mxu1 %vm24672_vm0, %v29087_v37  ;;  %20843 = vmatprep.subr.bf16.mxu1 %v29087_v37  ;;  %v1048_v25 = vmax.f32 %v29092_v10, %v780_v4  ;;  %v1195_v7 = vmin.f32 %v29092_v10, %v780_v4  ;;  %v1047_v47 = vmax.f32 %v29093_v52, %v778_v42  ;;  %v23823_v43 = vld [vmem:[%s28966_s5 + $0x28] sm:$0xff]  }
 0x273   :  { %v1347_v13 = vsel %vm25679_vm2, %v1144_v39, %v1291_v35  ;;  %v1346_v17 = vsel %vm25679_vm2, %v1143_v59, %v1290_v46  ;;  %19924 = vmatpush3.bf16.msra.mxu0 %v23820_v63  ;;  %v1194_v21 = vmin.f32 %v29093_v52, %v778_v42  ;;  %v23803_v42 = vld [vmem:[%s28966_s5 + $0x2d8] sm:$0xff]   ;;  %v23796_v59 = vld [vmem:[#allocation2 + $0x2c] sm:$0xff]  }
 0x274   :  { %v18762_v60 = vpack.c.bf16 %v1504_v16, %v1503_v54  ;;  %v1402_v29 = vmul.f32 %v25671_v28, %v1347_v13  ;;  %v1401_v61 = vmul.f32 %v25671_v28, %v1346_v17  ;;  %735 = vrot.lane.b32.xlu1 %v29094_v2, %s24673_s0  ;;  %19925 = vmatprep.subr.bf16.mxu0 %v29087_v37  ;;  %v23806_v54 = vld [vmem:[%s28966_s5 + $0x2e0] sm:$0xff]   ;;  %v29096_v63 = vld [vmem:[#allocation22_spill] sm:$0xff] }
 0x275   :  { %20844 = vmatpush3.bf16.msra.mxu1 %v23797_v22  ;;  %733 = vrot.lane.b32.xlu0 %v29095_v14, %s24673_s0  ;;  %v976_v5 = vpop.permute.xlu1 %975  ;;  %v974_v3 = vpop.permute.xlu0 %973  ;;  %v23824_v22 = vld [vmem:[%s28966_s5 + $0x30] sm:$0xff]  }
 0x276   :  { %18838 = vst [vmem:[#allocation2 + $0x50] sm:$0xff] %v18762_v60   ;;  %v1457_v19 = vadd.f32 %v25684_v48, %v1402_v29  ;;  %v1456_v33 = vadd.f32 %v25684_v48, %v1401_v61  ;;  %20845 = vmatprep.subr.bf16.mxu1 %v29087_v37  ;;  %v1097_v44 = vmax.f32 %v878_v34, %v976_v5  ;;  %v29097_v60 = vld [vmem:[#allocation12_spill] sm:$0xff] }
 0x277   :  { %v1244_v38 = vmin.f32 %v878_v34, %v976_v5  ;;  %v1096_v6 = vmax.f32 %v876_v51, %v974_v3  ;;  %v1243_v20 = vmin.f32 %v876_v51, %v974_v3  ;;  %19926 = vmatpush3.bf16.msra.mxu0 %v23821_v1  ;;  %v23828_v29 = vld [vmem:[%s28966_s5 + $0x38] sm:$0xff]   ;;  %v29098_v1 = vld [vmem:[#allocation21_spill] sm:$0xff] }
 0x278   :  { %v1506_v0 = vmax.f32 %v1457_v19, 0.0  ;;  %v1505_v15 = vmax.f32 %v1456_v33, 0.0  ;;  %20778 = vmatmul.mubr.bf16.gmra.mrb[4].mxu1 %v23795_v40  ;;  %v1146_v30 = vmax.f32 %v1048_v25, %v1097_v44  ;;  %833 = vrot.lane.b32.xlu1 %v29094_v2, %s24674_s28  ;;  %v23809_v40 = vld [vmem:[%s28966_s5 + $0x2e8] sm:$0xff]  }
 0x279   :  { %v1293_v9 = vmin.f32 %v1195_v7, %v1244_v38  ;;  %v1145_v27 = vmax.f32 %v1047_v47, %v1096_v6  ;;  %v1292_v55 = vmin.f32 %v1194_v21, %v1243_v20  ;;  %831 = vrot.lane.b32.xlu0 %v29095_v14, %s24674_s28  ;;  %v784_v4 = vpop.permute.xlu1 %783  ;;  %v782_v23 = vpop.permute.xlu0 %781  ;;  %20781 = vmatprep.mubr.msk.bf16.mxu1 %vm24672_vm0, %v29087_v37  ;;  %v29099_v7 = vld [vmem:[#allocation11_spill] sm:$0xff] }
 0x27a   :  { %v18767_v58 = vpack.c.bf16 %v1506_v0, %v1505_v15  ;;  %20846 = vmatpush3.bf16.msra.mxu1 %v23800_v49  ;;  %19927 = vmatprep.subr.bf16.mxu0 %v29087_v37  ;;  %v1050_v13 = vmax.f32 %v29096_v63, %v784_v4  ;;  %v1197_v17 = vmin.f32 %v29096_v63, %v784_v4  ;;  %v23798_v49 = vld [vmem:[#allocation2 + $0x34] sm:$0xff]  }
 0x27b   :  { %v1349_v26 = vsel %vm25679_vm2, %v1146_v30, %v1293_v9  ;;  %v1348_v41 = vsel %vm25679_vm2, %v1145_v27, %v1292_v55  ;;  %20847 = vmatprep.subr.bf16.mxu1 %v29087_v37  ;;  %19928 = vmatpush3.bf16.msra.mxu0 %v23823_v43  ;;  %v1049_v10 = vmax.f32 %v29098_v1, %v782_v23  ;;  %v23812_v9 = vld [vmem:[%s28966_s5 + $0x2f0] sm:$0xff]   ;;  %v23818_v43 = vld [vmem:[%s28966_s5 + $0x2f8] sm:$0xff]  }
 0x27c   :  { %18839 = vst [vmem:[#allocation2 + $0x58] sm:$0xff] %v18767_v58   ;;  %v1404_v50 = vmul.f32 %v25671_v28, %v1349_v26  ;;  %v1403_v8 = vmul.f32 %v25671_v28, %v1348_v41  ;;  %931 = vrot.lane.b32.xlu1 %v29094_v2, %s24675_s29  ;;  %19929 = vmatprep.subr.bf16.mxu0 %v29087_v37 }
 0x27d   :  { %929 = vrot.lane.b32.xlu0 %v29095_v14, %s24675_s29  ;;  %v882_v35 = vpop.permute.xlu1 %881  ;;  %v880_v46 = vpop.permute.xlu0 %879  ;;  %v1196_v25 = vmin.f32 %v29098_v1, %v782_v23 }
 0x27e   :  { %v1459_v39 = vadd.f32 %v25684_v48, %v1404_v50  ;;  %v1458_v16 = vadd.f32 %v25684_v48, %v1403_v8  ;;  %20848 = vmatpush3.bf16.msra.mxu1 %v23803_v42  ;;  %v29100_v50 = vld [vmem:[#allocation24_spill] sm:$0xff] }
 0x27f   :  { %20849 = vmatprep.subr.bf16.mxu1 %v29087_v37  ;;  %19930 = vmatpush3.bf16.msra.mxu0 %v23824_v22 }
 0x280   :  { %v1508_v34 = vmax.f32 %v1459_v39, 0.0  ;;  %v1507_v51 = vmax.f32 %v1458_v16, 0.0  ;;  %20782 = vmatmul.mubr.bf16.gmra.mrb[8].mxu1 %v23796_v59  ;;  %739 = vrot.lane.b32.xlu1 %v29097_v60, %s24673_s0  ;;  %v29101_v39 = vld [vmem:[#allocation33_spill] sm:$0xff]  ;;  %v29102_v59 = vld [vmem:[#allocation23_spill] sm:$0xff] }
 0x281   :  { %20785 = vmatprep.mubr.msk.bf16.mxu1 %vm24672_vm0, %v29087_v37  ;;  %737 = vrot.lane.b32.xlu0 %v29099_v7, %s24673_s0  ;;  %v980_v52 = vpop.permute.xlu1 %979  ;;  %v978_v47 = vpop.permute.xlu0 %977 }
 0x282   :  { %v18772_v61 = vpack.c.bf16 %v1508_v34, %v1507_v51  ;;  %v1099_v19 = vmax.f32 %v882_v35, %v980_v52  ;;  %v1246_v33 = vmin.f32 %v882_v35, %v980_v52  ;;  %v1098_v21 = vmax.f32 %v880_v46, %v978_v47  ;;  %20850 = vmatpush3.bf16.msra.mxu1 %v23806_v54  ;;  %v29103_v54 = vld [vmem:[#allocation32_spill] sm:$0xff] }
 0x283   :  { %v1245_v5 = vmin.f32 %v880_v46, %v978_v47  ;;  %20851 = vmatprep.subr.bf16.mxu1 %v29087_v37  ;;  %19931 = vmatprep.subr.bf16.mxu0 %v29087_v37  ;;  %v23799_v51 = vld [vmem:[#allocation2 + $0x3c] sm:$0xff]  }
 0x284   :  { %18840 = vst [vmem:[#allocation2 + $0x60] sm:$0xff] %v18772_v61   ;;  %v1148_v3 = vmax.f32 %v1050_v13, %v1099_v19  ;;  %v1295_v44 = vmin.f32 %v1197_v17, %v1246_v33  ;;  %v1147_v38 = vmax.f32 %v1049_v10, %v1098_v21  ;;  %837 = vrot.lane.b32.xlu1 %v29097_v60, %s24674_s28 }
 0x285   :  { %v1294_v6 = vmin.f32 %v1196_v25, %v1245_v5  ;;  %835 = vrot.lane.b32.xlu0 %v29099_v7, %s24674_s28  ;;  %v788_v20 = vpop.permute.xlu1 %787  ;;  %v786_v0 = vpop.permute.xlu0 %785  ;;  %19932 = vmatpush3.bf16.msra.mxu0 %v23828_v29 }
 0x286   :  { %v1351_v15 = vsel %vm25679_vm2, %v1148_v3, %v1295_v44  ;;  %20852 = vmatpush3.bf16.msra.mxu1 %v23809_v40  ;;  %20001 = vmatprep.subr.bf16.mxu0 %v29087_v37  ;;  %v1052_v8 = vmax.f32 %v29100_v50, %v788_v20  ;;  %v1199_v35 = vmin.f32 %v29100_v50, %v788_v20 }
 0x287   :  { %v1350_v30 = vsel %vm25679_vm2, %v1147_v38, %v1294_v6  ;;  %v1406_v27 = vmul.f32 %v25671_v28, %v1351_v15  ;;  %20853 = vmatprep.subr.bf16.mxu1 %v29087_v37  ;;  %v1051_v46 = vmax.f32 %v29102_v59, %v786_v0  ;;  %v1198_v22 = vmin.f32 %v29102_v59, %v786_v0  ;;  %v23801_v6 = vld [vmem:[#allocation2 + $0x44] sm:$0xff]   ;;  %v29104_v15 = vld [vmem:[#allocation26_spill] sm:$0xff] }
 0x288   :  { %v1405_v55 = vmul.f32 %v25671_v28, %v1350_v30  ;;  %20786 = vmatmul.mubr.bf16.gmra.mrb[12].mxu1 %v23798_v49  ;;  %935 = vrot.lane.b32.xlu1 %v29097_v60, %s24675_s29 }
 0x289   :  { %20789 = vmatprep.mubr.msk.bf16.mxu1 %vm24672_vm0, %v29087_v37  ;;  %v1461_v58 = vadd.f32 %v25684_v48, %v1406_v27  ;;  %933 = vrot.lane.b32.xlu0 %v29099_v7, %s24675_s29  ;;  %v886_v23 = vpop.permute.xlu1 %885  ;;  %v884_v42 = vpop.permute.xlu0 %883 }
 0x28a   :  { %v1460_v4 = vadd.f32 %v25684_v48, %v1405_v55  ;;  %20854 = vmatpush3.bf16.msra.mxu1 %v23812_v9  ;;  %v29105_v9 = vld [vmem:[#allocation35_spill] sm:$0xff] }
 0x28b   :  { %v1510_v26 = vmax.f32 %v1461_v58, 0.0  ;;  %20855 = vmatprep.subr.bf16.mxu1 %v29087_v37  ;;  %v29106_v58 = vld [vmem:[#allocation25_spill] sm:$0xff] }
 0x28c   :  { %v1509_v41 = vmax.f32 %v1460_v4, 0.0  ;;  %815 = vrot.lane.b32.xlu1 %v29101_v39, %s24673_s0 }
 0x28d   :  { %813 = vrot.lane.b32.xlu0 %v29103_v54, %s24673_s0  ;;  %v984_v34 = vpop.permute.xlu1 %983  ;;  %v982_v63 = vpop.permute.xlu0 %981 }
 0x28e   :  { %v18777_v16 = vpack.c.bf16 %v1510_v26, %v1509_v41  ;;  %v1101_v13 = vmax.f32 %v886_v23, %v984_v34  ;;  %v1248_v17 = vmin.f32 %v886_v23, %v984_v34  ;;  %v1100_v29 = vmax.f32 %v884_v42, %v982_v63  ;;  %20856 = vmatpush3.bf16.msra.mxu1 %v23818_v43 }
 0x28f   :  { %v1247_v61 = vmin.f32 %v884_v42, %v982_v63  ;;  %20925 = vmatprep.subr.bf16.mxu1 %v29087_v37  ;;  %v29107_v42 = vld [vmem:[#allocation34_spill] sm:$0xff] }
 0x290   :  { %18841 = vst [vmem:[#allocation2 + $0x68] sm:$0xff] %v18777_v16   ;;  %20790 = vmatmul.mubr.bf16.gmra.mrb[16].mxu1 %v23799_v51  ;;  %v1150_v1 = vmax.f32 %v1052_v8, %v1101_v13  ;;  %v1297_v10 = vmin.f32 %v1199_v35, %v1248_v17  ;;  %v1149_v25 = vmax.f32 %v1051_v46, %v1100_v29  ;;  %v23802_v51 = vld [vmem:[#allocation2 + $0x4c] sm:$0xff]  }
 0x291   :  { %v1296_v52 = vmin.f32 %v1198_v22, %v1247_v61  ;;  %913 = vrot.lane.b32.xlu1 %v29101_v39, %s24674_s28  ;;  %911 = vrot.lane.b32.xlu0 %v29103_v54, %s24674_s28  ;;  %v792_v47 = vpop.permute.xlu1 %791  ;;  %v790_v19 = vpop.permute.xlu0 %789 }
 0x292   :  { %20793 = vmatprep.mubr.msk.bf16.mxu1 %vm24672_vm0, %v29087_v37  ;;  %v1353_v33 = vsel %vm25679_vm2, %v1150_v1, %v1297_v10  ;;  %v1054_v30 = vmax.f32 %v29104_v15, %v792_v47  ;;  %v1201_v55 = vmin.f32 %v29104_v15, %v792_v47  ;;  %v1053_v4 = vmax.f32 %v29106_v58, %v790_v19 }
 0x293   :  { %v1352_v21 = vsel %vm25679_vm2, %v1149_v25, %v1296_v52  ;;  %v1408_v5 = vmul.f32 %v25671_v28, %v1353_v33  ;;  %v1200_v23 = vmin.f32 %v29106_v58, %v790_v19  ;;  %v29108_v33 = vld [vmem:[#allocation28_spill] sm:$0xff] }
 0x294   :  { %v1407_v40 = vmul.f32 %v25671_v28, %v1352_v21 }
 0x295   :  { %1011 = vrot.lane.b32.xlu1 %v29101_v39, %s24675_s29  ;;  %v1463_v3 = vadd.f32 %v25684_v48, %v1408_v5  ;;  %1009 = vrot.lane.b32.xlu0 %v29103_v54, %s24675_s29  ;;  %v890_v38 = vpop.permute.xlu1 %889  ;;  %v888_v20 = vpop.permute.xlu0 %887  ;;  %v29109_v5 = vld [vmem:[#allocation37_spill] sm:$0xff] }
 0x296   :  { %v1462_v44 = vadd.f32 %v25684_v48, %v1407_v40 }
 0x297   :  { %v1512_v49 = vmax.f32 %v1463_v3, 0.0 }
 0x298   :  { %v1511_v0 = vmax.f32 %v1462_v44, 0.0  ;;  %20794 = vmatmul.mubr.bf16.gmra.mrb[20].mxu1 %v23801_v6  ;;  %v29110_v44 = vld [vmem:[#allocation27_spill] sm:$0xff] }
 0x299   :  { %819 = vrot.lane.b32.xlu1 %v29105_v9, %s24673_s0  ;;  %20797 = vmatprep.mubr.msk.bf16.mxu1 %vm24672_vm0, %v29087_v37  ;;  %v988_v43 = vpop.permute.xlu1 %987  ;;  %v986_v26 = vpop.permute.xlu0 %985 }
 0x29a   :  { %v18782_v27 = vpack.c.bf16 %v1512_v49, %v1511_v0  ;;  %817 = vrot.lane.b32.xlu0 %v29107_v42, %s24673_s0  ;;  %v1103_v41 = vmax.f32 %v890_v38, %v988_v43  ;;  %v1250_v50 = vmin.f32 %v890_v38, %v988_v43  ;;  %v1102_v8 = vmax.f32 %v888_v20, %v986_v26  ;;  %v23804_v0 = vld [vmem:[#allocation2 + $0x54] sm:$0xff]  }
 0x29b   :  { %v1249_v16 = vmin.f32 %v888_v20, %v986_v26  ;;  %v29111_v20 = vld [vmem:[#allocation36_spill] sm:$0xff] }
 0x29c   :  { %18842 = vst [vmem:[#allocation2 + $0x70] sm:$0xff] %v18782_v27   ;;  %v1152_v35 = vmax.f32 %v1054_v30, %v1103_v41  ;;  %v1299_v59 = vmin.f32 %v1201_v55, %v1250_v50  ;;  %v1151_v46 = vmax.f32 %v1053_v4, %v1102_v8 }
 0x29d   :  { %v1298_v22 = vmin.f32 %v1200_v23, %v1249_v16  ;;  %917 = vrot.lane.b32.xlu1 %v29105_v9, %s24674_s28  ;;  %v796_v34 = vpop.permute.xlu1 %795  ;;  %v794_v63 = vpop.permute.xlu0 %793 }
 0x29e   :  { %915 = vrot.lane.b32.xlu0 %v29107_v42, %s24674_s28  ;;  %v1355_v13 = vsel %vm25679_vm2, %v1152_v35, %v1299_v59  ;;  %v1056_v21 = vmax.f32 %v29108_v33, %v796_v34  ;;  %v1203_v3 = vmin.f32 %v29108_v33, %v796_v34  ;;  %v1055_v38 = vmax.f32 %v29110_v44, %v794_v63 }
 0x29f   :  { %v1354_v17 = vsel %vm25679_vm2, %v1151_v46, %v1298_v22  ;;  %v1410_v29 = vmul.f32 %v25671_v28, %v1355_v13  ;;  %v1202_v6 = vmin.f32 %v29110_v44, %v794_v63 }
 0x2a0   :  { %v1409_v61 = vmul.f32 %v25671_v28, %v1354_v17  ;;  %20798 = vmatmul.mubr.bf16.gmra.mrb[24].mxu1 %v23802_v51  ;;  %v23805_v51 = vld [vmem:[#allocation2 + $0x5c] sm:$0xff]  }
 0x2a1   :  { %1015 = vrot.lane.b32.xlu1 %v29105_v9, %s24675_s29  ;;  %20801 = vmatprep.mubr.msk.bf16.mxu1 %vm24672_vm0, %v29087_v37  ;;  %v1465_v1 = vadd.f32 %v25684_v48, %v1410_v29  ;;  %v894_v25 = vpop.permute.xlu1 %893  ;;  %v892_v52 = vpop.permute.xlu0 %891 }
 0x2a2   :  { %v1464_v10 = vadd.f32 %v25684_v48, %v1409_v61  ;;  %1013 = vrot.lane.b32.xlu0 %v29107_v42, %s24675_s29  ;;  %v29112_v61 = vld [vmem:[#allocation38_spill] sm:$0xff] }
 0x2a3   :  { %v1514_v47 = vmax.f32 %v1465_v1, 0.0  ;;  %v23849_v53 = vld [vmem:[#allocation2 + $0x6c] sm:$0xff]  }
 0x2a4   :  { %v1513_v19 = vmax.f32 %v1464_v10, 0.0 }
 0x2a5   :  { %823 = vrot.lane.b32.xlu1 %v29109_v5, %s24673_s0  ;;  %v992_v49 = vpop.permute.xlu1 %991  ;;  %v990_v15 = vpop.permute.xlu0 %989 }
 0x2a6   :  { %v18787_v40 = vpack.c.bf16 %v1514_v47, %v1513_v19  ;;  %821 = vrot.lane.b32.xlu0 %v29111_v20, %s24673_s0  ;;  %v1105_v30 = vmax.f32 %v894_v25, %v992_v49  ;;  %v1252_v27 = vmin.f32 %v894_v25, %v992_v49  ;;  %v1104_v55 = vmax.f32 %v892_v52, %v990_v15  ;;  %v29113_v25 = vld [vmem:[#allocation29_spill] sm:$0xff] }
 0x2a7   :  { %v1251_v58 = vmin.f32 %v892_v52, %v990_v15  ;;  %v23807_v15 = vld [vmem:[#allocation2 + $0x64] sm:$0xff]  }
 0x2a8   :  { %18843 = vst [vmem:[#allocation2 + $0x78] sm:$0xff] %v18787_v40   ;;  %20802 = vmatmul.mubr.bf16.gmra.mrb[28].mxu1 %v23804_v0  ;;  %v1154_v4 = vmax.f32 %v1056_v21, %v1105_v30  ;;  %v1301_v23 = vmin.f32 %v1203_v3, %v1252_v27  ;;  %v1153_v43 = vmax.f32 %v1055_v38, %v1104_v55 }
 0x2a9   :  { %v1300_v26 = vmin.f32 %v1202_v6, %v1251_v58  ;;  %921 = vrot.lane.b32.xlu1 %v29109_v5, %s24674_s28  ;;  %v800_v41 = vpop.permute.xlu1 %799  ;;  %v798_v50 = vpop.permute.xlu0 %797  ;;  %20805 = vmatprep.mubr.msk.bf16.mxu1 %vm24672_vm0, %v29087_v37 }
 0x2aa   :  { %919 = vrot.lane.b32.xlu0 %v29111_v20, %s24674_s28  ;;  %v1357_v8 = vsel %vm25679_vm2, %v1154_v4, %v1301_v23  ;;  %v1058_v29 = vmax.f32 %v25155_v11, %v800_v41  ;;  %v1205_v10 = vmin.f32 %v25155_v11, %v800_v41  ;;  %v1057_v52 = vmax.f32 %v29113_v25, %v798_v50 }
 0x2ab   :  { %v1356_v16 = vsel %vm25679_vm2, %v1153_v43, %v1300_v26  ;;  %v1412_v35 = vmul.f32 %v25671_v28, %v1357_v8  ;;  %v1204_v47 = vmin.f32 %v29113_v25, %v798_v50 }
 0x2ac   :  { %v1411_v59 = vmul.f32 %v25671_v28, %v1356_v16 }
 0x2ad   :  { %1019 = vrot.lane.b32.xlu1 %v29109_v5, %s24675_s29  ;;  %v1467_v46 = vadd.f32 %v25684_v48, %v1412_v35  ;;  %v898_v34 = vpop.permute.xlu1 %897  ;;  %v896_v63 = vpop.permute.xlu0 %895 }
 0x2ae   :  { %v1466_v22 = vadd.f32 %v25684_v48, %v1411_v59  ;;  %1017 = vrot.lane.b32.xlu0 %v29111_v20, %s24675_s29 }
 0x2af   :  { %v1516_v13 = vmax.f32 %v1467_v46, 0.0 }
 0x2b0   :  { %v1515_v17 = vmax.f32 %v1466_v22, 0.0  ;;  %20806 = vmatmul.mubr.bf16.gmra.mrb[32].mxu1 %v23805_v51  ;;  %v23808_v51 = vld [vmem:[#allocation2 + $0x6c] sm:$0xff]  }
 0x2b1   :  { %923 = vrot.lane.b32.xlu1 %v29112_v61, %s24674_s28  ;;  %20809 = vmatprep.mubr.msk.bf16.mxu1 %vm24672_vm0, %v29087_v37  ;;  %v996_v19 = vpop.permute.xlu1 %995  ;;  %v994_v33 = vpop.permute.xlu0 %993 }
 0x2b2   :  { %v18792_v1 = vpack.c.bf16 %v1516_v13, %v1515_v17  ;;  %825 = vrot.lane.b32.xlu0 %v29112_v61, %s24673_s0  ;;  %v1107_v21 = vmax.f32 %v898_v34, %v996_v19  ;;  %v1254_v40 = vmin.f32 %v898_v34, %v996_v19  ;;  %v1106_v3 = vmax.f32 %v896_v63, %v994_v33 }
 0x2b3   :  { %v1253_v44 = vmin.f32 %v896_v63, %v994_v33 }
 0x2b4   :  { %18844 = vst [vmem:[#allocation2 + $0x80] sm:$0xff] %v18792_v1   ;;  %v1156_v38 = vmax.f32 %v1058_v29, %v1107_v21  ;;  %v1303_v6 = vmin.f32 %v1205_v10, %v1254_v40  ;;  %v1155_v49 = vmax.f32 %v1057_v52, %v1106_v3 }
 0x2b5   :  { %v1302_v0 = vmin.f32 %v1204_v47, %v1253_v44  ;;  %v804_v11 = vpop.permute.xlu1 %803  ;;  %v802_v30 = vpop.permute.xlu0 %801 }
 0x2b6   :  { %1021 = vrot.lane.b32.xlu0 %v29112_v61, %s24675_s29  ;;  %v1359_v27 = vsel %vm25679_vm2, %v1156_v38, %v1303_v6  ;;  %v1060_v16 = vmax.f32 %v25165_v31, %v804_v11  ;;  %v1207_v59 = vmin.f32 %v25165_v31, %v804_v11  ;;  %v1059_v46 = vmax.f32 %v25160_v24, %v802_v30  ;;  %v23810_v6 = vld [vmem:[#allocation2 + $0x74] sm:$0xff]  }
 0x2b7   :  { %v1358_v55 = vsel %vm25679_vm2, %v1155_v49, %v1302_v0  ;;  %v1414_v58 = vmul.f32 %v25671_v28, %v1359_v27  ;;  %v1206_v22 = vmin.f32 %v25160_v24, %v802_v30 }
 0x2b8   :  { %v1413_v4 = vmul.f32 %v25671_v28, %v1358_v55  ;;  %20810 = vmatmul.mubr.bf16.gmra.mrb[36].mxu1 %v23807_v15 }
 0x2b9   :  { %20813 = vmatprep.mubr.msk.bf16.mxu1 %vm24672_vm0, %v29087_v37  ;;  %v1469_v23 = vadd.f32 %v25684_v48, %v1414_v58  ;;  %v902_v26 = vpop.permute.xlu1 %901  ;;  %v900_v41 = vpop.permute.xlu0 %899 }
 0x2ba   :  { %v1468_v43 = vadd.f32 %v25684_v48, %v1413_v4 }
 0x2bb   :  { %v1518_v50 = vmax.f32 %v1469_v23, 0.0 }
 0x2bc   :  { %v1517_v8 = vmax.f32 %v1468_v43, 0.0 }
 0x2bd   :  { %v1000_v34 = vpop.permute.xlu1 %999  ;;  %v998_v63 = vpop.permute.xlu0 %997 }
 0x2be   :  { %v18797_v35 = vpack.c.bf16 %v1518_v50, %v1517_v8  ;;  %v1109_v13 = vmax.f32 %v902_v26, %v1000_v34  ;;  %v1256_v17 = vmin.f32 %v902_v26, %v1000_v34  ;;  %v1108_v29 = vmax.f32 %v900_v41, %v998_v63 }
 0x2bf   :  { %v1255_v1 = vmin.f32 %v900_v41, %v998_v63 }
 0x2c0   :  { %18845 = vst [vmem:[#allocation2 + $0x88] sm:$0xff] %v18797_v35   ;;  %20814 = vmatmul.mubr.bf16.gmra.mrb[40].mxu1 %v23808_v51  ;;  %v1158_v10 = vmax.f32 %v1060_v16, %v1109_v13  ;;  %v1305_v25 = vmin.f32 %v1207_v59, %v1256_v17  ;;  %v1157_v52 = vmax.f32 %v1059_v46, %v1108_v29 }
 0x2c1   :  { %v1304_v47 = vmin.f32 %v1206_v22, %v1255_v1  ;;  %20817 = vmatprep.mubr.msk.bf16.mxu1 %vm24672_vm0, %v29087_v37  ;;  %v808_v31 = vpop.permute.xlu1 %807  ;;  %v806_v19 = vpop.permute.xlu0 %805  ;;  %v23811_v22 = vld [vmem:[#allocation2 + $0x7c] sm:$0xff]  }
 0x2c2   :  { %v1361_v24 = vsel %vm25679_vm2, %v1158_v10, %v1305_v25  ;;  %v1062_v15 = vmax.f32 %v25175_v57, %v808_v31  ;;  %v1209_v27 = vmin.f32 %v25175_v57, %v808_v31  ;;  %v1061_v55 = vmax.f32 %v25170_v45, %v806_v19 }
 0x2c3   :  { %v1360_v33 = vsel %vm25679_vm2, %v1157_v52, %v1304_v47  ;;  %v1416_v21 = vmul.f32 %v25671_v28, %v1361_v24  ;;  %v1208_v58 = vmin.f32 %v25170_v45, %v806_v19 }
 0x2c4   :  { %v1415_v40 = vmul.f32 %v25671_v28, %v1360_v33 }
 0x2c5   :  { %v1471_v3 = vadd.f32 %v25684_v48, %v1416_v21  ;;  %v906_v38 = vpop.permute.xlu1 %905  ;;  %v904_v49 = vpop.permute.xlu0 %903 }
 0x2c6   :  { %v1470_v44 = vadd.f32 %v25684_v48, %v1415_v40 }
 0x2c7   :  { %v1520_v0 = vmax.f32 %v1471_v3, 0.0  ;;  %v23813_v31 = vld [vmem:[#allocation2 + $0x84] sm:$0xff]  }
 0x2c8   :  { %v1519_v11 = vmax.f32 %v1470_v44, 0.0  ;;  %20818 = vmatmul.mubr.bf16.gmra.mrb[44].mxu1 %v23810_v6 }
 0x2c9   :  { %20821 = vmatprep.mubr.msk.bf16.mxu1 %vm24672_vm0, %v29087_v37  ;;  %v1004_v4 = vpop.permute.xlu1 %1003  ;;  %v1002_v23 = vpop.permute.xlu0 %1001 }
 0x2ca   :  { %v18802_v30 = vpack.c.bf16 %v1520_v0, %v1519_v11  ;;  %v1111_v43 = vmax.f32 %v906_v38, %v1004_v4  ;;  %v1258_v26 = vmin.f32 %v906_v38, %v1004_v4  ;;  %v1110_v41 = vmax.f32 %v904_v49, %v1002_v23 }
 0x2cb   :  { %v1257_v50 = vmin.f32 %v904_v49, %v1002_v23 }
 0x2cc   :  { %18846 = vst [vmem:[#allocation2 + $0x90] sm:$0xff] %v18802_v30   ;;  %v1160_v8 = vmax.f32 %v1062_v15, %v1111_v43  ;;  %v1307_v16 = vmin.f32 %v1209_v27, %v1258_v26  ;;  %v1159_v35 = vmax.f32 %v1061_v55, %v1110_v41 }
 0x2cd   :  { %v1306_v59 = vmin.f32 %v1208_v58, %v1257_v50  ;;  %v812_v46 = vpop.permute.xlu1 %811 }
 0x2ce   :  { %v1363_v57 = vsel %vm25679_vm2, %v1160_v8, %v1307_v16  ;;  %v810_v45 = vpop.permute.xlu0 %809  ;;  %v1064_v19 = vmax.f32 %v29085_v36, %v812_v46  ;;  %v1211_v24 = vmin.f32 %v29085_v36, %v812_v46 }
 0x2cf   :  { %v1362_v34 = vsel %vm25679_vm2, %v1159_v35, %v1306_v59  ;;  %v1418_v51 = vmul.f32 %v25671_v28, %v1363_v57  ;;  %v1063_v3 = vmax.f32 %v29086_v62, %v810_v45  ;;  %v1210_v44 = vmin.f32 %v29086_v62, %v810_v45 }
 0x2d0   :  { %v1417_v63 = vmul.f32 %v25671_v28, %v1362_v34  ;;  %20822 = vmatmul.mubr.bf16.gmra.mrb[48].mxu1 %v23811_v22 }
 0x2d1   :  { %20825 = vmatprep.mubr.msk.bf16.mxu1 %vm24672_vm0, %v29087_v37  ;;  %v1473_v13 = vadd.f32 %v25684_v48, %v1418_v51  ;;  %v910_v29 = vpop.permute.xlu1 %909 }
 0x2d2   :  { %v1472_v17 = vadd.f32 %v25684_v48, %v1417_v63  ;;  %v908_v1 = vpop.permute.xlu0 %907 }
 0x2d3   :  { %v1522_v10 = vmax.f32 %v1473_v13, 0.0  ;;  %v23815_v43 = vld [vmem:[#allocation2 + $0x8c] sm:$0xff]  }
 0x2d4   :  { %v1521_v25 = vmax.f32 %v1472_v17, 0.0 }
 0x2d5   :  { %v1008_v47 = vpop.permute.xlu1 %1007 }
 0x2d6   :  { %v18807_v52 = vpack.c.bf16 %v1522_v10, %v1521_v25  ;;  %v1113_v33 = vmax.f32 %v910_v29, %v1008_v47  ;;  %v1260_v21 = vmin.f32 %v910_v29, %v1008_v47  ;;  %v1006_v40 = vpop.permute.xlu0 %1005 }
 0x2d7   :  { %v1112_v38 = vmax.f32 %v908_v1, %v1006_v40  ;;  %v1259_v6 = vmin.f32 %v908_v1, %v1006_v40 }
 0x2d8   :  { %18847 = vst [vmem:[#allocation2 + $0x98] sm:$0xff] %v18807_v52   ;;  %20826 = vmatmul.mubr.bf16.gmra.mrb[52].mxu1 %v23813_v31  ;;  %v1162_v49 = vmax.f32 %v1064_v19, %v1113_v33  ;;  %v1309_v0 = vmin.f32 %v1211_v24, %v1260_v21 }
 0x2d9   :  { %20829 = vmatprep.mubr.msk.bf16.mxu1 %vm24672_vm0, %v29087_v37  ;;  %v1161_v11 = vmax.f32 %v1063_v3, %v1112_v38  ;;  %v1308_v15 = vmin.f32 %v1210_v44, %v1259_v6 }
 0x2da   :  { %v732_v30 = vpop.permute.xlu1 %731  ;;  %v1365_v36 = vsel %vm25679_vm2, %v1162_v49, %v1309_v0  ;;  %v23825_v0 = vld [vmem:[#allocation2 + $0x1c] sm:$0xfe]  }
 0x2db   :  { %v730_v27 = vpop.permute.xlu0 %729  ;;  %v1420_v55 = vmul.f32 %v25671_v28, %v1365_v36  ;;  %v1364_v62 = vsel %vm25679_vm2, %v1161_v11, %v1308_v15  ;;  %v1024_v59 = vmax.f32 %v29088_v32, %v732_v30  ;;  %v1171_v46 = vmin.f32 %v29088_v32, %v732_v30  ;;  %v26145_v11 = vld [vmem:[#allocation2 + $0x24] sm:$0xff]  }
 0x2dc   :  { %v1419_v58 = vmul.f32 %v25671_v28, %v1364_v62  ;;  %v1023_v45 = vmax.f32 %v29089_v18, %v730_v27  ;;  %v1170_v51 = vmin.f32 %v29089_v18, %v730_v27 }
 0x2dd   :  { %v1475_v4 = vadd.f32 %v25684_v48, %v1420_v55 }
 0x2de   :  { %v830_v23 = vpop.permute.xlu1 %829  ;;  %v1474_v26 = vadd.f32 %v25684_v48, %v1419_v58 }
 0x2df   :  { %v828_v41 = vpop.permute.xlu0 %827  ;;  %v1524_v50 = vmax.f32 %v1475_v4, 0.0  ;;  %v23819_v17 = vld [vmem:[#allocation2 + $0x94] sm:$0xff]  }
 0x2e0   :  { %20830 = vmatmul.mubr.bf16.gmra.mrb[56].mxu1 %v23815_v43  ;;  %v1523_v8 = vmax.f32 %v1474_v26, 0.0 }
 0x2e1   :  { %20833 = vmatprep.mubr.msk.bf16.mxu1 %vm24672_vm0, %v29087_v37 }
 0x2e2   :  { %v18812_v16 = vpack.c.bf16 %v1524_v50, %v1523_v8  ;;  %v928_v35 = vpop.permute.xlu1 %927 }
 0x2e3   :  { %v1073_v22 = vmax.f32 %v830_v23, %v928_v35  ;;  %v1220_v57 = vmin.f32 %v830_v23, %v928_v35  ;;  %v926_v34 = vpop.permute.xlu0 %925 }
 0x2e4   :  { %18848 = vst [vmem:[#allocation2 + $0xa0] sm:$0xff] %v18812_v16   ;;  %v1072_v63 = vmax.f32 %v828_v41, %v926_v34  ;;  %v1219_v13 = vmin.f32 %v828_v41, %v926_v34  ;;  %v7318_v16 = vrot.slane %v26145_v11, 1  ;;  %v23837_v11 = vld [vmem:[%s28966_s5 + $0x310] sm:$0xff]  }
 0x2e5   :  { %v1122_v29 = vmax.f32 %v1024_v59, %v1073_v22  ;;  %v1269_v1 = vmin.f32 %v1171_v46, %v1220_v57  ;;  %v23827_v22 = vld [vmem:[%s28966_s5 + $0x300] sm:$0xff]  }
 0x2e6   :  { %v1121_v10 = vmax.f32 %v1023_v45, %v1072_v63  ;;  %v1268_v25 = vmin.f32 %v1170_v51, %v1219_v13  ;;  %v736_v52 = vpop.permute.xlu1 %735  ;;  %v26164_v63 = vld [vmem:[#allocation2 + $0x2c] sm:$0xff]  }
 0x2e7   :  { %v1325_v47 = vsel %vm25679_vm2, %v1122_v29, %v1269_v1  ;;  %v734_v32 = vpop.permute.xlu0 %733  ;;  %v1026_v6 = vmax.f32 %v29094_v2, %v736_v52  ;;  %v1173_v30 = vmin.f32 %v29094_v2, %v736_v52  ;;  %v7317_v2 = vrot.slane %v23825_v0, 1  ;;  %v23833_v13 = vld [vmem:[%s28966_s5 + $0x308] sm:$0xff]   ;;  %v23863_v1 = vld [vmem:[%s28966_s5 + $0x40] sm:$0xff]  }
 0x2e8   :  { %20834 = vmatmul.mubr.bf16.gmra.mrb[60].mxu1 %v23819_v17  ;;  %v1380_v31 = vmul.f32 %v25671_v28, %v1325_v47  ;;  %v1324_v19 = vsel %vm25679_vm2, %v1121_v10, %v1268_v25  ;;  %v1025_v62 = vmax.f32 %v29095_v14, %v734_v32  ;;  %v1172_v58 = vmin.f32 %v29095_v14, %v734_v32 }
 0x2e9   :  { %20837 = vmatprep.mubr.msk.bf16.mxu1 %vm24672_vm0, %v29087_v37  ;;  %v1379_v18 = vmul.f32 %v25671_v28, %v1324_v19  ;;  %v7319_v51 = vsel %vm2321_vm3, %v7317_v2, %v7318_v16 }
 0x2ea   :  { %v1435_v24 = vadd.f32 %v25684_v48, %v1380_v31  ;;  %v834_v33 = vpop.permute.xlu1 %833 }
 0x2eb   :  { %v1434_v21 = vadd.f32 %v25684_v48, %v1379_v18  ;;  %v832_v40 = vpop.permute.xlu0 %831  ;;  %v23822_v3 = vld [vmem:[#allocation2 + $0x9c] sm:$0xff]   ;;  %v7320_v18 = vrot.slane %v26164_v63, 1 }
 0x2ec   :  { %v1484_v44 = vmax.f32 %v1435_v24, 0.0  ;;  %v26224_v63 = vld [vmem:[#allocation2 + $0x3c] sm:$0xff]  }
 0x2ed   :  { %v1483_v38 = vmax.f32 %v1434_v21, 0.0 }
 0x2ee   :  { %v932_v49 = vpop.permute.xlu1 %931 }
 0x2ef   :  { %v18712_v15 = vpack.c.bf16 %v1484_v44, %v1483_v38  ;;  %v1075_v36 = vmax.f32 %v834_v33, %v932_v49  ;;  %v1222_v27 = vmin.f32 %v834_v33, %v932_v49  ;;  %v930_v55 = vpop.permute.xlu0 %929 }
 0x2f0   :  { %20838 = vmatmul.mubr.bf16.gmra.mrb[64].mxu1 %v23822_v3  ;;  %v1074_v4 = vmax.f32 %v832_v40, %v930_v55  ;;  %v1221_v23 = vmin.f32 %v832_v40, %v930_v55  ;;  %v23866_v3 = vld [vmem:[%s28966_s5 + $0x48] sm:$0xff]  }
 0x2f1   :  { %20857 = vmatprep.mubr.msk.bf16.mxu1 %vm24672_vm0, %v29087_v37  ;;  %18713 = vst [vmem:[#allocation2] sm:$0xff] %v18712_v15   ;;  %v1124_v43 = vmax.f32 %v1026_v6, %v1075_v36  ;;  %v1271_v26 = vmin.f32 %v1173_v30, %v1222_v27  ;;  %v26186_v6 = vld [vmem:[#allocation2 + $0x34] sm:$0xff]  }
 0x2f2   :  { %v1123_v41 = vmax.f32 %v1025_v62, %v1074_v4  ;;  %v1270_v50 = vmin.f32 %v1172_v58, %v1221_v23  ;;  %v740_v8 = vpop.permute.xlu1 %739  ;;  %v23868_v62 = vld [vmem:[%s28966_s5 + $0x50] sm:$0xff]  }
 0x2f3   :  { %v1327_v35 = vsel %vm25679_vm2, %v1124_v43, %v1271_v26  ;;  %v738_v59 = vpop.permute.xlu0 %737  ;;  %v1028_v47 = vmax.f32 %v29097_v60, %v740_v8  ;;  %v1175_v32 = vmin.f32 %v29097_v60, %v740_v8  ;;  %v7322_v43 = vrot.slane %v26186_v6, 1  ;;  %v23842_v26 = vld [vmem:[%s28966_s5 + $0x318] sm:$0xff]  }
 0x2f4   :  { %v1382_v14 = vmul.f32 %v25671_v28, %v1327_v35  ;;  %v1326_v46 = vsel %vm25679_vm2, %v1123_v41, %v1270_v50  ;;  %v1027_v31 = vmax.f32 %v29099_v7, %v738_v59  ;;  %v1174_v60 = vmin.f32 %v29099_v7, %v738_v59 }
 0x2f5   :  { %v1381_v57 = vmul.f32 %v25671_v28, %v1326_v46  ;;  %v7321_v7 = vsel %vm2321_vm3, %v7318_v16, %v7320_v18  ;;  %v23870_v16 = vld [vmem:[%s28966_s5 + $0x58] sm:$0xff]   ;;  %v7323_v46 = vsel %vm2321_vm3, %v7320_v18, %v7322_v43 }
 0x2f6   :  { %v1437_v34 = vadd.f32 %v25684_v48, %v1382_v14  ;;  %v838_v45 = vpop.permute.xlu1 %837 }
 0x2f7   :  { %v1436_v17 = vadd.f32 %v25684_v48, %v1381_v57  ;;  %v836_v29 = vpop.permute.xlu0 %835 }
 0x2f8   :  { %20858 = vmatmul.mubr.bf16.vlgmr.msra.gmra.mrb[0].mxu1 %v7319_v51  ;;  %v1486_v10 = vmax.f32 %v1437_v34, 0.0  ;;  %v23829_v25 = vld [vmem:[#allocation2] sm:$0xff]  }
 0x2f9   :  { %20926 = vmatpush3.bf16.msra.mxu1 %v23827_v22  ;;  %20861 = vmatprep.mubr.msk.bf16.mxu1 %vm24672_vm0, %v29087_v37  ;;  %v1485_v52 = vmax.f32 %v1436_v17, 0.0  ;;  %v23848_v22 = vld [vmem:[%s28966_s5 + $0x320] sm:$0xff]  }
 0x2fa   :  { %20927 = vmatprep.subr.bf16.mxu1 %v29087_v37  ;;  %v936_v19 = vpop.permute.xlu1 %935  ;;  %19934 = vmatmul.mubr.bf16.vlgmr.msra.gmra.mrb[100].mxu0 %v23829_v25 }
 0x2fb   :  { %v18717_v24 = vpack.c.bf16 %v1486_v10, %v1485_v52  ;;  %v1077_v33 = vmax.f32 %v838_v45, %v936_v19  ;;  %v1224_v21 = vmin.f32 %v838_v45, %v936_v19  ;;  %v934_v40 = vpop.permute.xlu0 %933  ;;  %19937 = vmatprep.mubr.msk.bf16.mxu0 %vm24672_vm0, %v29087_v37  ;;  %20002 = vmatpush3.bf16.msra.mxu0 %v23863_v1  ;;  %v23872_v52 = vld [vmem:[%s28966_s5 + $0x60] sm:$0xff]  }
 0x2fc   :  { %v1076_v44 = vmax.f32 %v836_v29, %v934_v40  ;;  %v1223_v38 = vmin.f32 %v836_v29, %v934_v40  ;;  %20003 = vmatprep.subr.bf16.mxu0 %v29087_v37 }
 0x2fd   :  { %20928 = vmatpush3.bf16.msra.mxu1 %v23833_v13  ;;  %18829 = vst [vmem:[#allocation2 + $0x8] sm:$0xff] %v18717_v24   ;;  %v1126_v49 = vmax.f32 %v1028_v47, %v1077_v33  ;;  %v1273_v0 = vmin.f32 %v1175_v32, %v1224_v21  ;;  %v7324_v24 = vrot.slane %v26224_v63, 1 }
 0x2fe   :  { %20929 = vmatprep.subr.bf16.mxu1 %v29087_v37  ;;  %v1125_v15 = vmax.f32 %v1027_v31, %v1076_v44  ;;  %v1272_v30 = vmin.f32 %v1174_v60, %v1223_v38  ;;  %v816_v36 = vpop.permute.xlu1 %815  ;;  %v23853_v31 = vld [vmem:[%s28966_s5 + $0x328] sm:$0xff]   ;;  %v23858_v38 = vld [vmem:[%s28966_s5 + $0x330] sm:$0xff]  }
 0x2ff   :  { %v1329_v27 = vsel %vm25679_vm2, %v1126_v49, %v1273_v0  ;;  %v814_v55 = vpop.permute.xlu0 %813  ;;  %20004 = vmatpush3.bf16.msra.mxu0 %v23866_v3  ;;  %v1066_v57 = vmax.f32 %v29101_v39, %v816_v36  ;;  %v1213_v34 = vmin.f32 %v29101_v39, %v816_v36  ;;  %v23876_v60 = vld [vmem:[%s28966_s5 + $0x68] sm:$0xff]   ;;  %v7325_v0 = vsel %vm2321_vm3, %v7322_v43, %v7324_v24  ;;  %v23878_v36 = vld [vmem:[%s28966_s5 + $0x70] sm:$0xff]  }
 0x300   :  { %20862 = vmatmul.mubr.bf16.gmra.mrb[4].mxu1 %v7321_v7  ;;  %v1384_v58 = vmul.f32 %v25671_v28, %v1329_v27  ;;  %v1328_v4 = vsel %vm25679_vm2, %v1125_v15, %v1272_v30  ;;  %20005 = vmatprep.subr.bf16.mxu0 %v29087_v37  ;;  %v1065_v45 = vmax.f32 %v29103_v54, %v814_v55 }
 0x301   :  { %20865 = vmatprep.mubr.msk.bf16.mxu1 %vm24672_vm0, %v29087_v37  ;;  %v1383_v23 = vmul.f32 %v25671_v28, %v1328_v4  ;;  %20930 = vmatpush3.bf16.msra.mxu1 %v23837_v11  ;;  %v1212_v10 = vmin.f32 %v29103_v54, %v814_v55  ;;  %v26256_v11 = vld [vmem:[#allocation2 + $0x44] sm:$0xff]  }
 0x302   :  { %v1439_v41 = vadd.f32 %v25684_v48, %v1384_v58  ;;  %20931 = vmatprep.subr.bf16.mxu1 %v29087_v37 }
 0x303   :  { %v914_v50 = vpop.permute.xlu1 %913  ;;  %v1438_v8 = vadd.f32 %v25684_v48, %v1383_v23  ;;  %v912_v2 = vpop.permute.xlu0 %911  ;;  %20006 = vmatpush3.bf16.msra.mxu0 %v23868_v62  ;;  %v23864_v62 = vld [vmem:[%s28966_s5 + $0x338] sm:$0xff]   ;;  %v7326_v23 = vrot.slane %v26256_v11, 1 }
 0x304   :  { %v1488_v35 = vmax.f32 %v1439_v41, 0.0  ;;  %v23831_v59 = vld [vmem:[#allocation2 + $0x8] sm:$0xff]   ;;  %20007 = vmatprep.subr.bf16.mxu0 %v29087_v37 }
 0x305   :  { %v1487_v14 = vmax.f32 %v1438_v8, 0.0  ;;  %20932 = vmatpush3.bf16.msra.mxu1 %v23842_v26  ;;  %19938 = vmatmul.mubr.bf16.gmra.mrb[104].mxu0 %v23831_v59 }
 0x306   :  { %20933 = vmatprep.subr.bf16.mxu1 %v29087_v37  ;;  %19941 = vmatprep.mubr.msk.bf16.mxu0 %vm24672_vm0, %v29087_v37 }
 0x307   :  { %v1012_v51 = vpop.permute.xlu1 %1011  ;;  %v18722_v13 = vpack.c.bf16 %v1488_v35, %v1487_v14  ;;  %v1010_v1 = vpop.permute.xlu0 %1009  ;;  %20008 = vmatpush3.bf16.msra.mxu0 %v23870_v16  ;;  %v26277_v14 = vld [vmem:[#allocation2 + $0x4c] sm:$0xff]  }
 0x308   :  { %v1115_v17 = vmax.f32 %v914_v50, %v1012_v51  ;;  %v1262_v29 = vmin.f32 %v914_v50, %v1012_v51  ;;  %20866 = vmatmul.mubr.bf16.gmra.mrb[8].mxu1 %v7323_v46  ;;  %v1114_v25 = vmax.f32 %v912_v2, %v1010_v1  ;;  %v1261_v39 = vmin.f32 %v912_v2, %v1010_v1 }
 0x309   :  { %20869 = vmatprep.mubr.msk.bf16.mxu1 %vm24672_vm0, %v29087_v37  ;;  %18830 = vst [vmem:[#allocation2 + $0x10] sm:$0xff] %v18722_v13   ;;  %20934 = vmatpush3.bf16.msra.mxu1 %v23848_v22 }
 0x30a   :  { %v1164_v47 = vmax.f32 %v1066_v57, %v1115_v17  ;;  %v1311_v32 = vmin.f32 %v1213_v34, %v1262_v29  ;;  %20009 = vmatprep.subr.bf16.mxu0 %v29087_v37  ;;  %v1163_v54 = vmax.f32 %v1065_v45, %v1114_v25  ;;  %v1310_v19 = vmin.f32 %v1212_v10, %v1261_v39  ;;  %v23838_v29 = vld [vmem:[#allocation2 + $0x18] sm:$0xff]  }
 0x30b   :  { %v820_v18 = vpop.permute.xlu1 %819  ;;  %20935 = vmatprep.subr.bf16.mxu1 %v29087_v37  ;;  %20010 = vmatpush3.bf16.msra.mxu0 %v23872_v52  ;;  %v7328_v39 = vrot.slane %v26277_v14, 1 }
 0x30c   :  { %v1367_v33 = vsel %vm25679_vm2, %v1164_v47, %v1311_v32  ;;  %v818_v21 = vpop.permute.xlu0 %817  ;;  %v1366_v3 = vsel %vm25679_vm2, %v1163_v54, %v1310_v19  ;;  %20011 = vmatprep.subr.bf16.mxu0 %v29087_v37  ;;  %v1068_v58 = vmax.f32 %v29105_v9, %v820_v18  ;;  %v1215_v26 = vmin.f32 %v29105_v9, %v820_v18  ;;  %v23880_v9 = vld [vmem:[%s28966_s5 + $0x78] sm:$0xff]  }
 0x30d   :  { %v1422_v40 = vmul.f32 %v25671_v28, %v1367_v33  ;;  %v1421_v44 = vmul.f32 %v25671_v28, %v1366_v3  ;;  %20936 = vmatpush3.bf16.msra.mxu1 %v23853_v31  ;;  %v1067_v2 = vmax.f32 %v29107_v42, %v818_v21  ;;  %v1214_v16 = vmin.f32 %v29107_v42, %v818_v21  ;;  %v23841_v54 = vld [vmem:[#allocation2 + $0x54] sm:$0xff]  }
 0x30e   :  { %20937 = vmatprep.subr.bf16.mxu1 %v29087_v37  ;;  %v7327_v42 = vsel %vm2321_vm3, %v7324_v24, %v7326_v23  ;;  %v7329_v24 = vsel %vm2321_vm3, %v7326_v23, %v7328_v39  ;;  %v23844_v23 = vld [vmem:[#allocation2 + $0x5c] sm:$0xff]  }
 0x30f   :  { %v1477_v6 = vadd.f32 %v25684_v48, %v1422_v40  ;;  %v918_v49 = vpop.permute.xlu1 %917  ;;  %v1476_v15 = vadd.f32 %v25684_v48, %v1421_v44  ;;  %20012 = vmatpush3.bf16.msra.mxu0 %v23876_v60 }
 0x310   :  { %20870 = vmatmul.mubr.bf16.gmra.mrb[12].mxu1 %v7325_v0  ;;  %v916_v30 = vpop.permute.xlu0 %915  ;;  %v23835_v27 = vld [vmem:[#allocation2 + $0x10] sm:$0xff]   ;;  %20013 = vmatprep.subr.bf16.mxu0 %v29087_v37  ;;  %v23840_v0 = vld [vmem:[#allocation2 + $0x20] sm:$0xff]  }
 0x311   :  { %v1526_v7 = vmax.f32 %v1477_v6, 0.0  ;;  %20873 = vmatprep.mubr.msk.bf16.mxu1 %vm24672_vm0, %v29087_v37  ;;  %v1525_v55 = vmax.f32 %v1476_v15, 0.0  ;;  %20938 = vmatpush3.bf16.msra.mxu1 %v23858_v38 }
 0x312   :  { %19942 = vmatmul.mubr.bf16.gmra.mrb[108].mxu0 %v23835_v27  ;;  %20939 = vmatprep.subr.bf16.mxu1 %v29087_v37 }
 0x313   :  { %v1016_v4 = vpop.permute.xlu1 %1015  ;;  %v18817_v43 = vpack.c.bf16 %v1526_v7, %v1525_v55  ;;  %19945 = vmatprep.mubr.msk.bf16.mxu0 %vm24672_vm0, %v29087_v37  ;;  %20014 = vmatpush3.bf16.msra.mxu0 %v23878_v36 }
 0x314   :  { %v1117_v41 = vmax.f32 %v918_v49, %v1016_v4  ;;  %v1264_v50 = vmin.f32 %v918_v49, %v1016_v4  ;;  %v1014_v8 = vpop.permute.xlu0 %1013  ;;  %20015 = vmatprep.subr.bf16.mxu0 %v29087_v37 }
 0x315   :  { %v1116_v35 = vmax.f32 %v916_v30, %v1014_v8  ;;  %v1263_v59 = vmin.f32 %v916_v30, %v1014_v8  ;;  %18849 = vst [vmem:[#allocation2 + $0xa8] sm:$0xff] %v18817_v43   ;;  %20940 = vmatpush3.bf16.msra.mxu1 %v23864_v62 }
 0x316   :  { %v1166_v46 = vmax.f32 %v1068_v58, %v1117_v41  ;;  %v1313_v22 = vmin.f32 %v1215_v26, %v1264_v50  ;;  %21009 = vmatprep.subr.bf16.mxu1 %v29087_v37 }
 0x317   :  { %v1165_v57 = vmax.f32 %v1067_v2, %v1116_v35  ;;  %v1312_v34 = vmin.f32 %v1214_v16, %v1263_v59  ;;  %v824_v45 = vpop.permute.xlu1 %823  ;;  %20016 = vmatpush3.bf16.msra.mxu0 %v23880_v9  ;;  %v23843_v59 = vld [vmem:[#allocation2 + $0x28] sm:$0xff]   ;;  %v7332_v9 = vrot.slane %v23844_v23, 1 }
 0x318   :  { %v1369_v51 = vsel %vm25679_vm2, %v1166_v46, %v1313_v22  ;;  %20874 = vmatmul.mubr.bf16.gmra.mrb[16].mxu1 %v7327_v42  ;;  %v822_v63 = vpop.permute.xlu0 %821  ;;  %20085 = vmatprep.subr.bf16.mxu0 %v29087_v37  ;;  %v1070_v19 = vmax.f32 %v29109_v5, %v824_v45  ;;  %v1217_v21 = vmin.f32 %v29109_v5, %v824_v45  ;;  %v7330_v5 = vrot.slane %v23841_v54, 1  ;;  %v23846_v42 = vld [vmem:[#allocation2 + $0x64] sm:$0xff]  }
 0x319   :  { %v1424_v13 = vmul.f32 %v25671_v28, %v1369_v51  ;;  %v1368_v17 = vsel %vm25679_vm2, %v1165_v57, %v1312_v34  ;;  %20877 = vmatprep.mubr.msk.bf16.mxu1 %vm24672_vm0, %v29087_v37  ;;  %v1069_v44 = vmax.f32 %v29111_v20, %v822_v63  ;;  %v1216_v38 = vmin.f32 %v29111_v20, %v822_v63  ;;  %v23845_v63 = vld [vmem:[#allocation2 + $0x30] sm:$0xff]  }
 0x31a   :  { %v1423_v1 = vmul.f32 %v25671_v28, %v1368_v17  ;;  %19946 = vmatmul.mubr.bf16.gmra.mrb[112].mxu0 %v23838_v29  ;;  %v7331_v4 = vsel %vm2321_vm3, %v7328_v39, %v7330_v5  ;;  %v7333_v45 = vsel %vm2321_vm3, %v7330_v5, %v7332_v9  ;;  %v7334_v17 = vrot.slane %v23846_v42, 1  ;;  %v23850_v39 = vld [vmem:[#allocation2 + $0x40] sm:$0xff]  }
 0x31b   :  { %v1479_v10 = vadd.f32 %v25684_v48, %v1424_v13  ;;  %v922_v25 = vpop.permute.xlu1 %921  ;;  %19949 = vmatprep.mubr.msk.bf16.mxu0 %vm24672_vm0, %v29087_v37 }
 0x31c   :  { %v1478_v52 = vadd.f32 %v25684_v48, %v1423_v1  ;;  %v920_v47 = vpop.permute.xlu0 %919  ;;  %v23847_v1 = vld [vmem:[#allocation2 + $0x38] sm:$0xff]  }
 0x31d   :  { %v1528_v32 = vmax.f32 %v1479_v10, 0.0  ;;  %v23851_v10 = vld [vmem:[#allocation2 + $0x74] sm:$0xff]  }
 0x31e   :  { %v1527_v31 = vmax.f32 %v1478_v52, 0.0  ;;  %v7338_v52 = vrot.slane %v23851_v10, 1  ;;  %v23887_v10 = vld [vmem:[#allocation2 + $0x18] sm:$0xff]  }
 0x31f   :  { %v1020_v18 = vpop.permute.xlu1 %1019 }
 0x320   :  { %v18822_v33 = vpack.c.bf16 %v1528_v32, %v1527_v31  ;;  %v1119_v40 = vmax.f32 %v922_v25, %v1020_v18  ;;  %v1266_v3 = vmin.f32 %v922_v25, %v1020_v18  ;;  %20878 = vmatmul.mubr.bf16.gmra.mrb[20].mxu1 %v7329_v24  ;;  %v1018_v60 = vpop.permute.xlu0 %1017  ;;  %v23854_v32 = vld [vmem:[#allocation2 + $0x7c] sm:$0xff]   ;;  %v23852_v31 = vld [vmem:[#allocation2 + $0x48] sm:$0xff]   ;;  %v23855_v24 = vld [vmem:[#allocation2 + $0x50] sm:$0xff]  }
 0x321   :  { %v1118_v6 = vmax.f32 %v920_v47, %v1018_v60  ;;  %v1265_v49 = vmin.f32 %v920_v47, %v1018_v60  ;;  %20881 = vmatprep.mubr.msk.bf16.mxu1 %vm24672_vm0, %v29087_v37  ;;  %v7340_v54 = vrot.slane %v23854_v32, 1  ;;  %v23856_v18 = vld [vmem:[#allocation2 + $0x84] sm:$0xff]   ;;  %v2327_v32 = vrot.slane %v23887_v10, 1 }
 0x322   :  { %18850 = vst [vmem:[#allocation2 + $0xb0] sm:$0xff] %v18822_v33   ;;  %v1168_v11 = vmax.f32 %v1070_v19, %v1119_v40  ;;  %v1315_v15 = vmin.f32 %v1217_v21, %v1266_v3  ;;  %19950 = vmatmul.mubr.bf16.gmra.mrb[116].mxu0 %v23840_v0  ;;  %v7342_v33 = vrot.slane %v23856_v18, 1  ;;  %v23859_v40 = vld [vmem:[#allocation2 + $0x8c] sm:$0xff]   ;;  %v23857_v3 = vld [vmem:[#allocation2 + $0x58] sm:$0xff]   ;;  %v23890_v18 = vld [vmem:[#allocation2 + $0x20] sm:$0xff]  }
 0x323   :  { %v1167_v30 = vmax.f32 %v1069_v44, %v1118_v6  ;;  %v1314_v36 = vmin.f32 %v1216_v38, %v1265_v49  ;;  %19953 = vmatprep.mubr.msk.bf16.mxu0 %vm24672_vm0, %v29087_v37  ;;  %v924_v26 = vpop.permute.xlu1 %923  ;;  %v7341_v19 = vsel %vm2321_vm3, %v7338_v52, %v7340_v54  ;;  %v7344_v60 = vrot.slane %v23859_v40, 1  ;;  %v23861_v38 = vld [vmem:[#allocation2 + $0x94] sm:$0xff]   ;;  %v23860_v6 = vld [vmem:[#allocation2 + $0x60] sm:$0xff]  }
 0x324   :  { %v1371_v7 = vsel %vm25679_vm2, %v1168_v11, %v1315_v15  ;;  %v826_v27 = vpop.permute.xlu0 %825  ;;  %v7343_v21 = vsel %vm2321_vm3, %v7340_v54, %v7342_v33  ;;  %v7346_v49 = vrot.slane %v23861_v38, 1  ;;  %v23865_v11 = vld [vmem:[#allocation2 + $0x9c] sm:$0xff]   ;;  %v23862_v15 = vld [vmem:[#allocation2 + $0x68] sm:$0xff]  }
 0x325   :  { %v1426_v20 = vmul.f32 %v25671_v28, %v1371_v7  ;;  %v1370_v55 = vsel %vm25679_vm2, %v1167_v30, %v1314_v36  ;;  %v1071_v41 = vmax.f32 %v29112_v61, %v826_v27  ;;  %v1218_v2 = vmin.f32 %v29112_v61, %v826_v27  ;;  %v23869_v36 = vld [vmem:[#allocation2 + $0xa4] ss:$0 sps:$4 sm:$0x11]   ;;  %v23867_v7 = vld [vmem:[#allocation2 + $0x70] sm:$0xff]   ;;  %v23916_v54 = vld [vmem:[%s28966_s5 + $0x378] sm:$0xff]  }
 0x326   :  { %v1425_v62 = vmul.f32 %v25671_v28, %v1370_v55  ;;  %v7345_v44 = vsel %vm2321_vm3, %v7342_v33, %v7344_v60  ;;  %v7347_v0 = vsel %vm2321_vm3, %v7344_v60, %v7346_v49  ;;  %v7348_v30 = vrot.slane %v23865_v11, 1  ;;  %v23928_v33 = vld [vmem:[%s28966_s5 + $0xa8] sm:$0xff]   ;;  %v23930_v60 = vld [vmem:[%s28966_s5 + $0xb0] sm:$0xff]  }
 0x327   :  { %v1481_v58 = vadd.f32 %v25684_v48, %v1426_v20  ;;  %v7350_v27 = vrot.slane %v23869_v36, 1  ;;  %v23873_v20 = vld [vmem:[#allocation2 + $0x1c] sm:$0xfc]   ;;  %v23895_v36 = vld [vmem:[#allocation2 + $0x30] sm:$0xff]  }
 0x328   :  { %v1480_v43 = vadd.f32 %v25684_v48, %v1425_v62  ;;  %20882 = vmatmul.mubr.bf16.gmra.mrb[24].mxu1 %v7331_v4  ;;  %v1022_v50 = vpop.permute.xlu0 %1021  ;;  %v7349_v5 = vsel %vm2321_vm3, %v7346_v49, %v7348_v30  ;;  %v23874_v62 = vld [vmem:[#allocation2 + $0x24] sm:$0xff]   ;;  %v7828_v4 = vrot.slane %v23873_v20, 2  ;;  %v23932_v49 = vld [vmem:[%s28966_s5 + $0xb8] sm:$0xff]  }
 0x329   :  { %v1530_v8 = vmax.f32 %v1481_v58, 0.0  ;;  %v1120_v16 = vmax.f32 %v924_v26, %v1022_v50  ;;  %v1267_v35 = vmin.f32 %v924_v26, %v1022_v50  ;;  %20885 = vmatprep.mubr.msk.bf16.mxu1 %vm24672_vm0, %v29087_v37  ;;  %v7351_v55 = vsel %vm2321_vm3, %v7348_v30, %v7350_v27  ;;  %v23871_v58 = vld [vmem:[#allocation2 + $0x78] sm:$0xff]   ;;  %v23877_v50 = vld [vmem:[#allocation2 + $0x80] sm:$0xff]  }
 0x32a   :  { %v1529_v14 = vmax.f32 %v1480_v43, 0.0  ;;  %19954 = vmatmul.mubr.bf16.gmra.mrb[120].mxu0 %v23843_v59  ;;  %v7829_v23 = vrot.slane %v23874_v62, 2  ;;  %v23875_v43 = vld [vmem:[%s28966_s5 + $0x340] sm:$0xff]   ;;  %v23889_v59 = vld [vmem:[%s28966_s5 + $0x350] sm:$0xff]   ;;  %v23897_v62 = vld [vmem:[#allocation2 + $0x38] sm:$0xff]  }
 0x32b   :  { %v1169_v46 = vmax.f32 %v1071_v41, %v1120_v16  ;;  %v1316_v22 = vmin.f32 %v1218_v2, %v1267_v35  ;;  %19957 = vmatprep.mubr.msk.bf16.mxu0 %vm24672_vm0, %v29087_v37  ;;  %v23879_v41 = vld [vmem:[#allocation2 + $0x2c] sm:$0xff]   ;;  %v23881_v35 = vld [vmem:[#allocation2] sm:$0xfe]  }
 0x32c   :  { %v18827_v57 = vpack.c.bf16 %v1530_v8, %v1529_v14  ;;  %v7830_v26 = vsel %vm2833_vm4, %v7828_v4, %v7829_v23  ;;  %v23884_v8 = vld [vmem:[%s28966_s5 + $0x348] sm:$0xff]   ;;  %v7831_v16 = vrot.slane %v23879_v41, 2  ;;  %v23896_v20 = vld [vmem:[#allocation2 + $0x5c] sm:$0xff]   ;;  %v2335_v4 = vrot.slane %v23897_v62, 1 }
 0x32d   :  { %v1372_v34 = vsel %vm25679_vm2, %v1169_v46, %v1316_v22  ;;  %v23882_v2 = vld [vmem:[#allocation2 + $0x8] sm:$0xff]   ;;  %v23883_v22 = vld [vmem:[#allocation2 + $0x34] sm:$0xff]   ;;  %v23899_v41 = vld [vmem:[#allocation2 + $0x40] sm:$0xff]  }
 0x32e   :  { %18851 = vst [vmem:[#allocation2 + $0xb8] sm:$0xff] %v18827_v57   ;;  %v1427_v61 = vmul.f32 %v25671_v28, %v1372_v34  ;;  %v7335_v28 = vsel %vm2321_vm3, %v7332_v9, %v7334_v17  ;;  %v2323_v14 = vrot.slane %v23882_v2, 1  ;;  %v7832_v46 = vsel %vm2833_vm4, %v7829_v23, %v7831_v16  ;;  %v23915_v57 = vld [vmem:[%s28966_s5 + $0x80] sm:$0xff]   ;;  %v23885_v34 = vld [vmem:[#allocation2 + $0x10] sm:$0xff]  }
 0x32f   :  { %v2322_v9 = vrot.slane %v23881_v35, 1  ;;  %v7833_v42 = vrot.slane %v23883_v22, 2 }
 0x330   :  { %v1482_v51 = vadd.f32 %v25684_v48, %v1427_v61  ;;  %20886 = vmatmul.mubr.bf16.gmra.mrb[28].mxu1 %v7333_v45  ;;  %v7336_v48 = vrot.slane %v23849_v53, 1  ;;  %v23894_v61 = vld [vmem:[%s28966_s5 + $0x358] sm:$0xff]   ;;  %v23905_v53 = vld [vmem:[%s28966_s5 + $0x368] sm:$0xff]  }
 0x331   :  { %20889 = vmatprep.mubr.msk.bf16.mxu1 %vm24672_vm0, %v29087_v37  ;;  %v2324_v45 = vsel %vm2321_vm3, %v2322_v9, %v2323_v14  ;;  %v23903_v9 = vld [vmem:[#allocation2 + $0x74] sm:$0xff]  }
 0x332   :  { %v1531_v13 = vmax.f32 %v1482_v51, 0.0  ;;  %19958 = vmatmul.mubr.bf16.gmra.mrb[124].mxu0 %v23845_v63  ;;  %v7337_v25 = vsel %vm2321_vm3, %v7334_v17, %v7336_v48  ;;  %v7339_v47 = vsel %vm2321_vm3, %v7336_v48, %v7338_v52  ;;  %v23918_v51 = vld [vmem:[%s28966_s5 + $0x88] sm:$0xff]   ;;  %v23900_v63 = vld [vmem:[%s28966_s5 + $0x360] sm:$0xff]   ;;  %v7834_v17 = vsel %vm2833_vm4, %v7831_v16, %v7833_v42 }
 0x333   :  { %19961 = vmatprep.mubr.msk.bf16.mxu0 %vm24672_vm0, %v29087_v37  ;;  %v23901_v16 = vld [vmem:[#allocation2 + $0x6c] sm:$0xff]  }
 0x334   :  { %v18708_v29 = vpack.c.bf16 %v1531_v13, %v1531_v13  ;;  %v2325_v13 = vrot.slane %v23885_v34, 1  ;;  %v23904_v34 = vld [vmem:[#allocation2 + $0x50] sm:$0xff]  }
 0x336   :  { %1777 = vst [vmem:[#allocation2 + $0xc0] sm:$0xf] %v18708_v29  ;;  %v23886_v29 = vld [vmem:[#allocation2 + $0x3c] sm:$0xff]  }
 0x337   :  { %v7835_v48 = vrot.slane %v23886_v29, 2 }
 0x338   :  { %20890 = vmatmul.mubr.bf16.gmra.mrb[32].mxu1 %v7335_v28  ;;  %v23920_v28 = vld [vmem:[%s28966_s5 + $0x90] sm:$0xff]  }
 0x339   :  { %20893 = vmatprep.mubr.msk.bf16.mxu1 %vm24672_vm0, %v29087_v37  ;;  %v7836_v52 = vsel %vm2833_vm4, %v7833_v42, %v7835_v48 }
 0x33a   :  { %19962 = vmatmul.mubr.bf16.gmra.mrb[128].mxu0 %v23847_v1  ;;  %v2326_v1 = vsel %vm2321_vm3, %v2323_v14, %v2325_v13  ;;  %v7847_v14 = vrot.slane %v23901_v16, 2 }
 0x33b   :  { %19965 = vmatprep.mubr.msk.bf16.mxu0 %vm24672_vm0, %v29087_v37 }
 0x340   :  { %20894 = vmatmul.mubr.bf16.gmra.mrb[36].mxu1 %v7337_v25  ;;  %v23922_v25 = vld [vmem:[%s28966_s5 + $0x98] sm:$0xff]  }
 0x341   :  { %20897 = vmatprep.mubr.msk.bf16.mxu1 %vm24672_vm0, %v29087_v37 }
 0x342   :  { %19966 = vmatmul.mubr.bf16.gmra.mrb[132].mxu0 %v23850_v39  ;;  %v23910_v39 = vld [vmem:[%s28966_s5 + $0x370] sm:$0xff]  }
 0x343   :  { %19969 = vmatprep.mubr.msk.bf16.mxu0 %vm24672_vm0, %v29087_v37 }
 0x348   :  { %20898 = vmatmul.mubr.bf16.gmra.mrb[40].mxu1 %v7339_v47  ;;  %v23888_v47 = vld [vmem:[#allocation2 + $0x44] sm:$0xff]  }
 0x349   :  { %20901 = vmatprep.mubr.msk.bf16.mxu1 %vm24672_vm0, %v29087_v37 }
 0x34a   :  { %19970 = vmatmul.mubr.bf16.gmra.mrb[136].mxu0 %v23852_v31  ;;  %v23924_v31 = vld [vmem:[%s28966_s5 + $0xa0] sm:$0xff]  }
 0x34b   :  { %19973 = vmatprep.mubr.msk.bf16.mxu0 %vm24672_vm0, %v29087_v37 }
 0x350   :  { %20902 = vmatmul.mubr.bf16.gmra.mrb[44].mxu1 %v7341_v19  ;;  %v2328_v19 = vsel %vm2321_vm3, %v2325_v13, %v2327_v32  ;;  %v23907_v13 = vld [vmem:[#allocation2 + $0x58] sm:$0xff]  }
 0x351   :  { %20905 = vmatprep.mubr.msk.bf16.mxu1 %vm24672_vm0, %v29087_v37  ;;  %v2343_v29 = vrot.slane %v23907_v13, 1 }
 0x352   :  { %19974 = vmatmul.mubr.bf16.gmra.mrb[140].mxu0 %v23855_v24  ;;  %v7837_v24 = vrot.slane %v23888_v47, 2 }
 0x353   :  { %19977 = vmatprep.mubr.msk.bf16.mxu0 %vm24672_vm0, %v29087_v37 }
 0x354   :  { %v7838_v40 = vsel %vm2833_vm4, %v7835_v48, %v7837_v24  ;;  %v23909_v48 = vld [vmem:[#allocation2 + $0x60] sm:$0xff]  }
 0x358   :  { %20906 = vmatmul.mubr.bf16.gmra.mrb[48].mxu1 %v7343_v21  ;;  %v2329_v21 = vrot.slane %v23890_v18, 1  ;;  %v23913_v18 = vld [vmem:[#allocation2 + $0x94] sm:$0xff]  }
 0x359   :  { %20909 = vmatprep.mubr.msk.bf16.mxu1 %vm24672_vm0, %v29087_v37 }
 0x35a   :  { %19978 = vmatmul.mubr.bf16.gmra.mrb[144].mxu0 %v23857_v3  ;;  %v23891_v3 = vld [vmem:[#allocation2 + $0x4c] sm:$0xff]   ;;  %v2330_v38 = vsel %vm2321_vm3, %v2327_v32, %v2329_v21 }
 0x35b   :  { %19981 = vmatprep.mubr.msk.bf16.mxu0 %vm24672_vm0, %v29087_v37  ;;  %v23912_v32 = vld [vmem:[#allocation2 + $0x68] sm:$0xff]  }
 0x360   :  { %20910 = vmatmul.mubr.bf16.gmra.mrb[52].mxu1 %v7345_v44  ;;  %v23892_v44 = vld [vmem:[#allocation2 + $0x28] sm:$0xff]  }
 0x361   :  { %20913 = vmatprep.mubr.msk.bf16.mxu1 %vm24672_vm0, %v29087_v37 }
 0x362   :  { %19982 = vmatmul.mubr.bf16.gmra.mrb[148].mxu0 %v23860_v6  ;;  %v7839_v6 = vrot.slane %v23891_v3, 2 }
 0x363   :  { %19985 = vmatprep.mubr.msk.bf16.mxu0 %vm24672_vm0, %v29087_v37 }
 0x364   :  { %v7840_v11 = vsel %vm2833_vm4, %v7837_v24, %v7839_v6 }
 0x368   :  { %20914 = vmatmul.mubr.bf16.gmra.mrb[56].mxu1 %v7347_v0  ;;  %v2331_v0 = vrot.slane %v23892_v44, 1  ;;  %v23919_v44 = vld [vmem:[#allocation2 + $0x78] sm:$0xff]  }
 0x369   :  { %20917 = vmatprep.mubr.msk.bf16.mxu1 %vm24672_vm0, %v29087_v37 }
 0x36a   :  { %19986 = vmatmul.mubr.bf16.gmra.mrb[152].mxu0 %v23862_v15  ;;  %v23893_v15 = vld [vmem:[#allocation2 + $0x54] sm:$0xff]   ;;  %v2332_v30 = vsel %vm2321_vm3, %v2329_v21, %v2331_v0  ;;  %v7857_v21 = vrot.slane %v23913_v18, 2  ;;  %v23942_v18 = vld [vmem:[#allocation2 + $0x20] sm:$0xff]  }
 0x36b   :  { %19989 = vmatprep.mubr.msk.bf16.mxu0 %vm24672_vm0, %v29087_v37 }
 0x370   :  { %20918 = vmatmul.mubr.bf16.gmra.mrb[60].mxu1 %v7349_v5  ;;  %v7841_v5 = vrot.slane %v23893_v15, 2 }
 0x371   :  { %20921 = vmatprep.mubr.msk.bf16.mxu1 %vm24672_vm0, %v29087_v37 }
 0x372   :  { %19990 = vmatmul.mubr.bf16.gmra.mrb[156].mxu0 %v23867_v7  ;;  %v2333_v7 = vrot.slane %v23895_v36, 1  ;;  %v7842_v27 = vsel %vm2833_vm4, %v7839_v6, %v7841_v5 }
 0x373   :  { %19993 = vmatprep.mubr.msk.bf16.mxu0 %vm24672_vm0, %v29087_v37 }
 0x378   :  { %20922 = vmatmul.mubr.bf16.gmra.mrb[64].mxu1 %v7351_v55  ;;  %v2334_v55 = vsel %vm2321_vm3, %v2331_v0, %v2333_v7 }
 0x379   :  { %20941 = vmatprep.mubr.msk.bf16.mxu1 %vm24672_vm0, %v29087_v37 }
 0x37a   :  { %19994 = vmatmul.mubr.bf16.gmra.mrb[160].mxu0 %v23871_v58  ;;  %v7843_v58 = vrot.slane %v23896_v20, 2  ;;  %v23926_v20 = vld [vmem:[#allocation2 + $0x24] sm:$0xff]  }
 0x37b   :  { %19997 = vmatprep.mubr.msk.bf16.mxu0 %vm24672_vm0, %v29087_v37 }
 0x37c   :  { %v7844_v23 = vsel %vm2833_vm4, %v7841_v5, %v7843_v58  ;;  %v23925_v5 = vld [vmem:[#allocation2 + $0x1c] sm:$0xf8]  }
 0x380   :  { %20942 = vmatmul.mubr.bf16.vlgmr.msra.gmra.mrb[0].mxu1 %v7830_v26  ;;  %v2336_v26 = vsel %vm2321_vm3, %v2333_v7, %v2335_v4 }
 0x381   :  { %21010 = vmatpush3.bf16.msra.mxu1 %v23875_v43  ;;  %20945 = vmatprep.mubr.msk.bf16.mxu1 %vm24672_vm0, %v29087_v37  ;;  %v23898_v43 = vld [vmem:[#allocation2 + $0x64] sm:$0xff]  }
 0x382   :  { %21011 = vmatprep.subr.bf16.mxu1 %v29087_v37  ;;  %19998 = vmatmul.mubr.bf16.gmra.mrb[164].mxu0 %v23877_v50  ;;  %v7845_v50 = vrot.slane %v23898_v43, 2 }
 0x383   :  { %20017 = vmatprep.mubr.msk.bf16.mxu0 %vm24672_vm0, %v29087_v37 }
 0x384   :  { %v7846_v2 = vsel %vm2833_vm4, %v7843_v58, %v7845_v50  ;;  %v7848_v22 = vsel %vm2833_vm4, %v7845_v50, %v7847_v14  ;;  %v8339_v58 = vrot.slane %v23925_v5, 3  ;;  %v23936_v50 = vld [vmem:[%s28966_s5 + $0x388] sm:$0xff]  }
 0x385   :  { %21012 = vmatpush3.bf16.msra.mxu1 %v23884_v8  ;;  %v2337_v8 = vrot.slane %v23899_v41, 1 }
 0x386   :  { %21013 = vmatprep.subr.bf16.mxu1 %v29087_v37 }
 0x387   :  { %v2338_v35 = vsel %vm2321_vm3, %v2335_v4, %v2337_v8  ;;  %v8340_v4 = vrot.slane %v23926_v20, 3  ;;  %v23948_v20 = vld [vmem:[#allocation2 + $0x5c] sm:$0xff]  }
 0x388   :  { %20946 = vmatmul.mubr.bf16.gmra.mrb[4].mxu1 %v7832_v46 }
 0x389   :  { %20949 = vmatprep.mubr.msk.bf16.mxu1 %vm24672_vm0, %v29087_v37  ;;  %21014 = vmatpush3.bf16.msra.mxu1 %v23889_v59  ;;  %v23902_v59 = vld [vmem:[#allocation2 + $0x48] sm:$0xff]   ;;  %v8341_v41 = vsel %vm3345_vm5, %v8339_v58, %v8340_v4  ;;  %v8354_v58 = vrot.slane %v23948_v20, 3 }
 0x38a   :  { %21015 = vmatprep.subr.bf16.mxu1 %v29087_v37  ;;  %20018 = vmatmul.mubr.bf16.vlgmr.msra.gmra.mrb[100].mxu0 %v2324_v45  ;;  %v2339_v46 = vrot.slane %v23902_v59, 1  ;;  %v2341_v45 = vrot.slane %v23904_v34, 1  ;;  %v23941_v59 = vld [vmem:[%s28966_s5 + $0x390] sm:$0xff]   ;;  %v23946_v34 = vld [vmem:[%s28966_s5 + $0x398] sm:$0xff]  }
 0x38b   :  { %20021 = vmatprep.mubr.msk.bf16.mxu0 %vm24672_vm0, %v29087_v37  ;;  %20086 = vmatpush3.bf16.msra.mxu0 %v23915_v57  ;;  %v23980_v20 = vld [vmem:[#allocation2 + $0x88] ss:$0 sps:$4 sm:$0x33]  }
 0x38c   :  { %20087 = vmatprep.subr.bf16.mxu0 %v29087_v37  ;;  %v2340_v57 = vsel %vm2321_vm3, %v2337_v8, %v2339_v46 }
 0x38d   :  { %21016 = vmatpush3.bf16.msra.mxu1 %v23894_v61  ;;  %v7849_v61 = vrot.slane %v23903_v9, 2 }
 0x38e   :  { %21017 = vmatprep.subr.bf16.mxu1 %v29087_v37 }
 0x38f   :  { %20088 = vmatpush3.bf16.msra.mxu0 %v23918_v51  ;;  %v7850_v42 = vsel %vm2833_vm4, %v7847_v14, %v7849_v61  ;;  %v23906_v51 = vld [vmem:[#allocation2 + $0x7c] sm:$0xff]  }
 0x390   :  { %20950 = vmatmul.mubr.bf16.gmra.mrb[8].mxu1 %v7834_v17  ;;  %20089 = vmatprep.subr.bf16.mxu0 %v29087_v37  ;;  %v7851_v17 = vrot.slane %v23906_v51, 2  ;;  %v23970_v51 = vld [vmem:[%s28966_s5 + $0xc8] sm:$0xff]  }
 0x391   :  { %20953 = vmatprep.mubr.msk.bf16.mxu1 %vm24672_vm0, %v29087_v37  ;;  %21018 = vmatpush3.bf16.msra.mxu1 %v23900_v63  ;;  %v2342_v63 = vsel %vm2321_vm3, %v2339_v46, %v2341_v45 }
 0x392   :  { %21019 = vmatprep.subr.bf16.mxu1 %v29087_v37  ;;  %20022 = vmatmul.mubr.bf16.gmra.mrb[104].mxu0 %v2326_v1  ;;  %v2344_v1 = vsel %vm2321_vm3, %v2341_v45, %v2343_v29  ;;  %v23937_v45 = vld [vmem:[#allocation2 + $0x10] sm:$0xff]  }
 0x393   :  { %20025 = vmatprep.mubr.msk.bf16.mxu0 %vm24672_vm0, %v29087_v37  ;;  %20090 = vmatpush3.bf16.msra.mxu0 %v23920_v28  ;;  %v7852_v28 = vsel %vm2833_vm4, %v7849_v61, %v7851_v17  ;;  %v2837_v13 = vrot.slane %v23937_v45, 2 }
 0x394   :  { %20091 = vmatprep.subr.bf16.mxu0 %v29087_v37 }
 0x395   :  { %21020 = vmatpush3.bf16.msra.mxu1 %v23905_v53  ;;  %v23908_v53 = vld [vmem:[#allocation2 + $0x84] sm:$0xff]  }
 0x396   :  { %21021 = vmatprep.subr.bf16.mxu1 %v29087_v37  ;;  %v7853_v10 = vrot.slane %v23908_v53, 2  ;;  %v23972_v53 = vld [vmem:[%s28966_s5 + $0xd0] sm:$0xff]  }
 0x397   :  { %20092 = vmatpush3.bf16.msra.mxu0 %v23922_v25  ;;  %v2345_v25 = vrot.slane %v23909_v48, 1 }
 0x398   :  { %20954 = vmatmul.mubr.bf16.gmra.mrb[12].mxu1 %v7836_v52  ;;  %20093 = vmatprep.subr.bf16.mxu0 %v29087_v37  ;;  %v23911_v52 = vld [vmem:[#allocation2 + $0x8c] sm:$0xff]  }
 0x399   :  { %20957 = vmatprep.mubr.msk.bf16.mxu1 %vm24672_vm0, %v29087_v37  ;;  %21022 = vmatpush3.bf16.msra.mxu1 %v23910_v39  ;;  %v7854_v39 = vsel %vm2833_vm4, %v7851_v17, %v7853_v10  ;;  %v2346_v47 = vsel %vm2321_vm3, %v2343_v29, %v2345_v25  ;;  %v23938_v17 = vld [vmem:[#allocation2 + $0x3c] sm:$0xff]  }
 0x39a   :  { %21023 = vmatprep.subr.bf16.mxu1 %v29087_v37  ;;  %20026 = vmatmul.mubr.bf16.gmra.mrb[108].mxu0 %v2328_v19  ;;  %v8346_v48 = vrot.slane %v23938_v17, 3 }
 0x39b   :  { %20029 = vmatprep.mubr.msk.bf16.mxu0 %vm24672_vm0, %v29087_v37  ;;  %20094 = vmatpush3.bf16.msra.mxu0 %v23924_v31  ;;  %v7855_v31 = vrot.slane %v23911_v52, 2 }
 0x39c   :  { %20095 = vmatprep.subr.bf16.mxu0 %v29087_v37 }
 0x39d   :  { %21024 = vmatpush3.bf16.msra.mxu1 %v23916_v54  ;;  %v2347_v54 = vrot.slane %v23912_v32, 1  ;;  %v7856_v19 = vsel %vm2833_vm4, %v7853_v10, %v7855_v31  ;;  %v7858_v3 = vsel %vm2833_vm4, %v7855_v31, %v7857_v21  ;;  %v23939_v10 = vld [vmem:[#allocation2 + $0x18] sm:$0xff]   ;;  %v23976_v31 = vld [vmem:[%s28966_s5 + $0xe0] sm:$0xff]  }
 0x39e   :  { %21093 = vmatprep.subr.bf16.mxu1 %v29087_v37  ;;  %v2839_v32 = vrot.slane %v23939_v10, 2 }
 0x39f   :  { %20096 = vmatpush3.bf16.msra.mxu0 %v23928_v33  ;;  %v2348_v24 = vsel %vm2321_vm3, %v2345_v25, %v2347_v54  ;;  %v23914_v33 = vld [vmem:[#allocation2 + $0x70] sm:$0xff]   ;;  %v23974_v25 = vld [vmem:[%s28966_s5 + $0xd8] sm:$0xff]  }
 0x3a0   :  { %20958 = vmatmul.mubr.bf16.gmra.mrb[16].mxu1 %v7838_v40  ;;  %20097 = vmatprep.subr.bf16.mxu0 %v29087_v37  ;;  %v2349_v40 = vrot.slane %v23914_v33, 1  ;;  %v23979_v33 = vld [vmem:[%s28966_s5 + $0xe8] sm:$0xff]  }
 0x3a1   :  { %20961 = vmatprep.mubr.msk.bf16.mxu1 %vm24672_vm0, %v29087_v37 }
 0x3a2   :  { %20030 = vmatmul.mubr.bf16.gmra.mrb[112].mxu0 %v2330_v38  ;;  %v2350_v38 = vsel %vm2321_vm3, %v2347_v54, %v2349_v40  ;;  %v23968_v54 = vld [vmem:[%s28966_s5 + $0x3b8] sm:$0xff]  }
 0x3a3   :  { %20033 = vmatprep.mubr.msk.bf16.mxu0 %vm24672_vm0, %v29087_v37  ;;  %20098 = vmatpush3.bf16.msra.mxu0 %v23930_v60  ;;  %v23917_v60 = vld [vmem:[#allocation2 + $0x9c] sm:$0xff]  }
 0x3a4   :  { %20099 = vmatprep.subr.bf16.mxu0 %v29087_v37  ;;  %v7859_v6 = vrot.slane %v23917_v60, 2  ;;  %v23981_v60 = vld [vmem:[%s28966_s5 + $0xf0] sm:$0xff]  }
 0x3a6   :  { %v7860_v0 = vsel %vm2833_vm4, %v7857_v21, %v7859_v6  ;;  %v23943_v21 = vld [vmem:[#allocation2 + $0x4c] sm:$0xff]  }
 0x3a7   :  { %20100 = vmatpush3.bf16.msra.mxu0 %v23932_v49  ;;  %v2351_v49 = vrot.slane %v23919_v44, 1  ;;  %v8350_v44 = vrot.slane %v23943_v21, 3 }
 0x3a8   :  { %20962 = vmatmul.mubr.bf16.gmra.mrb[20].mxu1 %v7840_v11  ;;  %20169 = vmatprep.subr.bf16.mxu0 %v29087_v37  ;;  %v23921_v11 = vld [vmem:[#allocation2 + $0xa4] ss:$0 sps:$4 sm:$0x33]  }
 0x3a9   :  { %20965 = vmatprep.mubr.msk.bf16.mxu1 %vm24672_vm0, %v29087_v37  ;;  %v2352_v15 = vsel %vm2321_vm3, %v2349_v40, %v2351_v49  ;;  %v7861_v36 = vrot.slane %v23921_v11, 2  ;;  %v2841_v40 = vrot.slane %v23942_v18, 2  ;;  %v23965_v18 = vld [vmem:[#allocation2 + $0x94] sm:$0xff]  }
 0x3aa   :  { %20034 = vmatmul.mubr.bf16.gmra.mrb[116].mxu0 %v2332_v30  ;;  %v23923_v30 = vld [vmem:[#allocation2 + $0x80] sm:$0xff]   ;;  %v8368_v21 = vrot.slane %v23965_v18, 3  ;;  %v23998_v18 = vld [vmem:[#allocation2 + $0x30] sm:$0xff]  }
 0x3ab   :  { %20037 = vmatprep.mubr.msk.bf16.mxu0 %vm24672_vm0, %v29087_v37  ;;  %v2353_v7 = vrot.slane %v23923_v30, 1 }
 0x3ad   :  { %v2354_v62 = vsel %vm2321_vm3, %v2351_v49, %v2353_v7  ;;  %v23983_v49 = vld [vmem:[%s28966_s5 + $0xf8] sm:$0xff]  }
 0x3b0   :  { %20966 = vmatmul.mubr.bf16.gmra.mrb[24].mxu1 %v7842_v27  ;;  %v7862_v27 = vsel %vm2833_vm4, %v7859_v6, %v7861_v36  ;;  %v2842_v6 = vsel %vm2833_vm4, %v2839_v32, %v2841_v40  ;;  %v23947_v36 = vld [vmem:[#allocation2 + $0x30] sm:$0xff]  }
 0x3b1   :  { %20969 = vmatprep.mubr.msk.bf16.mxu1 %vm24672_vm0, %v29087_v37 }
 0x3b2   :  { %20038 = vmatmul.mubr.bf16.gmra.mrb[120].mxu0 %v2334_v55  ;;  %v23929_v55 = vld [vmem:[#allocation2 + $0x88] ss:$0 sps:$4 sm:$0x11]  }
 0x3b3   :  { %20041 = vmatprep.mubr.msk.bf16.mxu0 %vm24672_vm0, %v29087_v37  ;;  %v2355_v43 = vrot.slane %v23929_v55, 1  ;;  %v23949_v55 = vld [vmem:[#allocation2 + $0x38] sm:$0xff]  }
 0x3b5   :  { %v2356_v8 = vsel %vm2321_vm3, %v2353_v7, %v2355_v43  ;;  %v2845_v7 = vrot.slane %v23947_v36, 2  ;;  %v23950_v43 = vld [vmem:[#allocation2 + $0x64] sm:$0xff]  }
 0x3b8   :  { %20970 = vmatmul.mubr.bf16.gmra.mrb[28].mxu1 %v7844_v23  ;;  %v23927_v23 = vld [vmem:[%s28966_s5 + $0x380] sm:$0xff]  }
 0x3b9   :  { %20973 = vmatprep.mubr.msk.bf16.mxu1 %vm24672_vm0, %v29087_v37 }
 0x3ba   :  { %20042 = vmatmul.mubr.bf16.gmra.mrb[124].mxu0 %v2336_v26  ;;  %v23931_v26 = vld [vmem:[#allocation2 + $0x2c] sm:$0xff]  }
 0x3bb   :  { %20045 = vmatprep.mubr.msk.bf16.mxu0 %vm24672_vm0, %v29087_v37  ;;  %v8342_v16 = vrot.slane %v23931_v26, 3 }
 0x3bd   :  { %v8343_v46 = vsel %vm3345_vm5, %v8340_v4, %v8342_v16  ;;  %v2847_v4 = vrot.slane %v23949_v55, 2  ;;  %v23978_v55 = vld [vmem:[%s28966_s5 + $0x3c0] sm:$0xff]  }
 0x3bf   :  { %v2848_v26 = vsel %vm2833_vm4, %v2845_v7, %v2847_v4 }
 0x3c0   :  { %20974 = vmatmul.mubr.bf16.gmra.mrb[32].mxu1 %v7846_v2  ;;  %v23934_v2 = vld [vmem:[#allocation2 + $0x8] sm:$0xff]  }
 0x3c1   :  { %20977 = vmatprep.mubr.msk.bf16.mxu1 %vm24672_vm0, %v29087_v37  ;;  %v2835_v14 = vrot.slane %v23934_v2, 2 }
 0x3c2   :  { %20046 = vmatmul.mubr.bf16.gmra.mrb[128].mxu0 %v2338_v35  ;;  %v23933_v35 = vld [vmem:[#allocation2] sm:$0xfc]  }
 0x3c3   :  { %20049 = vmatprep.mubr.msk.bf16.mxu0 %vm24672_vm0, %v29087_v37  ;;  %v2834_v9 = vrot.slane %v23933_v35, 2 }
 0x3c5   :  { %v2836_v61 = vsel %vm2833_vm4, %v2834_v9, %v2835_v14  ;;  %v23955_v9 = vld [vmem:[#allocation2 + $0x74] sm:$0xff]  }
 0x3c8   :  { %20978 = vmatmul.mubr.bf16.gmra.mrb[36].mxu1 %v7848_v22  ;;  %v23935_v22 = vld [vmem:[#allocation2 + $0x34] sm:$0xff]  }
 0x3c9   :  { %20981 = vmatprep.mubr.msk.bf16.mxu1 %vm24672_vm0, %v29087_v37 }
 0x3ca   :  { %20050 = vmatmul.mubr.bf16.gmra.mrb[132].mxu0 %v2340_v57  ;;  %v23967_v57 = vld [vmem:[%s28966_s5 + $0xc0] sm:$0xff]  }
 0x3cb   :  { %20053 = vmatprep.mubr.msk.bf16.mxu0 %vm24672_vm0, %v29087_v37 }
 0x3d0   :  { %20982 = vmatmul.mubr.bf16.gmra.mrb[40].mxu1 %v7850_v42  ;;  %v8344_v42 = vrot.slane %v23935_v22, 3 }
 0x3d1   :  { %20985 = vmatprep.mubr.msk.bf16.mxu1 %vm24672_vm0, %v29087_v37 }
 0x3d2   :  { %20054 = vmatmul.mubr.bf16.gmra.mrb[136].mxu0 %v2342_v63  ;;  %v23952_v63 = vld [vmem:[%s28966_s5 + $0x3a0] sm:$0xff]   ;;  %v8345_v29 = vsel %vm3345_vm5, %v8342_v16, %v8344_v42  ;;  %v8347_v52 = vsel %vm3345_vm5, %v8344_v42, %v8346_v48  ;;  %v23953_v16 = vld [vmem:[#allocation2 + $0x6c] sm:$0xff]  }
 0x3d3   :  { %20057 = vmatprep.mubr.msk.bf16.mxu0 %vm24672_vm0, %v29087_v37 }
 0x3d8   :  { %20986 = vmatmul.mubr.bf16.gmra.mrb[44].mxu1 %v7852_v28  ;;  %v23957_v28 = vld [vmem:[%s28966_s5 + $0x3a8] sm:$0xff]  }
 0x3d9   :  { %20989 = vmatprep.mubr.msk.bf16.mxu1 %vm24672_vm0, %v29087_v37 }
 0x3da   :  { %20058 = vmatmul.mubr.bf16.gmra.mrb[140].mxu0 %v2344_v1  ;;  %v2838_v1 = vsel %vm2833_vm4, %v2835_v14, %v2837_v13  ;;  %v8358_v14 = vrot.slane %v23953_v16, 3  ;;  %v24018_v16 = vld [vmem:[%s28966_s5 + $0x100] sm:$0xff]  }
 0x3db   :  { %20061 = vmatprep.mubr.msk.bf16.mxu0 %vm24672_vm0, %v29087_v37 }
 0x3e0   :  { %20990 = vmatmul.mubr.bf16.gmra.mrb[48].mxu1 %v7854_v39  ;;  %v23962_v39 = vld [vmem:[%s28966_s5 + $0x3b0] sm:$0xff]  }
 0x3e1   :  { %20993 = vmatprep.mubr.msk.bf16.mxu1 %vm24672_vm0, %v29087_v37 }
 0x3e2   :  { %20062 = vmatmul.mubr.bf16.gmra.mrb[144].mxu0 %v2346_v47  ;;  %v23940_v47 = vld [vmem:[#allocation2 + $0x44] sm:$0xff]  }
 0x3e3   :  { %20065 = vmatprep.mubr.msk.bf16.mxu0 %vm24672_vm0, %v29087_v37 }
 0x3e8   :  { %20994 = vmatmul.mubr.bf16.gmra.mrb[52].mxu1 %v7856_v19  ;;  %v2840_v19 = vsel %vm2833_vm4, %v2837_v13, %v2839_v32  ;;  %v23959_v13 = vld [vmem:[#allocation2 + $0x58] sm:$0xff]   ;;  %v23964_v32 = vld [vmem:[#allocation2 + $0x68] sm:$0xff]  }
 0x3e9   :  { %20997 = vmatprep.mubr.msk.bf16.mxu1 %vm24672_vm0, %v29087_v37 }
 0x3ea   :  { %20066 = vmatmul.mubr.bf16.gmra.mrb[148].mxu0 %v2348_v24  ;;  %v8348_v24 = vrot.slane %v23940_v47, 3 }
 0x3eb   :  { %20069 = vmatprep.mubr.msk.bf16.mxu0 %vm24672_vm0, %v29087_v37 }
 0x3ec   :  { %v8351_v11 = vsel %vm3345_vm5, %v8348_v24, %v8350_v44 }
 0x3f0   :  { %20998 = vmatmul.mubr.bf16.gmra.mrb[56].mxu1 %v7858_v3  ;;  %v8349_v3 = vsel %vm3345_vm5, %v8346_v48, %v8348_v24  ;;  %v23961_v48 = vld [vmem:[#allocation2 + $0x60] sm:$0xff]  }
 0x3f1   :  { %21001 = vmatprep.mubr.msk.bf16.mxu1 %vm24672_vm0, %v29087_v37 }
 0x3f2   :  { %20070 = vmatmul.mubr.bf16.gmra.mrb[152].mxu0 %v2350_v38  ;;  %v23944_v38 = vld [vmem:[#allocation2 + $0x28] sm:$0xff]  }
 0x3f3   :  { %20073 = vmatprep.mubr.msk.bf16.mxu0 %vm24672_vm0, %v29087_v37 }
 0x3f8   :  { %21002 = vmatmul.mubr.bf16.gmra.mrb[60].mxu1 %v7860_v0  ;;  %v2843_v0 = vrot.slane %v23944_v38, 2  ;;  %v23971_v38 = vld [vmem:[#allocation2 + $0x78] sm:$0xff]  }
 0x3f9   :  { %21005 = vmatprep.mubr.msk.bf16.mxu1 %vm24672_vm0, %v29087_v37 }
 0x3fa   :  { %20074 = vmatmul.mubr.bf16.gmra.mrb[156].mxu0 %v2352_v15  ;;  %v23945_v15 = vld [vmem:[#allocation2 + $0x54] sm:$0xff]   ;;  %v2844_v30 = vsel %vm2833_vm4, %v2841_v40, %v2843_v0 }
 0x3fb   :  { %20077 = vmatprep.mubr.msk.bf16.mxu0 %vm24672_vm0, %v29087_v37  ;;  %v8352_v5 = vrot.slane %v23945_v15, 3 }
 0x400   :  { %21006 = vmatmul.mubr.bf16.gmra.mrb[64].mxu1 %v7862_v27  ;;  %v8353_v27 = vsel %vm3345_vm5, %v8350_v44, %v8352_v5 }
 0x401   :  { %21025 = vmatprep.mubr.msk.bf16.mxu1 %vm24672_vm0, %v29087_v37 }
 0x402   :  { %20078 = vmatmul.mubr.bf16.gmra.mrb[160].mxu0 %v2354_v62  ;;  %v2846_v62 = vsel %vm2833_vm4, %v2843_v0, %v2845_v7 }
 0x403   :  { %20081 = vmatprep.mubr.msk.bf16.mxu0 %vm24672_vm0, %v29087_v37 }
 0x408   :  { %21026 = vmatmul.mubr.bf16.vlgmr.msra.gmra.mrb[0].mxu1 %v8341_v41  ;;  %v23951_v41 = vld [vmem:[#allocation2 + $0x40] sm:$0xff]  }
 0x409   :  { %21094 = vmatpush3.bf16.msra.mxu1 %v23927_v23  ;;  %21029 = vmatprep.mubr.msk.bf16.mxu1 %vm24672_vm0, %v29087_v37  ;;  %v8355_v23 = vsel %vm3345_vm5, %v8352_v5, %v8354_v58 }
 0x40a   :  { %21095 = vmatprep.subr.bf16.mxu1 %v29087_v37  ;;  %20082 = vmatmul.mubr.bf16.gmra.mrb[164].mxu0 %v2356_v8  ;;  %v2849_v8 = vrot.slane %v23951_v41, 2  ;;  %v23992_v41 = vld [vmem:[%s28966_s5 + $0x3d0] sm:$0xff]  }
 0x40b   :  { %20101 = vmatprep.mubr.msk.bf16.mxu0 %vm24672_vm0, %v29087_v37 }
 0x40c   :  { %v2850_v35 = vsel %vm2833_vm4, %v2847_v4, %v2849_v8  ;;  %v23987_v4 = vld [vmem:[%s28966_s5 + $0x3c8] sm:$0xff]  }
 0x40d   :  { %21096 = vmatpush3.bf16.msra.mxu1 %v23936_v50  ;;  %v8356_v50 = vrot.slane %v23950_v43, 3  ;;  %v23985_v43 = vld [vmem:[#allocation2 + $0x8] sm:$0xff]  }
 0x40e   :  { %21097 = vmatprep.subr.bf16.mxu1 %v29087_v37 }
 0x40f   :  { %v8357_v2 = vsel %vm3345_vm5, %v8354_v58, %v8356_v50  ;;  %v8359_v22 = vsel %vm3345_vm5, %v8356_v50, %v8358_v14  ;;  %v2867_v58 = vrot.slane %v23980_v20, 2  ;;  %v23982_v50 = vld [vmem:[#allocation2 + $0x28] sm:$0xff]  }
 0x410   :  { %21030 = vmatmul.mubr.bf16.gmra.mrb[4].mxu1 %v8343_v46 }
 0x411   :  { %21033 = vmatprep.mubr.msk.bf16.mxu1 %vm24672_vm0, %v29087_v37  ;;  %21098 = vmatpush3.bf16.msra.mxu1 %v23941_v59  ;;  %v23954_v59 = vld [vmem:[#allocation2 + $0x48] sm:$0xff]  }
 0x412   :  { %21099 = vmatprep.subr.bf16.mxu1 %v29087_v37  ;;  %20102 = vmatmul.mubr.bf16.vlgmr.msra.gmra.mrb[100].mxu0 %v2836_v61  ;;  %v2851_v46 = vrot.slane %v23954_v59, 2  ;;  %v8360_v61 = vrot.slane %v23955_v9, 3  ;;  %v23986_v9 = vld [vmem:[#allocation2 + $0x30] sm:$0xff]  }
 0x413   :  { %20105 = vmatprep.mubr.msk.bf16.mxu0 %vm24672_vm0, %v29087_v37  ;;  %20170 = vmatpush3.bf16.msra.mxu0 %v23967_v57 }
 0x414   :  { %20171 = vmatprep.subr.bf16.mxu0 %v29087_v37  ;;  %v2852_v57 = vsel %vm2833_vm4, %v2849_v8, %v2851_v46  ;;  %v8361_v42 = vsel %vm3345_vm5, %v8358_v14, %v8360_v61  ;;  %v3347_v8 = vrot.slane %v23985_v43, 3  ;;  %v23988_v14 = vld [vmem:[#allocation2 + $0x10] sm:$0xff]   ;;  %v24011_v43 = vld [vmem:[#allocation2 + $0x80] sm:$0xff]  }
 0x415   :  { %21100 = vmatpush3.bf16.msra.mxu1 %v23946_v34  ;;  %v23956_v34 = vld [vmem:[#allocation2 + $0x50] sm:$0xff]  }
 0x416   :  { %21101 = vmatprep.subr.bf16.mxu1 %v29087_v37  ;;  %v2853_v45 = vrot.slane %v23956_v34, 2  ;;  %v24023_v34 = vld [vmem:[%s28966_s5 + $0x110] sm:$0xff]  }
 0x417   :  { %20172 = vmatpush3.bf16.msra.mxu0 %v23970_v51  ;;  %v23958_v51 = vld [vmem:[#allocation2 + $0x7c] sm:$0xff]  }
 0x418   :  { %21034 = vmatmul.mubr.bf16.gmra.mrb[8].mxu1 %v8345_v29  ;;  %20173 = vmatprep.subr.bf16.mxu0 %v29087_v37  ;;  %v8362_v17 = vrot.slane %v23958_v51, 3  ;;  %v2855_v29 = vrot.slane %v23959_v13, 2  ;;  %v24025_v51 = vld [vmem:[%s28966_s5 + $0x118] sm:$0xff]  }
 0x419   :  { %21037 = vmatprep.mubr.msk.bf16.mxu1 %vm24672_vm0, %v29087_v37  ;;  %21102 = vmatpush3.bf16.msra.mxu1 %v23952_v63  ;;  %v2854_v63 = vsel %vm2833_vm4, %v2851_v46, %v2853_v45  ;;  %v24021_v46 = vld [vmem:[%s28966_s5 + $0x108] sm:$0xff]   ;;  %v23989_v13 = vld [vmem:[#allocation2 + $0x38] sm:$0xff]  }
 0x41a   :  { %21103 = vmatprep.subr.bf16.mxu1 %v29087_v37  ;;  %20106 = vmatmul.mubr.bf16.gmra.mrb[104].mxu0 %v2838_v1  ;;  %v2856_v1 = vsel %vm2833_vm4, %v2853_v45, %v2855_v29 }
 0x41b   :  { %20109 = vmatprep.mubr.msk.bf16.mxu0 %vm24672_vm0, %v29087_v37  ;;  %20174 = vmatpush3.bf16.msra.mxu0 %v23972_v53  ;;  %v23960_v53 = vld [vmem:[#allocation2 + $0x84] sm:$0xff]  }
 0x41c   :  { %20175 = vmatprep.subr.bf16.mxu0 %v29087_v37  ;;  %v8364_v10 = vrot.slane %v23960_v53, 3 }
 0x41d   :  { %21104 = vmatpush3.bf16.msra.mxu1 %v23957_v28  ;;  %v8363_v28 = vsel %vm3345_vm5, %v8360_v61, %v8362_v17  ;;  %v24008_v61 = vld [vmem:[%s28966_s5 + $0x3e8] sm:$0xff]  }
 0x41e   :  { %21105 = vmatprep.subr.bf16.mxu1 %v29087_v37 }
 0x41f   :  { %20176 = vmatpush3.bf16.msra.mxu0 %v23974_v25  ;;  %v2857_v25 = vrot.slane %v23961_v48, 2  ;;  %v24031_v48 = vld [vmem:[%s28966_s5 + $0x128] sm:$0xff]  }
 0x420   :  { %21038 = vmatmul.mubr.bf16.gmra.mrb[12].mxu1 %v8347_v52  ;;  %20177 = vmatprep.subr.bf16.mxu0 %v29087_v37  ;;  %v23963_v52 = vld [vmem:[#allocation2 + $0x8c] sm:$0xff]  }
 0x421   :  { %21041 = vmatprep.mubr.msk.bf16.mxu1 %vm24672_vm0, %v29087_v37  ;;  %21106 = vmatpush3.bf16.msra.mxu1 %v23962_v39  ;;  %v8365_v39 = vsel %vm3345_vm5, %v8362_v17, %v8364_v10  ;;  %v2858_v47 = vsel %vm2833_vm4, %v2855_v29, %v2857_v25  ;;  %v24027_v29 = vld [vmem:[%s28966_s5 + $0x120] sm:$0xff]  }
 0x422   :  { %21107 = vmatprep.subr.bf16.mxu1 %v29087_v37  ;;  %20110 = vmatmul.mubr.bf16.gmra.mrb[108].mxu0 %v2840_v19 }
 0x423   :  { %20113 = vmatprep.mubr.msk.bf16.mxu0 %vm24672_vm0, %v29087_v37  ;;  %20178 = vmatpush3.bf16.msra.mxu0 %v23976_v31  ;;  %v8366_v31 = vrot.slane %v23963_v52, 3 }
 0x424   :  { %20179 = vmatprep.subr.bf16.mxu0 %v29087_v37 }
 0x425   :  { %21108 = vmatpush3.bf16.msra.mxu1 %v23968_v54  ;;  %v2859_v54 = vrot.slane %v23964_v32, 2  ;;  %v8367_v19 = vsel %vm3345_vm5, %v8364_v10, %v8366_v31  ;;  %v23991_v10 = vld [vmem:[#allocation2 + $0x40] sm:$0xff]   ;;  %v24035_v32 = vld [vmem:[%s28966_s5 + $0x138] sm:$0xff]  }
 0x426   :  { %21177 = vmatprep.subr.bf16.mxu1 %v29087_v37 }
 0x427   :  { %20180 = vmatpush3.bf16.msra.mxu0 %v23979_v33  ;;  %v2860_v24 = vsel %vm2833_vm4, %v2857_v25, %v2859_v54  ;;  %v23966_v33 = vld [vmem:[#allocation2 + $0x70] sm:$0xff]  }
 0x428   :  { %21042 = vmatmul.mubr.bf16.gmra.mrb[16].mxu1 %v8349_v3  ;;  %20181 = vmatprep.subr.bf16.mxu0 %v29087_v37  ;;  %v2861_v40 = vrot.slane %v23966_v33, 2  ;;  %v8369_v3 = vsel %vm3345_vm5, %v8366_v31, %v8368_v21  ;;  %v23994_v31 = vld [vmem:[#allocation2 + $0x48] sm:$0xff]   ;;  %v3357_v33 = vrot.slane %v23998_v18, 3  ;;  %v24048_v18 = vld [vmem:[%s28966_s5 + $0x418] sm:$0xff]  }
 0x429   :  { %21045 = vmatprep.mubr.msk.bf16.mxu1 %vm24672_vm0, %v29087_v37 }
 0x42a   :  { %20114 = vmatmul.mubr.bf16.gmra.mrb[112].mxu0 %v2842_v6  ;;  %v2862_v44 = vsel %vm2833_vm4, %v2859_v54, %v2861_v40 }
 0x42b   :  { %20117 = vmatprep.mubr.msk.bf16.mxu0 %vm24672_vm0, %v29087_v37  ;;  %20182 = vmatpush3.bf16.msra.mxu0 %v23981_v60  ;;  %v23969_v60 = vld [vmem:[#allocation2 + $0x9c] sm:$0xff]  }
 0x42c   :  { %20183 = vmatprep.subr.bf16.mxu0 %v29087_v37  ;;  %v8370_v6 = vrot.slane %v23969_v60, 3 }
 0x42e   :  { %v8371_v0 = vsel %vm3345_vm5, %v8368_v21, %v8370_v6 }
 0x42f   :  { %20184 = vmatpush3.bf16.msra.mxu0 %v23983_v49  ;;  %v2863_v49 = vrot.slane %v23971_v38, 2  ;;  %v24002_v38 = vld [vmem:[#allocation2 + $0x40] sm:$0xff]  }
 0x430   :  { %21046 = vmatmul.mubr.bf16.gmra.mrb[20].mxu1 %v8351_v11  ;;  %20253 = vmatprep.subr.bf16.mxu0 %v29087_v37  ;;  %v23973_v11 = vld [vmem:[#allocation2 + $0xa4] ss:$0 sps:$4 sm:$0x77]  }
 0x431   :  { %21049 = vmatprep.mubr.msk.bf16.mxu1 %vm24672_vm0, %v29087_v37  ;;  %v2864_v15 = vsel %vm2833_vm4, %v2861_v40, %v2863_v49  ;;  %v8372_v36 = vrot.slane %v23973_v11, 3  ;;  %v24000_v40 = vld [vmem:[#allocation2 + $0x38] sm:$0xff]   ;;  %v24005_v11 = vld [vmem:[#allocation2 + $0x48] sm:$0xff]  }
 0x432   :  { %20118 = vmatmul.mubr.bf16.gmra.mrb[116].mxu0 %v2844_v30  ;;  %v23975_v30 = vld [vmem:[#allocation2 + $0x80] sm:$0xff]   ;;  %v3359_v60 = vrot.slane %v24000_v40, 3 }
 0x433   :  { %20121 = vmatprep.mubr.msk.bf16.mxu0 %vm24672_vm0, %v29087_v37  ;;  %v2865_v5 = vrot.slane %v23975_v30, 2  ;;  %v8373_v7 = vsel %vm3345_vm5, %v8370_v6, %v8372_v36  ;;  %v24001_v6 = vld [vmem:[#allocation2 + $0x60] sm:$0xff]   ;;  %v3363_v30 = vrot.slane %v24005_v11, 3 }
 0x438   :  { %21050 = vmatmul.mubr.bf16.gmra.mrb[24].mxu1 %v8353_v27  ;;  %v2866_v27 = vsel %vm2833_vm4, %v2863_v49, %v2865_v5  ;;  %v3361_v49 = vrot.slane %v24002_v38, 3  ;;  %v24059_v38 = vld [vmem:[%s28966_s5 + $0x428] sm:$0xff]  }
 0x439   :  { %21053 = vmatprep.mubr.msk.bf16.mxu1 %vm24672_vm0, %v29087_v37 }
 0x43a   :  { %20122 = vmatmul.mubr.bf16.gmra.mrb[120].mxu0 %v2846_v62  ;;  %v23977_v62 = vld [vmem:[#allocation2 + $0x20] sm:$0xff]   ;;  %v3364_v36 = vsel %vm3345_vm5, %v3361_v49, %v3363_v30 }
 0x43b   :  { %20125 = vmatprep.mubr.msk.bf16.mxu0 %vm24672_vm0, %v29087_v37 }
 0x440   :  { %21054 = vmatmul.mubr.bf16.gmra.mrb[28].mxu1 %v8355_v23  ;;  %v2868_v23 = vsel %vm2833_vm4, %v2865_v5, %v2867_v58  ;;  %v24007_v5 = vld [vmem:[#allocation2 + $0x50] sm:$0xff]  }
 0x441   :  { %21057 = vmatprep.mubr.msk.bf16.mxu1 %vm24672_vm0, %v29087_v37 }
 0x442   :  { %20126 = vmatmul.mubr.bf16.gmra.mrb[124].mxu0 %v2848_v26  ;;  %v23984_v26 = vld [vmem:[#allocation2] sm:$0xf8]  }
 0x443   :  { %20129 = vmatprep.mubr.msk.bf16.mxu0 %vm24672_vm0, %v29087_v37 }
 0x448   :  { %21058 = vmatmul.mubr.bf16.gmra.mrb[32].mxu1 %v8357_v2  ;;  %v3346_v2 = vrot.slane %v23984_v26, 3 }
 0x449   :  { %21061 = vmatprep.mubr.msk.bf16.mxu1 %vm24672_vm0, %v29087_v37 }
 0x44a   :  { %20130 = vmatmul.mubr.bf16.gmra.mrb[128].mxu0 %v2850_v35  ;;  %v23997_v35 = vld [vmem:[%s28966_s5 + $0x3d8] sm:$0xff]   ;;  %v3348_v59 = vsel %vm3345_vm5, %v3346_v2, %v3347_v8 }
 0x44b   :  { %20133 = vmatprep.mubr.msk.bf16.mxu0 %vm24672_vm0, %v29087_v37 }
 0x450   :  { %21062 = vmatmul.mubr.bf16.gmra.mrb[36].mxu1 %v8359_v22  ;;  %v24003_v22 = vld [vmem:[%s28966_s5 + $0x3e0] sm:$0xff]  }
 0x451   :  { %21065 = vmatprep.mubr.msk.bf16.mxu1 %vm24672_vm0, %v29087_v37 }
 0x452   :  { %20134 = vmatmul.mubr.bf16.gmra.mrb[132].mxu0 %v2852_v57  ;;  %v3349_v57 = vrot.slane %v23988_v14, 3 }
 0x453   :  { %20137 = vmatprep.mubr.msk.bf16.mxu0 %vm24672_vm0, %v29087_v37 }
 0x454   :  { %v3350_v45 = vsel %vm3345_vm5, %v3347_v8, %v3349_v57  ;;  %v24014_v8 = vld [vmem:[#allocation2 + $0x88] sm:$0xff]  }
 0x458   :  { %21066 = vmatmul.mubr.bf16.gmra.mrb[40].mxu1 %v8361_v42  ;;  %v23990_v42 = vld [vmem:[#allocation2 + $0x18] sm:$0xff]  }
 0x459   :  { %21069 = vmatprep.mubr.msk.bf16.mxu1 %vm24672_vm0, %v29087_v37  ;;  %v3351_v17 = vrot.slane %v23990_v42, 3 }
 0x45a   :  { %20138 = vmatmul.mubr.bf16.gmra.mrb[136].mxu0 %v2854_v63  ;;  %v24013_v63 = vld [vmem:[%s28966_s5 + $0x3f0] sm:$0xff]  }
 0x45b   :  { %20141 = vmatprep.mubr.msk.bf16.mxu0 %vm24672_vm0, %v29087_v37  ;;  %v3352_v53 = vsel %vm3345_vm5, %v3349_v57, %v3351_v17 }
 0x460   :  { %21070 = vmatmul.mubr.bf16.gmra.mrb[44].mxu1 %v8363_v28  ;;  %v24019_v28 = vld [vmem:[%s28966_s5 + $0x3f8] sm:$0xff]  }
 0x461   :  { %21073 = vmatprep.mubr.msk.bf16.mxu1 %vm24672_vm0, %v29087_v37 }
 0x462   :  { %20142 = vmatmul.mubr.bf16.gmra.mrb[140].mxu0 %v2856_v1  ;;  %v23993_v1 = vld [vmem:[#allocation2 + $0x20] sm:$0xff]  }
 0x463   :  { %20145 = vmatprep.mubr.msk.bf16.mxu0 %vm24672_vm0, %v29087_v37  ;;  %v3353_v25 = vrot.slane %v23993_v1, 3 }
 0x465   :  { %v3354_v52 = vsel %vm3345_vm5, %v3351_v17, %v3353_v25  ;;  %v24032_v17 = vld [vmem:[#allocation2 + $0x88] ss:$0 sps:$4 sm:$0x77]  }
 0x466   :  { %v3379_v1 = vrot.slane %v24032_v17, 3  ;;  %v24060_v17 = vld [vmem:[#allocation2 + $0x88] sm:$0xff]  }
 0x468   :  { %21074 = vmatmul.mubr.bf16.gmra.mrb[48].mxu1 %v8365_v39  ;;  %v24033_v39 = vld [vmem:[%s28966_s5 + $0x130] sm:$0xff]  }
 0x469   :  { %21077 = vmatprep.mubr.msk.bf16.mxu1 %vm24672_vm0, %v29087_v37 }
 0x46a   :  { %20146 = vmatmul.mubr.bf16.gmra.mrb[144].mxu0 %v2858_v47  ;;  %v23995_v47 = vld [vmem:[#allocation2 + $0x28] sm:$0xff]  }
 0x46b   :  { %20149 = vmatprep.mubr.msk.bf16.mxu0 %vm24672_vm0, %v29087_v37  ;;  %v3355_v54 = vrot.slane %v23995_v47, 3  ;;  %v24043_v47 = vld [vmem:[%s28966_s5 + $0x410] sm:$0xff]  }
 0x46d   :  { %v3358_v21 = vsel %vm3345_vm5, %v3355_v54, %v3357_v33 }
 0x470   :  { %21078 = vmatmul.mubr.bf16.gmra.mrb[52].mxu1 %v8367_v19  ;;  %v3356_v19 = vsel %vm3345_vm5, %v3353_v25, %v3355_v54  ;;  %v24038_v25 = vld [vmem:[%s28966_s5 + $0x408] sm:$0xff]   ;;  %v24069_v54 = vld [vmem:[%s28966_s5 + $0x140] sm:$0xff]  }
 0x471   :  { %21081 = vmatprep.mubr.msk.bf16.mxu1 %vm24672_vm0, %v29087_v37 }
 0x472   :  { %20150 = vmatmul.mubr.bf16.gmra.mrb[148].mxu0 %v2860_v24  ;;  %v23996_v24 = vld [vmem:[#allocation2 + $0x50] sm:$0xff]  }
 0x473   :  { %20153 = vmatprep.mubr.msk.bf16.mxu0 %vm24672_vm0, %v29087_v37 }
 0x478   :  { %21082 = vmatmul.mubr.bf16.gmra.mrb[56].mxu1 %v8369_v3  ;;  %v23999_v3 = vld [vmem:[#allocation2 + $0x58] sm:$0xff]  }
 0x479   :  { %21085 = vmatprep.mubr.msk.bf16.mxu1 %vm24672_vm0, %v29087_v37 }
 0x47a   :  { %20154 = vmatmul.mubr.bf16.gmra.mrb[152].mxu0 %v2862_v44  ;;  %v3360_v44 = vsel %vm3345_vm5, %v3357_v33, %v3359_v60  ;;  %v24072_v33 = vld [vmem:[%s28966_s5 + $0x148] sm:$0xff]  }
 0x47b   :  { %20157 = vmatprep.mubr.msk.bf16.mxu0 %vm24672_vm0, %v29087_v37 }
 0x480   :  { %21086 = vmatmul.mubr.bf16.gmra.mrb[60].mxu1 %v8371_v0  ;;  %v3362_v0 = vsel %vm3345_vm5, %v3359_v60, %v3361_v49  ;;  %v24074_v60 = vld [vmem:[%s28966_s5 + $0x150] sm:$0xff]   ;;  %v24076_v49 = vld [vmem:[%s28966_s5 + $0x158] sm:$0xff]  }
 0x481   :  { %21089 = vmatprep.mubr.msk.bf16.mxu1 %vm24672_vm0, %v29087_v37 }
 0x482   :  { %20158 = vmatmul.mubr.bf16.gmra.mrb[156].mxu0 %v2864_v15  ;;  %v24004_v15 = vld [vmem:[#allocation2 + $0x68] sm:$0xff]  }
 0x483   :  { %20161 = vmatprep.mubr.msk.bf16.mxu0 %vm24672_vm0, %v29087_v37 }
 0x488   :  { %21090 = vmatmul.mubr.bf16.gmra.mrb[64].mxu1 %v8373_v7  ;;  %v24006_v7 = vld [vmem:[#allocation2 + $0x70] sm:$0xff]  }
 0x489   :  { %21109 = vmatprep.mubr.msk.bf16.mxu1 %vm24672_vm0, %v29087_v37 }
 0x48a   :  { %20162 = vmatmul.mubr.bf16.gmra.mrb[160].mxu0 %v2866_v27  ;;  %v3365_v27 = vrot.slane %v24007_v5, 3  ;;  %v24070_v5 = vld [vmem:[%s28966_s5 + $0x438] sm:$0xff]  }
 0x48b   :  { %20165 = vmatprep.mubr.msk.bf16.mxu0 %vm24672_vm0, %v29087_v37 }
 0x48c   :  { %v3366_v20 = vsel %vm3345_vm5, %v3363_v30, %v3365_v27  ;;  %v24078_v30 = vld [vmem:[%s28966_s5 + $0x160] sm:$0xff]  }
 0x490   :  { %21110 = vmatmul.mubr.bf16.vlgmr.msra.gmra.mrb[0].mxu1 %v23977_v62  ;;  %v24009_v62 = vld [vmem:[#allocation2 + $0x78] sm:$0xff]  }
 0x491   :  { %21178 = vmatpush3.bf16.msra.mxu1 %v23978_v55  ;;  %21113 = vmatprep.mubr.msk.bf16.mxu1 %vm24672_vm0, %v29087_v37  ;;  %v24010_v55 = vld [vmem:[#allocation2 + $0x58] sm:$0xff]  }
 0x492   :  { %21179 = vmatprep.subr.bf16.mxu1 %v29087_v37  ;;  %20166 = vmatmul.mubr.bf16.gmra.mrb[164].mxu0 %v2868_v23  ;;  %v3367_v58 = vrot.slane %v24010_v55, 3  ;;  %v24012_v23 = vld [vmem:[#allocation2 + $0x60] sm:$0xff]   ;;  %v24045_v55 = vld [vmem:[#allocation2 + $0x58] sm:$0xff]  }
 0x493   :  { %20185 = vmatprep.mubr.msk.bf16.mxu0 %vm24672_vm0, %v29087_v37  ;;  %v3369_v26 = vrot.slane %v24012_v23, 3  ;;  %v24086_v23 = vld [vmem:[%s28966_s5 + $0x178] sm:$0xff]  }
 0x495   :  { %21180 = vmatpush3.bf16.msra.mxu1 %v23987_v4  ;;  %v3368_v4 = vsel %vm3345_vm5, %v3365_v27, %v3367_v58  ;;  %v24082_v27 = vld [vmem:[%s28966_s5 + $0x168] sm:$0xff]  }
 0x496   :  { %21181 = vmatprep.subr.bf16.mxu1 %v29087_v37 }
 0x498   :  { %21114 = vmatmul.mubr.bf16.gmra.mrb[4].mxu1 %v23982_v50  ;;  %v24015_v50 = vld [vmem:[#allocation2 + $0x68] sm:$0xff]  }
 0x499   :  { %21117 = vmatprep.mubr.msk.bf16.mxu1 %vm24672_vm0, %v29087_v37  ;;  %21182 = vmatpush3.bf16.msra.mxu1 %v23992_v41  ;;  %v3370_v41 = vsel %vm3345_vm5, %v3367_v58, %v3369_v26  ;;  %v3371_v2 = vrot.slane %v24015_v50, 3  ;;  %v24044_v58 = vld [vmem:[#allocation2 + $0x1c] sm:$0xff]  }
 0x49a   :  { %21183 = vmatprep.subr.bf16.mxu1 %v29087_v37  ;;  %20186 = vmatmul.mubr.bf16.vlgmr.msra.gmra.mrb[100].mxu0 %v3348_v59  ;;  %v24016_v59 = vld [vmem:[#allocation2 + $0x90] sm:$0xff]  }
 0x49b   :  { %20189 = vmatprep.mubr.msk.bf16.mxu0 %vm24672_vm0, %v29087_v37  ;;  %20254 = vmatpush3.bf16.msra.mxu0 %v24018_v16  ;;  %v3372_v16 = vsel %vm3345_vm5, %v3369_v26, %v3371_v2  ;;  %v24047_v26 = vld [vmem:[#allocation2 + $0x60] sm:$0xff]  }
 0x49c   :  { %20255 = vmatprep.subr.bf16.mxu0 %v29087_v37  ;;  %v9335_v50 = vrot.slane %v24047_v26, 2  ;;  %v24089_v26 = vld [vmem:[#allocation2 + $0x40] sm:$0xff]  }
 0x49d   :  { %21184 = vmatpush3.bf16.msra.mxu1 %v23997_v35  ;;  %v24017_v35 = vld [vmem:[#allocation2 + $0x70] sm:$0xff]  }
 0x49e   :  { %21185 = vmatprep.subr.bf16.mxu1 %v29087_v37  ;;  %v3373_v14 = vrot.slane %v24017_v35, 3 }
 0x49f   :  { %20256 = vmatpush3.bf16.msra.mxu0 %v24021_v46 }
 0x4a0   :  { %21118 = vmatmul.mubr.bf16.gmra.mrb[8].mxu1 %v23986_v9  ;;  %20257 = vmatprep.subr.bf16.mxu0 %v29087_v37  ;;  %v3374_v46 = vsel %vm3345_vm5, %v3371_v2, %v3373_v14  ;;  %v24020_v9 = vld [vmem:[#allocation2 + $0x98] sm:$0xff]   ;;  %v24050_v2 = vld [vmem:[#allocation2 + $0x68] sm:$0xff]  }
 0x4a1   :  { %21121 = vmatprep.mubr.msk.bf16.mxu1 %vm24672_vm0, %v29087_v37  ;;  %21186 = vmatpush3.bf16.msra.mxu1 %v24003_v22  ;;  %v24022_v22 = vld [vmem:[#allocation2 + $0x78] sm:$0xff]   ;;  %v9337_v35 = vrot.slane %v24050_v2, 2  ;;  %v9838_v2 = vrot.slane %v24089_v26, 3  ;;  %v24109_v26 = vld [vmem:[#allocation2 + $0x80] sm:$0xff]  }
 0x4a2   :  { %21187 = vmatprep.subr.bf16.mxu1 %v29087_v37  ;;  %20190 = vmatmul.mubr.bf16.gmra.mrb[104].mxu0 %v3350_v45  ;;  %v3375_v57 = vrot.slane %v24022_v22, 3  ;;  %v24024_v45 = vld [vmem:[#allocation2 + $0xa0] sm:$0xff]  }
 0x4a3   :  { %20193 = vmatprep.mubr.msk.bf16.mxu0 %vm24672_vm0, %v29087_v37  ;;  %20258 = vmatpush3.bf16.msra.mxu0 %v24023_v34 }
 0x4a4   :  { %20259 = vmatprep.subr.bf16.mxu0 %v29087_v37  ;;  %v3376_v34 = vsel %vm3345_vm5, %v3373_v14, %v3375_v57  ;;  %v24052_v14 = vld [vmem:[#allocation2 + $0x70] sm:$0xff]  }
 0x4a5   :  { %21188 = vmatpush3.bf16.msra.mxu1 %v24008_v61  ;;  %v24026_v61 = vld [vmem:[#allocation2 + $0x80] sm:$0xff]   ;;  %v9339_v22 = vrot.slane %v24052_v14, 2 }
 0x4a6   :  { %21189 = vmatprep.subr.bf16.mxu1 %v29087_v37  ;;  %v3377_v42 = vrot.slane %v24026_v61, 3 }
 0x4a7   :  { %20260 = vmatpush3.bf16.msra.mxu0 %v24025_v51  ;;  %v24028_v51 = vld [vmem:[#allocation2 + $0x28] sm:$0xfc]  }
 0x4a8   :  { %21122 = vmatmul.mubr.bf16.gmra.mrb[12].mxu1 %v23989_v13  ;;  %20261 = vmatprep.subr.bf16.mxu0 %v29087_v37  ;;  %v3378_v13 = vsel %vm3345_vm5, %v3375_v57, %v3377_v42  ;;  %v24055_v57 = vld [vmem:[#allocation2 + $0x78] sm:$0xff]  }
 0x4a9   :  { %21125 = vmatprep.mubr.msk.bf16.mxu1 %vm24672_vm0, %v29087_v37  ;;  %21190 = vmatpush3.bf16.msra.mxu1 %v24013_v63  ;;  %v24029_v63 = vld [vmem:[#allocation2 + $0x30] sm:$0xff]   ;;  %v9341_v61 = vrot.slane %v24055_v57, 2  ;;  %v24111_v57 = vld [vmem:[%s28966_s5 + $0x468] sm:$0xff]  }
 0x4aa   :  { %21191 = vmatprep.subr.bf16.mxu1 %v29087_v37  ;;  %20194 = vmatmul.mubr.bf16.gmra.mrb[108].mxu0 %v3352_v53  ;;  %v24030_v53 = vld [vmem:[%s28966_s5 + $0x400] sm:$0xff]  }
 0x4ab   :  { %20197 = vmatprep.mubr.msk.bf16.mxu0 %vm24672_vm0, %v29087_v37  ;;  %20262 = vmatpush3.bf16.msra.mxu0 %v24027_v29  ;;  %v9322_v29 = vrot.slane %v24028_v51, 2  ;;  %v24056_v51 = vld [vmem:[#allocation2 + $0x44] sm:$0xff]  }
 0x4ac   :  { %20263 = vmatprep.subr.bf16.mxu0 %v29087_v37 }
 0x4ad   :  { %21192 = vmatpush3.bf16.msra.mxu1 %v24019_v28  ;;  %v9323_v28 = vrot.slane %v24029_v63, 2 }
 0x4ae   :  { %21261 = vmatprep.subr.bf16.mxu1 %v29087_v37 }
 0x4af   :  { %20264 = vmatpush3.bf16.msra.mxu0 %v24031_v48  ;;  %v9324_v48 = vsel %vm2833_vm4, %v9322_v29, %v9323_v28  ;;  %v24058_v29 = vld [vmem:[#allocation2 + $0x4c] sm:$0xff]  }
 0x4b0   :  { %21126 = vmatmul.mubr.bf16.gmra.mrb[16].mxu1 %v23991_v10  ;;  %20265 = vmatprep.subr.bf16.mxu0 %v29087_v37  ;;  %v24034_v10 = vld [vmem:[#allocation2 + $0x38] sm:$0xff]  }
 0x4b1   :  { %21129 = vmatprep.mubr.msk.bf16.mxu1 %vm24672_vm0, %v29087_v37 }
 0x4b2   :  { %20198 = vmatmul.mubr.bf16.gmra.mrb[112].mxu0 %v3354_v52  ;;  %v9325_v52 = vrot.slane %v24034_v10, 2 }
 0x4b3   :  { %20201 = vmatprep.mubr.msk.bf16.mxu0 %vm24672_vm0, %v29087_v37  ;;  %20266 = vmatpush3.bf16.msra.mxu0 %v24033_v39  ;;  %v3380_v39 = vsel %vm3345_vm5, %v3377_v42, %v3379_v1  ;;  %v24057_v42 = vld [vmem:[#allocation2 + $0x80] sm:$0xff]   ;;  %v24062_v1 = vld [vmem:[#allocation2 + $0x90] sm:$0xff]  }
 0x4b4   :  { %20267 = vmatprep.subr.bf16.mxu0 %v29087_v37  ;;  %v9343_v63 = vrot.slane %v24057_v42, 2  ;;  %v9347_v10 = vrot.slane %v24062_v1, 2  ;;  %v24128_v42 = vld [vmem:[%s28966_s5 + $0x198] sm:$0xff]   ;;  %v24096_v1 = vld [vmem:[#allocation2 + $0x2c] sm:$0xff]  }
 0x4b7   :  { %20268 = vmatpush3.bf16.msra.mxu0 %v24035_v32  ;;  %v9326_v32 = vsel %vm2833_vm4, %v9323_v28, %v9325_v52  ;;  %v9345_v28 = vrot.slane %v24060_v17, 2  ;;  %v24094_v17 = vld [vmem:[#allocation2 + $0x50] sm:$0xff]  }
 0x4b8   :  { %21130 = vmatmul.mubr.bf16.gmra.mrb[20].mxu1 %v23994_v31  ;;  %20337 = vmatprep.subr.bf16.mxu0 %v29087_v37  ;;  %v24037_v31 = vld [vmem:[#allocation2 + $0x40] sm:$0xff]  }
 0x4b9   :  { %21133 = vmatprep.mubr.msk.bf16.mxu1 %vm24672_vm0, %v29087_v37 }
 0x4ba   :  { %20202 = vmatmul.mubr.bf16.gmra.mrb[116].mxu0 %v3356_v19  ;;  %v24036_v19 = vld [vmem:[#allocation2 + $0x4] sm:$0xff]  }
 0x4bb   :  { %20205 = vmatprep.mubr.msk.bf16.mxu0 %vm24672_vm0, %v29087_v37 }
 0x4c0   :  { %21134 = vmatmul.mubr.bf16.gmra.mrb[24].mxu1 %v23996_v24  ;;  %v9327_v24 = vrot.slane %v24037_v31, 2  ;;  %v24067_v31 = vld [vmem:[#allocation2 + $0xa0] sm:$0xff]  }
 0x4c1   :  { %21137 = vmatprep.mubr.msk.bf16.mxu1 %vm24672_vm0, %v29087_v37 }
 0x4c2   :  { %20206 = vmatmul.mubr.bf16.gmra.mrb[120].mxu0 %v3358_v21  ;;  %v24054_v21 = vld [vmem:[%s28966_s5 + $0x420] sm:$0xff]   ;;  %v9328_v40 = vsel %vm2833_vm4, %v9325_v52, %v9327_v24 }
 0x4c3   :  { %20209 = vmatprep.mubr.msk.bf16.mxu0 %vm24672_vm0, %v29087_v37  ;;  %v24063_v52 = vld [vmem:[#allocation2 + $0x5c] sm:$0xff]  }
 0x4c8   :  { %21138 = vmatmul.mubr.bf16.gmra.mrb[28].mxu1 %v23999_v3  ;;  %v24040_v3 = vld [vmem:[#allocation2 + $0x48] sm:$0xff]  }
 0x4c9   :  { %21141 = vmatprep.mubr.msk.bf16.mxu1 %vm24672_vm0, %v29087_v37 }
 0x4ca   :  { %20210 = vmatmul.mubr.bf16.gmra.mrb[124].mxu0 %v3360_v44  ;;  %v24039_v44 = vld [vmem:[#allocation2 + $0xc] sm:$0xff]  }
 0x4cb   :  { %20213 = vmatprep.mubr.msk.bf16.mxu0 %vm24672_vm0, %v29087_v37 }
 0x4d0   :  { %21142 = vmatmul.mubr.bf16.gmra.mrb[32].mxu1 %v24001_v6  ;;  %v9329_v6 = vrot.slane %v24040_v3, 2  ;;  %v24075_v3 = vld [vmem:[#allocation2 + $0xb0] ss:$0 sps:$4 sm:$0x33]  }
 0x4d1   :  { %21145 = vmatprep.mubr.msk.bf16.mxu1 %vm24672_vm0, %v29087_v37 }
 0x4d2   :  { %20214 = vmatmul.mubr.bf16.gmra.mrb[128].mxu0 %v3362_v0  ;;  %v24064_v0 = vld [vmem:[%s28966_s5 + $0x430] sm:$0xff]   ;;  %v9330_v11 = vsel %vm2833_vm4, %v9327_v24, %v9329_v6  ;;  %v24071_v24 = vld [vmem:[#allocation2 + $0xa8] sm:$0xff]  }
 0x4d3   :  { %20217 = vmatprep.mubr.msk.bf16.mxu0 %vm24672_vm0, %v29087_v37 }
 0x4d8   :  { %21146 = vmatmul.mubr.bf16.gmra.mrb[36].mxu1 %v24004_v15  ;;  %v24042_v15 = vld [vmem:[#allocation2 + $0x50] sm:$0xff]  }
 0x4d9   :  { %21149 = vmatprep.mubr.msk.bf16.mxu1 %vm24672_vm0, %v29087_v37 }
 0x4da   :  { %20218 = vmatmul.mubr.bf16.gmra.mrb[132].mxu0 %v3364_v36  ;;  %v24041_v36 = vld [vmem:[#allocation2 + $0x14] sm:$0xff]  }
 0x4db   :  { %20221 = vmatprep.mubr.msk.bf16.mxu0 %vm24672_vm0, %v29087_v37 }
 0x4e0   :  { %21150 = vmatmul.mubr.bf16.gmra.mrb[40].mxu1 %v24006_v7  ;;  %v9331_v7 = vrot.slane %v24042_v15, 2 }
 0x4e1   :  { %21153 = vmatprep.mubr.msk.bf16.mxu1 %vm24672_vm0, %v29087_v37 }
 0x4e2   :  { %20222 = vmatmul.mubr.bf16.gmra.mrb[136].mxu0 %v3366_v20  ;;  %v9332_v20 = vsel %vm2833_vm4, %v9329_v6, %v9331_v7  ;;  %v24079_v6 = vld [vmem:[#allocation2 + $0x28] sm:$0xf8]  }
 0x4e3   :  { %20225 = vmatprep.mubr.msk.bf16.mxu0 %vm24672_vm0, %v29087_v37 }
 0x4e8   :  { %21154 = vmatmul.mubr.bf16.gmra.mrb[44].mxu1 %v24009_v62  ;;  %v24084_v62 = vld [vmem:[%s28966_s5 + $0x170] sm:$0xff]  }
 0x4e9   :  { %21157 = vmatprep.mubr.msk.bf16.mxu1 %vm24672_vm0, %v29087_v37 }
 0x4ea   :  { %20226 = vmatmul.mubr.bf16.gmra.mrb[140].mxu0 %v3368_v4  ;;  %v9333_v4 = vrot.slane %v24045_v55, 2  ;;  %v24088_v55 = vld [vmem:[#allocation2 + $0x14] sm:$0xff]  }
 0x4eb   :  { %20229 = vmatprep.mubr.msk.bf16.mxu0 %vm24672_vm0, %v29087_v37 }
 0x4f0   :  { %21158 = vmatmul.mubr.bf16.gmra.mrb[48].mxu1 %v24011_v43  ;;  %v9334_v43 = vsel %vm2833_vm4, %v9331_v7, %v9333_v4  ;;  %v24083_v7 = vld [vmem:[#allocation2 + $0x84] sm:$0xff]  }
 0x4f1   :  { %21161 = vmatprep.mubr.msk.bf16.mxu1 %vm24672_vm0, %v29087_v37 }
 0x4f2   :  { %20230 = vmatmul.mubr.bf16.gmra.mrb[144].mxu0 %v3370_v41  ;;  %v24046_v41 = vld [vmem:[#allocation2 + $0x24] sm:$0xff]  }
 0x4f3   :  { %20233 = vmatprep.mubr.msk.bf16.mxu0 %vm24672_vm0, %v29087_v37 }
 0x4f8   :  { %21162 = vmatmul.mubr.bf16.gmra.mrb[52].mxu1 %v24014_v8  ;;  %v9336_v8 = vsel %vm2833_vm4, %v9333_v4, %v9335_v50 }
 0x4f9   :  { %21165 = vmatprep.mubr.msk.bf16.mxu1 %vm24672_vm0, %v29087_v37 }
 0x4fa   :  { %20234 = vmatmul.mubr.bf16.gmra.mrb[148].mxu0 %v3372_v16  ;;  %v24049_v16 = vld [vmem:[#allocation2 + $0x2c] sm:$0xff]  }
 0x4fb   :  { %20237 = vmatprep.mubr.msk.bf16.mxu0 %vm24672_vm0, %v29087_v37 }
 0x500   :  { %21166 = vmatmul.mubr.bf16.gmra.mrb[56].mxu1 %v24016_v59  ;;  %v9338_v59 = vsel %vm2833_vm4, %v9335_v50, %v9337_v35  ;;  %v24100_v50 = vld [vmem:[%s28966_s5 + $0x458] sm:$0xff]  }
 0x501   :  { %21169 = vmatprep.mubr.msk.bf16.mxu1 %vm24672_vm0, %v29087_v37 }
 0x502   :  { %20238 = vmatmul.mubr.bf16.gmra.mrb[152].mxu0 %v3374_v46  ;;  %v24051_v46 = vld [vmem:[#allocation2 + $0x34] sm:$0xff]  }
 0x503   :  { %20241 = vmatprep.mubr.msk.bf16.mxu0 %vm24672_vm0, %v29087_v37 }
 0x508   :  { %21170 = vmatmul.mubr.bf16.gmra.mrb[60].mxu1 %v24020_v9  ;;  %v9340_v9 = vsel %vm2833_vm4, %v9337_v35, %v9339_v22  ;;  %v24124_v35 = vld [vmem:[%s28966_s5 + $0x188] sm:$0xff]  }
 0x509   :  { %21173 = vmatprep.mubr.msk.bf16.mxu1 %vm24672_vm0, %v29087_v37 }
 0x50a   :  { %20242 = vmatmul.mubr.bf16.gmra.mrb[156].mxu0 %v3376_v34  ;;  %v24053_v34 = vld [vmem:[#allocation2 + $0x3c] sm:$0xff]  }
 0x50b   :  { %20245 = vmatprep.mubr.msk.bf16.mxu0 %vm24672_vm0, %v29087_v37 }
 0x510   :  { %21174 = vmatmul.mubr.bf16.gmra.mrb[64].mxu1 %v24024_v45  ;;  %v9342_v45 = vsel %vm2833_vm4, %v9339_v22, %v9341_v61 }
 0x511   :  { %21193 = vmatprep.mubr.msk.bf16.mxu1 %vm24672_vm0, %v29087_v37 }
 0x512   :  { %20246 = vmatmul.mubr.bf16.gmra.mrb[160].mxu0 %v3378_v13  ;;  %v9344_v13 = vsel %vm2833_vm4, %v9341_v61, %v9343_v63  ;;  %v24093_v61 = vld [vmem:[#allocation2 + $0x24] sm:$0xff]  }
 0x513   :  { %20249 = vmatprep.mubr.msk.bf16.mxu0 %vm24672_vm0, %v29087_v37 }
 0x518   :  { %21194 = vmatmul.mubr.bf16.vlgmr.msra.gmra.mrb[0].mxu1 %v9324_v48  ;;  %v24061_v48 = vld [vmem:[#allocation2 + $0x54] sm:$0xff]  }
 0x519   :  { %21262 = vmatpush3.bf16.msra.mxu1 %v24030_v53  ;;  %21197 = vmatprep.mubr.msk.bf16.mxu1 %vm24672_vm0, %v29087_v37  ;;  %v9346_v53 = vsel %vm2833_vm4, %v9343_v63, %v9345_v28  ;;  %v4334_v63 = vrot.slane %v24093_v61, 2  ;;  %v24115_v61 = vld [vmem:[#allocation2 + $0x6c] sm:$0xff]  }
 0x51a   :  { %21263 = vmatprep.subr.bf16.mxu1 %v29087_v37  ;;  %20250 = vmatmul.mubr.bf16.gmra.mrb[164].mxu0 %v3380_v39  ;;  %v24065_v39 = vld [vmem:[#allocation2 + $0x98] sm:$0xff]  }
 0x51b   :  { %20269 = vmatprep.mubr.msk.bf16.mxu0 %vm24672_vm0, %v29087_v37 }
 0x51d   :  { %21264 = vmatpush3.bf16.msra.mxu1 %v24038_v25  ;;  %v9348_v25 = vsel %vm2833_vm4, %v9345_v28, %v9347_v10  ;;  %v24122_v28 = vld [vmem:[%s28966_s5 + $0x478] sm:$0xff]  }
 0x51e   :  { %21265 = vmatprep.subr.bf16.mxu1 %v29087_v37 }
 0x520   :  { %21198 = vmatmul.mubr.bf16.gmra.mrb[4].mxu1 %v9326_v32 }
 0x521   :  { %21201 = vmatprep.mubr.msk.bf16.mxu1 %vm24672_vm0, %v29087_v37  ;;  %21266 = vmatpush3.bf16.msra.mxu1 %v24043_v47  ;;  %v9349_v47 = vrot.slane %v24065_v39, 2 }
 0x522   :  { %21267 = vmatprep.subr.bf16.mxu1 %v29087_v37  ;;  %20270 = vmatmul.mubr.bf16.vlgmr.msra.gmra.mrb[100].mxu0 %v24036_v19  ;;  %v9351_v19 = vrot.slane %v24067_v31, 2  ;;  %v24098_v31 = vld [vmem:[#allocation2 + $0x34] sm:$0xff]  }
 0x523   :  { %20273 = vmatprep.mubr.msk.bf16.mxu0 %vm24672_vm0, %v29087_v37  ;;  %20338 = vmatpush3.bf16.msra.mxu0 %v24069_v54  ;;  %v9350_v32 = vsel %vm2833_vm4, %v9347_v10, %v9349_v47  ;;  %v24066_v54 = vld [vmem:[#allocation2 + $0x64] sm:$0xff]  }
 0x524   :  { %20339 = vmatprep.subr.bf16.mxu0 %v29087_v37  ;;  %v24133_v10 = vld [vmem:[%s28966_s5 + $0x1a8] sm:$0xff]  }
 0x525   :  { %21268 = vmatpush3.bf16.msra.mxu1 %v24048_v18  ;;  %v9352_v18 = vsel %vm2833_vm4, %v9349_v47, %v9351_v19  ;;  %v24135_v47 = vld [vmem:[%s28966_s5 + $0x1b0] sm:$0xff]  }
 0x526   :  { %21269 = vmatprep.subr.bf16.mxu1 %v29087_v37 }
 0x527   :  { %20340 = vmatpush3.bf16.msra.mxu0 %v24072_v33  ;;  %v24068_v33 = vld [vmem:[#allocation2 + $0x6c] sm:$0xff]  }
 0x528   :  { %21202 = vmatmul.mubr.bf16.gmra.mrb[8].mxu1 %v9328_v40  ;;  %20341 = vmatprep.subr.bf16.mxu0 %v29087_v37 }
 0x529   :  { %21205 = vmatprep.mubr.msk.bf16.mxu1 %vm24672_vm0, %v29087_v37  ;;  %21270 = vmatpush3.bf16.msra.mxu1 %v24054_v21  ;;  %v9353_v21 = vrot.slane %v24071_v24, 2 }
 0x52a   :  { %21271 = vmatprep.subr.bf16.mxu1 %v29087_v37  ;;  %20274 = vmatmul.mubr.bf16.gmra.mrb[104].mxu0 %v24039_v44  ;;  %v9355_v44 = vrot.slane %v24075_v3, 2 }
 0x52b   :  { %20277 = vmatprep.mubr.msk.bf16.mxu0 %vm24672_vm0, %v29087_v37  ;;  %20342 = vmatpush3.bf16.msra.mxu0 %v24074_v60  ;;  %v9354_v40 = vsel %vm2833_vm4, %v9351_v19, %v9353_v21  ;;  %v24073_v60 = vld [vmem:[#allocation2 + $0x74] sm:$0xff]  }
 0x52c   :  { %20343 = vmatprep.subr.bf16.mxu0 %v29087_v37  ;;  %v24137_v19 = vld [vmem:[%s28966_s5 + $0x1b8] sm:$0xff]  }
 0x52d   :  { %21272 = vmatpush3.bf16.msra.mxu1 %v24059_v38  ;;  %v9356_v38 = vsel %vm2833_vm4, %v9353_v21, %v9355_v44 }
 0x52e   :  { %21273 = vmatprep.subr.bf16.mxu1 %v29087_v37 }
 0x52f   :  { %20344 = vmatpush3.bf16.msra.mxu0 %v24076_v49  ;;  %v24080_v49 = vld [vmem:[#allocation2 + $0x30] sm:$0xff]  }
 0x530   :  { %21206 = vmatmul.mubr.bf16.gmra.mrb[12].mxu1 %v9330_v11  ;;  %20345 = vmatprep.subr.bf16.mxu0 %v29087_v37  ;;  %v9833_v11 = vrot.slane %v24079_v6, 3  ;;  %v9834_v15 = vrot.slane %v24080_v49, 3  ;;  %v24103_v49 = vld [vmem:[#allocation2 + $0x44] sm:$0xff]  }
 0x531   :  { %21209 = vmatprep.mubr.msk.bf16.mxu1 %vm24672_vm0, %v29087_v37  ;;  %21274 = vmatpush3.bf16.msra.mxu1 %v24064_v0  ;;  %v24077_v0 = vld [vmem:[#allocation2 + $0x7c] sm:$0xff]  }
 0x532   :  { %21275 = vmatprep.subr.bf16.mxu1 %v29087_v37  ;;  %20278 = vmatmul.mubr.bf16.gmra.mrb[108].mxu0 %v24041_v36  ;;  %v9835_v36 = vsel %vm3345_vm5, %v9833_v11, %v9834_v15  ;;  %v4342_v11 = vrot.slane %v24103_v49, 2  ;;  %v24131_v49 = vld [vmem:[#allocation2 + $0x2c] sm:$0xff]  }
 0x533   :  { %20281 = vmatprep.mubr.msk.bf16.mxu0 %vm24672_vm0, %v29087_v37  ;;  %20346 = vmatpush3.bf16.msra.mxu0 %v24078_v30  ;;  %v24081_v30 = vld [vmem:[%s28966_s5 + $0x440] sm:$0xff]  }
 0x534   :  { %20347 = vmatprep.subr.bf16.mxu0 %v29087_v37 }
 0x535   :  { %21276 = vmatpush3.bf16.msra.mxu1 %v24070_v5  ;;  %v24085_v5 = vld [vmem:[#allocation2 + $0x38] sm:$0xff]  }
 0x536   :  { %21345 = vmatprep.subr.bf16.mxu1 %v29087_v37 }
 0x537   :  { %20348 = vmatpush3.bf16.msra.mxu0 %v24082_v27  ;;  %v24090_v27 = vld [vmem:[%s28966_s5 + $0x448] sm:$0xff]  }
 0x538   :  { %21210 = vmatmul.mubr.bf16.gmra.mrb[16].mxu1 %v9332_v20  ;;  %20349 = vmatprep.subr.bf16.mxu0 %v29087_v37  ;;  %v24087_v20 = vld [vmem:[#allocation2 + $0xc] sm:$0xfc]  }
 0x539   :  { %21213 = vmatprep.mubr.msk.bf16.mxu1 %vm24672_vm0, %v29087_v37  ;;  %v4329_v4 = vrot.slane %v24087_v20, 2 }
 0x53a   :  { %20282 = vmatmul.mubr.bf16.gmra.mrb[112].mxu0 %v24044_v58  ;;  %v24095_v58 = vld [vmem:[%s28966_s5 + $0x450] sm:$0xff]  }
 0x53b   :  { %20285 = vmatprep.mubr.msk.bf16.mxu0 %vm24672_vm0, %v29087_v37  ;;  %20350 = vmatpush3.bf16.msra.mxu0 %v24084_v62  ;;  %v9836_v62 = vrot.slane %v24085_v5, 3  ;;  %v24105_v5 = vld [vmem:[#allocation2 + $0x4c] sm:$0xff]  }
 0x53c   :  { %20351 = vmatprep.subr.bf16.mxu0 %v29087_v37 }
 0x53d   :  { %v9839_v14 = vsel %vm3345_vm5, %v9836_v62, %v9838_v2 }
 0x53f   :  { %20352 = vmatpush3.bf16.msra.mxu0 %v24086_v23  ;;  %v4330_v23 = vrot.slane %v24088_v55, 2  ;;  %v24107_v55 = vld [vmem:[#allocation2 + $0x78] sm:$0xff]  }
 0x540   :  { %21214 = vmatmul.mubr.bf16.gmra.mrb[20].mxu1 %v9334_v43  ;;  %20421 = vmatprep.subr.bf16.mxu0 %v29087_v37  ;;  %v9837_v43 = vsel %vm3345_vm5, %v9834_v15, %v9836_v62 }
 0x541   :  { %21217 = vmatprep.mubr.msk.bf16.mxu1 %vm24672_vm0, %v29087_v37 }
 0x542   :  { %20286 = vmatmul.mubr.bf16.gmra.mrb[116].mxu0 %v24046_v41  ;;  %v24121_v41 = vld [vmem:[%s28966_s5 + $0x180] sm:$0xff]  }
 0x543   :  { %20289 = vmatprep.mubr.msk.bf16.mxu0 %vm24672_vm0, %v29087_v37 }
 0x548   :  { %21218 = vmatmul.mubr.bf16.gmra.mrb[24].mxu1 %v9336_v8  ;;  %v4331_v8 = vsel %vm2833_vm4, %v4329_v4, %v4330_v23  ;;  %v9852_v4 = vrot.slane %v24107_v55, 3  ;;  %v24172_v55 = vld [vmem:[%s28966_s5 + $0x1c0] sm:$0xff]  }
 0x549   :  { %21221 = vmatprep.mubr.msk.bf16.mxu1 %vm24672_vm0, %v29087_v37 }
 0x54a   :  { %20290 = vmatmul.mubr.bf16.gmra.mrb[120].mxu0 %v24049_v16  ;;  %v24091_v16 = vld [vmem:[#allocation2 + $0x1c] sm:$0xff]  }
 0x54b   :  { %20293 = vmatprep.mubr.msk.bf16.mxu0 %vm24672_vm0, %v29087_v37  ;;  %v4332_v22 = vrot.slane %v24091_v16, 2 }
 0x550   :  { %21222 = vmatmul.mubr.bf16.gmra.mrb[28].mxu1 %v9338_v59  ;;  %v24106_v59 = vld [vmem:[%s28966_s5 + $0x460] sm:$0xff]  }
 0x551   :  { %21225 = vmatprep.mubr.msk.bf16.mxu1 %vm24672_vm0, %v29087_v37 }
 0x552   :  { %20294 = vmatmul.mubr.bf16.gmra.mrb[124].mxu0 %v24051_v46  ;;  %v24092_v46 = vld [vmem:[#allocation2 + $0x48] sm:$0xff]  }
 0x553   :  { %20297 = vmatprep.mubr.msk.bf16.mxu0 %vm24672_vm0, %v29087_v37 }
 0x558   :  { %21226 = vmatmul.mubr.bf16.gmra.mrb[32].mxu1 %v9340_v9  ;;  %v24126_v9 = vld [vmem:[%s28966_s5 + $0x190] sm:$0xff]  }
 0x559   :  { %21229 = vmatprep.mubr.msk.bf16.mxu1 %vm24672_vm0, %v29087_v37 }
 0x55a   :  { %20298 = vmatmul.mubr.bf16.gmra.mrb[128].mxu0 %v24053_v34  ;;  %v4333_v34 = vsel %vm2833_vm4, %v4330_v23, %v4332_v22 }
 0x55b   :  { %20301 = vmatprep.mubr.msk.bf16.mxu0 %vm24672_vm0, %v29087_v37 }
 0x560   :  { %21230 = vmatmul.mubr.bf16.gmra.mrb[36].mxu1 %v9342_v45  ;;  %v9840_v45 = vrot.slane %v24092_v46, 3 }
 0x561   :  { %21233 = vmatprep.mubr.msk.bf16.mxu1 %vm24672_vm0, %v29087_v37 }
 0x562   :  { %20302 = vmatmul.mubr.bf16.gmra.mrb[132].mxu0 %v24056_v51  ;;  %v24116_v51 = vld [vmem:[%s28966_s5 + $0x470] sm:$0xff]  }
 0x563   :  { %20305 = vmatprep.mubr.msk.bf16.mxu0 %vm24672_vm0, %v29087_v37 }
 0x568   :  { %21234 = vmatmul.mubr.bf16.gmra.mrb[40].mxu1 %v9344_v13  ;;  %v9841_v13 = vsel %vm3345_vm5, %v9838_v2, %v9840_v45 }
 0x569   :  { %21237 = vmatprep.mubr.msk.bf16.mxu1 %vm24672_vm0, %v29087_v37 }
 0x56a   :  { %20306 = vmatmul.mubr.bf16.gmra.mrb[136].mxu0 %v24058_v29  ;;  %v24130_v29 = vld [vmem:[%s28966_s5 + $0x1a0] sm:$0xff]  }
 0x56b   :  { %20309 = vmatprep.mubr.msk.bf16.mxu0 %vm24672_vm0, %v29087_v37 }
 0x570   :  { %21238 = vmatmul.mubr.bf16.gmra.mrb[44].mxu1 %v9346_v53  ;;  %v4335_v53 = vsel %vm2833_vm4, %v4332_v22, %v4334_v63 }
 0x571   :  { %21241 = vmatprep.mubr.msk.bf16.mxu1 %vm24672_vm0, %v29087_v37 }
 0x572   :  { %20310 = vmatmul.mubr.bf16.gmra.mrb[140].mxu0 %v24061_v48  ;;  %v9842_v48 = vrot.slane %v24094_v17, 3  ;;  %v24118_v17 = vld [vmem:[#allocation2 + $0x74] sm:$0xff]  }
 0x573   :  { %20313 = vmatprep.mubr.msk.bf16.mxu0 %vm24672_vm0, %v29087_v37 }
 0x574   :  { %v9843_v39 = vsel %vm3345_vm5, %v9840_v45, %v9842_v48 }
 0x578   :  { %21242 = vmatmul.mubr.bf16.gmra.mrb[48].mxu1 %v9348_v25  ;;  %v4336_v25 = vrot.slane %v24096_v1, 2  ;;  %v24119_v1 = vld [vmem:[#allocation2 + $0xa0] sm:$0xff]  }
 0x579   :  { %21245 = vmatprep.mubr.msk.bf16.mxu1 %vm24672_vm0, %v29087_v37 }
 0x57a   :  { %20314 = vmatmul.mubr.bf16.gmra.mrb[144].mxu0 %v24063_v52  ;;  %v24097_v52 = vld [vmem:[#allocation2 + $0x58] sm:$0xff]  }
 0x57b   :  { %20317 = vmatprep.mubr.msk.bf16.mxu0 %vm24672_vm0, %v29087_v37 }
 0x580   :  { %21246 = vmatmul.mubr.bf16.gmra.mrb[52].mxu1 %v9350_v32  ;;  %v4337_v32 = vsel %vm2833_vm4, %v4334_v63, %v4336_v25  ;;  %v24117_v63 = vld [vmem:[#allocation2 + $0x98] sm:$0xff]  }
 0x581   :  { %21249 = vmatprep.mubr.msk.bf16.mxu1 %vm24672_vm0, %v29087_v37 }
 0x582   :  { %20318 = vmatmul.mubr.bf16.gmra.mrb[148].mxu0 %v24066_v54  ;;  %v9844_v54 = vrot.slane %v24097_v52, 3 }
 0x583   :  { %20321 = vmatprep.mubr.msk.bf16.mxu0 %vm24672_vm0, %v29087_v37 }
 0x584   :  { %v9845_v24 = vsel %vm3345_vm5, %v9842_v48, %v9844_v54 }
 0x588   :  { %21250 = vmatmul.mubr.bf16.gmra.mrb[56].mxu1 %v9352_v18  ;;  %v4338_v18 = vrot.slane %v24098_v31, 2  ;;  %v24125_v31 = vld [vmem:[#allocation2 + $0x84] sm:$0xff]  }
 0x589   :  { %21253 = vmatprep.mubr.msk.bf16.mxu1 %vm24672_vm0, %v29087_v37 }
 0x58a   :  { %20322 = vmatmul.mubr.bf16.gmra.mrb[152].mxu0 %v24068_v33  ;;  %v24099_v33 = vld [vmem:[#allocation2 + $0x60] sm:$0xff]   ;;  %v4339_v21 = vsel %vm2833_vm4, %v4336_v25, %v4338_v18  ;;  %v9862_v25 = vrot.slane %v24119_v1, 3 }
 0x58b   :  { %20325 = vmatprep.mubr.msk.bf16.mxu0 %vm24672_vm0, %v29087_v37  ;;  %v9846_v3 = vrot.slane %v24099_v33, 3  ;;  %v24152_v1 = vld [vmem:[#allocation2 + $0x3c] sm:$0xff]  }
 0x58d   :  { %v9847_v44 = vsel %vm3345_vm5, %v9844_v54, %v9846_v3 }
 0x590   :  { %21254 = vmatmul.mubr.bf16.gmra.mrb[60].mxu1 %v9354_v40  ;;  %v24101_v40 = vld [vmem:[#allocation2 + $0x3c] sm:$0xff]  }
 0x591   :  { %21257 = vmatprep.mubr.msk.bf16.mxu1 %vm24672_vm0, %v29087_v37 }
 0x592   :  { %20326 = vmatmul.mubr.bf16.gmra.mrb[156].mxu0 %v24073_v60  ;;  %v4340_v60 = vrot.slane %v24101_v40, 2 }
 0x593   :  { %20329 = vmatprep.mubr.msk.bf16.mxu0 %vm24672_vm0, %v29087_v37 }
 0x594   :  { %v4341_v6 = vsel %vm2833_vm4, %v4338_v18, %v4340_v60 }
 0x598   :  { %21258 = vmatmul.mubr.bf16.gmra.mrb[64].mxu1 %v9356_v38  ;;  %v24102_v38 = vld [vmem:[#allocation2 + $0x68] sm:$0xff]  }
 0x599   :  { %21277 = vmatprep.mubr.msk.bf16.mxu1 %vm24672_vm0, %v29087_v37 }
 0x59a   :  { %20330 = vmatmul.mubr.bf16.gmra.mrb[160].mxu0 %v24077_v0  ;;  %v9848_v0 = vrot.slane %v24102_v38, 3  ;;  %v24134_v38 = vld [vmem:[#allocation2 + $0x94] ss:$0 sps:$4 sm:$0x33]  }
 0x59b   :  { %20333 = vmatprep.mubr.msk.bf16.mxu0 %vm24672_vm0, %v29087_v37 }
 0x59c   :  { %v9849_v15 = vsel %vm3345_vm5, %v9846_v3, %v9848_v0 }
 0x5a0   :  { %21278 = vmatmul.mubr.bf16.vlgmr.msra.gmra.mrb[0].mxu1 %v9835_v36  ;;  %v4343_v36 = vsel %vm2833_vm4, %v4340_v60, %v4342_v11 }
 0x5a1   :  { %21346 = vmatpush3.bf16.msra.mxu1 %v24081_v30  ;;  %21281 = vmatprep.mubr.msk.bf16.mxu1 %vm24672_vm0, %v29087_v37  ;;  %v24104_v30 = vld [vmem:[#allocation2 + $0x70] sm:$0xff]  }
 0x5a2   :  { %21347 = vmatprep.subr.bf16.mxu1 %v29087_v37  ;;  %20334 = vmatmul.mubr.bf16.gmra.mrb[164].mxu0 %v24083_v7  ;;  %v9850_v7 = vrot.slane %v24104_v30, 3  ;;  %v24138_v30 = vld [vmem:[#allocation2 + $0xc] sm:$0xf8]  }
 0x5a3   :  { %20353 = vmatprep.mubr.msk.bf16.mxu0 %vm24672_vm0, %v29087_v37 }
 0x5a4   :  { %v9851_v20 = vsel %vm3345_vm5, %v9848_v0, %v9850_v7  ;;  %v4362_v0 = vrot.slane %v24134_v38, 2 }
 0x5a5   :  { %21348 = vmatpush3.bf16.msra.mxu1 %v24090_v27  ;;  %v4344_v27 = vrot.slane %v24105_v5, 2  ;;  %v24146_v5 = vld [vmem:[%s28966_s5 + $0x490] sm:$0xff]  }
 0x5a6   :  { %21349 = vmatprep.subr.bf16.mxu1 %v29087_v37 }
 0x5a7   :  { %v4345_v62 = vsel %vm2833_vm4, %v4342_v11, %v4344_v27  ;;  %v24141_v11 = vld [vmem:[%s28966_s5 + $0x488] sm:$0xff]  }
 0x5a8   :  { %21282 = vmatmul.mubr.bf16.gmra.mrb[4].mxu1 %v9837_v43  ;;  %v9853_v43 = vsel %vm3345_vm5, %v9850_v7, %v9852_v4  ;;  %v24136_v7 = vld [vmem:[#allocation2 + $0x34] sm:$0xff]  }
 0x5a9   :  { %21285 = vmatprep.mubr.msk.bf16.mxu1 %vm24672_vm0, %v29087_v37  ;;  %21350 = vmatpush3.bf16.msra.mxu1 %v24095_v58  ;;  %v24108_v58 = vld [vmem:[#allocation2 + $0x54] sm:$0xff]  }
 0x5aa   :  { %21351 = vmatprep.subr.bf16.mxu1 %v29087_v37  ;;  %20354 = vmatmul.mubr.bf16.vlgmr.msra.gmra.mrb[100].mxu0 %v4331_v8  ;;  %v4346_v23 = vrot.slane %v24108_v58, 2  ;;  %v9854_v8 = vrot.slane %v24109_v26, 3  ;;  %v24140_v26 = vld [vmem:[#allocation2 + $0x3c] sm:$0xff]  }
 0x5ab   :  { %20357 = vmatprep.mubr.msk.bf16.mxu0 %vm24672_vm0, %v29087_v37  ;;  %20422 = vmatpush3.bf16.msra.mxu0 %v24121_v41 }
 0x5ac   :  { %20423 = vmatprep.subr.bf16.mxu0 %v29087_v37  ;;  %v4347_v41 = vsel %vm2833_vm4, %v4344_v27, %v4346_v23  ;;  %v9855_v16 = vsel %vm3345_vm5, %v9852_v4, %v9854_v8  ;;  %v4840_v27 = vrot.slane %v24138_v30, 3  ;;  %v24142_v4 = vld [vmem:[#allocation2 + $0x1c] sm:$0xff]   ;;  %v24165_v30 = vld [vmem:[#allocation2 + $0x8c] sm:$0xff]  }
 0x5ad   :  { %21352 = vmatpush3.bf16.msra.mxu1 %v24100_v50  ;;  %v24110_v50 = vld [vmem:[#allocation2 + $0x5c] sm:$0xff]  }
 0x5ae   :  { %21353 = vmatprep.subr.bf16.mxu1 %v29087_v37  ;;  %v4348_v2 = vrot.slane %v24110_v50, 2  ;;  %v24177_v50 = vld [vmem:[%s28966_s5 + $0x1d0] sm:$0xff]  }
 0x5af   :  { %20424 = vmatpush3.bf16.msra.mxu0 %v24124_v35  ;;  %v24112_v35 = vld [vmem:[#allocation2 + $0x88] sm:$0xff]  }
 0x5b0   :  { %21286 = vmatmul.mubr.bf16.gmra.mrb[8].mxu1 %v9839_v14  ;;  %20425 = vmatprep.subr.bf16.mxu0 %v29087_v37  ;;  %v24113_v14 = vld [vmem:[#allocation2 + $0x64] sm:$0xff]   ;;  %v9856_v46 = vrot.slane %v24112_v35, 3  ;;  %v24179_v35 = vld [vmem:[%s28966_s5 + $0x1d8] sm:$0xff]  }
 0x5b1   :  { %21289 = vmatprep.mubr.msk.bf16.mxu1 %vm24672_vm0, %v29087_v37  ;;  %21354 = vmatpush3.bf16.msra.mxu1 %v24106_v59  ;;  %v4349_v59 = vsel %vm2833_vm4, %v4346_v23, %v4348_v2  ;;  %v4350_v22 = vrot.slane %v24113_v14, 2  ;;  %v24175_v23 = vld [vmem:[%s28966_s5 + $0x1c8] sm:$0xff]  }
 0x5b2   :  { %21355 = vmatprep.subr.bf16.mxu1 %v29087_v37  ;;  %20358 = vmatmul.mubr.bf16.gmra.mrb[104].mxu0 %v4333_v34  ;;  %v24143_v14 = vld [vmem:[#allocation2 + $0x44] sm:$0xff]  }
 0x5b3   :  { %20361 = vmatprep.mubr.msk.bf16.mxu0 %vm24672_vm0, %v29087_v37  ;;  %20426 = vmatpush3.bf16.msra.mxu0 %v24126_v9  ;;  %v9857_v9 = vsel %vm3345_vm5, %v9854_v8, %v9856_v46  ;;  %v4351_v34 = vsel %vm2833_vm4, %v4348_v2, %v4350_v22  ;;  %v24162_v8 = vld [vmem:[%s28966_s5 + $0x4a8] sm:$0xff]  }
 0x5b4   :  { %20427 = vmatprep.subr.bf16.mxu0 %v29087_v37 }
 0x5b5   :  { %21356 = vmatpush3.bf16.msra.mxu1 %v24111_v57  ;;  %v24114_v57 = vld [vmem:[#allocation2 + $0x90] sm:$0xff]  }
 0x5b6   :  { %21357 = vmatprep.subr.bf16.mxu1 %v29087_v37  ;;  %v9858_v45 = vrot.slane %v24114_v57, 3 }
 0x5b7   :  { %20428 = vmatpush3.bf16.msra.mxu0 %v24128_v42  ;;  %v4352_v42 = vrot.slane %v24115_v61, 2  ;;  %v24185_v61 = vld [vmem:[%s28966_s5 + $0x1e8] sm:$0xff]  }
 0x5b8   :  { %21290 = vmatmul.mubr.bf16.gmra.mrb[12].mxu1 %v9841_v13  ;;  %20429 = vmatprep.subr.bf16.mxu0 %v29087_v37 }
 0x5b9   :  { %21293 = vmatprep.mubr.msk.bf16.mxu1 %vm24672_vm0, %v29087_v37  ;;  %21358 = vmatpush3.bf16.msra.mxu1 %v24116_v51  ;;  %v9859_v51 = vsel %vm3345_vm5, %v9856_v46, %v9858_v45  ;;  %v4353_v13 = vsel %vm2833_vm4, %v4350_v22, %v4352_v42  ;;  %v24181_v22 = vld [vmem:[%s28966_s5 + $0x1e0] sm:$0xff]  }
 0x5ba   :  { %21359 = vmatprep.subr.bf16.mxu1 %v29087_v37  ;;  %20362 = vmatmul.mubr.bf16.gmra.mrb[108].mxu0 %v4335_v53 }
 0x5bb   :  { %20365 = vmatprep.mubr.msk.bf16.mxu0 %vm24672_vm0, %v29087_v37  ;;  %20430 = vmatpush3.bf16.msra.mxu0 %v24130_v29  ;;  %v9860_v29 = vrot.slane %v24117_v63, 3 }
 0x5bc   :  { %20431 = vmatprep.subr.bf16.mxu0 %v29087_v37 }
 0x5bd   :  { %21360 = vmatpush3.bf16.msra.mxu1 %v24122_v28  ;;  %v4354_v28 = vrot.slane %v24118_v17, 2  ;;  %v9861_v53 = vsel %vm3345_vm5, %v9858_v45, %v9860_v29  ;;  %v9863_v52 = vsel %vm3345_vm5, %v9860_v29, %v9862_v25  ;;  %v24145_v45 = vld [vmem:[#allocation2 + $0x4c] sm:$0xff]   ;;  %v24189_v17 = vld [vmem:[%s28966_s5 + $0x1f8] sm:$0xff]  }
 0x5be   :  { %21429 = vmatprep.subr.bf16.mxu1 %v29087_v37  ;;  %v24148_v29 = vld [vmem:[#allocation2 + $0x54] sm:$0xff]  }
 0x5bf   :  { %20432 = vmatpush3.bf16.msra.mxu0 %v24133_v10  ;;  %v4355_v48 = vsel %vm2833_vm4, %v4352_v42, %v4354_v28  ;;  %v24120_v10 = vld [vmem:[#allocation2 + $0x7c] sm:$0xff]  }
 0x5c0   :  { %21294 = vmatmul.mubr.bf16.gmra.mrb[16].mxu1 %v9843_v39  ;;  %20433 = vmatprep.subr.bf16.mxu0 %v29087_v37  ;;  %v4356_v39 = vrot.slane %v24120_v10, 2  ;;  %v4851_v10 = vrot.slane %v24152_v1, 3  ;;  %v24202_v1 = vld [vmem:[%s28966_s5 + $0x4d8] sm:$0xff]  }
 0x5c1   :  { %21297 = vmatprep.mubr.msk.bf16.mxu1 %vm24672_vm0, %v29087_v37 }
 0x5c2   :  { %20366 = vmatmul.mubr.bf16.gmra.mrb[112].mxu0 %v4337_v32  ;;  %v4357_v32 = vsel %vm2833_vm4, %v4354_v28, %v4356_v39 }
 0x5c3   :  { %20369 = vmatprep.mubr.msk.bf16.mxu0 %vm24672_vm0, %v29087_v37  ;;  %20434 = vmatpush3.bf16.msra.mxu0 %v24135_v47  ;;  %v24123_v47 = vld [vmem:[#allocation2 + $0xa8] sm:$0xff]  }
 0x5c4   :  { %20435 = vmatprep.subr.bf16.mxu0 %v29087_v37  ;;  %v9864_v54 = vrot.slane %v24123_v47, 3 }
 0x5c6   :  { %v9865_v18 = vsel %vm3345_vm5, %v9862_v25, %v9864_v54 }
 0x5c7   :  { %20436 = vmatpush3.bf16.msra.mxu0 %v24137_v19  ;;  %v4358_v19 = vrot.slane %v24125_v31, 2  ;;  %v24156_v31 = vld [vmem:[#allocation2 + $0x4c] sm:$0xff]  }
 0x5c8   :  { %21298 = vmatmul.mubr.bf16.gmra.mrb[20].mxu1 %v9845_v24  ;;  %20505 = vmatprep.subr.bf16.mxu0 %v29087_v37  ;;  %v24127_v24 = vld [vmem:[#allocation2 + $0xb0] ss:$0 sps:$4 sm:$0x77]  }
 0x5c9   :  { %21301 = vmatprep.mubr.msk.bf16.mxu1 %vm24672_vm0, %v29087_v37  ;;  %v4359_v33 = vsel %vm2833_vm4, %v4356_v39, %v4358_v19  ;;  %v9866_v40 = vrot.slane %v24127_v24, 3  ;;  %v24154_v39 = vld [vmem:[#allocation2 + $0x44] sm:$0xff]   ;;  %v24159_v24 = vld [vmem:[#allocation2 + $0x54] sm:$0xff]  }
 0x5ca   :  { %20370 = vmatmul.mubr.bf16.gmra.mrb[116].mxu0 %v4339_v21  ;;  %v24129_v21 = vld [vmem:[#allocation2 + $0x8c] sm:$0xff]   ;;  %v4853_v47 = vrot.slane %v24154_v39, 3 }
 0x5cb   :  { %20373 = vmatprep.mubr.msk.bf16.mxu0 %vm24672_vm0, %v29087_v37  ;;  %v4360_v3 = vrot.slane %v24129_v21, 2  ;;  %v9867_v60 = vsel %vm3345_vm5, %v9864_v54, %v9866_v40  ;;  %v24155_v54 = vld [vmem:[#allocation2 + $0x6c] sm:$0xff]   ;;  %v4857_v21 = vrot.slane %v24159_v24, 3 }
 0x5d0   :  { %21302 = vmatmul.mubr.bf16.gmra.mrb[24].mxu1 %v9847_v44  ;;  %v4361_v44 = vsel %vm2833_vm4, %v4358_v19, %v4360_v3  ;;  %v4855_v19 = vrot.slane %v24156_v31, 3  ;;  %v24213_v31 = vld [vmem:[%s28966_s5 + $0x4e8] sm:$0xff]  }
 0x5d1   :  { %21305 = vmatprep.mubr.msk.bf16.mxu1 %vm24672_vm0, %v29087_v37 }
 0x5d2   :  { %20374 = vmatmul.mubr.bf16.gmra.mrb[120].mxu0 %v4341_v6  ;;  %v24132_v6 = vld [vmem:[%s28966_s5 + $0x480] sm:$0xff]   ;;  %v4858_v40 = vsel %vm3345_vm5, %v4855_v19, %v4857_v21 }
 0x5d3   :  { %20377 = vmatprep.mubr.msk.bf16.mxu0 %vm24672_vm0, %v29087_v37 }
 0x5d8   :  { %21306 = vmatmul.mubr.bf16.gmra.mrb[28].mxu1 %v9849_v15  ;;  %v4363_v15 = vsel %vm2833_vm4, %v4360_v3, %v4362_v0  ;;  %v24161_v3 = vld [vmem:[#allocation2 + $0x5c] sm:$0xff]  }
 0x5d9   :  { %21309 = vmatprep.mubr.msk.bf16.mxu1 %vm24672_vm0, %v29087_v37 }
 0x5da   :  { %20378 = vmatmul.mubr.bf16.gmra.mrb[124].mxu0 %v4343_v36  ;;  %v24139_v36 = vld [vmem:[#allocation2 + $0x14] sm:$0xff]  }
 0x5db   :  { %20381 = vmatprep.mubr.msk.bf16.mxu0 %vm24672_vm0, %v29087_v37 }
 0x5e0   :  { %21310 = vmatmul.mubr.bf16.gmra.mrb[32].mxu1 %v9851_v20  ;;  %v4841_v20 = vrot.slane %v24139_v36, 3 }
 0x5e1   :  { %21313 = vmatprep.mubr.msk.bf16.mxu1 %vm24672_vm0, %v29087_v37 }
 0x5e2   :  { %20382 = vmatmul.mubr.bf16.gmra.mrb[128].mxu0 %v4345_v62  ;;  %v24151_v62 = vld [vmem:[%s28966_s5 + $0x498] sm:$0xff]   ;;  %v4842_v58 = vsel %vm3345_vm5, %v4840_v27, %v4841_v20 }
 0x5e3   :  { %20385 = vmatprep.mubr.msk.bf16.mxu0 %vm24672_vm0, %v29087_v37  ;;  %v24168_v27 = vld [vmem:[#allocation2 + $0x94] sm:$0xff]  }
 0x5e8   :  { %21314 = vmatmul.mubr.bf16.gmra.mrb[36].mxu1 %v9853_v43  ;;  %v24157_v43 = vld [vmem:[%s28966_s5 + $0x4a0] sm:$0xff]  }
 0x5e9   :  { %21317 = vmatprep.mubr.msk.bf16.mxu1 %vm24672_vm0, %v29087_v37 }
 0x5ea   :  { %20386 = vmatmul.mubr.bf16.gmra.mrb[132].mxu0 %v4347_v41  ;;  %v4843_v41 = vrot.slane %v24142_v4, 3 }
 0x5eb   :  { %20389 = vmatprep.mubr.msk.bf16.mxu0 %vm24672_vm0, %v29087_v37 }
 0x5ec   :  { %v4844_v2 = vsel %vm3345_vm5, %v4841_v20, %v4843_v41 }
 0x5f0   :  { %21318 = vmatmul.mubr.bf16.gmra.mrb[40].mxu1 %v9855_v16  ;;  %v24144_v16 = vld [vmem:[#allocation2 + $0x24] sm:$0xff]  }
 0x5f1   :  { %21321 = vmatprep.mubr.msk.bf16.mxu1 %vm24672_vm0, %v29087_v37  ;;  %v4845_v46 = vrot.slane %v24144_v16, 3 }
 0x5f2   :  { %20390 = vmatmul.mubr.bf16.gmra.mrb[136].mxu0 %v4349_v59  ;;  %v24167_v59 = vld [vmem:[%s28966_s5 + $0x4b0] sm:$0xff]  }
 0x5f3   :  { %20393 = vmatprep.mubr.msk.bf16.mxu0 %vm24672_vm0, %v29087_v37  ;;  %v4846_v57 = vsel %vm3345_vm5, %v4843_v41, %v4845_v46 }
 0x5f8   :  { %21322 = vmatmul.mubr.bf16.gmra.mrb[44].mxu1 %v9857_v9  ;;  %v24173_v9 = vld [vmem:[%s28966_s5 + $0x4b8] sm:$0xff]  }
 0x5f9   :  { %21325 = vmatprep.mubr.msk.bf16.mxu1 %vm24672_vm0, %v29087_v37 }
 0x5fa   :  { %20394 = vmatmul.mubr.bf16.gmra.mrb[140].mxu0 %v4351_v34  ;;  %v24147_v34 = vld [vmem:[#allocation2 + $0x2c] sm:$0xff]  }
 0x5fb   :  { %20397 = vmatprep.mubr.msk.bf16.mxu0 %vm24672_vm0, %v29087_v37  ;;  %v4847_v42 = vrot.slane %v24147_v34, 3 }
 0x5fd   :  { %v4848_v63 = vsel %vm3345_vm5, %v4845_v46, %v4847_v42  ;;  %v24186_v46 = vld [vmem:[#allocation2 + $0x94] ss:$0 sps:$4 sm:$0x77]  }
 0x5fe   :  { %v4873_v34 = vrot.slane %v24186_v46, 3  ;;  %v24214_v46 = vld [vmem:[#allocation2 + $0x8c] sm:$0xff]  }
 0x600   :  { %21326 = vmatmul.mubr.bf16.gmra.mrb[48].mxu1 %v9859_v51  ;;  %v24187_v51 = vld [vmem:[%s28966_s5 + $0x1f0] sm:$0xff]  }
 0x601   :  { %21329 = vmatprep.mubr.msk.bf16.mxu1 %vm24672_vm0, %v29087_v37 }
 0x602   :  { %20398 = vmatmul.mubr.bf16.gmra.mrb[144].mxu0 %v4353_v13  ;;  %v24149_v13 = vld [vmem:[#allocation2 + $0x34] sm:$0xff]  }
 0x603   :  { %20401 = vmatprep.mubr.msk.bf16.mxu0 %vm24672_vm0, %v29087_v37  ;;  %v4849_v28 = vrot.slane %v24149_v13, 3  ;;  %v24197_v13 = vld [vmem:[%s28966_s5 + $0x4d0] sm:$0xff]  }
 0x605   :  { %v4852_v25 = vsel %vm3345_vm5, %v4849_v28, %v4851_v10 }
 0x608   :  { %21330 = vmatmul.mubr.bf16.gmra.mrb[52].mxu1 %v9861_v53  ;;  %v4850_v53 = vsel %vm3345_vm5, %v4847_v42, %v4849_v28  ;;  %v24192_v42 = vld [vmem:[%s28966_s5 + $0x4c8] sm:$0xff]   ;;  %v24223_v28 = vld [vmem:[%s28966_s5 + $0x200] sm:$0xff]  }
 0x609   :  { %21333 = vmatprep.mubr.msk.bf16.mxu1 %vm24672_vm0, %v29087_v37 }
 0x60a   :  { %20402 = vmatmul.mubr.bf16.gmra.mrb[148].mxu0 %v4355_v48  ;;  %v24150_v48 = vld [vmem:[#allocation2 + $0x5c] sm:$0xff]  }
 0x60b   :  { %20405 = vmatprep.mubr.msk.bf16.mxu0 %vm24672_vm0, %v29087_v37 }
 0x610   :  { %21334 = vmatmul.mubr.bf16.gmra.mrb[56].mxu1 %v9863_v52  ;;  %v24153_v52 = vld [vmem:[#allocation2 + $0x64] sm:$0xff]  }
 0x611   :  { %21337 = vmatprep.mubr.msk.bf16.mxu1 %vm24672_vm0, %v29087_v37 }
 0x612   :  { %20406 = vmatmul.mubr.bf16.gmra.mrb[152].mxu0 %v4357_v32  ;;  %v4854_v32 = vsel %vm3345_vm5, %v4851_v10, %v4853_v47  ;;  %v24226_v10 = vld [vmem:[%s28966_s5 + $0x208] sm:$0xff]  }
 0x613   :  { %20409 = vmatprep.mubr.msk.bf16.mxu0 %vm24672_vm0, %v29087_v37 }
 0x618   :  { %21338 = vmatmul.mubr.bf16.gmra.mrb[60].mxu1 %v9865_v18  ;;  %v4856_v18 = vsel %vm3345_vm5, %v4853_v47, %v4855_v19  ;;  %v24228_v47 = vld [vmem:[%s28966_s5 + $0x210] sm:$0xff]   ;;  %v24230_v19 = vld [vmem:[%s28966_s5 + $0x218] sm:$0xff]  }
 0x619   :  { %21341 = vmatprep.mubr.msk.bf16.mxu1 %vm24672_vm0, %v29087_v37 }
 0x61a   :  { %20410 = vmatmul.mubr.bf16.gmra.mrb[156].mxu0 %v4359_v33  ;;  %v24158_v33 = vld [vmem:[#allocation2 + $0x74] sm:$0xff]  }
 0x61b   :  { %20413 = vmatprep.mubr.msk.bf16.mxu0 %vm24672_vm0, %v29087_v37 }
 0x620   :  { %21342 = vmatmul.mubr.bf16.gmra.mrb[64].mxu1 %v9867_v60  ;;  %v24160_v60 = vld [vmem:[#allocation2 + $0x7c] sm:$0xff]  }
 0x621   :  { %21361 = vmatprep.mubr.msk.bf16.mxu1 %vm24672_vm0, %v29087_v37 }
 0x622   :  { %20414 = vmatmul.mubr.bf16.gmra.mrb[160].mxu0 %v4361_v44  ;;  %v4859_v44 = vrot.slane %v24161_v3, 3  ;;  %v24224_v3 = vld [vmem:[%s28966_s5 + $0x4f8] sm:$0xff]  }
 0x623   :  { %20417 = vmatprep.mubr.msk.bf16.mxu0 %vm24672_vm0, %v29087_v37 }
 0x624   :  { %v4860_v38 = vsel %vm3345_vm5, %v4857_v21, %v4859_v44  ;;  %v24232_v21 = vld [vmem:[%s28966_s5 + $0x220] sm:$0xff]  }
 0x628   :  { %21362 = vmatmul.mubr.bf16.vlgmr.msra.gmra.mrb[0].mxu1 %v24131_v49  ;;  %v24163_v49 = vld [vmem:[#allocation2 + $0x84] sm:$0xff]  }
 0x629   :  { %21430 = vmatpush3.bf16.msra.mxu1 %v24132_v6  ;;  %21365 = vmatprep.mubr.msk.bf16.mxu1 %vm24672_vm0, %v29087_v37  ;;  %v24164_v6 = vld [vmem:[#allocation2 + $0x64] sm:$0xff]  }
 0x62a   :  { %21431 = vmatprep.subr.bf16.mxu1 %v29087_v37  ;;  %20418 = vmatmul.mubr.bf16.gmra.mrb[164].mxu0 %v4363_v15  ;;  %v4861_v0 = vrot.slane %v24164_v6, 3  ;;  %v24166_v15 = vld [vmem:[#allocation2 + $0x6c] sm:$0xff]   ;;  %v24199_v6 = vld [vmem:[#allocation2 + $0x5c] sm:$0xff]  }
 0x62b   :  { %20437 = vmatprep.mubr.msk.bf16.mxu0 %vm24672_vm0, %v29087_v37  ;;  %v4863_v36 = vrot.slane %v24166_v15, 3  ;;  %v24240_v15 = vld [vmem:[%s28966_s5 + $0x238] sm:$0xff]  }
 0x62d   :  { %21432 = vmatpush3.bf16.msra.mxu1 %v24141_v11  ;;  %v4862_v11 = vsel %vm3345_vm5, %v4859_v44, %v4861_v0  ;;  %v24236_v44 = vld [vmem:[%s28966_s5 + $0x228] sm:$0xff]  }
 0x62e   :  { %21433 = vmatprep.subr.bf16.mxu1 %v29087_v37 }
 0x630   :  { %21366 = vmatmul.mubr.bf16.gmra.mrb[4].mxu1 %v24136_v7  ;;  %v24169_v7 = vld [vmem:[#allocation2 + $0x74] sm:$0xff]  }
 0x631   :  { %21369 = vmatprep.mubr.msk.bf16.mxu1 %vm24672_vm0, %v29087_v37  ;;  %21434 = vmatpush3.bf16.msra.mxu1 %v24146_v5  ;;  %v4864_v5 = vsel %vm3345_vm5, %v4861_v0, %v4863_v36  ;;  %v4865_v20 = vrot.slane %v24169_v7, 3  ;;  %v24198_v0 = vld [vmem:[#allocation2 + $0x28] sm:$0xff]  }
 0x632   :  { %21435 = vmatprep.subr.bf16.mxu1 %v29087_v37  ;;  %20438 = vmatmul.mubr.bf16.vlgmr.msra.gmra.mrb[100].mxu0 %v4842_v58  ;;  %v24170_v58 = vld [vmem:[#allocation2 + $0x9c] sm:$0xff]  }
 0x633   :  { %20441 = vmatprep.mubr.msk.bf16.mxu0 %vm24672_vm0, %v29087_v37  ;;  %20506 = vmatpush3.bf16.msra.mxu0 %v24172_v55  ;;  %v4866_v55 = vsel %vm3345_vm5, %v4863_v36, %v4865_v20  ;;  %v24201_v36 = vld [vmem:[#allocation2 + $0x64] sm:$0xff]  }
 0x634   :  { %20507 = vmatprep.subr.bf16.mxu0 %v29087_v37  ;;  %v10829_v7 = vrot.slane %v24201_v36, 1 }
 0x635   :  { %21436 = vmatpush3.bf16.msra.mxu1 %v24151_v62  ;;  %v24171_v62 = vld [vmem:[#allocation2 + $0x7c] sm:$0xff]  }
 0x636   :  { %21437 = vmatprep.subr.bf16.mxu1 %v29087_v37  ;;  %v4867_v4 = vrot.slane %v24171_v62, 3 }
 0x637   :  { %20508 = vmatpush3.bf16.msra.mxu0 %v24175_v23 }
 0x638   :  { %21370 = vmatmul.mubr.bf16.gmra.mrb[8].mxu1 %v24140_v26  ;;  %20509 = vmatprep.subr.bf16.mxu0 %v29087_v37  ;;  %v4868_v23 = vsel %vm3345_vm5, %v4865_v20, %v4867_v4  ;;  %v24174_v26 = vld [vmem:[#allocation2 + $0xa4] sm:$0xff]   ;;  %v24204_v20 = vld [vmem:[#allocation2 + $0x6c] sm:$0xff]  }
 0x639   :  { %21373 = vmatprep.mubr.msk.bf16.mxu1 %vm24672_vm0, %v29087_v37  ;;  %21438 = vmatpush3.bf16.msra.mxu1 %v24157_v43  ;;  %v24176_v43 = vld [vmem:[#allocation2 + $0x84] sm:$0xff]   ;;  %v10831_v62 = vrot.slane %v24204_v20, 1 }
 0x63a   :  { %21439 = vmatprep.subr.bf16.mxu1 %v29087_v37  ;;  %20442 = vmatmul.mubr.bf16.gmra.mrb[104].mxu0 %v4844_v2  ;;  %v4869_v41 = vrot.slane %v24176_v43, 3  ;;  %v24178_v2 = vld [vmem:[#allocation2 + $0xac] sm:$0xff]   ;;  %v24245_v20 = vld [vmem:[#allocation2 + $0x20] sm:$0xff]  }
 0x63b   :  { %20445 = vmatprep.mubr.msk.bf16.mxu0 %vm24672_vm0, %v29087_v37  ;;  %20510 = vmatpush3.bf16.msra.mxu0 %v24177_v50 }
 0x63c   :  { %20511 = vmatprep.subr.bf16.mxu0 %v29087_v37  ;;  %v4870_v50 = vsel %vm3345_vm5, %v4867_v4, %v4869_v41  ;;  %v24206_v4 = vld [vmem:[#allocation2 + $0x74] sm:$0xff]  }
 0x63d   :  { %21440 = vmatpush3.bf16.msra.mxu1 %v24162_v8  ;;  %v24180_v8 = vld [vmem:[#allocation2 + $0x8c] sm:$0xff]   ;;  %v10833_v43 = vrot.slane %v24206_v4, 1  ;;  %v5826_v4 = vrot.slane %v24245_v20, 1 }
 0x63e   :  { %21441 = vmatprep.subr.bf16.mxu1 %v29087_v37  ;;  %v4871_v16 = vrot.slane %v24180_v8, 3 }
 0x63f   :  { %20512 = vmatpush3.bf16.msra.mxu0 %v24179_v35  ;;  %v24182_v35 = vld [vmem:[#allocation2 + $0x2c] sm:$0xfe]  }
 0x640   :  { %21374 = vmatmul.mubr.bf16.gmra.mrb[12].mxu1 %v24143_v14  ;;  %20513 = vmatprep.subr.bf16.mxu0 %v29087_v37  ;;  %v4872_v14 = vsel %vm3345_vm5, %v4869_v41, %v4871_v16  ;;  %v24209_v41 = vld [vmem:[#allocation2 + $0x7c] sm:$0xff]  }
 0x641   :  { %21377 = vmatprep.mubr.msk.bf16.mxu1 %vm24672_vm0, %v29087_v37  ;;  %21442 = vmatpush3.bf16.msra.mxu1 %v24167_v59  ;;  %v24183_v59 = vld [vmem:[#allocation2 + $0x34] sm:$0xff]   ;;  %v10835_v8 = vrot.slane %v24209_v41, 1  ;;  %v24265_v41 = vld [vmem:[%s28966_s5 + $0x528] sm:$0xff]  }
 0x642   :  { %21443 = vmatprep.subr.bf16.mxu1 %v29087_v37  ;;  %20446 = vmatmul.mubr.bf16.gmra.mrb[108].mxu0 %v4846_v57  ;;  %v24184_v57 = vld [vmem:[%s28966_s5 + $0x4c0] sm:$0xff]  }
 0x643   :  { %20449 = vmatprep.mubr.msk.bf16.mxu0 %vm24672_vm0, %v29087_v37  ;;  %20514 = vmatpush3.bf16.msra.mxu0 %v24181_v22  ;;  %v10816_v22 = vrot.slane %v24182_v35, 1  ;;  %v24210_v35 = vld [vmem:[#allocation2 + $0x50] sm:$0xff]  }
 0x644   :  { %20515 = vmatprep.subr.bf16.mxu0 %v29087_v37 }
 0x645   :  { %21444 = vmatpush3.bf16.msra.mxu1 %v24173_v9  ;;  %v10817_v9 = vrot.slane %v24183_v59, 1 }
 0x646   :  { %21513 = vmatprep.subr.bf16.mxu1 %v29087_v37 }
 0x647   :  { %20516 = vmatpush3.bf16.msra.mxu0 %v24185_v61  ;;  %v10818_v61 = vsel %vm2321_vm3, %v10816_v22, %v10817_v9  ;;  %v24212_v22 = vld [vmem:[#allocation2 + $0x58] sm:$0xff]  }
 0x648   :  { %21378 = vmatmul.mubr.bf16.gmra.mrb[16].mxu1 %v24145_v45  ;;  %20517 = vmatprep.subr.bf16.mxu0 %v29087_v37  ;;  %v24188_v45 = vld [vmem:[#allocation2 + $0x3c] sm:$0xff]  }
 0x649   :  { %21381 = vmatprep.mubr.msk.bf16.mxu1 %vm24672_vm0, %v29087_v37 }
 0x64a   :  { %20450 = vmatmul.mubr.bf16.gmra.mrb[112].mxu0 %v4848_v63  ;;  %v10819_v63 = vrot.slane %v24188_v45, 1 }
 0x64b   :  { %20453 = vmatprep.mubr.msk.bf16.mxu0 %vm24672_vm0, %v29087_v37  ;;  %20518 = vmatpush3.bf16.msra.mxu0 %v24187_v51  ;;  %v4874_v51 = vsel %vm3345_vm5, %v4871_v16, %v4873_v34  ;;  %v24211_v16 = vld [vmem:[#allocation2 + $0x84] sm:$0xff]   ;;  %v24216_v34 = vld [vmem:[#allocation2 + $0x94] sm:$0xff]  }
 0x64c   :  { %20519 = vmatprep.subr.bf16.mxu0 %v29087_v37  ;;  %v10837_v59 = vrot.slane %v24211_v16, 1  ;;  %v10841_v45 = vrot.slane %v24216_v34, 1  ;;  %v24282_v16 = vld [vmem:[%s28966_s5 + $0x258] sm:$0xff]   ;;  %v24250_v34 = vld [vmem:[#allocation2 + $0x30] sm:$0xff]  }
 0x64f   :  { %20520 = vmatpush3.bf16.msra.mxu0 %v24189_v17  ;;  %v10820_v17 = vsel %vm2321_vm3, %v10817_v9, %v10819_v63  ;;  %v10839_v9 = vrot.slane %v24214_v46, 1  ;;  %v24248_v46 = vld [vmem:[#allocation2 + $0x54] sm:$0xff]  }
 0x650   :  { %21382 = vmatmul.mubr.bf16.gmra.mrb[20].mxu1 %v24148_v29  ;;  %20589 = vmatprep.subr.bf16.mxu0 %v29087_v37  ;;  %v24191_v29 = vld [vmem:[#allocation2 + $0x44] sm:$0xff]  }
 0x651   :  { %21385 = vmatprep.mubr.msk.bf16.mxu1 %vm24672_vm0, %v29087_v37 }
 0x652   :  { %20454 = vmatmul.mubr.bf16.gmra.mrb[116].mxu0 %v4850_v53  ;;  %v24190_v53 = vld [vmem:[#allocation2 + $0x10] sm:$0xff]  }
 0x653   :  { %20457 = vmatprep.mubr.msk.bf16.mxu0 %vm24672_vm0, %v29087_v37 }
 0x658   :  { %21386 = vmatmul.mubr.bf16.gmra.mrb[24].mxu1 %v24150_v48  ;;  %v10821_v48 = vrot.slane %v24191_v29, 1  ;;  %v24221_v29 = vld [vmem:[#allocation2 + $0xa4] sm:$0xff]  }
 0x659   :  { %21389 = vmatprep.mubr.msk.bf16.mxu1 %vm24672_vm0, %v29087_v37 }
 0x65a   :  { %20458 = vmatmul.mubr.bf16.gmra.mrb[120].mxu0 %v4852_v25  ;;  %v24208_v25 = vld [vmem:[%s28966_s5 + $0x4e0] sm:$0xff]   ;;  %v10822_v39 = vsel %vm2321_vm3, %v10819_v63, %v10821_v48  ;;  %v24217_v63 = vld [vmem:[#allocation2 + $0x68] sm:$0xff]  }
 0x65b   :  { %20461 = vmatprep.mubr.msk.bf16.mxu0 %vm24672_vm0, %v29087_v37 }
 0x660   :  { %21390 = vmatmul.mubr.bf16.gmra.mrb[28].mxu1 %v24153_v52  ;;  %v24194_v52 = vld [vmem:[#allocation2 + $0x4c] sm:$0xff]  }
 0x661   :  { %21393 = vmatprep.mubr.msk.bf16.mxu1 %vm24672_vm0, %v29087_v37 }
 0x662   :  { %20462 = vmatmul.mubr.bf16.gmra.mrb[124].mxu0 %v4854_v32  ;;  %v24193_v32 = vld [vmem:[#allocation2 + $0x18] sm:$0xff]  }
 0x663   :  { %20465 = vmatprep.mubr.msk.bf16.mxu0 %vm24672_vm0, %v29087_v37 }
 0x668   :  { %21394 = vmatmul.mubr.bf16.gmra.mrb[32].mxu1 %v24155_v54  ;;  %v10823_v54 = vrot.slane %v24194_v52, 1  ;;  %v24229_v52 = vld [vmem:[#allocation2 + $0xb4] ss:$0 sps:$4 sm:$0x11]  }
 0x669   :  { %21397 = vmatprep.mubr.msk.bf16.mxu1 %vm24672_vm0, %v29087_v37 }
 0x66a   :  { %20466 = vmatmul.mubr.bf16.gmra.mrb[128].mxu0 %v4856_v18  ;;  %v24218_v18 = vld [vmem:[%s28966_s5 + $0x4f0] sm:$0xff]   ;;  %v10824_v24 = vsel %vm2321_vm3, %v10821_v48, %v10823_v54 }
 0x66b   :  { %20469 = vmatprep.mubr.msk.bf16.mxu0 %vm24672_vm0, %v29087_v37  ;;  %v24225_v48 = vld [vmem:[#allocation2 + $0xac] sm:$0xff]  }
 0x670   :  { %21398 = vmatmul.mubr.bf16.gmra.mrb[36].mxu1 %v24158_v33  ;;  %v24196_v33 = vld [vmem:[#allocation2 + $0x54] sm:$0xff]  }
 0x671   :  { %21401 = vmatprep.mubr.msk.bf16.mxu1 %vm24672_vm0, %v29087_v37 }
 0x672   :  { %20470 = vmatmul.mubr.bf16.gmra.mrb[132].mxu0 %v4858_v40  ;;  %v24195_v40 = vld [vmem:[#allocation2 + $0x20] sm:$0xff]  }
 0x673   :  { %20473 = vmatprep.mubr.msk.bf16.mxu0 %vm24672_vm0, %v29087_v37 }
 0x678   :  { %21402 = vmatmul.mubr.bf16.gmra.mrb[40].mxu1 %v24160_v60  ;;  %v10825_v60 = vrot.slane %v24196_v33, 1 }
 0x679   :  { %21405 = vmatprep.mubr.msk.bf16.mxu1 %vm24672_vm0, %v29087_v37 }
 0x67a   :  { %20474 = vmatmul.mubr.bf16.gmra.mrb[136].mxu0 %v4860_v38  ;;  %v10826_v38 = vsel %vm2321_vm3, %v10823_v54, %v10825_v60  ;;  %v24233_v54 = vld [vmem:[#allocation2 + $0x2c] sm:$0xfc]  }
 0x67b   :  { %20477 = vmatprep.mubr.msk.bf16.mxu0 %vm24672_vm0, %v29087_v37 }
 0x680   :  { %21406 = vmatmul.mubr.bf16.gmra.mrb[44].mxu1 %v24163_v49  ;;  %v24238_v49 = vld [vmem:[%s28966_s5 + $0x230] sm:$0xff]  }
 0x681   :  { %21409 = vmatprep.mubr.msk.bf16.mxu1 %vm24672_vm0, %v29087_v37 }
 0x682   :  { %20478 = vmatmul.mubr.bf16.gmra.mrb[140].mxu0 %v4862_v11  ;;  %v10827_v11 = vrot.slane %v24199_v6, 1 }
 0x683   :  { %20481 = vmatprep.mubr.msk.bf16.mxu0 %vm24672_vm0, %v29087_v37 }
 0x688   :  { %21410 = vmatmul.mubr.bf16.gmra.mrb[48].mxu1 %v24165_v30  ;;  %v10828_v30 = vsel %vm2321_vm3, %v10825_v60, %v10827_v11  ;;  %v24237_v60 = vld [vmem:[#allocation2 + $0x90] sm:$0xff]  }
 0x689   :  { %21413 = vmatprep.mubr.msk.bf16.mxu1 %vm24672_vm0, %v29087_v37 }
 0x68a   :  { %20482 = vmatmul.mubr.bf16.gmra.mrb[144].mxu0 %v4864_v5  ;;  %v24200_v5 = vld [vmem:[#allocation2 + $0x30] sm:$0xff]  }
 0x68b   :  { %20485 = vmatprep.mubr.msk.bf16.mxu0 %vm24672_vm0, %v29087_v37 }
 0x690   :  { %21414 = vmatmul.mubr.bf16.gmra.mrb[52].mxu1 %v24168_v27  ;;  %v10830_v27 = vsel %vm2321_vm3, %v10827_v11, %v10829_v7 }
 0x691   :  { %21417 = vmatprep.mubr.msk.bf16.mxu1 %vm24672_vm0, %v29087_v37 }
 0x692   :  { %20486 = vmatmul.mubr.bf16.gmra.mrb[148].mxu0 %v4866_v55  ;;  %v24203_v55 = vld [vmem:[#allocation2 + $0x38] sm:$0xff]  }
 0x693   :  { %20489 = vmatprep.mubr.msk.bf16.mxu0 %vm24672_vm0, %v29087_v37 }
 0x698   :  { %21418 = vmatmul.mubr.bf16.gmra.mrb[56].mxu1 %v24170_v58  ;;  %v10832_v58 = vsel %vm2321_vm3, %v10829_v7, %v10831_v62  ;;  %v24254_v7 = vld [vmem:[%s28966_s5 + $0x518] sm:$0xff]  }
 0x699   :  { %21421 = vmatprep.mubr.msk.bf16.mxu1 %vm24672_vm0, %v29087_v37 }
 0x69a   :  { %20490 = vmatmul.mubr.bf16.gmra.mrb[152].mxu0 %v4868_v23  ;;  %v24205_v23 = vld [vmem:[#allocation2 + $0x40] sm:$0xff]  }
 0x69b   :  { %20493 = vmatprep.mubr.msk.bf16.mxu0 %vm24672_vm0, %v29087_v37 }
 0x6a0   :  { %21422 = vmatmul.mubr.bf16.gmra.mrb[60].mxu1 %v24174_v26  ;;  %v10834_v26 = vsel %vm2321_vm3, %v10831_v62, %v10833_v43  ;;  %v24278_v62 = vld [vmem:[%s28966_s5 + $0x248] sm:$0xff]  }
 0x6a1   :  { %21425 = vmatprep.mubr.msk.bf16.mxu1 %vm24672_vm0, %v29087_v37 }
 0x6a2   :  { %20494 = vmatmul.mubr.bf16.gmra.mrb[156].mxu0 %v4870_v50  ;;  %v24207_v50 = vld [vmem:[#allocation2 + $0x48] sm:$0xff]  }
 0x6a3   :  { %20497 = vmatprep.mubr.msk.bf16.mxu0 %vm24672_vm0, %v29087_v37 }
 0x6a8   :  { %21426 = vmatmul.mubr.bf16.gmra.mrb[64].mxu1 %v24178_v2  ;;  %v10836_v2 = vsel %vm2321_vm3, %v10833_v43, %v10835_v8  ;;  %v24246_v43 = vld [vmem:[#allocation2 + $0x4c] sm:$0xff]  }
 0x6a9   :  { %21445 = vmatprep.mubr.msk.bf16.mxu1 %vm24672_vm0, %v29087_v37 }
 0x6aa   :  { %20498 = vmatmul.mubr.bf16.gmra.mrb[160].mxu0 %v4872_v14  ;;  %v10838_v14 = vsel %vm2321_vm3, %v10835_v8, %v10837_v59  ;;  %v24247_v8 = vld [vmem:[#allocation2 + $0x28] sm:$0xff]  }
 0x6ab   :  { %20501 = vmatprep.mubr.msk.bf16.mxu0 %vm24672_vm0, %v29087_v37 }
 0x6b0   :  { %21446 = vmatmul.mubr.bf16.vlgmr.msra.gmra.mrb[0].mxu1 %v10818_v61  ;;  %v24215_v61 = vld [vmem:[#allocation2 + $0x60] sm:$0xff]  }
 0x6b1   :  { %21514 = vmatpush3.bf16.msra.mxu1 %v24184_v57  ;;  %21449 = vmatprep.mubr.msk.bf16.mxu1 %vm24672_vm0, %v29087_v37  ;;  %v10840_v57 = vsel %vm2321_vm3, %v10837_v59, %v10839_v9  ;;  %v5828_v59 = vrot.slane %v24247_v8, 1  ;;  %v24269_v8 = vld [vmem:[#allocation2 + $0x70] sm:$0xff]  }
 0x6b2   :  { %21515 = vmatprep.subr.bf16.mxu1 %v29087_v37  ;;  %20502 = vmatmul.mubr.bf16.gmra.mrb[164].mxu0 %v4874_v51  ;;  %v24219_v51 = vld [vmem:[#allocation2 + $0x9c] sm:$0xff]  }
 0x6b3   :  { %20521 = vmatprep.mubr.msk.bf16.mxu0 %vm24672_vm0, %v29087_v37 }
 0x6b5   :  { %21516 = vmatpush3.bf16.msra.mxu1 %v24192_v42  ;;  %v10842_v42 = vsel %vm2321_vm3, %v10839_v9, %v10841_v45  ;;  %v24276_v9 = vld [vmem:[%s28966_s5 + $0x538] sm:$0xff]  }
 0x6b6   :  { %21517 = vmatprep.subr.bf16.mxu1 %v29087_v37 }
 0x6b8   :  { %21450 = vmatmul.mubr.bf16.gmra.mrb[4].mxu1 %v10820_v17 }
 0x6b9   :  { %21453 = vmatprep.mubr.msk.bf16.mxu1 %vm24672_vm0, %v29087_v37  ;;  %21518 = vmatpush3.bf16.msra.mxu1 %v24197_v13  ;;  %v10843_v13 = vrot.slane %v24219_v51, 1 }
 0x6ba   :  { %21519 = vmatprep.subr.bf16.mxu1 %v29087_v37  ;;  %20522 = vmatmul.mubr.bf16.vlgmr.msra.gmra.mrb[100].mxu0 %v24190_v53  ;;  %v10845_v53 = vrot.slane %v24221_v29, 1  ;;  %v24252_v29 = vld [vmem:[#allocation2 + $0x38] sm:$0xff]  }
 0x6bb   :  { %20525 = vmatprep.mubr.msk.bf16.mxu0 %vm24672_vm0, %v29087_v37  ;;  %20590 = vmatpush3.bf16.msra.mxu0 %v24223_v28  ;;  %v10844_v17 = vsel %vm2321_vm3, %v10841_v45, %v10843_v13  ;;  %v24220_v28 = vld [vmem:[#allocation2 + $0x70] sm:$0xff]   ;;  %v24287_v45 = vld [vmem:[%s28966_s5 + $0x268] sm:$0xff]  }
 0x6bc   :  { %20591 = vmatprep.subr.bf16.mxu0 %v29087_v37 }
 0x6bd   :  { %21520 = vmatpush3.bf16.msra.mxu1 %v24202_v1  ;;  %v10846_v1 = vsel %vm2321_vm3, %v10843_v13, %v10845_v53  ;;  %v24289_v13 = vld [vmem:[%s28966_s5 + $0x270] sm:$0xff]  }
 0x6be   :  { %21521 = vmatprep.subr.bf16.mxu1 %v29087_v37 }
 0x6bf   :  { %20592 = vmatpush3.bf16.msra.mxu0 %v24226_v10  ;;  %v24222_v10 = vld [vmem:[#allocation2 + $0x78] sm:$0xff]  }
 0x6c0   :  { %21454 = vmatmul.mubr.bf16.gmra.mrb[8].mxu1 %v10822_v39  ;;  %20593 = vmatprep.subr.bf16.mxu0 %v29087_v37 }
 0x6c1   :  { %21457 = vmatprep.mubr.msk.bf16.mxu1 %vm24672_vm0, %v29087_v37  ;;  %21522 = vmatpush3.bf16.msra.mxu1 %v24208_v25  ;;  %v10847_v25 = vrot.slane %v24225_v48, 1 }
 0x6c2   :  { %21523 = vmatprep.subr.bf16.mxu1 %v29087_v37  ;;  %20526 = vmatmul.mubr.bf16.gmra.mrb[104].mxu0 %v24193_v32  ;;  %v10849_v32 = vrot.slane %v24229_v52, 1 }
 0x6c3   :  { %20529 = vmatprep.mubr.msk.bf16.mxu0 %vm24672_vm0, %v29087_v37  ;;  %20594 = vmatpush3.bf16.msra.mxu0 %v24228_v47  ;;  %v10848_v39 = vsel %vm2321_vm3, %v10845_v53, %v10847_v25  ;;  %v24227_v47 = vld [vmem:[#allocation2 + $0x80] sm:$0xff]   ;;  %v24291_v53 = vld [vmem:[%s28966_s5 + $0x278] sm:$0xff]  }
 0x6c4   :  { %20595 = vmatprep.subr.bf16.mxu0 %v29087_v37 }
 0x6c5   :  { %21524 = vmatpush3.bf16.msra.mxu1 %v24213_v31  ;;  %v10850_v31 = vsel %vm2321_vm3, %v10847_v25, %v10849_v32 }
 0x6c6   :  { %21525 = vmatprep.subr.bf16.mxu1 %v29087_v37 }
 0x6c7   :  { %20596 = vmatpush3.bf16.msra.mxu0 %v24230_v19  ;;  %v24234_v19 = vld [vmem:[#allocation2 + $0x34] sm:$0xff]  }
 0x6c8   :  { %21458 = vmatmul.mubr.bf16.gmra.mrb[12].mxu1 %v10824_v24  ;;  %20597 = vmatprep.subr.bf16.mxu0 %v29087_v37  ;;  %v11327_v24 = vrot.slane %v24233_v54, 2  ;;  %v11328_v33 = vrot.slane %v24234_v19, 2  ;;  %v24257_v19 = vld [vmem:[#allocation2 + $0x48] sm:$0xff]  }
 0x6c9   :  { %21461 = vmatprep.mubr.msk.bf16.mxu1 %vm24672_vm0, %v29087_v37  ;;  %21526 = vmatpush3.bf16.msra.mxu1 %v24218_v18  ;;  %v24231_v18 = vld [vmem:[#allocation2 + $0x88] sm:$0xff]  }
 0x6ca   :  { %21527 = vmatprep.subr.bf16.mxu1 %v29087_v37  ;;  %20530 = vmatmul.mubr.bf16.gmra.mrb[108].mxu0 %v24195_v40  ;;  %v11329_v40 = vsel %vm2833_vm4, %v11327_v24, %v11328_v33  ;;  %v5836_v24 = vrot.slane %v24257_v19, 1  ;;  %v24285_v19 = vld [vmem:[#allocation2 + $0x38] sm:$0xff]  }
 0x6cb   :  { %20533 = vmatprep.mubr.msk.bf16.mxu0 %vm24672_vm0, %v29087_v37  ;;  %20598 = vmatpush3.bf16.msra.mxu0 %v24232_v21  ;;  %v24235_v21 = vld [vmem:[%s28966_s5 + $0x500] sm:$0xff]  }
 0x6cc   :  { %20599 = vmatprep.subr.bf16.mxu0 %v29087_v37 }
 0x6cd   :  { %21528 = vmatpush3.bf16.msra.mxu1 %v24224_v3  ;;  %v24239_v3 = vld [vmem:[#allocation2 + $0x3c] sm:$0xff]  }
 0x6ce   :  { %21597 = vmatprep.subr.bf16.mxu1 %v29087_v37  ;;  %v11330_v6 = vrot.slane %v24239_v3, 2  ;;  %v24259_v3 = vld [vmem:[#allocation2 + $0x50] sm:$0xff]  }
 0x6cf   :  { %20600 = vmatpush3.bf16.msra.mxu0 %v24236_v44  ;;  %v24244_v44 = vld [vmem:[%s28966_s5 + $0x508] sm:$0xff]  }
 0x6d0   :  { %21462 = vmatmul.mubr.bf16.gmra.mrb[16].mxu1 %v10826_v38  ;;  %20601 = vmatprep.subr.bf16.mxu0 %v29087_v37  ;;  %v24241_v38 = vld [vmem:[#allocation2 + $0x10] sm:$0xfe]  }
 0x6d1   :  { %21465 = vmatprep.mubr.msk.bf16.mxu1 %vm24672_vm0, %v29087_v37  ;;  %v5823_v11 = vrot.slane %v24241_v38, 1 }
 0x6d2   :  { %20534 = vmatmul.mubr.bf16.gmra.mrb[112].mxu0 %v24198_v0  ;;  %v24249_v0 = vld [vmem:[%s28966_s5 + $0x510] sm:$0xff]  }
 0x6d3   :  { %20537 = vmatprep.mubr.msk.bf16.mxu0 %vm24672_vm0, %v29087_v37  ;;  %20602 = vmatpush3.bf16.msra.mxu0 %v24238_v49  ;;  %v24242_v49 = vld [vmem:[#allocation2 + $0x18] sm:$0xff]  }
 0x6d4   :  { %20603 = vmatprep.subr.bf16.mxu0 %v29087_v37  ;;  %v5824_v36 = vrot.slane %v24242_v49, 1 }
 0x6d7   :  { %20604 = vmatpush3.bf16.msra.mxu0 %v24240_v15  ;;  %v11331_v15 = vsel %vm2833_vm4, %v11328_v33, %v11330_v6 }
 0x6d8   :  { %21466 = vmatmul.mubr.bf16.gmra.mrb[20].mxu1 %v10828_v30  ;;  %20673 = vmatprep.subr.bf16.mxu0 %v29087_v37  ;;  %v24243_v30 = vld [vmem:[#allocation2 + $0x44] sm:$0xff]  }
 0x6d9   :  { %21469 = vmatprep.mubr.msk.bf16.mxu1 %vm24672_vm0, %v29087_v37 }
 0x6da   :  { %20538 = vmatmul.mubr.bf16.gmra.mrb[116].mxu0 %v24200_v5  ;;  %v24275_v5 = vld [vmem:[%s28966_s5 + $0x240] sm:$0xff]  }
 0x6db   :  { %20541 = vmatprep.mubr.msk.bf16.mxu0 %vm24672_vm0, %v29087_v37 }
 0x6e0   :  { %21470 = vmatmul.mubr.bf16.gmra.mrb[24].mxu1 %v10830_v27  ;;  %v5825_v27 = vsel %vm2321_vm3, %v5823_v11, %v5824_v36 }
 0x6e1   :  { %21473 = vmatprep.mubr.msk.bf16.mxu1 %vm24672_vm0, %v29087_v37 }
 0x6e2   :  { %20542 = vmatmul.mubr.bf16.gmra.mrb[120].mxu0 %v24203_v55  ;;  %v11332_v55 = vrot.slane %v24243_v30, 2 }
 0x6e3   :  { %20545 = vmatprep.mubr.msk.bf16.mxu0 %vm24672_vm0, %v29087_v37 }
 0x6e8   :  { %21474 = vmatmul.mubr.bf16.gmra.mrb[28].mxu1 %v10832_v58  ;;  %v24260_v58 = vld [vmem:[%s28966_s5 + $0x520] sm:$0xff]  }
 0x6e9   :  { %21477 = vmatprep.mubr.msk.bf16.mxu1 %vm24672_vm0, %v29087_v37 }
 0x6ea   :  { %20546 = vmatmul.mubr.bf16.gmra.mrb[124].mxu0 %v24205_v23  ;;  %v11333_v23 = vsel %vm2833_vm4, %v11330_v6, %v11332_v55  ;;  %v24261_v6 = vld [vmem:[#allocation2 + $0x7c] sm:$0xff]  }
 0x6eb   :  { %20549 = vmatprep.mubr.msk.bf16.mxu0 %vm24672_vm0, %v29087_v37  ;;  %v11346_v11 = vrot.slane %v24261_v6, 2  ;;  %v24305_v6 = vld [vmem:[%s28966_s5 + $0x558] sm:$0xff]  }
 0x6f0   :  { %21478 = vmatmul.mubr.bf16.gmra.mrb[32].mxu1 %v10834_v26  ;;  %v24280_v26 = vld [vmem:[%s28966_s5 + $0x250] sm:$0xff]  }
 0x6f1   :  { %21481 = vmatprep.mubr.msk.bf16.mxu1 %vm24672_vm0, %v29087_v37 }
 0x6f2   :  { %20550 = vmatmul.mubr.bf16.gmra.mrb[128].mxu0 %v24207_v50  ;;  %v5827_v50 = vsel %vm2321_vm3, %v5824_v36, %v5826_v4  ;;  %v24263_v36 = vld [vmem:[#allocation2 + $0x84] sm:$0xff]  }
 0x6f3   :  { %20553 = vmatprep.mubr.msk.bf16.mxu0 %vm24672_vm0, %v29087_v37 }
 0x6f8   :  { %21482 = vmatmul.mubr.bf16.gmra.mrb[36].mxu1 %v10836_v2  ;;  %v11334_v2 = vrot.slane %v24246_v43, 2 }
 0x6f9   :  { %21485 = vmatprep.mubr.msk.bf16.mxu1 %vm24672_vm0, %v29087_v37 }
 0x6fa   :  { %20554 = vmatmul.mubr.bf16.gmra.mrb[132].mxu0 %v24210_v35  ;;  %v24270_v35 = vld [vmem:[%s28966_s5 + $0x530] sm:$0xff]  }
 0x6fb   :  { %20557 = vmatprep.mubr.msk.bf16.mxu0 %vm24672_vm0, %v29087_v37 }
 0x700   :  { %21486 = vmatmul.mubr.bf16.gmra.mrb[40].mxu1 %v10838_v14  ;;  %v11335_v14 = vsel %vm2833_vm4, %v11332_v55, %v11334_v2 }
 0x701   :  { %21489 = vmatprep.mubr.msk.bf16.mxu1 %vm24672_vm0, %v29087_v37 }
 0x702   :  { %20558 = vmatmul.mubr.bf16.gmra.mrb[136].mxu0 %v24212_v22  ;;  %v24284_v22 = vld [vmem:[%s28966_s5 + $0x260] sm:$0xff]  }
 0x703   :  { %20561 = vmatprep.mubr.msk.bf16.mxu0 %vm24672_vm0, %v29087_v37 }
 0x708   :  { %21490 = vmatmul.mubr.bf16.gmra.mrb[44].mxu1 %v10840_v57  ;;  %v5829_v57 = vsel %vm2321_vm3, %v5826_v4, %v5828_v59  ;;  %v24267_v4 = vld [vmem:[#allocation2 + $0x68] sm:$0xff]  }
 0x709   :  { %21493 = vmatprep.mubr.msk.bf16.mxu1 %vm24672_vm0, %v29087_v37  ;;  %v5844_v43 = vrot.slane %v24267_v4, 1  ;;  %v24301_v4 = vld [vmem:[#allocation2 + $0x30] sm:$0xff]  }
 0x70a   :  { %20562 = vmatmul.mubr.bf16.gmra.mrb[140].mxu0 %v24215_v61  ;;  %v11336_v61 = vrot.slane %v24248_v46, 2  ;;  %v24272_v46 = vld [vmem:[#allocation2 + $0x78] sm:$0xff]  }
 0x70b   :  { %20565 = vmatprep.mubr.msk.bf16.mxu0 %vm24672_vm0, %v29087_v37 }
 0x70c   :  { %v11337_v51 = vsel %vm2833_vm4, %v11334_v2, %v11336_v61 }
 0x710   :  { %21494 = vmatmul.mubr.bf16.gmra.mrb[48].mxu1 %v10842_v42  ;;  %v5830_v42 = vrot.slane %v24250_v34, 1  ;;  %v24273_v34 = vld [vmem:[#allocation2 + $0xa4] sm:$0xff]  }
 0x711   :  { %21497 = vmatprep.mubr.msk.bf16.mxu1 %vm24672_vm0, %v29087_v37 }
 0x712   :  { %20566 = vmatmul.mubr.bf16.gmra.mrb[144].mxu0 %v24217_v63  ;;  %v24251_v63 = vld [vmem:[#allocation2 + $0x5c] sm:$0xff]  }
 0x713   :  { %20569 = vmatprep.mubr.msk.bf16.mxu0 %vm24672_vm0, %v29087_v37 }
 0x718   :  { %21498 = vmatmul.mubr.bf16.gmra.mrb[52].mxu1 %v10844_v17  ;;  %v5831_v17 = vsel %vm2321_vm3, %v5828_v59, %v5830_v42  ;;  %v24271_v59 = vld [vmem:[#allocation2 + $0x9c] sm:$0xff]  }
 0x719   :  { %21501 = vmatprep.mubr.msk.bf16.mxu1 %vm24672_vm0, %v29087_v37 }
 0x71a   :  { %20570 = vmatmul.mubr.bf16.gmra.mrb[148].mxu0 %v24220_v28  ;;  %v11338_v28 = vrot.slane %v24251_v63, 2 }
 0x71b   :  { %20573 = vmatprep.mubr.msk.bf16.mxu0 %vm24672_vm0, %v29087_v37 }
 0x71c   :  { %v11339_v48 = vsel %vm2833_vm4, %v11336_v61, %v11338_v28 }
 0x720   :  { %21502 = vmatmul.mubr.bf16.gmra.mrb[56].mxu1 %v10846_v1  ;;  %v5832_v1 = vrot.slane %v24252_v29, 1  ;;  %v24279_v29 = vld [vmem:[#allocation2 + $0x88] sm:$0xff]  }
 0x721   :  { %21505 = vmatprep.mubr.msk.bf16.mxu1 %vm24672_vm0, %v29087_v37 }
 0x722   :  { %20574 = vmatmul.mubr.bf16.gmra.mrb[152].mxu0 %v24222_v10  ;;  %v24253_v10 = vld [vmem:[#allocation2 + $0x64] sm:$0xff]   ;;  %v5833_v25 = vsel %vm2321_vm3, %v5830_v42, %v5832_v1  ;;  %v11356_v42 = vrot.slane %v24273_v34, 2  ;;  %v24310_v34 = vld [vmem:[#allocation2 + $0x50] sm:$0xff]  }
 0x723   :  { %20577 = vmatprep.mubr.msk.bf16.mxu0 %vm24672_vm0, %v29087_v37  ;;  %v11340_v52 = vrot.slane %v24253_v10, 2 }
 0x725   :  { %v11341_v32 = vsel %vm2833_vm4, %v11338_v28, %v11340_v52 }
 0x728   :  { %21506 = vmatmul.mubr.bf16.gmra.mrb[60].mxu1 %v10848_v39  ;;  %v24255_v39 = vld [vmem:[#allocation2 + $0x40] sm:$0xff]  }
 0x729   :  { %21509 = vmatprep.mubr.msk.bf16.mxu1 %vm24672_vm0, %v29087_v37 }
 0x72a   :  { %20578 = vmatmul.mubr.bf16.gmra.mrb[156].mxu0 %v24227_v47  ;;  %v5834_v47 = vrot.slane %v24255_v39, 1 }
 0x72b   :  { %20581 = vmatprep.mubr.msk.bf16.mxu0 %vm24672_vm0, %v29087_v37 }
 0x72c   :  { %v5835_v54 = vsel %vm2321_vm3, %v5832_v1, %v5834_v47 }
 0x730   :  { %21510 = vmatmul.mubr.bf16.gmra.mrb[64].mxu1 %v10850_v31  ;;  %v24256_v31 = vld [vmem:[#allocation2 + $0x6c] sm:$0xff]  }
 0x731   :  { %21529 = vmatprep.mubr.msk.bf16.mxu1 %vm24672_vm0, %v29087_v37 }
 0x732   :  { %20582 = vmatmul.mubr.bf16.gmra.mrb[160].mxu0 %v24231_v18  ;;  %v11342_v18 = vrot.slane %v24256_v31, 2  ;;  %v24288_v31 = vld [vmem:[#allocation2 + $0x98] ss:$0 sps:$4 sm:$0x11]  }
 0x733   :  { %20585 = vmatprep.mubr.msk.bf16.mxu0 %vm24672_vm0, %v29087_v37 }
 0x734   :  { %v11343_v33 = vsel %vm2833_vm4, %v11340_v52, %v11342_v18 }
 0x738   :  { %21530 = vmatmul.mubr.bf16.vlgmr.msra.gmra.mrb[0].mxu1 %v11329_v40  ;;  %v5837_v40 = vsel %vm2321_vm3, %v5834_v47, %v5836_v24 }
 0x739   :  { %21598 = vmatpush3.bf16.msra.mxu1 %v24235_v21  ;;  %21533 = vmatprep.mubr.msk.bf16.mxu1 %vm24672_vm0, %v29087_v37  ;;  %v24258_v21 = vld [vmem:[#allocation2 + $0x74] sm:$0xff]  }
 0x73a   :  { %21599 = vmatprep.subr.bf16.mxu1 %v29087_v37  ;;  %20586 = vmatmul.mubr.bf16.gmra.mrb[164].mxu0 %v24237_v60  ;;  %v11344_v60 = vrot.slane %v24258_v21, 2  ;;  %v24292_v21 = vld [vmem:[#allocation2 + $0x10] sm:$0xfc]  }
 0x73b   :  { %20605 = vmatprep.mubr.msk.bf16.mxu0 %vm24672_vm0, %v29087_v37 }
 0x73c   :  { %v11345_v38 = vsel %vm2833_vm4, %v11342_v18, %v11344_v60  ;;  %v11347_v30 = vsel %vm2833_vm4, %v11344_v60, %v11346_v11  ;;  %v5856_v18 = vrot.slane %v24288_v31, 1  ;;  %v24290_v60 = vld [vmem:[#allocation2 + $0x40] sm:$0xff]  }
 0x73d   :  { %21600 = vmatpush3.bf16.msra.mxu1 %v24244_v44  ;;  %v5838_v44 = vrot.slane %v24259_v3, 1  ;;  %v24300_v3 = vld [vmem:[%s28966_s5 + $0x550] sm:$0xff]  }
 0x73e   :  { %21601 = vmatprep.subr.bf16.mxu1 %v29087_v37 }
 0x73f   :  { %v5839_v49 = vsel %vm2321_vm3, %v5836_v24, %v5838_v44  ;;  %v24295_v24 = vld [vmem:[%s28966_s5 + $0x548] sm:$0xff]  }
 0x740   :  { %21534 = vmatmul.mubr.bf16.gmra.mrb[4].mxu1 %v11331_v15 }
 0x741   :  { %21537 = vmatprep.mubr.msk.bf16.mxu1 %vm24672_vm0, %v29087_v37  ;;  %21602 = vmatpush3.bf16.msra.mxu1 %v24249_v0  ;;  %v24262_v0 = vld [vmem:[#allocation2 + $0x58] sm:$0xff]  }
 0x742   :  { %21603 = vmatprep.subr.bf16.mxu1 %v29087_v37  ;;  %20606 = vmatmul.mubr.bf16.vlgmr.msra.gmra.mrb[100].mxu0 %v5825_v27  ;;  %v5840_v15 = vrot.slane %v24262_v0, 1  ;;  %v11348_v27 = vrot.slane %v24263_v36, 2  ;;  %v24296_v0 = vld [vmem:[#allocation2 + $0x20] sm:$0xff]   ;;  %v24316_v36 = vld [vmem:[%s28966_s5 + $0x568] sm:$0xff]  }
 0x743   :  { %20609 = vmatprep.mubr.msk.bf16.mxu0 %vm24672_vm0, %v29087_v37  ;;  %20674 = vmatpush3.bf16.msra.mxu0 %v24275_v5 }
 0x744   :  { %20675 = vmatprep.subr.bf16.mxu0 %v29087_v37  ;;  %v5841_v5 = vsel %vm2321_vm3, %v5838_v44, %v5840_v15  ;;  %v11349_v55 = vsel %vm2833_vm4, %v11346_v11, %v11348_v27  ;;  %v6334_v44 = vrot.slane %v24292_v21, 2  ;;  %v24311_v11 = vld [vmem:[%s28966_s5 + $0x560] sm:$0xff]   ;;  %v24324_v21 = vld [vmem:[#allocation2 + $0xa8] sm:$0xff]  }
 0x745   :  { %21604 = vmatpush3.bf16.msra.mxu1 %v24254_v7  ;;  %v24264_v7 = vld [vmem:[#allocation2 + $0x60] sm:$0xff]  }
 0x746   :  { %21605 = vmatprep.subr.bf16.mxu1 %v29087_v37  ;;  %v5842_v20 = vrot.slane %v24264_v7, 1  ;;  %v24298_v7 = vld [vmem:[#allocation2 + $0x28] sm:$0xff]  }
 0x747   :  { %20676 = vmatpush3.bf16.msra.mxu0 %v24278_v62  ;;  %v24266_v62 = vld [vmem:[#allocation2 + $0x8c] sm:$0xff]  }
 0x748   :  { %21538 = vmatmul.mubr.bf16.gmra.mrb[8].mxu1 %v11333_v23  ;;  %20677 = vmatprep.subr.bf16.mxu0 %v29087_v37  ;;  %v11350_v23 = vrot.slane %v24266_v62, 2  ;;  %v24326_v62 = vld [vmem:[%s28966_s5 + $0x578] sm:$0xff]  }
 0x749   :  { %21541 = vmatprep.mubr.msk.bf16.mxu1 %vm24672_vm0, %v29087_v37  ;;  %21606 = vmatpush3.bf16.msra.mxu1 %v24260_v58  ;;  %v5843_v58 = vsel %vm2321_vm3, %v5840_v15, %v5842_v20  ;;  %v24294_v15 = vld [vmem:[#allocation2 + $0x48] sm:$0xff]  }
 0x74a   :  { %21607 = vmatprep.subr.bf16.mxu1 %v29087_v37  ;;  %20610 = vmatmul.mubr.bf16.gmra.mrb[104].mxu0 %v5827_v50  ;;  %v5845_v50 = vsel %vm2321_vm3, %v5842_v20, %v5844_v43  ;;  %v24297_v20 = vld [vmem:[#allocation2 + $0x50] sm:$0xff]  }
 0x74b   :  { %20613 = vmatprep.mubr.msk.bf16.mxu0 %vm24672_vm0, %v29087_v37  ;;  %20678 = vmatpush3.bf16.msra.mxu0 %v24280_v26  ;;  %v11351_v26 = vsel %vm2833_vm4, %v11348_v27, %v11350_v23  ;;  %v24321_v27 = vld [vmem:[%s28966_s5 + $0x570] sm:$0xff]  }
 0x74c   :  { %20679 = vmatprep.subr.bf16.mxu0 %v29087_v37 }
 0x74d   :  { %21608 = vmatpush3.bf16.msra.mxu1 %v24265_v41  ;;  %v24268_v41 = vld [vmem:[#allocation2 + $0x94] sm:$0xff]  }
 0x74e   :  { %21609 = vmatprep.subr.bf16.mxu1 %v29087_v37  ;;  %v11352_v2 = vrot.slane %v24268_v41, 2  ;;  %v24303_v41 = vld [vmem:[#allocation2 + $0x38] sm:$0xff]  }
 0x74f   :  { %20680 = vmatpush3.bf16.msra.mxu0 %v24282_v16  ;;  %v5846_v16 = vrot.slane %v24269_v8, 1  ;;  %v6343_v8 = vrot.slane %v24303_v41, 2 }
 0x750   :  { %21542 = vmatmul.mubr.bf16.gmra.mrb[12].mxu1 %v11335_v14  ;;  %20681 = vmatprep.subr.bf16.mxu0 %v29087_v37 }
 0x751   :  { %21545 = vmatprep.mubr.msk.bf16.mxu1 %vm24672_vm0, %v29087_v37  ;;  %21610 = vmatpush3.bf16.msra.mxu1 %v24270_v35  ;;  %v11353_v35 = vsel %vm2833_vm4, %v11350_v23, %v11352_v2  ;;  %v5847_v14 = vsel %vm2321_vm3, %v5844_v43, %v5846_v16  ;;  %v24299_v23 = vld [vmem:[#allocation2 + $0x58] sm:$0xff]   ;;  %v6341_v43 = vrot.slane %v24301_v4, 2  ;;  %v24337_v4 = vld [vmem:[%s28966_s5 + $0x588] sm:$0xff]  }
 0x752   :  { %21611 = vmatprep.subr.bf16.mxu1 %v29087_v37  ;;  %20614 = vmatmul.mubr.bf16.gmra.mrb[108].mxu0 %v5829_v57 }
 0x753   :  { %20617 = vmatprep.mubr.msk.bf16.mxu0 %vm24672_vm0, %v29087_v37  ;;  %20682 = vmatpush3.bf16.msra.mxu0 %v24284_v22  ;;  %v11354_v22 = vrot.slane %v24271_v59, 2 }
 0x754   :  { %20683 = vmatprep.subr.bf16.mxu0 %v29087_v37 }
 0x755   :  { %21612 = vmatpush3.bf16.msra.mxu1 %v24276_v9  ;;  %v5848_v9 = vrot.slane %v24272_v46, 1  ;;  %v11355_v57 = vsel %vm2833_vm4, %v11352_v2, %v11354_v22  ;;  %v11357_v63 = vsel %vm2833_vm4, %v11354_v22, %v11356_v42  ;;  %v6344_v2 = vsel %vm2833_vm4, %v6341_v43, %v6343_v8  ;;  %v24308_v46 = vld [vmem:[#allocation2 + $0x48] sm:$0xff]   ;;  %v24307_v22 = vld [vmem:[#allocation2 + $0x70] sm:$0xff]  }
 0x756   :  { %21681 = vmatprep.subr.bf16.mxu1 %v29087_v37 }
 0x757   :  { %20684 = vmatpush3.bf16.msra.mxu0 %v24287_v45  ;;  %v5849_v61 = vsel %vm2321_vm3, %v5846_v16, %v5848_v9  ;;  %v24274_v45 = vld [vmem:[#allocation2 + $0x80] sm:$0xff]  }
 0x758   :  { %21546 = vmatmul.mubr.bf16.gmra.mrb[16].mxu1 %v11337_v51  ;;  %20685 = vmatprep.subr.bf16.mxu0 %v29087_v37  ;;  %v5850_v51 = vrot.slane %v24274_v45, 1  ;;  %v24306_v16 = vld [vmem:[#allocation2 + $0x40] sm:$0xff]   ;;  %v6349_v45 = vrot.slane %v24310_v34, 2  ;;  %v24355_v34 = vld [vmem:[%s28966_s5 + $0x5b8] sm:$0xff]  }
 0x759   :  { %21549 = vmatprep.mubr.msk.bf16.mxu1 %vm24672_vm0, %v29087_v37  ;;  %v6345_v59 = vrot.slane %v24306_v16, 2  ;;  %v24346_v16 = vld [vmem:[%s28966_s5 + $0x5a0] sm:$0xff]  }
 0x75a   :  { %20618 = vmatmul.mubr.bf16.gmra.mrb[112].mxu0 %v5831_v17  ;;  %v5851_v17 = vsel %vm2321_vm3, %v5848_v9, %v5850_v51  ;;  %v6347_v9 = vrot.slane %v24308_v46, 2 }
 0x75b   :  { %20621 = vmatprep.mubr.msk.bf16.mxu0 %vm24672_vm0, %v29087_v37  ;;  %20686 = vmatpush3.bf16.msra.mxu0 %v24289_v13  ;;  %v24277_v13 = vld [vmem:[#allocation2 + $0xac] sm:$0xff]  }
 0x75c   :  { %20687 = vmatprep.subr.bf16.mxu0 %v29087_v37  ;;  %v11358_v28 = vrot.slane %v24277_v13, 2 }
 0x75e   :  { %v11359_v1 = vsel %vm2833_vm4, %v11356_v42, %v11358_v28  ;;  %v6350_v42 = vsel %vm2833_vm4, %v6347_v9, %v6349_v45 }
 0x75f   :  { %20688 = vmatpush3.bf16.msra.mxu0 %v24291_v53  ;;  %v5852_v53 = vrot.slane %v24279_v29, 1  ;;  %v24315_v29 = vld [vmem:[#allocation2 + $0x60] sm:$0xff]  }
 0x760   :  { %21550 = vmatmul.mubr.bf16.gmra.mrb[20].mxu1 %v11339_v48  ;;  %v24281_v48 = vld [vmem:[#allocation2 + $0xb4] ss:$0 sps:$4 sm:$0x33]  }
 0x761   :  { %21553 = vmatprep.mubr.msk.bf16.mxu1 %vm24672_vm0, %v29087_v37  ;;  %v5853_v10 = vsel %vm2321_vm3, %v5850_v51, %v5852_v53  ;;  %v11360_v39 = vrot.slane %v24281_v48, 2  ;;  %v24313_v51 = vld [vmem:[#allocation2 + $0x58] sm:$0xff]   ;;  %v24318_v48 = vld [vmem:[#allocation2 + $0x68] sm:$0xff]  }
 0x762   :  { %20622 = vmatmul.mubr.bf16.gmra.mrb[116].mxu0 %v5833_v25  ;;  %v24283_v25 = vld [vmem:[#allocation2 + $0x90] sm:$0xff]   ;;  %v6351_v13 = vrot.slane %v24313_v51, 2 }
 0x763   :  { %20625 = vmatprep.mubr.msk.bf16.mxu0 %vm24672_vm0, %v29087_v37  ;;  %v5854_v52 = vrot.slane %v24283_v25, 1  ;;  %v11361_v47 = vsel %vm2833_vm4, %v11358_v28, %v11360_v39  ;;  %v24314_v28 = vld [vmem:[#allocation2 + $0x88] sm:$0xff]   ;;  %v6355_v25 = vrot.slane %v24318_v48, 2  ;;  %v24345_v48 = vld [vmem:[#allocation2 + $0x80] sm:$0xff]  }
 0x768   :  { %21554 = vmatmul.mubr.bf16.gmra.mrb[24].mxu1 %v11341_v32  ;;  %v5855_v32 = vsel %vm2321_vm3, %v5852_v53, %v5854_v52  ;;  %v6353_v53 = vrot.slane %v24315_v29, 2 }
 0x769   :  { %21557 = vmatprep.mubr.msk.bf16.mxu1 %vm24672_vm0, %v29087_v37 }
 0x76a   :  { %20626 = vmatmul.mubr.bf16.gmra.mrb[120].mxu0 %v5835_v54  ;;  %v24286_v54 = vld [vmem:[%s28966_s5 + $0x540] sm:$0xff]   ;;  %v6356_v39 = vsel %vm2833_vm4, %v6353_v53, %v6355_v25 }
 0x76b   :  { %20629 = vmatprep.mubr.msk.bf16.mxu0 %vm24672_vm0, %v29087_v37 }
 0x770   :  { %21558 = vmatmul.mubr.bf16.gmra.mrb[28].mxu1 %v11343_v33  ;;  %v5857_v33 = vsel %vm2321_vm3, %v5854_v52, %v5856_v18  ;;  %v24320_v52 = vld [vmem:[#allocation2 + $0x70] sm:$0xff]  }
 0x771   :  { %21561 = vmatprep.mubr.msk.bf16.mxu1 %vm24672_vm0, %v29087_v37 }
 0x772   :  { %20630 = vmatmul.mubr.bf16.gmra.mrb[124].mxu0 %v5837_v40  ;;  %v24293_v40 = vld [vmem:[#allocation2 + $0x18] sm:$0xff]  }
 0x773   :  { %20633 = vmatprep.mubr.msk.bf16.mxu0 %vm24672_vm0, %v29087_v37 }
 0x778   :  { %21562 = vmatmul.mubr.bf16.gmra.mrb[32].mxu1 %v11345_v38  ;;  %v6335_v38 = vrot.slane %v24293_v40, 2 }
 0x779   :  { %21565 = vmatprep.mubr.msk.bf16.mxu1 %vm24672_vm0, %v29087_v37 }
 0x77a   :  { %20634 = vmatmul.mubr.bf16.gmra.mrb[128].mxu0 %v5839_v49  ;;  %v6336_v49 = vsel %vm2833_vm4, %v6334_v44, %v6335_v38  ;;  %v24327_v44 = vld [vmem:[#allocation2 + $0xb0] sm:$0xff]  }
 0x77b   :  { %20637 = vmatprep.mubr.msk.bf16.mxu0 %vm24672_vm0, %v29087_v37 }
 0x780   :  { %21566 = vmatmul.mubr.bf16.gmra.mrb[36].mxu1 %v11347_v30  ;;  %v6337_v30 = vrot.slane %v24296_v0, 2  ;;  %v24329_v0 = vld [vmem:[#allocation2 + $0xb8] sm:$0xff]  }
 0x781   :  { %21569 = vmatprep.mubr.msk.bf16.mxu1 %vm24672_vm0, %v29087_v37 }
 0x782   :  { %20638 = vmatmul.mubr.bf16.gmra.mrb[132].mxu0 %v5841_v5  ;;  %v6338_v5 = vsel %vm2833_vm4, %v6335_v38, %v6337_v30 }
 0x783   :  { %20641 = vmatprep.mubr.msk.bf16.mxu0 %vm24672_vm0, %v29087_v37 }
 0x788   :  { %21570 = vmatmul.mubr.bf16.gmra.mrb[40].mxu1 %v11349_v55  ;;  %v6339_v55 = vrot.slane %v24298_v7, 2 }
 0x789   :  { %21573 = vmatprep.mubr.msk.bf16.mxu1 %vm24672_vm0, %v29087_v37 }
 0x78a   :  { %20642 = vmatmul.mubr.bf16.gmra.mrb[136].mxu0 %v5843_v58  ;;  %v6340_v58 = vsel %vm2833_vm4, %v6337_v30, %v6339_v55  ;;  %v24332_v30 = vld [vmem:[#allocation2 + $0x40] sm:$0xff]  }
 0x78b   :  { %20645 = vmatprep.mubr.msk.bf16.mxu0 %vm24672_vm0, %v29087_v37 }
 0x790   :  { %21574 = vmatmul.mubr.bf16.gmra.mrb[44].mxu1 %v11351_v26  ;;  %v6342_v26 = vsel %vm2833_vm4, %v6339_v55, %v6341_v43 }
 0x791   :  { %21577 = vmatprep.mubr.msk.bf16.mxu1 %vm24672_vm0, %v29087_v37 }
 0x792   :  { %20646 = vmatmul.mubr.bf16.gmra.mrb[140].mxu0 %v5845_v50  ;;  %v24302_v50 = vld [vmem:[#allocation2 + $0x60] sm:$0xff]  }
 0x793   :  { %20649 = vmatprep.mubr.msk.bf16.mxu0 %vm24672_vm0, %v29087_v37 }
 0x798   :  { %21578 = vmatmul.mubr.bf16.gmra.mrb[48].mxu1 %v11353_v35  ;;  %v24304_v35 = vld [vmem:[#allocation2 + $0x68] sm:$0xff]  }
 0x799   :  { %21581 = vmatprep.mubr.msk.bf16.mxu1 %vm24672_vm0, %v29087_v37 }
 0x79a   :  { %20650 = vmatmul.mubr.bf16.gmra.mrb[144].mxu0 %v5847_v14  ;;  %v6346_v14 = vsel %vm2833_vm4, %v6343_v8, %v6345_v59  ;;  %v24343_v8 = vld [vmem:[%s28966_s5 + $0x598] sm:$0xff]  }
 0x79b   :  { %20653 = vmatprep.mubr.msk.bf16.mxu0 %vm24672_vm0, %v29087_v37 }
 0x7a0   :  { %21582 = vmatmul.mubr.bf16.gmra.mrb[52].mxu1 %v11355_v57  ;;  %v6348_v57 = vsel %vm2833_vm4, %v6345_v59, %v6347_v9  ;;  %v24338_v59 = vld [vmem:[#allocation2 + $0x58] sm:$0xff]  }
 0x7a1   :  { %21585 = vmatprep.mubr.msk.bf16.mxu1 %vm24672_vm0, %v29087_v37  ;;  %v12317_v46 = vrot.slane %v24338_v59, 1 }
 0x7a2   :  { %20654 = vmatmul.mubr.bf16.gmra.mrb[148].mxu0 %v5849_v61  ;;  %v24309_v61 = vld [vmem:[#allocation2 + $0x78] sm:$0xff]  }
 0x7a3   :  { %20657 = vmatprep.mubr.msk.bf16.mxu0 %vm24672_vm0, %v29087_v37 }
 0x7a8   :  { %21586 = vmatmul.mubr.bf16.gmra.mrb[56].mxu1 %v11357_v63  ;;  %v24312_v63 = vld [vmem:[#allocation2 + $0x80] sm:$0xff]  }
 0x7a9   :  { %21589 = vmatprep.mubr.msk.bf16.mxu1 %vm24672_vm0, %v29087_v37 }
 0x7aa   :  { %20658 = vmatmul.mubr.bf16.gmra.mrb[152].mxu0 %v5851_v17  ;;  %v6352_v17 = vsel %vm2833_vm4, %v6349_v45, %v6351_v13 }
 0x7ab   :  { %20661 = vmatprep.mubr.msk.bf16.mxu0 %vm24672_vm0, %v29087_v37 }
 0x7b0   :  { %21590 = vmatmul.mubr.bf16.gmra.mrb[60].mxu1 %v11359_v1  ;;  %v6354_v1 = vsel %vm2833_vm4, %v6351_v13, %v6353_v53  ;;  %v24342_v13 = vld [vmem:[#allocation2 + $0x70] sm:$0xff]  }
 0x7b1   :  { %21593 = vmatprep.mubr.msk.bf16.mxu1 %vm24672_vm0, %v29087_v37 }
 0x7b2   :  { %20662 = vmatmul.mubr.bf16.gmra.mrb[156].mxu0 %v5853_v10  ;;  %v24317_v10 = vld [vmem:[#allocation2 + $0x90] sm:$0xff]  }
 0x7b3   :  { %20665 = vmatprep.mubr.msk.bf16.mxu0 %vm24672_vm0, %v29087_v37 }
 0x7b8   :  { %21594 = vmatmul.mubr.bf16.gmra.mrb[64].mxu1 %v11361_v47  ;;  %v24319_v47 = vld [vmem:[#allocation2 + $0x98] sm:$0xff]  }
 0x7b9   :  { %21613 = vmatprep.mubr.msk.bf16.mxu1 %vm24672_vm0, %v29087_v37 }
 0x7ba   :  { %20666 = vmatmul.mubr.bf16.gmra.mrb[160].mxu0 %v5855_v32  ;;  %v6357_v32 = vrot.slane %v24320_v52, 2 }
 0x7bb   :  { %20669 = vmatprep.mubr.msk.bf16.mxu0 %vm24672_vm0, %v29087_v37 }
 0x7bc   :  { %v6358_v31 = vsel %vm2833_vm4, %v6355_v25, %v6357_v32 }
 0x7c0   :  { %21614 = vmatmul.mubr.bf16.vlgmr.msra.gmra.mrb[0].mxu1 %v24285_v19  ;;  %v24322_v19 = vld [vmem:[#allocation2 + $0xa0] sm:$0xff]  }
 0x7c1   :  { %21682 = vmatpush3.bf16.msra.mxu1 %v24286_v54  ;;  %21617 = vmatprep.mubr.msk.bf16.mxu1 %vm24672_vm0, %v29087_v37  ;;  %v24323_v54 = vld [vmem:[#allocation2 + $0x78] sm:$0xff]  }
 0x7c2   :  { %21683 = vmatprep.subr.bf16.mxu1 %v29087_v37  ;;  %20670 = vmatmul.mubr.bf16.gmra.mrb[164].mxu0 %v5857_v33  ;;  %v6359_v18 = vrot.slane %v24323_v54, 2  ;;  %v24325_v33 = vld [vmem:[#allocation2 + $0x80] sm:$0xff]  }
 0x7c3   :  { %20689 = vmatprep.mubr.msk.bf16.mxu0 %vm24672_vm0, %v29087_v37  ;;  %v6361_v40 = vrot.slane %v24325_v33, 2 }
 0x7c5   :  { %21684 = vmatpush3.bf16.msra.mxu1 %v24295_v24  ;;  %v6360_v24 = vsel %vm2833_vm4, %v6357_v32, %v6359_v18  ;;  %v24348_v32 = vld [vmem:[#allocation2 + $0x90] sm:$0xff]  }
 0x7c6   :  { %21685 = vmatprep.subr.bf16.mxu1 %v29087_v37 }
 0x7c8   :  { %21618 = vmatmul.mubr.bf16.gmra.mrb[4].mxu1 %v24290_v60  ;;  %v24328_v60 = vld [vmem:[#allocation2 + $0x88] sm:$0xff]  }
 0x7c9   :  { %21621 = vmatprep.mubr.msk.bf16.mxu1 %vm24672_vm0, %v29087_v37  ;;  %21686 = vmatpush3.bf16.msra.mxu1 %v24300_v3  ;;  %v6362_v3 = vsel %vm2833_vm4, %v6359_v18, %v6361_v40  ;;  %v6363_v38 = vrot.slane %v24328_v60, 2 }
 0x7ca   :  { %21687 = vmatprep.subr.bf16.mxu1 %v29087_v37  ;;  %20690 = vmatmul.mubr.bf16.vlgmr.msra.gmra.mrb[100].mxu0 %v6336_v49  ;;  %v24330_v49 = vld [vmem:[#allocation2 + $0x90] sm:$0xff]  }
 0x7cb   :  { %20693 = vmatprep.mubr.msk.bf16.mxu0 %vm24672_vm0, %v29087_v37 }
 0x7cd   :  { %21688 = vmatpush3.bf16.msra.mxu1 %v24305_v6  ;;  %v6364_v6 = vsel %vm2833_vm4, %v6361_v40, %v6363_v38  ;;  %v24351_v40 = vld [vmem:[#allocation2 + $0xa0] sm:$0xff]  }
 0x7ce   :  { %21689 = vmatprep.subr.bf16.mxu1 %v29087_v37 }
 0x7d0   :  { %21622 = vmatmul.mubr.bf16.gmra.mrb[8].mxu1 %v24294_v15  ;;  %v24331_v15 = vld [vmem:[#allocation2 + $0x38] sm:$0xfe]  }
 0x7d1   :  { %21625 = vmatprep.mubr.msk.bf16.mxu1 %vm24672_vm0, %v29087_v37  ;;  %21690 = vmatpush3.bf16.msra.mxu1 %v24311_v11  ;;  %v6365_v11 = vrot.slane %v24330_v49, 2  ;;  %v12310_v7 = vrot.slane %v24331_v15, 1 }
 0x7d2   :  { %21691 = vmatprep.subr.bf16.mxu1 %v29087_v37  ;;  %20694 = vmatmul.mubr.bf16.gmra.mrb[104].mxu0 %v6338_v5  ;;  %v24334_v5 = vld [vmem:[#allocation2 + $0x98] ss:$0 sps:$4 sm:$0x33]  }
 0x7d3   :  { %20697 = vmatprep.mubr.msk.bf16.mxu0 %vm24672_vm0, %v29087_v37  ;;  %v6367_v55 = vrot.slane %v24334_v5, 2 }
 0x7d5   :  { %21692 = vmatpush3.bf16.msra.mxu1 %v24316_v36  ;;  %v6366_v36 = vsel %vm2833_vm4, %v6363_v38, %v6365_v11 }
 0x7d6   :  { %21693 = vmatprep.subr.bf16.mxu1 %v29087_v37 }
 0x7d8   :  { %21626 = vmatmul.mubr.bf16.gmra.mrb[12].mxu1 %v24297_v20  ;;  %v24333_v20 = vld [vmem:[%s28966_s5 + $0x580] sm:$0xff]  }
 0x7d9   :  { %21629 = vmatprep.mubr.msk.bf16.mxu1 %vm24672_vm0, %v29087_v37  ;;  %21694 = vmatpush3.bf16.msra.mxu1 %v24321_v27  ;;  %v12311_v27 = vrot.slane %v24332_v30, 1 }
 0x7da   :  { %21695 = vmatprep.subr.bf16.mxu1 %v29087_v37  ;;  %20698 = vmatmul.mubr.bf16.gmra.mrb[108].mxu0 %v6340_v58  ;;  %v24335_v58 = vld [vmem:[#allocation2 + $0x48] sm:$0xff]  }
 0x7db   :  { %20701 = vmatprep.mubr.msk.bf16.mxu0 %vm24672_vm0, %v29087_v37  ;;  %v12313_v43 = vrot.slane %v24335_v58, 1 }
 0x7dd   :  { %21696 = vmatpush3.bf16.msra.mxu1 %v24326_v62  ;;  %v12312_v62 = vsel %vm2321_vm3, %v12310_v7, %v12311_v27  ;;  %v12314_v41 = vsel %vm2321_vm3, %v12311_v27, %v12313_v43  ;;  %v24354_v27 = vld [vmem:[#allocation2 + $0xb0] sm:$0xff]  }
 0x7de   :  { %21765 = vmatprep.subr.bf16.mxu1 %v29087_v37 }
 0x7e0   :  { %21630 = vmatmul.mubr.bf16.gmra.mrb[16].mxu1 %v24299_v23  ;;  %v6368_v23 = vsel %vm2833_vm4, %v6365_v11, %v6367_v55 }
 0x7e1   :  { %21633 = vmatprep.mubr.msk.bf16.mxu1 %vm24672_vm0, %v29087_v37 }
 0x7e2   :  { %20702 = vmatmul.mubr.bf16.gmra.mrb[112].mxu0 %v6342_v26  ;;  %v24340_v26 = vld [vmem:[%s28966_s5 + $0x590] sm:$0xff]  }
 0x7e3   :  { %20705 = vmatprep.mubr.msk.bf16.mxu0 %vm24672_vm0, %v29087_v37 }
 0x7e8   :  { %21634 = vmatmul.mubr.bf16.gmra.mrb[20].mxu1 %v24302_v50  ;;  %v24336_v50 = vld [vmem:[#allocation2 + $0x50] sm:$0xff]  }
 0x7e9   :  { %21637 = vmatprep.mubr.msk.bf16.mxu1 %vm24672_vm0, %v29087_v37 }
 0x7ea   :  { %20706 = vmatmul.mubr.bf16.gmra.mrb[116].mxu0 %v6344_v2  ;;  %v12315_v2 = vrot.slane %v24336_v50, 1 }
 0x7eb   :  { %20709 = vmatprep.mubr.msk.bf16.mxu0 %vm24672_vm0, %v29087_v37 }
 0x7ec   :  { %v12318_v9 = vsel %vm2321_vm3, %v12315_v2, %v12317_v46 }
 0x7f0   :  { %21638 = vmatmul.mubr.bf16.gmra.mrb[24].mxu1 %v24304_v35  ;;  %v12316_v35 = vsel %vm2321_vm3, %v12313_v43, %v12315_v2  ;;  %v24356_v43 = vld [vmem:[#allocation2 + $0xb8] sm:$0xff]  }
 0x7f1   :  { %21641 = vmatprep.mubr.msk.bf16.mxu1 %vm24672_vm0, %v29087_v37  ;;  %v12341_v50 = vrot.slane %v24356_v43, 1 }
 0x7f2   :  { %20710 = vmatmul.mubr.bf16.gmra.mrb[120].mxu0 %v6346_v14  ;;  %v24349_v14 = vld [vmem:[%s28966_s5 + $0x5a8] sm:$0xff]  }
 0x7f3   :  { %20713 = vmatprep.mubr.msk.bf16.mxu0 %vm24672_vm0, %v29087_v37 }
 0x7f8   :  { %21642 = vmatmul.mubr.bf16.gmra.mrb[28].mxu1 %v24307_v22  ;;  %v24352_v22 = vld [vmem:[%s28966_s5 + $0x5b0] sm:$0xff]  }
 0x7f9   :  { %21645 = vmatprep.mubr.msk.bf16.mxu1 %vm24672_vm0, %v29087_v37 }
 0x7fa   :  { %20714 = vmatmul.mubr.bf16.gmra.mrb[124].mxu0 %v6348_v57  ;;  %v24339_v57 = vld [vmem:[#allocation2 + $0x60] sm:$0xff]  }
 0x7fb   :  { %20717 = vmatprep.mubr.msk.bf16.mxu0 %vm24672_vm0, %v29087_v37 }
 0x800   :  { %21646 = vmatmul.mubr.bf16.gmra.mrb[32].mxu1 %v24309_v61  ;;  %v12319_v61 = vrot.slane %v24339_v57, 1 }
 0x801   :  { %21649 = vmatprep.mubr.msk.bf16.mxu1 %vm24672_vm0, %v29087_v37 }
 0x802   :  { %20718 = vmatmul.mubr.bf16.gmra.mrb[128].mxu0 %v6350_v42  ;;  %v12320_v45 = vsel %vm2321_vm3, %v12317_v46, %v12319_v61  ;;  %v24341_v42 = vld [vmem:[#allocation2 + $0x68] sm:$0xff]  }
 0x803   :  { %20721 = vmatprep.mubr.msk.bf16.mxu0 %vm24672_vm0, %v29087_v37  ;;  %v12321_v51 = vrot.slane %v24341_v42, 1 }
 0x808   :  { %21650 = vmatmul.mubr.bf16.gmra.mrb[36].mxu1 %v24312_v63  ;;  %v12322_v63 = vsel %vm2321_vm3, %v12319_v61, %v12321_v51  ;;  %v24359_v61 = vld [vmem:[#allocation2 + $0x40] sm:$0xff]  }
 0x809   :  { %21653 = vmatprep.mubr.msk.bf16.mxu1 %vm24672_vm0, %v29087_v37 }
 0x80a   :  { %20722 = vmatmul.mubr.bf16.gmra.mrb[132].mxu0 %v6352_v17  ;;  %v12323_v17 = vrot.slane %v24342_v13, 1  ;;  %v24360_v13 = vld [vmem:[%s28966_s5 + $0x5c0] sm:$0xff]  }
 0x80b   :  { %20725 = vmatprep.mubr.msk.bf16.mxu0 %vm24672_vm0, %v29087_v37 }
 0x80c   :  { %v12324_v29 = vsel %vm2321_vm3, %v12321_v51, %v12323_v17 }
 0x810   :  { %21654 = vmatmul.mubr.bf16.gmra.mrb[40].mxu1 %v24314_v28  ;;  %v24344_v28 = vld [vmem:[#allocation2 + $0x78] sm:$0xff]  }
 0x811   :  { %21657 = vmatprep.mubr.msk.bf16.mxu1 %vm24672_vm0, %v29087_v37  ;;  %v12325_v53 = vrot.slane %v24344_v28, 1 }
 0x812   :  { %20726 = vmatmul.mubr.bf16.gmra.mrb[136].mxu0 %v6354_v1 }
 0x813   :  { %20729 = vmatprep.mubr.msk.bf16.mxu0 %vm24672_vm0, %v29087_v37  ;;  %v12326_v1 = vsel %vm2321_vm3, %v12323_v17, %v12325_v53 }
 0x818   :  { %21658 = vmatmul.mubr.bf16.gmra.mrb[44].mxu1 %v24317_v10  ;;  %v12327_v10 = vrot.slane %v24345_v48, 1 }
 0x819   :  { %21661 = vmatprep.mubr.msk.bf16.mxu1 %vm24672_vm0, %v29087_v37 }
 0x81a   :  { %20730 = vmatmul.mubr.bf16.gmra.mrb[140].mxu0 %v6356_v39  ;;  %v12328_v25 = vsel %vm2321_vm3, %v12325_v53, %v12327_v10  ;;  %v24347_v39 = vld [vmem:[#allocation2 + $0x88] sm:$0xff]  }
 0x81b   :  { %20733 = vmatprep.mubr.msk.bf16.mxu0 %vm24672_vm0, %v29087_v37  ;;  %v12329_v52 = vrot.slane %v24347_v39, 1  ;;  %v24361_v53 = vld [vmem:[#allocation2 + $0x48] sm:$0xff]   ;;  %v24366_v39 = vld [vmem:[%s28966_s5 + $0x5d0] sm:$0xff]  }
 0x820   :  { %21662 = vmatmul.mubr.bf16.gmra.mrb[48].mxu1 %v24319_v47  ;;  %v12330_v47 = vsel %vm2321_vm3, %v12327_v10, %v12329_v52  ;;  %v24363_v10 = vld [vmem:[%s28966_s5 + $0x5c8] sm:$0xff]  }
 0x821   :  { %21665 = vmatprep.mubr.msk.bf16.mxu1 %vm24672_vm0, %v29087_v37 }
 0x822   :  { %20734 = vmatmul.mubr.bf16.gmra.mrb[144].mxu0 %v6358_v31  ;;  %v12331_v31 = vrot.slane %v24348_v32, 1 }
 0x823   :  { %20737 = vmatprep.mubr.msk.bf16.mxu0 %vm24672_vm0, %v29087_v37 }
 0x824   :  { %v12332_v54 = vsel %vm2321_vm3, %v12329_v52, %v12331_v31 }
 0x828   :  { %21666 = vmatmul.mubr.bf16.gmra.mrb[52].mxu1 %v24322_v19  ;;  %v24350_v19 = vld [vmem:[#allocation2 + $0x98] sm:$0xff]  }
 0x829   :  { %21669 = vmatprep.mubr.msk.bf16.mxu1 %vm24672_vm0, %v29087_v37  ;;  %v12333_v18 = vrot.slane %v24350_v19, 1 }
 0x82a   :  { %20738 = vmatmul.mubr.bf16.gmra.mrb[148].mxu0 %v6360_v24 }
 0x82b   :  { %20741 = vmatprep.mubr.msk.bf16.mxu0 %vm24672_vm0, %v29087_v37 }
 0x830   :  { %21670 = vmatmul.mubr.bf16.gmra.mrb[56].mxu1 %v24324_v21  ;;  %v12334_v21 = vsel %vm2321_vm3, %v12331_v31, %v12333_v18  ;;  %v24362_v31 = vld [vmem:[#allocation2 + $0x50] sm:$0xff]  }
 0x831   :  { %21673 = vmatprep.mubr.msk.bf16.mxu1 %vm24672_vm0, %v29087_v37 }
 0x832   :  { %20742 = vmatmul.mubr.bf16.gmra.mrb[152].mxu0 %v6362_v3 }
 0x833   :  { %20745 = vmatprep.mubr.msk.bf16.mxu0 %vm24672_vm0, %v29087_v37 }
 0x838   :  { %21674 = vmatmul.mubr.bf16.gmra.mrb[60].mxu1 %v24327_v44  ;;  %v12335_v44 = vrot.slane %v24351_v40, 1 }
 0x839   :  { %21677 = vmatprep.mubr.msk.bf16.mxu1 %vm24672_vm0, %v29087_v37 }
 0x83a   :  { %20746 = vmatmul.mubr.bf16.gmra.mrb[156].mxu0 %v6364_v6  ;;  %v12336_v49 = vsel %vm2321_vm3, %v12333_v18, %v12335_v44  ;;  %v24369_v18 = vld [vmem:[%s28966_s5 + $0x5d8] sm:$0xff]  }
 0x83b   :  { %20749 = vmatprep.mubr.msk.bf16.mxu0 %vm24672_vm0, %v29087_v37 }
 0x840   :  { %21678 = vmatmul.mubr.bf16.gmra.mrb[64].mxu1 %v24329_v0  ;;  %v24353_v0 = vld [vmem:[#allocation2 + $0xa8] sm:$0xff]  }
 0x841   :  { %21697 = vmatprep.mubr.msk.bf16.mxu1 %vm24672_vm0, %v29087_v37  ;;  %v12337_v30 = vrot.slane %v24353_v0, 1  ;;  %v24378_v0 = vld [vmem:[%s28966_s5 + $0x5f0] sm:$0xff]  }
 0x842   :  { %20750 = vmatmul.mubr.bf16.gmra.mrb[160].mxu0 %v6366_v36 }
 0x843   :  { %20753 = vmatprep.mubr.msk.bf16.mxu0 %vm24672_vm0, %v29087_v37  ;;  %v12338_v7 = vsel %vm2321_vm3, %v12335_v44, %v12337_v30 }
 0x848   :  { %21698 = vmatmul.mubr.bf16.vlgmr.msra.gmra.mrb[0].mxu1 %v12312_v62  ;;  %v12339_v62 = vrot.slane %v24354_v27, 1  ;;  %v24381_v27 = vld [vmem:[%s28966_s5 + $0x5f8] sm:$0xff]  }
 0x849   :  { %21766 = vmatpush3.bf16.msra.mxu1 %v24333_v20  ;;  %21701 = vmatprep.mubr.msk.bf16.mxu1 %vm24672_vm0, %v29087_v37 }
 0x84a   :  { %21767 = vmatprep.subr.bf16.mxu1 %v29087_v37  ;;  %20754 = vmatmul.mubr.bf16.gmra.mrb[164].mxu0 %v6368_v23  ;;  %v12340_v23 = vsel %vm2321_vm3, %v12337_v30, %v12339_v62 }
 0x84d   :  { %21768 = vmatpush3.bf16.msra.mxu1 %v24337_v4 }
 0x84e   :  { %21769 = vmatprep.subr.bf16.mxu1 %v29087_v37 }
 0x850   :  { %21702 = vmatmul.mubr.bf16.gmra.mrb[4].mxu1 %v12314_v41 }
 0x851   :  { %21705 = vmatprep.mubr.msk.bf16.mxu1 %vm24672_vm0, %v29087_v37  ;;  %21770 = vmatpush3.bf16.msra.mxu1 %v24340_v26 }
 0x852   :  { %21771 = vmatprep.subr.bf16.mxu1 %v29087_v37 }
 0x855   :  { %21772 = vmatpush3.bf16.msra.mxu1 %v24343_v8 }
 0x856   :  { %21773 = vmatprep.subr.bf16.mxu1 %v29087_v37 }
 0x858   :  { %21706 = vmatmul.mubr.bf16.gmra.mrb[8].mxu1 %v12316_v35  ;;  %v24357_v35 = vld [vmem:[#allocation2 + $0xc0] ss:$0 sps:$4 sm:$0x11]  }
 0x859   :  { %21709 = vmatprep.mubr.msk.bf16.mxu1 %vm24672_vm0, %v29087_v37  ;;  %21774 = vmatpush3.bf16.msra.mxu1 %v24346_v16  ;;  %v12342_v16 = vsel %vm2321_vm3, %v12339_v62, %v12341_v50  ;;  %v12343_v46 = vrot.slane %v24357_v35, 1 }
 0x85a   :  { %21775 = vmatprep.subr.bf16.mxu1 %v29087_v37 }
 0x85b   :  { %v12344_v57 = vsel %vm2321_vm3, %v12341_v50, %v12343_v46 }
 0x85d   :  { %21776 = vmatpush3.bf16.msra.mxu1 %v24349_v14 }
 0x85e   :  { %21777 = vmatprep.subr.bf16.mxu1 %v29087_v37 }
 0x860   :  { %21710 = vmatmul.mubr.bf16.gmra.mrb[12].mxu1 %v12318_v9 }
 0x861   :  { %21713 = vmatprep.mubr.msk.bf16.mxu1 %vm24672_vm0, %v29087_v37  ;;  %21778 = vmatpush3.bf16.msra.mxu1 %v24352_v22 }
 0x862   :  { %21779 = vmatprep.subr.bf16.mxu1 %v29087_v37 }
 0x865   :  { %21780 = vmatpush3.bf16.msra.mxu1 %v24355_v34  ;;  %v24358_v34 = vld [vmem:[#allocation2 + $0x38] sm:$0xfc]  }
 0x866   :  { %21849 = vmatprep.subr.bf16.mxu1 %v29087_v37  ;;  %v12821_v51 = vrot.slane %v24358_v34, 2 }
 0x868   :  { %21714 = vmatmul.mubr.bf16.gmra.mrb[16].mxu1 %v12320_v45 }
 0x869   :  { %21717 = vmatprep.mubr.msk.bf16.mxu1 %vm24672_vm0, %v29087_v37 }
 0x870   :  { %21718 = vmatmul.mubr.bf16.gmra.mrb[20].mxu1 %v12322_v63  ;;  %v12822_v63 = vrot.slane %v24359_v61, 2 }
 0x871   :  { %21721 = vmatprep.mubr.msk.bf16.mxu1 %vm24672_vm0, %v29087_v37 }
 0x872   :  { %v12823_v28 = vsel %vm2833_vm4, %v12821_v51, %v12822_v63 }
 0x878   :  { %21722 = vmatmul.mubr.bf16.gmra.mrb[24].mxu1 %v12324_v29 }
 0x879   :  { %21725 = vmatprep.mubr.msk.bf16.mxu1 %vm24672_vm0, %v29087_v37 }
 0x880   :  { %21726 = vmatmul.mubr.bf16.gmra.mrb[28].mxu1 %v12326_v1 }
 0x881   :  { %21729 = vmatprep.mubr.msk.bf16.mxu1 %vm24672_vm0, %v29087_v37 }
 0x888   :  { %21730 = vmatmul.mubr.bf16.gmra.mrb[32].mxu1 %v12328_v25  ;;  %v12824_v25 = vrot.slane %v24361_v53, 2 }
 0x889   :  { %21733 = vmatprep.mubr.msk.bf16.mxu1 %vm24672_vm0, %v29087_v37 }
 0x88a   :  { %v12825_v32 = vsel %vm2833_vm4, %v12822_v63, %v12824_v25  ;;  %v24371_v63 = vld [vmem:[#allocation2 + $0x80] sm:$0xff]  }
 0x890   :  { %21734 = vmatmul.mubr.bf16.gmra.mrb[36].mxu1 %v12330_v47 }
 0x891   :  { %21737 = vmatprep.mubr.msk.bf16.mxu1 %vm24672_vm0, %v29087_v37 }
 0x898   :  { %21738 = vmatmul.mubr.bf16.gmra.mrb[40].mxu1 %v12332_v54 }
 0x899   :  { %21741 = vmatprep.mubr.msk.bf16.mxu1 %vm24672_vm0, %v29087_v37 }
 0x89d   :  { %v6468_v24 = vpop.f32.mrb[100].mxu0 }
 0x89e   :  { %22077 = vst [vmem:[#allocation3] sm:$0xff] %v6468_v24  ;;  %v20691_v33 = vpop.f32.mrb[101].mxu0  ;;  %v12826_v24 = vrot.slane %v24362_v31, 2  ;;  %v24374_v31 = vld [vmem:[#allocation2 + $0x90] sm:$0xff]  }
 0x89f   :  { %v6471_v3 = vpop.f32.mrb[102].mxu0  ;;  %v24372_v33 = vld [vmem:[%s28966_s5 + $0x5e0] sm:$0xff]  }
 0x8a0   :  { %21742 = vmatmul.mubr.bf16.gmra.mrb[44].mxu1 %v12334_v21  ;;  %22080 = vst [vmem:[#allocation3 + $0x8] sm:$0xff] %v6471_v3  ;;  %v20692_v60 = vpop.f32.mrb[103].mxu0  ;;  %v12827_v3 = vsel %vm2833_vm4, %v12824_v25, %v12826_v24 }
 0x8a1   :  { %21745 = vmatprep.mubr.msk.bf16.mxu1 %vm24672_vm0, %v29087_v37  ;;  %v24364_v60 = vld [vmem:[#allocation2 + $0x58] sm:$0xff]  }
 0x8a5   :  { %v6476_v38 = vpop.f32.mrb[104].mxu0 }
 0x8a6   :  { %22083 = vst [vmem:[#allocation3 + $0x10] sm:$0xff] %v6476_v38  ;;  %v20695_v6 = vpop.f32.mrb[105].mxu0 }
 0x8a7   :  { %v6479_v11 = vpop.f32.mrb[106].mxu0  ;;  %v24375_v6 = vld [vmem:[%s28966_s5 + $0x5e8] sm:$0xff]  }
 0x8a8   :  { %21746 = vmatmul.mubr.bf16.gmra.mrb[48].mxu1 %v12336_v49  ;;  %22086 = vst [vmem:[#allocation3 + $0x18] sm:$0xff] %v6479_v11  ;;  %v20696_v15 = vpop.f32.mrb[107].mxu0  ;;  %v12828_v49 = vrot.slane %v24364_v60, 2 }
 0x8a9   :  { %21749 = vmatprep.mubr.msk.bf16.mxu1 %vm24672_vm0, %v29087_v37 }
 0x8aa   :  { %v12829_v30 = vsel %vm2833_vm4, %v12826_v24, %v12828_v49 }
 0x8ad   :  { %v6484_v36 = vpop.f32.mrb[108].mxu0 }
 0x8ae   :  { %22089 = vst [vmem:[#allocation3 + $0x20] sm:$0xff] %v6484_v36  ;;  %v20699_v5 = vpop.f32.mrb[109].mxu0  ;;  %v24365_v36 = vld [vmem:[#allocation2 + $0x60] sm:$0xff]  }
 0x8af   :  { %v6487_v20 = vpop.f32.mrb[110].mxu0 }
 0x8b0   :  { %21750 = vmatmul.mubr.bf16.gmra.mrb[52].mxu1 %v12338_v7  ;;  %22092 = vst [vmem:[#allocation3 + $0x28] sm:$0xff] %v6487_v20  ;;  %v20700_v55 = vpop.f32.mrb[111].mxu0  ;;  %v12830_v20 = vrot.slane %v24365_v36, 2  ;;  %v24380_v36 = vld [vmem:[#allocation2 + $0xb0] sm:$0xff]  }
 0x8b1   :  { %21753 = vmatprep.mubr.msk.bf16.mxu1 %vm24672_vm0, %v29087_v37 }
 0x8b5   :  { %v6492_v58 = vpop.f32.mrb[112].mxu0 }
 0x8b6   :  { %22095 = vst [vmem:[#allocation3 + $0x30] sm:$0xff] %v6492_v58  ;;  %v20703_v4 = vpop.f32.mrb[113].mxu0  ;;  %v12831_v58 = vsel %vm2833_vm4, %v12828_v49, %v12830_v20 }
 0x8b7   :  { %v6495_v26 = vpop.f32.mrb[114].mxu0  ;;  %v24367_v4 = vld [vmem:[#allocation2 + $0x68] sm:$0xff]  }
 0x8b8   :  { %21754 = vmatmul.mubr.bf16.gmra.mrb[56].mxu1 %v12340_v23  ;;  %22098 = vst [vmem:[#allocation3 + $0x38] sm:$0xff] %v6495_v26  ;;  %v20704_v41 = vpop.f32.mrb[115].mxu0  ;;  %v12832_v26 = vrot.slane %v24367_v4, 2 }
 0x8b9   :  { %21757 = vmatprep.mubr.msk.bf16.mxu1 %vm24672_vm0, %v29087_v37 }
 0x8bd   :  { %v6500_v8 = vpop.f32.mrb[116].mxu0 }
 0x8be   :  { %22101 = vst [vmem:[#allocation3 + $0x40] sm:$0xff] %v6500_v8  ;;  %v20707_v2 = vpop.f32.mrb[117].mxu0  ;;  %v12833_v8 = vsel %vm2833_vm4, %v12830_v20, %v12832_v26 }
 0x8bf   :  { %v6503_v59 = vpop.f32.mrb[118].mxu0  ;;  %v24368_v2 = vld [vmem:[#allocation2 + $0x70] sm:$0xff]  }
 0x8c0   :  { %21758 = vmatmul.mubr.bf16.gmra.mrb[60].mxu1 %v12342_v16  ;;  %22104 = vst [vmem:[#allocation3 + $0x48] sm:$0xff] %v6503_v59  ;;  %v20708_v14 = vpop.f32.mrb[119].mxu0  ;;  %v12834_v59 = vrot.slane %v24368_v2, 2  ;;  %v24387_v2 = vld [vmem:[#allocation2 + $0x48] sm:$0xff]  }
 0x8c1   :  { %21761 = vmatprep.mubr.msk.bf16.mxu1 %vm24672_vm0, %v29087_v37 }
 0x8c5   :  { %v6508_v22 = vpop.f32.mrb[120].mxu0 }
 0x8c6   :  { %22107 = vst [vmem:[#allocation3 + $0x50] sm:$0xff] %v6508_v22  ;;  %v20711_v9 = vpop.f32.mrb[121].mxu0  ;;  %v12835_v22 = vsel %vm2833_vm4, %v12832_v26, %v12834_v59 }
 0x8c7   :  { %v6511_v45 = vpop.f32.mrb[122].mxu0  ;;  %v24370_v9 = vld [vmem:[#allocation2 + $0x78] sm:$0xff]  }
 0x8c8   :  { %21762 = vmatmul.mubr.bf16.gmra.mrb[64].mxu1 %v12344_v57  ;;  %22110 = vst [vmem:[#allocation3 + $0x58] sm:$0xff] %v6511_v45  ;;  %v20712_v42 = vpop.f32.mrb[123].mxu0  ;;  %v12836_v61 = vrot.slane %v24370_v9, 2 }
 0x8c9   :  { %21781 = vmatprep.mubr.msk.bf16.mxu1 %vm24672_vm0, %v29087_v37 }
 0x8ca   :  { %v12837_v51 = vsel %vm2833_vm4, %v12834_v59, %v12836_v61  ;;  %v24392_v59 = vld [vmem:[%s28966_s5 + $0x610] sm:$0xff]  }
 0x8cd   :  { %v6516_v17 = vpop.f32.mrb[124].mxu0 }
 0x8ce   :  { %22113 = vst [vmem:[#allocation3 + $0x60] sm:$0xff] %v6516_v17  ;;  %v20715_v29 = vpop.f32.mrb[125].mxu0 }
 0x8cf   :  { %v6519_v1 = vpop.f32.mrb[126].mxu0  ;;  %v12838_v29 = vrot.slane %v24371_v63, 2 }
 0x8d0   :  { %21782 = vmatmul.mubr.bf16.vlgmr.msra.gmra.mrb[0].mxu1 %v12823_v28  ;;  %22116 = vst [vmem:[#allocation3 + $0x68] sm:$0xff] %v6519_v1  ;;  %v20716_v48 = vpop.f32.mrb[127].mxu0 }
 0x8d1   :  { %21850 = vmatpush3.bf16.msra.mxu1 %v24360_v13  ;;  %21785 = vmatprep.mubr.msk.bf16.mxu1 %vm24672_vm0, %v29087_v37  ;;  %v12839_v1 = vsel %vm2833_vm4, %v12836_v61, %v12838_v29  ;;  %v24373_v48 = vld [vmem:[#allocation2 + $0x88] sm:$0xff]   ;;  %v24390_v61 = vld [vmem:[#allocation2 + $0x58] sm:$0xff]  }
 0x8d2   :  { %21851 = vmatprep.subr.bf16.mxu1 %v29087_v37 }
 0x8d5   :  { %21852 = vmatpush3.bf16.msra.mxu1 %v24363_v10  ;;  %v6524_v52 = vpop.f32.mrb[128].mxu0 }
 0x8d6   :  { %21853 = vmatprep.subr.bf16.mxu1 %v29087_v37  ;;  %22119 = vst [vmem:[#allocation3 + $0x70] sm:$0xff] %v6524_v52  ;;  %v20719_v47 = vpop.f32.mrb[129].mxu0 }
 0x8d7   :  { %v6527_v54 = vpop.f32.mrb[130].mxu0 }
 0x8d8   :  { %21786 = vmatmul.mubr.bf16.gmra.mrb[4].mxu1 %v12825_v32  ;;  %22122 = vst [vmem:[#allocation3 + $0x78] sm:$0xff] %v6527_v54  ;;  %v20720_v19 = vpop.f32.mrb[131].mxu0 }
 0x8d9   :  { %21789 = vmatprep.mubr.msk.bf16.mxu1 %vm24672_vm0, %v29087_v37  ;;  %21854 = vmatpush3.bf16.msra.mxu1 %v24366_v39  ;;  %v12840_v39 = vrot.slane %v24373_v48, 2 }
 0x8da   :  { %21855 = vmatprep.subr.bf16.mxu1 %v29087_v37 }
 0x8db   :  { %v12841_v32 = vsel %vm2833_vm4, %v12838_v29, %v12840_v39 }
 0x8dd   :  { %21856 = vmatpush3.bf16.msra.mxu1 %v24369_v18  ;;  %v6532_v21 = vpop.f32.mrb[132].mxu0  ;;  %v12842_v18 = vrot.slane %v24374_v31, 2  ;;  %v24397_v31 = vld [vmem:[#allocation2 + $0x80] sm:$0xff]  }
 0x8de   :  { %21857 = vmatprep.subr.bf16.mxu1 %v29087_v37  ;;  %22125 = vst [vmem:[#allocation3 + $0x80] sm:$0xff] %v6532_v21  ;;  %v20723_v40 = vpop.f32.mrb[133].mxu0 }
 0x8df   :  { %v6535_v44 = vpop.f32.mrb[134].mxu0  ;;  %v12843_v21 = vsel %vm2833_vm4, %v12840_v39, %v12842_v18  ;;  %v24376_v40 = vld [vmem:[#allocation2 + $0x98] sm:$0xff]  }
 0x8e0   :  { %21790 = vmatmul.mubr.bf16.gmra.mrb[8].mxu1 %v12827_v3  ;;  %22128 = vst [vmem:[#allocation3 + $0x88] sm:$0xff] %v6535_v44  ;;  %v20724_v38 = vpop.f32.mrb[135].mxu0  ;;  %v12844_v44 = vrot.slane %v24376_v40, 2 }
 0x8e1   :  { %21793 = vmatprep.mubr.msk.bf16.mxu1 %vm24672_vm0, %v29087_v37  ;;  %21858 = vmatpush3.bf16.msra.mxu1 %v24372_v33 }
 0x8e2   :  { %21859 = vmatprep.subr.bf16.mxu1 %v29087_v37  ;;  %v12845_v38 = vsel %vm2833_vm4, %v12842_v18, %v12844_v44  ;;  %v24399_v18 = vld [vmem:[#allocation2 + $0x88] sm:$0xff]  }
 0x8e5   :  { %21860 = vmatpush3.bf16.msra.mxu1 %v24375_v6  ;;  %v6540_v11 = vpop.f32.mrb[136].mxu0  ;;  %v24377_v6 = vld [vmem:[#allocation2 + $0xa0] sm:$0xff]  }
 0x8e6   :  { %21861 = vmatprep.subr.bf16.mxu1 %v29087_v37  ;;  %22131 = vst [vmem:[#allocation3 + $0x90] sm:$0xff] %v6540_v11  ;;  %v20727_v15 = vpop.f32.mrb[137].mxu0  ;;  %v12846_v49 = vrot.slane %v24377_v6, 2  ;;  %v24379_v11 = vld [vmem:[#allocation2 + $0xa8] sm:$0xff]   ;;  %v24403_v6 = vld [vmem:[#allocation2 + $0xa0] sm:$0xff]  }
 0x8e7   :  { %v6543_v5 = vpop.f32.mrb[138].mxu0  ;;  %v12848_v15 = vrot.slane %v24379_v11, 2 }
 0x8e8   :  { %21794 = vmatmul.mubr.bf16.gmra.mrb[12].mxu1 %v12829_v30  ;;  %22134 = vst [vmem:[#allocation3 + $0x98] sm:$0xff] %v6543_v5  ;;  %v20728_v7 = vpop.f32.mrb[139].mxu0  ;;  %v12850_v5 = vrot.slane %v24380_v36, 2  ;;  %v14210_v36 = vld [vmem:[%s28962_s1 + $0x8] sm:$0xff] }
 0x8e9   :  { %21797 = vmatprep.mubr.msk.bf16.mxu1 %vm24672_vm0, %v29087_v37  ;;  %21862 = vmatpush3.bf16.msra.mxu1 %v24378_v0  ;;  %v12847_v0 = vsel %vm2833_vm4, %v12844_v44, %v12846_v49  ;;  %v12849_v30 = vsel %vm2833_vm4, %v12846_v49, %v12848_v15  ;;  %v14209_v49 = vld [vmem:[%s28962_s1] sm:$0xff] }
 0x8ea   :  { %21863 = vmatprep.subr.bf16.mxu1 %v29087_v37  ;;  %v12851_v7 = vsel %vm2833_vm4, %v12848_v15, %v12850_v5  ;;  %14245 = vperm.xlu1 %23750, %v14209_v49   ;;  %v24405_v15 = vld [vmem:[#allocation2 + $0xa8] sm:$0xff]  }
 0x8eb   :  { %14250 = vperm.xlu0 %23751, %v14210_v36   ;;  %v24423_v49 = vld [vmem:[#allocation2 + $0xa4] sm:$0xff]  }
 0x8ec   :  { %v24428_v36 = vld [vmem:[%s28969_s8] sm:$0xff]  }
 0x8ed   :  { %21864 = vmatpush3.bf16.msra.mxu1 %v24381_v27  ;;  %v6548_v55 = vpop.f32.mrb[140].mxu0  ;;  %v24382_v27 = vld [vmem:[#allocation2 + $0xb8] sm:$0xff]  }
 0x8ee   :  { %21933 = vmatprep.subr.bf16.mxu1 %v29087_v37  ;;  %22137 = vst [vmem:[#allocation3 + $0xa0] sm:$0xff] %v6548_v55  ;;  %v20731_v62 = vpop.f32.mrb[141].mxu0  ;;  %v12852_v20 = vrot.slane %v24382_v27, 2 }
 0x8ef   :  { %v6551_v23 = vpop.f32.mrb[142].mxu0  ;;  %v24383_v62 = vld [vmem:[#allocation2 + $0xc0] ss:$0 sps:$4 sm:$0x33]  }
 0x8f0   :  { %21798 = vmatmul.mubr.bf16.gmra.mrb[16].mxu1 %v12831_v58  ;;  %22140 = vst [vmem:[#allocation3 + $0xa8] sm:$0xff] %v6551_v23  ;;  %v20732_v43 = vpop.f32.mrb[143].mxu0  ;;  %v12853_v55 = vsel %vm2833_vm4, %v12850_v5, %v12852_v20  ;;  %v12854_v58 = vrot.slane %v24383_v62, 2  ;;  %v24384_v23 = vld [vmem:[#allocation2 + $0x38] sm:$0xf8]   ;;  %v14213_v62 = vld [vmem:[%s28962_s1 + $0x20] sm:$0xff] }
 0x8f1   :  { %21801 = vmatprep.mubr.msk.bf16.mxu1 %vm24672_vm0, %v29087_v37  ;;  %v24385_v43 = vld [vmem:[#allocation2 + $0x40] sm:$0xff]   ;;  %v13332_v26 = vrot.slane %v24384_v23, 3  ;;  %v14212_v5 = vld [vmem:[%s28962_s1 + $0x18] sm:$0xff]  ;;  %14265 = vperm.xlu0 %23751, %v14213_v62  }
 0x8f2   :  { %v12855_v4 = vsel %vm2833_vm4, %v12852_v20, %v12854_v58  ;;  %v24406_v20 = vld [vmem:[#allocation2 + $0xb0] sm:$0xff]   ;;  %v14216_v58 = vld [vmem:[%s28962_s1 + $0x38] sm:$0xff] }
 0x8f3   :  { %v24434_v62 = vld [vmem:[%s28969_s8 + $0x18] sm:$0xff]  }
 0x8f5   :  { %v6556_v41 = vpop.f32.mrb[144].mxu0 }
 0x8f6   :  { %22143 = vst [vmem:[#allocation3 + $0xb0] sm:$0xff] %v6556_v41  ;;  %v20735_v50 = vpop.f32.mrb[145].mxu0  ;;  %v13333_v41 = vrot.slane %v24385_v43, 3  ;;  %v24408_v43 = vld [vmem:[#allocation2 + $0xb8] sm:$0xff]  }
 0x8f7   :  { %v6559_v16 = vpop.f32.mrb[146].mxu0  ;;  %v24386_v50 = vld [vmem:[%s28966_s5 + $0x600] sm:$0xff]  }
 0x8f8   :  { %21802 = vmatmul.mubr.bf16.gmra.mrb[20].mxu1 %v12833_v8  ;;  %22146 = vst [vmem:[#allocation3 + $0xb8] sm:$0xff] %v6559_v16  ;;  %v20736_v35 = vpop.f32.mrb[147].mxu0  ;;  %v13334_v8 = vsel %vm3345_vm5, %v13332_v26, %v13333_v41  ;;  %v24389_v16 = vld [vmem:[%s28966_s5 + $0x608] sm:$0xff]  }
 0x8f9   :  { %21805 = vmatprep.mubr.msk.bf16.mxu1 %vm24672_vm0, %v29087_v37  ;;  %v13335_v35 = vrot.slane %v24387_v2, 3  ;;  %v14218_v26 = vld [vmem:[%s28962_s1 + $0x48] sm:$0xff]  ;;  %v14217_v2 = vld [vmem:[%s28962_s1 + $0x40] sm:$0xff] }
 0x8fd   :  { %v6564_v14 = vpop.f32.mrb[148].mxu0 }
 0x8fe   :  { %22149 = vst [vmem:[#allocation3 + $0xc0] sm:$0xff] %v6564_v14  ;;  %v20739_v46 = vpop.f32.mrb[149].mxu0  ;;  %v13336_v14 = vsel %vm3345_vm5, %v13333_v41, %v13335_v35  ;;  %v14215_v41 = vld [vmem:[%s28962_s1 + $0x30] sm:$0xff] }
 0x8ff   :  { %v6567_v57 = vpop.f32.mrb[150].mxu0  ;;  %v24388_v46 = vld [vmem:[#allocation2 + $0x50] sm:$0xff]   ;;  %14275 = vperm.xlu0 %23751, %v14215_v41   ;;  %v24435_v41 = vld [vmem:[%s28969_s8 + $0x60] sm:$0xff]  }
 0x900   :  { %21806 = vmatmul.mubr.bf16.gmra.mrb[24].mxu1 %v12835_v22  ;;  %22152 = vst [vmem:[#allocation3 + $0xc8] sm:$0xff] %v6567_v57  ;;  %v20740_v34 = vpop.f32.mrb[151].mxu0  ;;  %v24395_v22 = vld [vmem:[%s28966_s5 + $0x618] sm:$0xff]   ;;  %v13337_v9 = vrot.slane %v24388_v46, 3  ;;  %v24398_v57 = vld [vmem:[%s28966_s5 + $0x620] sm:$0xff]  }
 0x901   :  { %21809 = vmatprep.mubr.msk.bf16.mxu1 %vm24672_vm0, %v29087_v37  ;;  %v14224_v46 = vld [vmem:[%s28962_s1 + $0x78] sm:$0xff] }
 0x902   :  { %v13338_v34 = vsel %vm3345_vm5, %v13335_v35, %v13337_v9  ;;  %v24409_v35 = vld [vmem:[#allocation2 + $0xc0] ss:$0 sps:$4 sm:$0x77]  }
 0x903   :  { %14285 = vperm.xlu0 %23751, %v14217_v2   ;;  %v22081_v2 = vld [vmem:[#allocation3 + $0x8] sm:$0xff] }
 0x905   :  { %v6572_v45 = vpop.f32.mrb[152].mxu0 }
 0x906   :  { %22155 = vst [vmem:[#allocation3 + $0xd0] sm:$0xff] %v6572_v45  ;;  %v20743_v42 = vpop.f32.mrb[153].mxu0  ;;  %v24401_v45 = vld [vmem:[%s28966_s5 + $0x628] sm:$0xff]  }
 0x907   :  { %v6575_v13 = vpop.f32.mrb[154].mxu0  ;;  %v13339_v42 = vrot.slane %v24390_v61, 3  ;;  %v14223_v61 = vld [vmem:[%s28962_s1 + $0x70] sm:$0xff] }
 0x908   :  { %21810 = vmatmul.mubr.bf16.gmra.mrb[28].mxu1 %v12837_v51  ;;  %22158 = vst [vmem:[#allocation3 + $0xd8] sm:$0xff] %v6575_v13  ;;  %v20744_v17 = vpop.f32.mrb[155].mxu0  ;;  %v24404_v51 = vld [vmem:[%s28966_s5 + $0x630] sm:$0xff]   ;;  %v24391_v13 = vld [vmem:[#allocation2 + $0x60] sm:$0xff]  }
 0x909   :  { %21813 = vmatprep.mubr.msk.bf16.mxu1 %vm24672_vm0, %v29087_v37  ;;  %v13340_v63 = vsel %vm3345_vm5, %v13337_v9, %v13339_v42  ;;  %v24407_v17 = vld [vmem:[%s28966_s5 + $0x638] sm:$0xff]   ;;  %v13341_v29 = vrot.slane %v24391_v13, 3  ;;  %v14221_v9 = vld [vmem:[%s28962_s1 + $0x60] sm:$0xff]  ;;  %v14227_v13 = vld [vmem:[%s28962_s1 + $0x90] sm:$0xff] }
 0x90d   :  { %v6580_v28 = vpop.f32.mrb[156].mxu0 }
 0x90e   :  { %22161 = vst [vmem:[#allocation3 + $0xe0] sm:$0xff] %v6580_v28  ;;  %v20747_v53 = vpop.f32.mrb[157].mxu0  ;;  %v13342_v28 = vsel %vm3345_vm5, %v13339_v42, %v13341_v29  ;;  %v14225_v42 = vld [vmem:[%s28962_s1 + $0x80] sm:$0xff] }
 0x90f   :  { %v6583_v10 = vpop.f32.mrb[158].mxu0  ;;  %v24393_v53 = vld [vmem:[#allocation2 + $0x68] sm:$0xff]  }
 0x910   :  { %21814 = vmatmul.mubr.bf16.gmra.mrb[32].mxu1 %v12839_v1  ;;  %22164 = vst [vmem:[#allocation3 + $0xe8] sm:$0xff] %v6583_v10  ;;  %v20748_v25 = vpop.f32.mrb[159].mxu0  ;;  %v13343_v1 = vrot.slane %v24393_v53, 3  ;;  %v24394_v10 = vld [vmem:[#allocation2 + $0x70] sm:$0xff]   ;;  %v14234_v53 = vld [vmem:[%s28962_s1 + $0xc8] sm:$0xff] }
 0x911   :  { %21817 = vmatprep.mubr.msk.bf16.mxu1 %vm24672_vm0, %v29087_v37  ;;  %v13345_v25 = vrot.slane %v24394_v10, 3  ;;  %v14233_v10 = vld [vmem:[%s28962_s1 + $0xc0] sm:$0xff] }
 0x912   :  { %v13344_v48 = vsel %vm3345_vm5, %v13341_v29, %v13343_v1  ;;  %v14229_v29 = vld [vmem:[%s28962_s1 + $0xa0] sm:$0xff] }
 0x913   :  { %v13346_v39 = vsel %vm3345_vm5, %v13343_v1, %v13345_v25  ;;  %v14231_v1 = vld [vmem:[%s28962_s1 + $0xb0] sm:$0xff] }
 0x915   :  { %v6588_v52 = vpop.f32.mrb[160].mxu0 }
 0x916   :  { %22167 = vst [vmem:[#allocation3 + $0xf0] sm:$0xff] %v6588_v52  ;;  %v20751_v47 = vpop.f32.mrb[161].mxu0  ;;  %v24396_v52 = vld [vmem:[#allocation2 + $0x78] sm:$0xff]  }
 0x917   :  { %v6591_v54 = vpop.f32.mrb[162].mxu0  ;;  %v13347_v47 = vrot.slane %v24396_v52, 3  ;;  %v14235_v52 = vld [vmem:[%s28962_s1 + $0xd0] sm:$0xff] }
 0x918   :  { %21818 = vmatmul.mubr.bf16.gmra.mrb[36].mxu1 %v12841_v32  ;;  %22170 = vst [vmem:[#allocation3 + $0xf8] sm:$0xff] %v6591_v54  ;;  %v20752_v19 = vpop.f32.mrb[163].mxu0  ;;  %v13349_v54 = vrot.slane %v24397_v31, 3  ;;  %v24413_v31 = vld [vmem:[#allocation2 + $0x54] sm:$0xff]  }
 0x919   :  { %21821 = vmatprep.mubr.msk.bf16.mxu1 %vm24672_vm0, %v29087_v37  ;;  %v13348_v32 = vsel %vm3345_vm5, %v13345_v25, %v13347_v47  ;;  %v24412_v25 = vld [vmem:[#allocation2 + $0x4c] sm:$0xff]  }
 0x91a   :  { %v13350_v19 = vsel %vm3345_vm5, %v13347_v47, %v13349_v54  ;;  %v14240_v47 = vld [vmem:[%s28962_s1 + $0xf8] sm:$0xff] }
 0x91d   :  { %v6596_v24 = vpop.f32.mrb[164].mxu0 }
 0x91e   :  { %22173 = vst [vmem:[#allocation3 + $0x100] sm:$0xff] %v6596_v24  ;;  %v20755_v33 = vpop.f32.mrb[165].mxu0  ;;  %v13351_v24 = vrot.slane %v24399_v18, 3  ;;  %v14241_v18 = vld [vmem:[%s28962_s1 + $0x100] sm:$0xff] }
 0x91f   :  { %v6599_v3 = vpop.f32.mrb[166].mxu0 }
 0x920   :  { %21822 = vmatmul.mubr.bf16.gmra.mrb[40].mxu1 %v12843_v21  ;;  %22176 = vst [vmem:[#allocation3 + $0x108] sm:$0xff] %v6599_v3  ;;  %v20756_v60 = vpop.f32.mrb[167].mxu0  ;;  %v13352_v33 = vsel %vm3345_vm5, %v13349_v54, %v13351_v24  ;;  %v24400_v21 = vld [vmem:[#allocation2 + $0x90] sm:$0xff]   ;;  %v14242_v54 = vld [vmem:[%s28962_s1 + $0x108] sm:$0xff] }
 0x921   :  { %21825 = vmatprep.mubr.msk.bf16.mxu1 %vm24672_vm0, %v29087_v37  ;;  %v13353_v40 = vrot.slane %v24400_v21, 3  ;;  %v24402_v60 = vld [vmem:[#allocation2 + $0x98] sm:$0xff]   ;;  %v24416_v21 = vld [vmem:[#allocation2 + $0x6c] sm:$0xff]  }
 0x922   :  { %v13355_v44 = vrot.slane %v24402_v60, 3  ;;  %v24419_v60 = vld [vmem:[#allocation2 + $0x84] sm:$0xff]  }
 0x923   :  { %v13354_v3 = vsel %vm3345_vm5, %v13351_v24, %v13353_v40  ;;  %v24414_v24 = vld [vmem:[#allocation2 + $0x5c] sm:$0xff]  }
 0x928   :  { %21826 = vmatmul.mubr.bf16.gmra.mrb[44].mxu1 %v12845_v38  ;;  %v13356_v38 = vsel %vm3345_vm5, %v13353_v40, %v13355_v44  ;;  %v24417_v40 = vld [vmem:[#allocation2 + $0x74] sm:$0xff]  }
 0x929   :  { %21829 = vmatprep.mubr.msk.bf16.mxu1 %vm24672_vm0, %v29087_v37 }
 0x930   :  { %21830 = vmatmul.mubr.bf16.gmra.mrb[48].mxu1 %v12847_v0  ;;  %v13357_v0 = vrot.slane %v24403_v6, 3  ;;  %v24422_v6 = vld [vmem:[#allocation2 + $0x9c] sm:$0xff]  }
 0x931   :  { %21833 = vmatprep.mubr.msk.bf16.mxu1 %vm24672_vm0, %v29087_v37 }
 0x932   :  { %v13358_v11 = vsel %vm3345_vm5, %v13355_v44, %v13357_v0  ;;  %v24420_v44 = vld [vmem:[#allocation2 + $0x8c] sm:$0xff]  }
 0x938   :  { %21834 = vmatmul.mubr.bf16.gmra.mrb[52].mxu1 %v12849_v30  ;;  %v14211_v30 = vld [vmem:[%s28962_s1 + $0x10] sm:$0xff] }
 0x939   :  { %21837 = vmatprep.mubr.msk.bf16.mxu1 %vm24672_vm0, %v29087_v37  ;;  %14255 = vperm.xlu1 %23750, %v14211_v30   ;;  %v24427_v30 = vld [vmem:[%s28969_s8 + $0x40] sm:$0xff]  }
 0x93a   :  { %19510 = vmatprep.subr.bf16.mxu0 %v24427_v30 }
 0x93b   :  { %19511 = vmatpush3.bf16.msra.mxu0 %v24428_v36  ;;  %v22096_v36 = vld [vmem:[#allocation3 + $0x30] sm:$0xff] }
 0x93d   :  { %14260 = vperm.xlu1 %23750, %v14212_v5   ;;  %v24429_v5 = vld [vmem:[%s28969_s8 + $0x48] sm:$0xff]  }
 0x93e   :  { %19512 = vmatprep.subr.bf16.mxu0 %v24429_v5 }
 0x940   :  { %21838 = vmatmul.mubr.bf16.gmra.mrb[56].mxu1 %v12851_v7  ;;  %v13359_v7 = vrot.slane %v24405_v15, 3  ;;  %v24426_v15 = vld [vmem:[#allocation2 + $0xbc] sm:$0xff]  }
 0x941   :  { %21841 = vmatprep.mubr.msk.bf16.mxu1 %vm24672_vm0, %v29087_v37 }
 0x942   :  { %v13360_v27 = vsel %vm3345_vm5, %v13357_v0, %v13359_v7  ;;  %v24424_v0 = vld [vmem:[#allocation2 + $0xac] sm:$0xff]  }
 0x948   :  { %21842 = vmatmul.mubr.bf16.gmra.mrb[60].mxu1 %v12853_v55  ;;  %v14214_v55 = vld [vmem:[%s28962_s1 + $0x28] sm:$0xff] }
 0x949   :  { %21845 = vmatprep.mubr.msk.bf16.mxu1 %vm24672_vm0, %v29087_v37  ;;  %14270 = vperm.xlu1 %23750, %v14214_v55   ;;  %v24433_v55 = vld [vmem:[%s28969_s8 + $0x58] sm:$0xff]  }
 0x94d   :  { %14280 = vperm.xlu1 %23750, %v14216_v58  }
 0x950   :  { %21846 = vmatmul.mubr.bf16.gmra.mrb[64].mxu1 %v12855_v4  ;;  %v13361_v4 = vrot.slane %v24406_v20, 3  ;;  %v24432_v20 = vld [vmem:[%s28969_s8 + $0x10] sm:$0xff]  }
 0x951   :  { %21865 = vmatprep.mubr.msk.bf16.mxu1 %vm24672_vm0, %v29087_v37  ;;  %14290 = vperm.xlu1 %23750, %v14218_v26  }
 0x952   :  { %v13362_v23 = vsel %vm3345_vm5, %v13359_v7, %v13361_v4  ;;  %v24430_v7 = vld [vmem:[%s28969_s8 + $0x8] sm:$0xff]  }
 0x953   :  { %19513 = vmatpush3.bf16.msra.mxu0 %v24430_v7 }
 0x958   :  { %21866 = vmatmul.mubr.bf16.vlgmr.msra.gmra.mrb[0].mxu1 %v13334_v8  ;;  %v13363_v8 = vrot.slane %v24408_v43, 3 }
 0x959   :  { %21934 = vmatpush3.bf16.msra.mxu1 %v24386_v50  ;;  %21869 = vmatprep.mubr.msk.bf16.mxu1 %vm24672_vm0, %v29087_v37  ;;  %v14220_v50 = vld [vmem:[%s28962_s1 + $0x58] sm:$0xff] }
 0x95a   :  { %21935 = vmatprep.subr.bf16.mxu1 %v29087_v37  ;;  %14300 = vperm.xlu1 %23750, %v14220_v50   ;;  %v24436_v50 = vld [vmem:[%s28969_s8 + $0x20] sm:$0xff]  }
 0x95d   :  { %21936 = vmatpush3.bf16.msra.mxu1 %v24389_v16  ;;  %v13364_v16 = vsel %vm3345_vm5, %v13361_v4, %v13363_v8  ;;  %v22078_v4 = vld [vmem:[#allocation3] sm:$0xff] }
 0x95e   :  { %21937 = vmatprep.subr.bf16.mxu1 %v29087_v37 }
 0x960   :  { %21870 = vmatmul.mubr.bf16.gmra.mrb[4].mxu1 %v13336_v14  ;;  %v14219_v14 = vld [vmem:[%s28962_s1 + $0x50] sm:$0xff] }
 0x961   :  { %21873 = vmatprep.mubr.msk.bf16.mxu1 %vm24672_vm0, %v29087_v37  ;;  %21938 = vmatpush3.bf16.msra.mxu1 %v24392_v59  ;;  %v14222_v59 = vld [vmem:[%s28962_s1 + $0x68] sm:$0xff] }
 0x962   :  { %21939 = vmatprep.subr.bf16.mxu1 %v29087_v37  ;;  %14310 = vperm.xlu1 %23750, %v14222_v59  }
 0x963   :  { %14295 = vperm.xlu0 %23751, %v14219_v14  }
 0x965   :  { %21940 = vmatpush3.bf16.msra.mxu1 %v24395_v22  ;;  %v13365_v22 = vrot.slane %v24409_v35, 3 }
 0x966   :  { %21941 = vmatprep.subr.bf16.mxu1 %v29087_v37  ;;  %14320 = vperm.xlu1 %23750, %v14224_v46  }
 0x967   :  { %14305 = vperm.xlu0 %23751, %v14221_v9  }
 0x968   :  { %21874 = vmatmul.mubr.bf16.gmra.mrb[8].mxu1 %v13338_v34  ;;  %v14226_v34 = vld [vmem:[%s28962_s1 + $0x88] sm:$0xff] }
 0x969   :  { %21877 = vmatprep.mubr.msk.bf16.mxu1 %vm24672_vm0, %v29087_v37  ;;  %21942 = vmatpush3.bf16.msra.mxu1 %v24398_v57  ;;  %v13366_v57 = vsel %vm3345_vm5, %v13363_v8, %v13365_v22 }
 0x96a   :  { %21943 = vmatprep.subr.bf16.mxu1 %v29087_v37  ;;  %14330 = vperm.xlu1 %23750, %v14226_v34  }
 0x96b   :  { %14315 = vperm.xlu0 %23751, %v14223_v61  }
 0x96d   :  { %21944 = vmatpush3.bf16.msra.mxu1 %v24401_v45  ;;  %v14228_v45 = vld [vmem:[%s28962_s1 + $0x98] sm:$0xff] }
 0x96e   :  { %21945 = vmatprep.subr.bf16.mxu1 %v29087_v37  ;;  %14340 = vperm.xlu1 %23750, %v14228_v45   ;;  %v22084_v45 = vld [vmem:[#allocation3 + $0x10] sm:$0xff] }
 0x96f   :  { %14325 = vperm.xlu0 %23751, %v14225_v42  }
 0x970   :  { %21878 = vmatmul.mubr.bf16.gmra.mrb[12].mxu1 %v13340_v63  ;;  %v14230_v63 = vld [vmem:[%s28962_s1 + $0xa8] sm:$0xff] }
 0x971   :  { %21881 = vmatprep.mubr.msk.bf16.mxu1 %vm24672_vm0, %v29087_v37  ;;  %21946 = vmatpush3.bf16.msra.mxu1 %v24404_v51  ;;  %v24410_v51 = vld [vmem:[#allocation2 + $0x3c] sm:$0xff]  }
 0x972   :  { %21947 = vmatprep.subr.bf16.mxu1 %v29087_v37  ;;  %14350 = vperm.xlu1 %23750, %v14230_v63  }
 0x973   :  { %14335 = vperm.xlu0 %23751, %v14227_v13  }
 0x975   :  { %21948 = vmatpush3.bf16.msra.mxu1 %v24407_v17  ;;  %v14232_v17 = vld [vmem:[%s28962_s1 + $0xb8] sm:$0xff] }
 0x976   :  { %14360 = vperm.xlu1 %23750, %v14232_v17   ;;  %v22087_v17 = vld [vmem:[#allocation3 + $0x18] sm:$0xff] }
 0x977   :  { %14345 = vperm.xlu0 %23751, %v14229_v29  }
 0x978   :  { %21882 = vmatmul.mubr.bf16.gmra.mrb[16].mxu1 %v13342_v28  ;;  %v24411_v28 = vld [vmem:[#allocation2 + $0x44] sm:$0xff]  }
 0x979   :  { %21885 = vmatprep.mubr.msk.bf16.mxu1 %vm24672_vm0, %v29087_v37 }
 0x97a   :  { %14370 = vperm.xlu1 %23750, %v14234_v53  }
 0x97b   :  { %14355 = vperm.xlu0 %23751, %v14231_v1  }
 0x97f   :  { %14365 = vperm.xlu0 %23751, %v14233_v10  }
 0x980   :  { %21886 = vmatmul.mubr.bf16.gmra.mrb[20].mxu1 %v13344_v48  ;;  %v14236_v48 = vld [vmem:[%s28962_s1 + $0xd8] sm:$0xff] }
 0x981   :  { %21889 = vmatprep.mubr.msk.bf16.mxu1 %vm24672_vm0, %v29087_v37  ;;  %14380 = vperm.xlu1 %23750, %v14236_v48  }
 0x983   :  { %14375 = vperm.xlu0 %23751, %v14235_v52  }
 0x988   :  { %21890 = vmatmul.mubr.bf16.gmra.mrb[24].mxu1 %v13346_v39  ;;  %v14238_v39 = vld [vmem:[%s28962_s1 + $0xe8] sm:$0xff] }
 0x989   :  { %21893 = vmatprep.mubr.msk.bf16.mxu1 %vm24672_vm0, %v29087_v37  ;;  %14390 = vperm.xlu1 %23750, %v14238_v39  }
 0x98d   :  { %14400 = vperm.xlu1 %23750, %v14240_v47  }
 0x990   :  { %21894 = vmatmul.mubr.bf16.gmra.mrb[28].mxu1 %v13348_v32  ;;  %v14237_v32 = vld [vmem:[%s28962_s1 + $0xe0] sm:$0xff] }
 0x991   :  { %21897 = vmatprep.mubr.msk.bf16.mxu1 %vm24672_vm0, %v29087_v37  ;;  %14385 = vperm.xlu0 %23751, %v14237_v32  }
 0x992   :  { %14410 = vperm.xlu1 %23750, %v14242_v54  }
 0x998   :  { %21898 = vmatmul.mubr.bf16.gmra.mrb[32].mxu1 %v13350_v19  ;;  %v14239_v19 = vld [vmem:[%s28962_s1 + $0xf0] sm:$0xff] }
 0x999   :  { %21901 = vmatprep.mubr.msk.bf16.mxu1 %vm24672_vm0, %v29087_v37  ;;  %14395 = vperm.xlu0 %23751, %v14239_v19  }
 0x99d   :  { %14405 = vperm.xlu0 %23751, %v14241_v18  }
 0x9a0   :  { %21902 = vmatmul.mubr.bf16.gmra.mrb[36].mxu1 %v13352_v33  ;;  %v24415_v33 = vld [vmem:[#allocation2 + $0x64] sm:$0xff]  }
 0x9a1   :  { %21905 = vmatprep.mubr.msk.bf16.mxu1 %vm24672_vm0, %v29087_v37 }
 0x9a8   :  { %21906 = vmatmul.mubr.bf16.gmra.mrb[40].mxu1 %v13354_v3  ;;  %v24418_v3 = vld [vmem:[#allocation2 + $0x7c] sm:$0xff]  }
 0x9a9   :  { %21909 = vmatprep.mubr.msk.bf16.mxu1 %vm24672_vm0, %v29087_v37 }
 0x9b0   :  { %21910 = vmatmul.mubr.bf16.gmra.mrb[44].mxu1 %v13356_v38  ;;  %v24421_v38 = vld [vmem:[#allocation2 + $0x94] sm:$0xff]  }
 0x9b1   :  { %21913 = vmatprep.mubr.msk.bf16.mxu1 %vm24672_vm0, %v29087_v37 }
 0x9b8   :  { %21914 = vmatmul.mubr.bf16.gmra.mrb[48].mxu1 %v13358_v11  ;;  %v24425_v11 = vld [vmem:[#allocation2 + $0xb4] sm:$0xff]  }
 0x9b9   :  { %21917 = vmatprep.mubr.msk.bf16.mxu1 %vm24672_vm0, %v29087_v37 }
 0x9c0   :  { %21918 = vmatmul.mubr.bf16.gmra.mrb[52].mxu1 %v13360_v27  ;;  %v24431_v27 = vld [vmem:[%s28969_s8 + $0x50] sm:$0xff]  }
 0x9c1   :  { %21921 = vmatprep.mubr.msk.bf16.mxu1 %vm24672_vm0, %v29087_v37  ;;  %19514 = vmatprep.subr.bf16.mxu0 %v24431_v27 }
 0x9c2   :  { %19515 = vmatpush3.bf16.msra.mxu0 %v24432_v20 }
 0x9c3   :  { %19516 = vmatprep.subr.bf16.mxu0 %v24433_v55 }
 0x9c6   :  { %19517 = vmatpush3.bf16.msra.mxu0 %v24434_v62  ;;  %v22099_v62 = vld [vmem:[#allocation3 + $0x38] sm:$0xff] }
 0x9c7   :  { %19518 = vmatprep.subr.bf16.mxu0 %v24435_v41 }
 0x9c8   :  { %21922 = vmatmul.mubr.bf16.gmra.mrb[56].mxu1 %v13362_v23  ;;  %v14246_v23 = vpop.permute.xlu1 %14245 }
 0x9c9   :  { %21925 = vmatprep.mubr.msk.bf16.mxu1 %vm24672_vm0, %v29087_v37 }
 0x9ca   :  { %19519 = vmatpush3.bf16.msra.mxu0 %v24436_v50 }
 0x9cc   :  { %v14256_v22 = vpop.permute.xlu1 %14255 }
 0x9d0   :  { %21926 = vmatmul.mubr.bf16.gmra.mrb[60].mxu1 %v13364_v16  ;;  %v14251_v16 = vpop.permute.xlu0 %14250  ;;  %v14261_v1 = vpop.permute.xlu1 %14260 }
 0x9d1   :  { %21929 = vmatprep.mubr.msk.bf16.mxu1 %vm24672_vm0, %v29087_v37 }
 0x9d8   :  { %21930 = vmatmul.mubr.bf16.gmra.mrb[64].mxu1 %v13366_v57 }
 0x9d9   :  { %21949 = vmatprep.mubr.msk.bf16.mxu1 %vm24672_vm0, %v29087_v37 }
 0x9e0   :  { %21950 = vmatmul.mubr.bf16.vlgmr.msra.gmra.mrb[0].mxu1 %v24410_v51 }
 0x9e1   :  { %21953 = vmatprep.mubr.msk.bf16.mxu1 %vm24672_vm0, %v29087_v37 }
 0x9e8   :  { %21954 = vmatmul.mubr.bf16.gmra.mrb[4].mxu1 %v24411_v28 }
 0x9e9   :  { %21957 = vmatprep.mubr.msk.bf16.mxu1 %vm24672_vm0, %v29087_v37 }
 0x9f0   :  { %21958 = vmatmul.mubr.bf16.gmra.mrb[8].mxu1 %v24412_v25 }
 0x9f1   :  { %21961 = vmatprep.mubr.msk.bf16.mxu1 %vm24672_vm0, %v29087_v37 }
 0x9f8   :  { %21962 = vmatmul.mubr.bf16.gmra.mrb[12].mxu1 %v24413_v31  ;;  %v22090_v31 = vld [vmem:[#allocation3 + $0x20] sm:$0xff] }
 0x9f9   :  { %21965 = vmatprep.mubr.msk.bf16.mxu1 %vm24672_vm0, %v29087_v37 }
 0xa00   :  { %21966 = vmatmul.mubr.bf16.gmra.mrb[16].mxu1 %v24414_v24 }
 0xa01   :  { %21969 = vmatprep.mubr.msk.bf16.mxu1 %vm24672_vm0, %v29087_v37 }
 0xa08   :  { %21970 = vmatmul.mubr.bf16.gmra.mrb[20].mxu1 %v24415_v33  ;;  %v22093_v33 = vld [vmem:[#allocation3 + $0x28] sm:$0xff] }
 0xa09   :  { %21973 = vmatprep.mubr.msk.bf16.mxu1 %vm24672_vm0, %v29087_v37 }
 0xa10   :  { %21974 = vmatmul.mubr.bf16.gmra.mrb[24].mxu1 %v24416_v21  ;;  %v14266_v21 = vpop.permute.xlu0 %14265 }
 0xa11   :  { %21977 = vmatprep.mubr.msk.bf16.mxu1 %vm24672_vm0, %v29087_v37 }
 0xa14   :  { %v14276_v20 = vpop.permute.xlu0 %14275 }
 0xa18   :  { %21978 = vmatmul.mubr.bf16.gmra.mrb[28].mxu1 %v24417_v40 }
 0xa19   :  { %21981 = vmatprep.mubr.msk.bf16.mxu1 %vm24672_vm0, %v29087_v37 }
 0xa20   :  { %21982 = vmatmul.mubr.bf16.gmra.mrb[32].mxu1 %v24418_v3 }
 0xa21   :  { %21985 = vmatprep.mubr.msk.bf16.mxu1 %vm24672_vm0, %v29087_v37 }
 0xa28   :  { %21986 = vmatmul.mubr.bf16.gmra.mrb[36].mxu1 %v24419_v60 }
 0xa29   :  { %21989 = vmatprep.mubr.msk.bf16.mxu1 %vm24672_vm0, %v29087_v37 }
 0xa30   :  { %21990 = vmatmul.mubr.bf16.gmra.mrb[40].mxu1 %v24420_v44  ;;  %v14271_v44 = vpop.permute.xlu1 %14270 }
 0xa31   :  { %21993 = vmatprep.mubr.msk.bf16.mxu1 %vm24672_vm0, %v29087_v37 }
 0xa38   :  { %21994 = vmatmul.mubr.bf16.gmra.mrb[44].mxu1 %v24421_v38 }
 0xa39   :  { %21997 = vmatprep.mubr.msk.bf16.mxu1 %vm24672_vm0, %v29087_v37 }
 0xa40   :  { %21998 = vmatmul.mubr.bf16.gmra.mrb[48].mxu1 %v24422_v6 }
 0xa41   :  { %22001 = vmatprep.mubr.msk.bf16.mxu1 %vm24672_vm0, %v29087_v37 }
 0xa48   :  { %22002 = vmatmul.mubr.bf16.gmra.mrb[52].mxu1 %v24423_v49 }
 0xa49   :  { %22005 = vmatprep.mubr.msk.bf16.mxu1 %vm24672_vm0, %v29087_v37 }
 0xa50   :  { %22006 = vmatmul.mubr.bf16.gmra.mrb[56].mxu1 %v24424_v0 }
 0xa51   :  { %22009 = vmatprep.mubr.msk.bf16.mxu1 %vm24672_vm0, %v29087_v37 }
 0xa58   :  { %22010 = vmatmul.mubr.bf16.gmra.mrb[60].mxu1 %v24425_v11 }
 0xa59   :  { %22013 = vmatprep.mubr.msk.bf16.mxu1 %vm24672_vm0, %v29087_v37 }
 0xa60   :  { %22014 = vmatmul.mubr.bf16.gmra.mrb[64].mxu1 %v24426_v15 }
 0xab3   :  { %v13938_v58 = vpop.f32.mrb[0].mxu1 }
 0xab4   :  { %v22079_v43 = vadd.f32 %v22078_v4, %v13938_v58  ;;  %v21951_v26 = vpop.f32.mrb[1].mxu1 }
 0xab5   :  { %v13941_v8 = vpop.f32.mrb[2].mxu1 }
 0xab6   :  { %14141 = vst [vmem:[#allocation3] sm:$0xff] %v22079_v43  ;;  %v22082_v35 = vadd.f32 %v22081_v2, %v13941_v8  ;;  %v21952_v59 = vpop.f32.mrb[3].mxu1  ;;  %v14413_v14 = vmul.f32 %v22079_v43, %v14246_v23  ;;  %v14281_v43 = vpop.permute.xlu1 %14280 }
 0xab7   :  { %v22102_v59 = vld [vmem:[#allocation3 + $0x40] sm:$0xff] }
 0xab8   :  { %14142 = vst [vmem:[#allocation3 + $0x8] sm:$0xff] %v22082_v35  ;;  %v14414_v46 = vmul.f32 %v22082_v35, %v14251_v16  ;;  %v14486_v9 = vmul.f32 %v14413_v14, %v14413_v14 }
 0xaba   :  { %v14447_v57 = vadd.f32 %v14414_v46, %v14413_v14  ;;  %v14487_v34 = vmul.f32 %v14414_v46, %v14414_v46 }
 0xabb   :  { %v13946_v61 = vpop.f32.mrb[4].mxu1 }
 0xabc   :  { %v22085_v42 = vadd.f32 %v22084_v45, %v13946_v61  ;;  %v21955_v51 = vpop.f32.mrb[5].mxu1  ;;  %v14520_v63 = vadd.f32 %v14487_v34, %v14486_v9  ;;  %v14286_v9 = vpop.permute.xlu0 %14285  ;;  %v22105_v34 = vld [vmem:[#allocation3 + $0x48] sm:$0xff] }
 0xabd   :  { %v13949_v13 = vpop.f32.mrb[6].mxu1  ;;  %v14291_v51 = vpop.permute.xlu1 %14290 }
 0xabe   :  { %14143 = vst [vmem:[#allocation3 + $0x10] sm:$0xff] %v22085_v42  ;;  %v22088_v29 = vadd.f32 %v22087_v17, %v13949_v13  ;;  %v21956_v28 = vpop.f32.mrb[7].mxu1  ;;  %v14415_v53 = vmul.f32 %v22085_v42, %v14256_v22 }
 0xac0   :  { %14144 = vst [vmem:[#allocation3 + $0x18] sm:$0xff] %v22088_v29  ;;  %v14416_v48 = vmul.f32 %v22088_v29, %v14261_v1  ;;  %v14448_v10 = vadd.f32 %v14447_v57, %v14415_v53  ;;  %v14488_v25 = vmul.f32 %v14415_v53, %v14415_v53 }
 0xac2   :  { %v14489_v39 = vmul.f32 %v14416_v48, %v14416_v48  ;;  %v14521_v52 = vadd.f32 %v14520_v63, %v14488_v25  ;;  %v14449_v47 = vadd.f32 %v14448_v10, %v14416_v48  ;;  %v22108_v48 = vld [vmem:[#allocation3 + $0x50] sm:$0xff] }
 0xac3   :  { %v13954_v32 = vpop.f32.mrb[8].mxu1 }
 0xac4   :  { %v22091_v54 = vadd.f32 %v22090_v31, %v13954_v32  ;;  %v21959_v19 = vpop.f32.mrb[9].mxu1  ;;  %v14522_v18 = vadd.f32 %v14521_v52, %v14489_v39  ;;  %v14296_v52 = vpop.permute.xlu0 %14295  ;;  %v22111_v32 = vld [vmem:[#allocation3 + $0x58] sm:$0xff] }
 0xac5   :  { %v13957_v24 = vpop.f32.mrb[10].mxu1 }
 0xac6   :  { %14145 = vst [vmem:[#allocation3 + $0x20] sm:$0xff] %v22091_v54  ;;  %v22094_v40 = vadd.f32 %v22093_v33, %v13957_v24  ;;  %v21960_v3 = vpop.f32.mrb[11].mxu1  ;;  %v14417_v60 = vmul.f32 %v22091_v54, %v14266_v21 }
 0xac7   :  { %v24438_v3 = vld [vmem:[%s28969_s8 + $0x28] sm:$0xff]  }
 0xac8   :  { %14146 = vst [vmem:[#allocation3 + $0x28] sm:$0xff] %v22094_v40  ;;  %v14450_v38 = vadd.f32 %v14449_v47, %v14417_v60  ;;  %v14490_v6 = vmul.f32 %v14417_v60, %v14417_v60  ;;  %v14418_v49 = vmul.f32 %v22094_v40, %v14271_v44  ;;  %v24437_v40 = vld [vmem:[%s28969_s8 + $0x68] sm:$0xff]   ;;  %v24439_v60 = vld [vmem:[%s28969_s8 + $0x70] sm:$0xff]  }
 0xac9   :  { %19520 = vmatprep.subr.bf16.mxu0 %v24437_v40 }
 0xaca   :  { %v14523_v0 = vadd.f32 %v14522_v18, %v14490_v6  ;;  %v14451_v11 = vadd.f32 %v14450_v38, %v14418_v49  ;;  %v14491_v15 = vmul.f32 %v14418_v49, %v14418_v49  ;;  %v14301_v18 = vpop.permute.xlu1 %14300  ;;  %19521 = vmatpush3.bf16.msra.mxu0 %v24438_v3 }
 0xacb   :  { %v13962_v30 = vpop.f32.mrb[12].mxu1  ;;  %19522 = vmatprep.subr.bf16.mxu0 %v24439_v60 }
 0xacc   :  { %v22097_v5 = vadd.f32 %v22096_v36, %v13962_v30  ;;  %v14524_v7 = vadd.f32 %v14523_v0, %v14491_v15  ;;  %v21963_v27 = vpop.f32.mrb[13].mxu1  ;;  %v22114_v0 = vld [vmem:[#allocation3 + $0x60] sm:$0xff]  ;;  %v24440_v36 = vld [vmem:[%s28969_s8 + $0x30] sm:$0xff]  }
 0xacd   :  { %v13965_v55 = vpop.f32.mrb[14].mxu1  ;;  %v22117_v27 = vld [vmem:[#allocation3 + $0x68] sm:$0xff] }
 0xace   :  { %14147 = vst [vmem:[#allocation3 + $0x30] sm:$0xff] %v22097_v5  ;;  %v14419_v58 = vmul.f32 %v22097_v5, %v14276_v20  ;;  %v22100_v4 = vadd.f32 %v22099_v62, %v13965_v55  ;;  %v21964_v23 = vpop.f32.mrb[15].mxu1  ;;  %v14306_v5 = vpop.permute.xlu0 %14305  ;;  %v24441_v20 = vld [vmem:[%s28969_s8 + $0x78] sm:$0xff]   ;;  %19523 = vmatpush3.bf16.msra.mxu0 %v24440_v36 }
 0xacf   :  { %19524 = vmatprep.subr.bf16.mxu0 %v24441_v20 }
 0xad0   :  { %v14452_v26 = vadd.f32 %v14451_v11, %v14419_v58  ;;  %v14492_v41 = vmul.f32 %v14419_v58, %v14419_v58  ;;  %14148 = vst [vmem:[#allocation3 + $0x38] sm:$0xff] %v22100_v4  ;;  %v14420_v50 = vmul.f32 %v22100_v4, %v14281_v43  ;;  %v14311_v4 = vpop.permute.xlu1 %14310 }
 0xad2   :  { %v14525_v8 = vadd.f32 %v14524_v7, %v14492_v41  ;;  %v14453_v2 = vadd.f32 %v14452_v26, %v14420_v50  ;;  %v14493_v16 = vmul.f32 %v14420_v50, %v14420_v50  ;;  %v24442_v41 = vld [vmem:[%s28969_s8 + $0x38] sm:$0xff]  }
 0xad3   :  { %v13970_v35 = vpop.f32.mrb[16].mxu1  ;;  %19525 = vmatpush3.bf16.msra.mxu0 %v24442_v41 }
 0xad4   :  { %v14526_v14 = vadd.f32 %v14525_v8, %v14493_v16  ;;  %v22103_v46 = vadd.f32 %v22102_v59, %v13970_v35  ;;  %v21967_v22 = vpop.f32.mrb[17].mxu1  ;;  %v22120_v35 = vld [vmem:[#allocation3 + $0x70] sm:$0xff]  ;;  %v24443_v59 = vld [vmem:[%s28969_s8 + $0xc0] sm:$0xff]  }
 0xad5   :  { %v13973_v57 = vpop.f32.mrb[18].mxu1  ;;  %19532 = vmatprep.subr.bf16.mxu0 %v24443_v59 }
 0xad6   :  { %14149 = vst [vmem:[#allocation3 + $0x40] sm:$0xff] %v22103_v46  ;;  %v14421_v61 = vmul.f32 %v22103_v46, %v14286_v9  ;;  %v22106_v45 = vadd.f32 %v22105_v34, %v13973_v57  ;;  %v21968_v42 = vpop.f32.mrb[19].mxu1  ;;  %v14316_v9 = vpop.permute.xlu0 %14315  ;;  %v22123_v34 = vld [vmem:[#allocation3 + $0x78] sm:$0xff] }
 0xad8   :  { %v14454_v63 = vadd.f32 %v14453_v2, %v14421_v61  ;;  %v14494_v13 = vmul.f32 %v14421_v61, %v14421_v61  ;;  %14150 = vst [vmem:[#allocation3 + $0x48] sm:$0xff] %v22106_v45  ;;  %v14422_v17 = vmul.f32 %v22106_v45, %v14291_v51  ;;  %v14321_v51 = vpop.permute.xlu1 %14320 }
 0xada   :  { %v14527_v29 = vadd.f32 %v14526_v14, %v14494_v13  ;;  %v14455_v28 = vadd.f32 %v14454_v63, %v14422_v17  ;;  %v14495_v53 = vmul.f32 %v14422_v17, %v14422_v17 }
 0xadb   :  { %v13978_v1 = vpop.f32.mrb[20].mxu1 }
 0xadc   :  { %v14528_v10 = vadd.f32 %v14527_v29, %v14495_v53  ;;  %v22109_v25 = vadd.f32 %v22108_v48, %v13978_v1  ;;  %v21971_v39 = vpop.f32.mrb[21].mxu1  ;;  %v22126_v48 = vld [vmem:[#allocation3 + $0x80] sm:$0xff] }
 0xadd   :  { %v13981_v47 = vpop.f32.mrb[22].mxu1 }
 0xade   :  { %14151 = vst [vmem:[#allocation3 + $0x50] sm:$0xff] %v22109_v25  ;;  %v14423_v31 = vmul.f32 %v22109_v25, %v14296_v52  ;;  %v22112_v54 = vadd.f32 %v22111_v32, %v13981_v47  ;;  %v21972_v19 = vpop.f32.mrb[23].mxu1  ;;  %v14326_v52 = vpop.permute.xlu0 %14325  ;;  %v22129_v32 = vld [vmem:[#allocation3 + $0x88] sm:$0xff] }
 0xae0   :  { %v14456_v24 = vadd.f32 %v14455_v28, %v14423_v31  ;;  %v14496_v33 = vmul.f32 %v14423_v31, %v14423_v31  ;;  %14152 = vst [vmem:[#allocation3 + $0x58] sm:$0xff] %v22112_v54  ;;  %v14424_v21 = vmul.f32 %v22112_v54, %v14301_v18  ;;  %v14331_v18 = vpop.permute.xlu1 %14330 }
 0xae2   :  { %v14529_v44 = vadd.f32 %v14528_v10, %v14496_v33  ;;  %v14457_v38 = vadd.f32 %v14456_v24, %v14424_v21  ;;  %v14497_v6 = vmul.f32 %v14424_v21, %v14424_v21 }
 0xae3   :  { %v13986_v49 = vpop.f32.mrb[24].mxu1 }
 0xae4   :  { %v14530_v11 = vadd.f32 %v14529_v44, %v14497_v6  ;;  %v22115_v15 = vadd.f32 %v22114_v0, %v13986_v49  ;;  %v21975_v30 = vpop.f32.mrb[25].mxu1 }
 0xae5   :  { %v13989_v7 = vpop.f32.mrb[26].mxu1  ;;  %v22135_v30 = vld [vmem:[#allocation3 + $0x98] sm:$0xff] }
 0xae6   :  { %14153 = vst [vmem:[#allocation3 + $0x60] sm:$0xff] %v22115_v15  ;;  %v14425_v55 = vmul.f32 %v22115_v15, %v14306_v5  ;;  %v22118_v62 = vadd.f32 %v22117_v27, %v13989_v7  ;;  %v21976_v58 = vpop.f32.mrb[27].mxu1  ;;  %v14341_v27 = vpop.permute.xlu1 %14340 }
 0xae8   :  { %v14458_v23 = vadd.f32 %v14457_v38, %v14425_v55  ;;  %v14498_v43 = vmul.f32 %v14425_v55, %v14425_v55  ;;  %14154 = vst [vmem:[#allocation3 + $0x68] sm:$0xff] %v22118_v62  ;;  %v14426_v26 = vmul.f32 %v22118_v62, %v14311_v4  ;;  %v22132_v38 = vld [vmem:[#allocation3 + $0x90] sm:$0xff] }
 0xaea   :  { %v14531_v50 = vadd.f32 %v14530_v11, %v14498_v43  ;;  %v14459_v8 = vadd.f32 %v14458_v23, %v14426_v26  ;;  %v14499_v2 = vmul.f32 %v14426_v26, %v14426_v26  ;;  %v14336_v11 = vpop.permute.xlu0 %14335  ;;  %v22138_v26 = vld [vmem:[#allocation3 + $0xa0] sm:$0xff] }
 0xaeb   :  { %v13994_v16 = vpop.f32.mrb[28].mxu1 }
 0xaec   :  { %v14532_v14 = vadd.f32 %v14531_v50, %v14499_v2  ;;  %v22121_v46 = vadd.f32 %v22120_v35, %v13994_v16  ;;  %v21979_v22 = vpop.f32.mrb[29].mxu1  ;;  %v22141_v35 = vld [vmem:[#allocation3 + $0xa8] sm:$0xff] }
 0xaed   :  { %v13997_v57 = vpop.f32.mrb[30].mxu1  ;;  %v14351_v22 = vpop.permute.xlu1 %14350 }
 0xaee   :  { %14155 = vst [vmem:[#allocation3 + $0x70] sm:$0xff] %v22121_v46  ;;  %v14427_v61 = vmul.f32 %v22121_v46, %v14316_v9  ;;  %v22124_v45 = vadd.f32 %v22123_v34, %v13997_v57  ;;  %v21980_v42 = vpop.f32.mrb[31].mxu1  ;;  %v14346_v2 = vpop.permute.xlu0 %14345 }
 0xaf0   :  { %v14460_v63 = vadd.f32 %v14459_v8, %v14427_v61  ;;  %v14500_v13 = vmul.f32 %v14427_v61, %v14427_v61  ;;  %14156 = vst [vmem:[#allocation3 + $0x78] sm:$0xff] %v22124_v45  ;;  %v14428_v17 = vmul.f32 %v22124_v45, %v14321_v51 }
 0xaf2   :  { %v14533_v29 = vadd.f32 %v14532_v14, %v14500_v13  ;;  %v14461_v28 = vadd.f32 %v14460_v63, %v14428_v17  ;;  %v14501_v53 = vmul.f32 %v14428_v17, %v14428_v17  ;;  %v22144_v63 = vld [vmem:[#allocation3 + $0xb0] sm:$0xff] }
 0xaf3   :  { %v14002_v1 = vpop.f32.mrb[32].mxu1 }
 0xaf4   :  { %v14534_v10 = vadd.f32 %v14533_v29, %v14501_v53  ;;  %v22127_v25 = vadd.f32 %v22126_v48, %v14002_v1  ;;  %v21983_v39 = vpop.f32.mrb[33].mxu1  ;;  %v22147_v1 = vld [vmem:[#allocation3 + $0xb8] sm:$0xff] }
 0xaf5   :  { %v14005_v47 = vpop.f32.mrb[34].mxu1  ;;  %v14361_v39 = vpop.permute.xlu1 %14360 }
 0xaf6   :  { %14157 = vst [vmem:[#allocation3 + $0x80] sm:$0xff] %v22127_v25  ;;  %v14429_v31 = vmul.f32 %v22127_v25, %v14326_v52  ;;  %v22130_v54 = vadd.f32 %v22129_v32, %v14005_v47  ;;  %v21984_v19 = vpop.f32.mrb[35].mxu1 }
 0xaf8   :  { %v14462_v24 = vadd.f32 %v14461_v28, %v14429_v31  ;;  %v14502_v33 = vmul.f32 %v14429_v31, %v14429_v31  ;;  %14158 = vst [vmem:[#allocation3 + $0x88] sm:$0xff] %v22130_v54  ;;  %v14430_v21 = vmul.f32 %v22130_v54, %v14331_v18  ;;  %v14356_v28 = vpop.permute.xlu0 %14355 }
 0xafa   :  { %v14535_v40 = vadd.f32 %v14534_v10, %v14502_v33  ;;  %v14463_v3 = vadd.f32 %v14462_v24, %v14430_v21  ;;  %v14503_v60 = vmul.f32 %v14430_v21, %v14430_v21  ;;  %v22150_v24 = vld [vmem:[#allocation3 + $0xc0] sm:$0xff] }
 0xafb   :  { %v14010_v44 = vpop.f32.mrb[36].mxu1 }
 0xafc   :  { %v14536_v6 = vadd.f32 %v14535_v40, %v14503_v60  ;;  %v22133_v49 = vadd.f32 %v22132_v38, %v14010_v44  ;;  %v21987_v0 = vpop.f32.mrb[37].mxu1  ;;  %v22153_v44 = vld [vmem:[#allocation3 + $0xc8] sm:$0xff] }
 0xafd   :  { %v14013_v15 = vpop.f32.mrb[38].mxu1  ;;  %v14371_v0 = vpop.permute.xlu1 %14370 }
 0xafe   :  { %14159 = vst [vmem:[#allocation3 + $0x90] sm:$0xff] %v22133_v49  ;;  %v14431_v36 = vmul.f32 %v22133_v49, %v14336_v11  ;;  %v22136_v5 = vadd.f32 %v22135_v30, %v14013_v15  ;;  %v21988_v7 = vpop.f32.mrb[39].mxu1 }
 0xb00   :  { %v14464_v20 = vadd.f32 %v14463_v3, %v14431_v36  ;;  %v14504_v55 = vmul.f32 %v14431_v36, %v14431_v36  ;;  %14160 = vst [vmem:[#allocation3 + $0x98] sm:$0xff] %v22136_v5  ;;  %v14432_v62 = vmul.f32 %v22136_v5, %v14341_v27  ;;  %v14366_v3 = vpop.permute.xlu0 %14365 }
 0xb02   :  { %v14537_v58 = vadd.f32 %v14536_v6, %v14504_v55  ;;  %v14465_v4 = vadd.f32 %v14464_v20, %v14432_v62  ;;  %v14505_v23 = vmul.f32 %v14432_v62, %v14432_v62  ;;  %v22156_v20 = vld [vmem:[#allocation3 + $0xd0] sm:$0xff] }
 0xb03   :  { %v14018_v43 = vpop.f32.mrb[40].mxu1 }
 0xb04   :  { %v14538_v41 = vadd.f32 %v14537_v58, %v14505_v23  ;;  %v22139_v50 = vadd.f32 %v22138_v26, %v14018_v43  ;;  %v21991_v8 = vpop.f32.mrb[41].mxu1  ;;  %v22159_v43 = vld [vmem:[#allocation3 + $0xd8] sm:$0xff] }
 0xb05   :  { %v14021_v16 = vpop.f32.mrb[42].mxu1  ;;  %v14381_v8 = vpop.permute.xlu1 %14380 }
 0xb06   :  { %14161 = vst [vmem:[#allocation3 + $0xa0] sm:$0xff] %v22139_v50  ;;  %v14433_v59 = vmul.f32 %v22139_v50, %v14346_v2  ;;  %v22142_v14 = vadd.f32 %v22141_v35, %v14021_v16  ;;  %v21992_v46 = vpop.f32.mrb[43].mxu1 }
 0xb08   :  { %v14466_v9 = vadd.f32 %v14465_v4, %v14433_v59  ;;  %v14506_v57 = vmul.f32 %v14433_v59, %v14433_v59  ;;  %14162 = vst [vmem:[#allocation3 + $0xa8] sm:$0xff] %v22142_v14  ;;  %v14434_v34 = vmul.f32 %v22142_v14, %v14351_v22  ;;  %v14376_v4 = vpop.permute.xlu0 %14375 }
 0xb0a   :  { %v14539_v61 = vadd.f32 %v14538_v41, %v14506_v57  ;;  %v14467_v45 = vadd.f32 %v14466_v9, %v14434_v34  ;;  %v14507_v42 = vmul.f32 %v14434_v34, %v14434_v34  ;;  %v22162_v9 = vld [vmem:[#allocation3 + $0xe0] sm:$0xff] }
 0xb0b   :  { %v14026_v51 = vpop.f32.mrb[44].mxu1 }
 0xb0c   :  { %v14540_v13 = vadd.f32 %v14539_v61, %v14507_v42  ;;  %v22145_v17 = vadd.f32 %v22144_v63, %v14026_v51  ;;  %v21995_v29 = vpop.f32.mrb[45].mxu1  ;;  %v22165_v51 = vld [vmem:[#allocation3 + $0xe8] sm:$0xff] }
 0xb0d   :  { %v14029_v53 = vpop.f32.mrb[46].mxu1  ;;  %v14391_v29 = vpop.permute.xlu1 %14390 }
 0xb0e   :  { %14163 = vst [vmem:[#allocation3 + $0xb0] sm:$0xff] %v22145_v17  ;;  %v14435_v48 = vmul.f32 %v22145_v17, %v14356_v28  ;;  %v22148_v10 = vadd.f32 %v22147_v1, %v14029_v53  ;;  %v21996_v25 = vpop.f32.mrb[47].mxu1 }
 0xb10   :  { %v14468_v52 = vadd.f32 %v14467_v45, %v14435_v48  ;;  %v14508_v47 = vmul.f32 %v14435_v48, %v14435_v48  ;;  %14164 = vst [vmem:[#allocation3 + $0xb8] sm:$0xff] %v22148_v10  ;;  %v14436_v32 = vmul.f32 %v22148_v10, %v14361_v39  ;;  %v14386_v45 = vpop.permute.xlu0 %14385 }
 0xb12   :  { %v14541_v31 = vadd.f32 %v14540_v13, %v14508_v47  ;;  %v14469_v54 = vadd.f32 %v14468_v52, %v14436_v32  ;;  %v14509_v19 = vmul.f32 %v14436_v32, %v14436_v32  ;;  %v22168_v52 = vld [vmem:[#allocation3 + $0xf0] sm:$0xff] }
 0xb13   :  { %v14034_v18 = vpop.f32.mrb[48].mxu1 }
 0xb14   :  { %v14542_v33 = vadd.f32 %v14541_v31, %v14509_v19  ;;  %v22151_v21 = vadd.f32 %v22150_v24, %v14034_v18  ;;  %v21999_v40 = vpop.f32.mrb[49].mxu1  ;;  %v22171_v18 = vld [vmem:[#allocation3 + $0xf8] sm:$0xff] }
 0xb15   :  { %v14037_v60 = vpop.f32.mrb[50].mxu1  ;;  %v14401_v40 = vpop.permute.xlu1 %14400 }
 0xb16   :  { %14165 = vst [vmem:[#allocation3 + $0xc0] sm:$0xff] %v22151_v21  ;;  %v14437_v38 = vmul.f32 %v22151_v21, %v14366_v3  ;;  %v22154_v6 = vadd.f32 %v22153_v44, %v14037_v60  ;;  %v22000_v49 = vpop.f32.mrb[51].mxu1 }
 0xb18   :  { %v14470_v11 = vadd.f32 %v14469_v54, %v14437_v38  ;;  %v14510_v15 = vmul.f32 %v14437_v38, %v14437_v38  ;;  %14166 = vst [vmem:[#allocation3 + $0xc8] sm:$0xff] %v22154_v6  ;;  %v14438_v30 = vmul.f32 %v22154_v6, %v14371_v0  ;;  %v14396_v54 = vpop.permute.xlu0 %14395 }
 0xb1a   :  { %v14543_v36 = vadd.f32 %v14542_v33, %v14510_v15  ;;  %v14471_v5 = vadd.f32 %v14470_v11, %v14438_v30  ;;  %v14511_v7 = vmul.f32 %v14438_v30, %v14438_v30  ;;  %v22174_v11 = vld [vmem:[#allocation3 + $0x100] sm:$0xff] }
 0xb1b   :  { %v14042_v27 = vpop.f32.mrb[52].mxu1 }
 0xb1c   :  { %v14544_v55 = vadd.f32 %v14543_v36, %v14511_v7  ;;  %v22157_v62 = vadd.f32 %v22156_v20, %v14042_v27  ;;  %v22003_v58 = vpop.f32.mrb[53].mxu1  ;;  %v22177_v27 = vld [vmem:[#allocation3 + $0x108] sm:$0xff] }
 0xb1d   :  { %v14045_v23 = vpop.f32.mrb[54].mxu1  ;;  %v14411_v58 = vpop.permute.xlu1 %14410 }
 0xb1e   :  { %14167 = vst [vmem:[#allocation3 + $0xd0] sm:$0xff] %v22157_v62  ;;  %v14439_v26 = vmul.f32 %v22157_v62, %v14376_v4  ;;  %v22160_v41 = vadd.f32 %v22159_v43, %v14045_v23  ;;  %v22004_v50 = vpop.f32.mrb[55].mxu1 }
 0xb20   :  { %v14472_v2 = vadd.f32 %v14471_v5, %v14439_v26  ;;  %v14512_v16 = vmul.f32 %v14439_v26, %v14439_v26  ;;  %14168 = vst [vmem:[#allocation3 + $0xd8] sm:$0xff] %v22160_v41  ;;  %v14440_v35 = vmul.f32 %v22160_v41, %v14381_v8  ;;  %v14406_v5 = vpop.permute.xlu0 %14405 }
 0xb22   :  { %v14545_v59 = vadd.f32 %v14544_v55, %v14512_v16  ;;  %v14473_v14 = vadd.f32 %v14472_v2, %v14440_v35  ;;  %v14513_v46 = vmul.f32 %v14440_v35, %v14440_v35 }
 0xb23   :  { %v14050_v22 = vpop.f32.mrb[56].mxu1 }
 0xb24   :  { %v14546_v57 = vadd.f32 %v14545_v59, %v14513_v46  ;;  %v22163_v34 = vadd.f32 %v22162_v9, %v14050_v22  ;;  %v22007_v61 = vpop.f32.mrb[57].mxu1 }
 0xb25   :  { %v14053_v42 = vpop.f32.mrb[58].mxu1 }
 0xb26   :  { %14169 = vst [vmem:[#allocation3 + $0xe0] sm:$0xff] %v22163_v34  ;;  %v14441_v63 = vmul.f32 %v22163_v34, %v14386_v45  ;;  %v22166_v13 = vadd.f32 %v22165_v51, %v14053_v42  ;;  %v22008_v17 = vpop.f32.mrb[59].mxu1 }
 0xb28   :  { %v14474_v28 = vadd.f32 %v14473_v14, %v14441_v63  ;;  %v14514_v53 = vmul.f32 %v14441_v63, %v14441_v63  ;;  %14170 = vst [vmem:[#allocation3 + $0xe8] sm:$0xff] %v22166_v13  ;;  %v14442_v1 = vmul.f32 %v22166_v13, %v14391_v29  ;;  %v14564_v29 = vld [vmem:[%s28967_s6] sm:$0x1] }
 0xb2a   :  { %v14547_v48 = vadd.f32 %v14546_v57, %v14514_v53  ;;  %v14475_v10 = vadd.f32 %v14474_v28, %v14442_v1  ;;  %v14515_v25 = vmul.f32 %v14442_v1, %v14442_v1  ;;  %v14605_v28 = vld [vmem:[#allocation3 + $0x4] sm:$0x3]  ;;  %v14606_v53 = vld [vmem:[#allocation3 + $0x6] sm:$0x3]  ;;  %v14607_v1 = vld [vmem:[#allocation3 + $0x20] sm:$0x3] }
 0xb2b   :  { %v14058_v39 = vpop.f32.mrb[60].mxu1 }
 0xb2c   :  { %v14548_v47 = vadd.f32 %v14547_v48, %v14515_v25  ;;  %v22169_v32 = vadd.f32 %v22168_v52, %v14058_v39  ;;  %v22011_v31 = vpop.f32.mrb[61].mxu1  ;;  %v14608_v48 = vld [vmem:[#allocation3 + $0x22] sm:$0x3]  ;;  %v14574_v25 = vld [vmem:[#allocation3 + $0x1e] sm:$0x3] }
 0xb2d   :  { %v14061_v19 = vpop.f32.mrb[62].mxu1  ;;  %v14637_v39 = vld [vmem:[#allocation3 + $0x28] sm:$0x3]  ;;  %v14638_v52 = vld [vmem:[#allocation3 + $0x2a] sm:$0x3] }
 0xb2e   :  { %14171 = vst [vmem:[#allocation3 + $0xf0] sm:$0xff] %v22169_v32  ;;  %v14443_v24 = vmul.f32 %v22169_v32, %v14396_v54  ;;  %v22172_v33 = vadd.f32 %v22171_v18, %v14061_v19  ;;  %v22012_v21 = vpop.f32.mrb[63].mxu1  ;;  %v14571_v32 = vld [vmem:[#allocation3] sm:$0x3]  ;;  %v14572_v31 = vld [vmem:[#allocation3 + $0x2] sm:$0x3]  ;;  %v14609_v19 = vmax.f32 %v14605_v28, %v14606_v53  ;;  %v14610_v18 = vmax.f32 %v14607_v1, %v14608_v48 }
 0xb2f   :  { %v14636_v21 = vld [vmem:[#allocation3 + $0xe] sm:$0x3] }
 0xb30   :  { %v14476_v3 = vadd.f32 %v14475_v10, %v14443_v24  ;;  %v14516_v60 = vmul.f32 %v14443_v24, %v14443_v24  ;;  %14172 = vst [vmem:[#allocation3 + $0xf8] sm:$0xff] %v22172_v33  ;;  %v14444_v44 = vmul.f32 %v22172_v33, %v14401_v40  ;;  %v14573_v10 = vld [vmem:[#allocation3 + $0x1c] sm:$0x3]  ;;  %v14613_v24 = vmin.f32 %v14607_v1, %v14608_v48  ;;  %v14635_v33 = vld [vmem:[#allocation3 + $0xc] sm:$0x3] }
 0xb31   :  { %v14568_v40 = vld [vmem:[%s28968_s7] sm:$0x1]  ;;  %v14620_v1 = vld [vmem:[#allocation3 + $0x8] sm:$0x3]  ;;  %v14621_v48 = vld [vmem:[#allocation3 + $0xa] sm:$0x3] }
 0xb32   :  { %v14549_v38 = vadd.f32 %v14548_v47, %v14516_v60  ;;  %v14477_v6 = vadd.f32 %v14476_v3, %v14444_v44  ;;  %v14517_v49 = vmul.f32 %v14444_v44, %v14444_v44  ;;  %v14576_v3 = vmax.f32 %v14573_v10, %v14574_v25 }
 0xb33   :  { %v14066_v0 = vpop.f32.mrb[64].mxu1  ;;  %v14579_v60 = vmin.f32 %v14573_v10, %v14574_v25  ;;  %v14640_v44 = vmax.f32 %v14637_v39, %v14638_v52  ;;  %v24450_v10 = vld [vmem:[%s28969_s8 + $0x98] sm:$0xff]  }
 0xb34   :  { %v14550_v15 = vadd.f32 %v14549_v38, %v14517_v49  ;;  %v22175_v30 = vadd.f32 %v22174_v11, %v14066_v0  ;;  %v22015_v36 = vpop.f32.mrb[65].mxu1  ;;  %v14643_v38 = vmin.f32 %v14637_v39, %v14638_v52  ;;  %v14612_v49 = vmin.f32 %v14605_v28, %v14606_v53  ;;  %v14667_v28 = vld [vmem:[#allocation3 + $0x54] sm:$0x3]  ;;  %v14668_v53 = vld [vmem:[#allocation3 + $0x56] sm:$0x3] }
 0xb35   :  { %v14069_v7 = vpop.f32.mrb[66].mxu1  ;;  %v14575_v0 = vmax.f32 %v14571_v32, %v14572_v31  ;;  %v14642_v36 = vmin.f32 %v14635_v33, %v14636_v21  ;;  %v14665_v52 = vld [vmem:[#allocation3 + $0x38] sm:$0x3] }
 0xb36   :  { %14173 = vst [vmem:[#allocation3 + $0x100] sm:$0xff] %v22175_v30  ;;  %v14445_v20 = vmul.f32 %v22175_v30, %v14406_v5  ;;  %v22178_v55 = vadd.f32 %v22177_v27, %v14069_v7  ;;  %v22016_v62 = vpop.f32.mrb[67].mxu1  ;;  %v14639_v30 = vmax.f32 %v14635_v33, %v14636_v21  ;;  %v14611_v27 = vmax.f32 %v14609_v19, %v14610_v18  ;;  %v24452_v21 = vld [vmem:[%s28969_s8 + $0xa0] sm:$0xff]  }
 0xb37   :  { %v14624_v19 = vmax.f32 %v14620_v1, %v14621_v48  ;;  %v14627_v18 = vmin.f32 %v14620_v1, %v14621_v48  ;;  %v24468_v1 = vld [vmem:[%s28969_s8 + $0x120] sm:$0xff]  }
 0xb38   :  { %v14478_v4 = vadd.f32 %v14477_v6, %v14445_v20  ;;  %v14518_v23 = vmul.f32 %v14445_v20, %v14445_v20  ;;  %14174 = vst [vmem:[#allocation3 + $0x108] sm:$0xff] %v22178_v55  ;;  %v14446_v43 = vmul.f32 %v22178_v55, %v14411_v58  ;;  %v14614_v20 = vmin.f32 %v14612_v49, %v14613_v24 }
 0xb39   :  { %v14577_v55 = vmax.f32 %v14575_v0, %v14576_v3  ;;  %v14641_v58 = vmax.f32 %v14639_v30, %v14640_v44  ;;  %v24454_v0 = vld [vmem:[%s28969_s8 + $0xa8] sm:$0xff]  }
 0xb3a   :  { %v14551_v26 = vadd.f32 %v14550_v15, %v14518_v23  ;;  %v14479_v41 = vadd.f32 %v14478_v4, %v14446_v43  ;;  %v14519_v50 = vmul.f32 %v14446_v43, %v14446_v43  ;;  %v14578_v15 = vmin.f32 %v14571_v32, %v14572_v31  ;;  %v24451_v32 = vld [vmem:[%s28969_s8 + $0xe0] sm:$0xff]  }
 0xb3b   :  { %v14644_v4 = vmin.f32 %v14642_v36, %v14643_v38  ;;  %v14670_v31 = vmax.f32 %v14667_v28, %v14668_v53  ;;  %v24456_v36 = vld [vmem:[%s28969_s8 + $0xb0] sm:$0xff]  }
 0xb3c   :  { %v14480_v8 = vrot.slane %v14479_v41, 4  ;;  %v14552_v2 = vadd.f32 %v14551_v26, %v14519_v50  ;;  %v14580_v62 = vmin.f32 %v14578_v15, %v14579_v60  ;;  %v24453_v60 = vld [vmem:[%s28969_s8 + $0xe8] sm:$0xff]  }
 0xb3e   :  { %v14481_v16 = vadd.f32 %v14480_v8, %v14479_v41  ;;  %v14553_v35 = vrot.slane %v14552_v2, 4 }
 0xb40   :  { %v14482_v59 = vrot.slane %v14481_v16, 2  ;;  %v14554_v14 = vadd.f32 %v14553_v35, %v14552_v2 }
 0xb42   :  { %v14483_v46 = vadd.f32 %v14482_v59, %v14481_v16  ;;  %v14555_v22 = vrot.slane %v14554_v14, 2 }
 0xb44   :  { %v14484_v9 = vrot.slane %v14483_v46, 1  ;;  %v14556_v57 = vadd.f32 %v14555_v22, %v14554_v14 }
 0xb46   :  { %v14485_v34 = vadd.f32 %v14484_v9, %v14483_v46  ;;  %v14557_v61 = vrot.slane %v14556_v57, 1 }
 0xb48   :  { %v14558_v45 = vadd.f32 %v14557_v61, %v14556_v57  ;;  %v14560_v42 = vmul.f32 0.005, %v14485_v34  ;;  %v24445_v61 = vld [vmem:[%s28969_s8 + $0xc8] sm:$0xff]  }
 0xb4a   :  { %v14561_v51 = vmul.f32 0.005, %v14558_v45  ;;  %v14562_v63 = vmul.f32 %v14560_v42, %v14560_v42 }
 0xb4c   :  { %v14563_v13 = vsub.f32 %v14561_v51, %v14562_v63  ;;  %v24447_v51 = vld [vmem:[%s28969_s8 + $0xd0] sm:$0xff]  }
 0xb4d   :  { %v24448_v63 = vld [vmem:[%s28969_s8 + $0x90] sm:$0xff]  }
 0xb4e   :  { %v14565_v17 = vadd.f32 1e-05, %v14563_v13  ;;  %v24449_v13 = vld [vmem:[%s28969_s8 + $0xd8] sm:$0xff]  }
 0xb50   :  { %24645 = vrsqrt.f32 %v14565_v17  ;;  %v14622_v17 = vld [vmem:[#allocation3 + $0x24] sm:$0x3] }
 0xb5a   :  { %v24646_v47 = vpop.eup %24645 }
 0xb5b   :  { %v14567_v54 = vmul.f32 %v24646_v47, %v14564_v29  ;;  %v14623_v29 = vld [vmem:[#allocation3 + $0x26] sm:$0x3]  ;;  %v14666_v47 = vld [vmem:[#allocation3 + $0x3a] sm:$0x3] }
 0xb5c   :  { %v14625_v25 = vmax.f32 %v14622_v17, %v14623_v29  ;;  %v14628_v39 = vmin.f32 %v14622_v17, %v14623_v29  ;;  %v14669_v24 = vmax.f32 %v14665_v52, %v14666_v47  ;;  %v14672_v33 = vmin.f32 %v14665_v52, %v14666_v47 }
 0xb5d   :  { %v14569_v6 = vmul.f32 %v14567_v54, %v14560_v42  ;;  %vm14581_vm6 = vcmp.ge.f32.partialorder %v14567_v54, 0.0  ;;  %v28199_v43 = vrot.slane %v14567_v54, %v25630_v56  ;;  %v24446_v42 = vld [vmem:[%s28969_s8 + $0x88] sm:$0xff]   ;;  %v14673_v54 = vmin.f32 %v14667_v28, %v14668_v53 }
 0xb5e   :  { %v14582_v11 = vsel %vm14581_vm6, 1, %v29080_v12  ;;  %v14629_v3 = vmin.f32 %v14627_v18, %v14628_v39  ;;  %v14671_v44 = vmax.f32 %v14669_v24, %v14670_v31  ;;  %v24470_v31 = vld [vmem:[%s28969_s8 + $0x128] sm:$0xff]   ;;  %v24472_v24 = vld [vmem:[%s28969_s8 + $0x130] sm:$0xff]  }
 0xb5f   :  { %v14570_v5 = vsub.f32 %v14568_v40, %v14569_v6  ;;  %v14586_v7 = vrot.slane %v14582_v11, %v25630_v56  ;;  %v14626_v40 = vmax.f32 %v14624_v19, %v14625_v25  ;;  %v14674_v38 = vmin.f32 %v14672_v33, %v14673_v54  ;;  %v24455_v11 = vld [vmem:[%s28969_s8 + $0xf0] sm:$0xff]   ;;  %v24469_v25 = vld [vmem:[%s28969_s8 + $0x168] sm:$0xff]   ;;  %v24473_v33 = vld [vmem:[%s28969_s8 + $0x178] sm:$0xff]  }
 0xb60   :  { %v24471_v54 = vld [vmem:[%s28969_s8 + $0x170] sm:$0xff]  }
 0xb61   :  { %vm28194_vm7 = vcmp.eq.s32.totalorder %v14586_v7, 1  ;;  %v28208_v50 = vrot.slane %v14570_v5, %v25630_v56  ;;  %v24444_v56 = vld [vmem:[%s28969_s8 + $0x80] sm:$0xff]   ;;  %v24457_v5 = vld [vmem:[%s28969_s8 + $0xf8] sm:$0xff]  }
 0xb62   :  { %v14615_v12 = vsel %vm28194_vm7, %v14611_v27, %v14614_v20  ;;  %v14588_v26 = vsel %vm28194_vm7, %v14577_v55, %v14580_v62  ;;  %v14645_v41 = vsel %vm28194_vm7, %v14641_v58, %v14644_v4  ;;  %v14630_v6 = vsel %vm28194_vm7, %v14626_v40, %v14629_v3  ;;  %v24458_v20 = vld [vmem:[%s28969_s8 + $0xb8] sm:$0xff]   ;;  %v24459_v62 = vld [vmem:[%s28969_s8 + $0x140] sm:$0xff]  }
 0xb63   :  { %v14616_v8 = vmul.f32 %v14615_v12, %v28199_v43  ;;  %v14595_v2 = vmul.f32 %v28199_v43, %v14588_v26  ;;  %v14646_v16 = vmul.f32 %v14645_v41, %v28199_v43  ;;  %v14675_v49 = vsel %vm28194_vm7, %v14671_v44, %v14674_v38  ;;  %v24460_v4 = vld [vmem:[%s28969_s8 + $0x100] sm:$0xff]   ;;  %v24461_v26 = vld [vmem:[%s28969_s8 + $0x148] sm:$0xff]   ;;  %v24474_v3 = vld [vmem:[%s28969_s8 + $0x138] sm:$0xff]  }
 0xb64   :  { %v14631_v15 = vmul.f32 %v14630_v6, %v28199_v43  ;;  %v14676_v30 = vmul.f32 %v14675_v49, %v28199_v43  ;;  %v24475_v44 = vld [vmem:[%s28969_s8 + $0x1c0] sm:$0xff]  }
 0xb65   :  { %v14617_v35 = vadd.f32 %v14616_v8, %v28208_v50  ;;  %v14602_v59 = vadd.f32 %v28208_v50, %v14595_v2  ;;  %v14647_v14 = vadd.f32 %v14646_v16, %v28208_v50  ;;  %v24462_v8 = vld [vmem:[%s28969_s8 + $0x108] sm:$0xff]   ;;  %v24463_v2 = vld [vmem:[%s28969_s8 + $0x150] sm:$0xff]   ;;  %v24476_v6 = vld [vmem:[%s28969_s8 + $0x180] sm:$0xff]  }
 0xb66   :  { %v14632_v7 = vadd.f32 %v14631_v15, %v28208_v50  ;;  %v14677_v27 = vadd.f32 %v14676_v30, %v28208_v50  ;;  %v24464_v16 = vld [vmem:[%s28969_s8 + $0x110] sm:$0xff]   ;;  %v24478_v15 = vld [vmem:[%s28969_s8 + $0x188] sm:$0xff]  }
 0xb67   :  { %v14618_v46 = vmax.f32 %v14617_v35, 0.0  ;;  %v14603_v22 = vmax.f32 %v14602_v59, 0.0  ;;  %v14648_v9 = vmax.f32 %v14647_v14, 0.0  ;;  %v24465_v35 = vld [vmem:[%s28969_s8 + $0x158] sm:$0xff]   ;;  %v14652_v59 = vld [vmem:[#allocation3 + $0x2c] sm:$0x3] }
 0xb68   :  { %v14633_v55 = vmax.f32 %v14632_v7, 0.0  ;;  %v14678_v58 = vmax.f32 %v14677_v27, 0.0  ;;  %v14653_v14 = vld [vmem:[#allocation3 + $0x2e] sm:$0x3]  ;;  %v14682_v7 = vld [vmem:[#allocation3 + $0x58] sm:$0x3] }
 0xb69   :  { %v14619_v57 = vpack.c.bf16 %v14618_v46, %v14618_v46  ;;  %v14604_v34 = vpack.c.bf16 %v14603_v22, %v14603_v22  ;;  %v14649_v45 = vpack.c.bf16 %v14648_v9, %v14648_v9  ;;  %v14697_v46 = vld [vmem:[#allocation3 + $0x5c] sm:$0x3]  ;;  %v14698_v22 = vld [vmem:[#allocation3 + $0x5e] sm:$0x3]  ;;  %v14650_v9 = vld [vmem:[#allocation3 + $0x10] sm:$0x3] }
 0xb6a   :  { %v14634_v12 = vpack.c.bf16 %v14633_v55, %v14633_v55  ;;  %v14679_v41 = vpack.c.bf16 %v14678_v58, %v14678_v58  ;;  %v24479_v30 = vld [vmem:[%s28969_s8 + $0x1d0] sm:$0xff]   ;;  %v14683_v27 = vld [vmem:[#allocation3 + $0x5a] sm:$0x3]  ;;  %v14728_v55 = vld [vmem:[#allocation3 + $0x66] sm:$0x3] }
 0xb6b   :  { %16604 = vmatprep.mubr.bf16.mxu0 %v14619_v57  ;;  %v14651_v57 = vld [vmem:[#allocation3 + $0x12] sm:$0x3]  ;;  %v14681_v58 = vld [vmem:[#allocation3 + $0x3e] sm:$0x3] }
 0xb6c   :  { %16605 = vmatmul.mubr.bf16.vlgmr.msra.gmra.mrb[168].mxu0 %v14604_v34  ;;  %v24466_v34 = vld [vmem:[%s28969_s8 + $0x118] sm:$0xff]   ;;  %v14654_v17 = vmax.f32 %v14650_v9, %v14651_v57  ;;  %v14657_v29 = vmin.f32 %v14650_v9, %v14651_v57  ;;  %v24484_v9 = vld [vmem:[%s28969_s8 + $0x1a0] sm:$0xff]  }
 0xb6d   :  { %19533 = vmatpush3.bf16.msra.mxu0 %v24444_v56  ;;  %16644 = vmatprep.mubr.bf16.mxu0 %v14649_v45  ;;  %v14655_v56 = vmax.f32 %v14652_v59, %v14653_v14  ;;  %v14695_v45 = vld [vmem:[#allocation3 + $0x40] sm:$0x3] }
 0xb6e   :  { %19534 = vmatprep.subr.bf16.mxu0 %v24445_v61  ;;  %v14658_v61 = vmin.f32 %v14652_v59, %v14653_v14 }
 0xb6f   :  { %v14656_v48 = vmax.f32 %v14654_v17, %v14655_v56  ;;  %v24485_v56 = vld [vmem:[%s28969_s8 + $0x1e8] sm:$0xff]  }
 0xb71   :  { %19535 = vmatpush3.bf16.msra.mxu0 %v24446_v42  ;;  %v14696_v42 = vld [vmem:[#allocation3 + $0x42] sm:$0x3] }
 0xb72   :  { %19536 = vmatprep.subr.bf16.mxu0 %v24447_v51  ;;  %v24467_v51 = vld [vmem:[%s28969_s8 + $0x160] sm:$0xff]   ;;  %v14699_v28 = vmax.f32 %v14695_v45, %v14696_v42  ;;  %v14702_v53 = vmin.f32 %v14695_v45, %v14696_v42 }
 0xb75   :  { %19537 = vmatpush3.bf16.msra.mxu0 %v24448_v63  ;;  %v14700_v63 = vmax.f32 %v14697_v46, %v14698_v22 }
 0xb76   :  { %19538 = vmatprep.subr.bf16.mxu0 %v24449_v13  ;;  %v14703_v13 = vmin.f32 %v14697_v46, %v14698_v22 }
 0xb77   :  { %v14701_v39 = vmax.f32 %v14699_v28, %v14700_v63  ;;  %v24486_v63 = vld [vmem:[%s28969_s8 + $0x1a8] sm:$0xff]   ;;  %v24488_v28 = vld [vmem:[%s28969_s8 + $0x1b0] sm:$0xff]  }
 0xb78   :  { %v14704_v52 = vmin.f32 %v14702_v53, %v14703_v13  ;;  %v24487_v13 = vld [vmem:[%s28969_s8 + $0x1f0] sm:$0xff]   ;;  %v24489_v53 = vld [vmem:[%s28969_s8 + $0x1f8] sm:$0xff]  }
 0xb79   :  { %19539 = vmatpush3.bf16.msra.mxu0 %v24450_v10  ;;  %v14659_v10 = vmin.f32 %v14657_v29, %v14658_v61 }
 0xb7a   :  { %19540 = vmatprep.subr.bf16.mxu0 %v24451_v32  ;;  %v14705_v32 = vsel %vm28194_vm7, %v14701_v39, %v14704_v52  ;;  %v24491_v39 = vld [vmem:[%s28969_s8 + $0x240] sm:$0xff]  }
 0xb7b   :  { %v14660_v47 = vsel %vm28194_vm7, %v14656_v48, %v14659_v10  ;;  %v14706_v18 = vmul.f32 %v14705_v32, %v28199_v43  ;;  %v24490_v10 = vld [vmem:[%s28969_s8 + $0x1b8] sm:$0xff]  }
 0xb7c   :  { %v14661_v19 = vmul.f32 %v14660_v47, %v28199_v43  ;;  %v24492_v47 = vld [vmem:[%s28969_s8 + $0x200] sm:$0xff]  }
 0xb7d   :  { %19541 = vmatpush3.bf16.msra.mxu0 %v24452_v21  ;;  %v14707_v40 = vadd.f32 %v14706_v18, %v28208_v50  ;;  %v24495_v18 = vld [vmem:[%s28969_s8 + $0x250] sm:$0xff]  }
 0xb7e   :  { %19542 = vmatprep.subr.bf16.mxu0 %v24453_v60  ;;  %v14662_v21 = vadd.f32 %v14661_v19, %v28208_v50  ;;  %v24494_v19 = vld [vmem:[%s28969_s8 + $0x208] sm:$0xff]  }
 0xb7f   :  { %v14708_v38 = vmax.f32 %v14707_v40, 0.0  ;;  %v14713_v40 = vld [vmem:[#allocation3 + $0x62] sm:$0x3] }
 0xb80   :  { %v14663_v60 = vmax.f32 %v14662_v21, 0.0  ;;  %v14712_v21 = vld [vmem:[#allocation3 + $0x60] sm:$0x3] }
 0xb81   :  { %19543 = vmatpush3.bf16.msra.mxu0 %v24454_v0  ;;  %v24477_v0 = vld [vmem:[%s28969_s8 + $0x1c8] sm:$0xff]  }
 0xb82   :  { %19544 = vmatprep.subr.bf16.mxu0 %v24455_v11  ;;  %v14664_v49 = vpack.c.bf16 %v14663_v60, %v14663_v60  ;;  %v14709_v11 = vpack.c.bf16 %v14708_v38, %v14708_v38  ;;  %v14758_v60 = vld [vmem:[#allocation3 + $0x92] sm:$0x3]  ;;  %v14711_v38 = vld [vmem:[#allocation3 + $0x46] sm:$0x3] }
 0xb85   :  { %19545 = vmatpush3.bf16.msra.mxu0 %v24456_v36  ;;  %v24480_v36 = vld [vmem:[%s28969_s8 + $0x190] sm:$0xff]  }
 0xb86   :  { %19546 = vmatprep.subr.bf16.mxu0 %v24457_v5  ;;  %v24481_v5 = vld [vmem:[%s28969_s8 + $0x1d8] sm:$0xff]  }
 0xb89   :  { %19547 = vmatpush3.bf16.msra.mxu0 %v24458_v20  ;;  %v14727_v20 = vld [vmem:[#allocation3 + $0x64] sm:$0x3] }
 0xb8a   :  { %19554 = vmatprep.subr.bf16.mxu0 %v24459_v62  ;;  %v14680_v62 = vld [vmem:[#allocation3 + $0x3c] sm:$0x3] }
 0xb8b   :  { %v14684_v59 = vmax.f32 %v14680_v62, %v14681_v58  ;;  %v14687_v14 = vmin.f32 %v14680_v62, %v14681_v58  ;;  %v24500_v62 = vld [vmem:[%s28969_s8 + $0x220] sm:$0xff]  }
 0xb8c   :  { %16645 = vmatmul.mubr.bf16.vlgmr.msra.gmra.mrb[172].mxu0 %v14634_v12  ;;  %v14685_v12 = vmax.f32 %v14682_v7, %v14683_v27 }
 0xb8d   :  { %19555 = vmatpush3.bf16.msra.mxu0 %v24460_v4  ;;  %16684 = vmatprep.mubr.bf16.mxu0 %v14679_v41  ;;  %v24482_v4 = vld [vmem:[%s28969_s8 + $0x198] sm:$0xff]   ;;  %v14725_v41 = vld [vmem:[#allocation3 + $0x48] sm:$0x3] }
 0xb8e   :  { %19556 = vmatprep.subr.bf16.mxu0 %v24461_v26  ;;  %v14688_v26 = vmin.f32 %v14682_v7, %v14683_v27  ;;  %v14686_v57 = vmax.f32 %v14684_v59, %v14685_v12  ;;  %v24501_v12 = vld [vmem:[%s28969_s8 + $0x268] sm:$0xff]  }
 0xb91   :  { %19557 = vmatpush3.bf16.msra.mxu0 %v24462_v8  ;;  %v14726_v8 = vld [vmem:[#allocation3 + $0x4a] sm:$0x3] }
 0xb92   :  { %19558 = vmatprep.subr.bf16.mxu0 %v24463_v2  ;;  %v24483_v2 = vld [vmem:[%s28969_s8 + $0x1e0] sm:$0xff]   ;;  %v14729_v46 = vmax.f32 %v14725_v41, %v14726_v8  ;;  %v14732_v22 = vmin.f32 %v14725_v41, %v14726_v8 }
 0xb95   :  { %19559 = vmatpush3.bf16.msra.mxu0 %v24464_v16  ;;  %v14730_v16 = vmax.f32 %v14727_v20, %v14728_v55 }
 0xb96   :  { %19560 = vmatprep.subr.bf16.mxu0 %v24465_v35  ;;  %v14733_v35 = vmin.f32 %v14727_v20, %v14728_v55 }
 0xb97   :  { %v14731_v61 = vmax.f32 %v14729_v46, %v14730_v16  ;;  %v24502_v16 = vld [vmem:[%s28969_s8 + $0x228] sm:$0xff]   ;;  %v24504_v46 = vld [vmem:[%s28969_s8 + $0x230] sm:$0xff]  }
 0xb98   :  { %v14734_v45 = vmin.f32 %v14732_v22, %v14733_v35  ;;  %v24503_v35 = vld [vmem:[%s28969_s8 + $0x270] sm:$0xff]   ;;  %v24505_v22 = vld [vmem:[%s28969_s8 + $0x278] sm:$0xff]  }
 0xb99   :  { %19561 = vmatpush3.bf16.msra.mxu0 %v24466_v34  ;;  %v14689_v34 = vmin.f32 %v14687_v14, %v14688_v26 }
 0xb9a   :  { %19562 = vmatprep.subr.bf16.mxu0 %v24467_v51  ;;  %v14735_v51 = vsel %vm28194_vm7, %v14731_v61, %v14734_v45  ;;  %v24507_v61 = vld [vmem:[%s28969_s8 + $0x2c0] sm:$0xff]  }
 0xb9b   :  { %v14690_v42 = vsel %vm28194_vm7, %v14686_v57, %v14689_v34  ;;  %v14736_v29 = vmul.f32 %v14735_v51, %v28199_v43  ;;  %v24506_v34 = vld [vmem:[%s28969_s8 + $0x238] sm:$0xff]  }
 0xb9c   :  { %v14691_v17 = vmul.f32 %v14690_v42, %v28199_v43  ;;  %v24508_v42 = vld [vmem:[%s28969_s8 + $0x280] sm:$0xff]  }
 0xb9d   :  { %19563 = vmatpush3.bf16.msra.mxu0 %v24468_v1  ;;  %v14737_v48 = vadd.f32 %v14736_v29, %v28208_v50  ;;  %v24511_v29 = vld [vmem:[%s28969_s8 + $0x2d0] sm:$0xff]  }
 0xb9e   :  { %19564 = vmatprep.subr.bf16.mxu0 %v24469_v25  ;;  %v14692_v1 = vadd.f32 %v14691_v17, %v28208_v50  ;;  %v24510_v17 = vld [vmem:[%s28969_s8 + $0x288] sm:$0xff]  }
 0xb9f   :  { %v14738_v52 = vmax.f32 %v14737_v48, 0.0  ;;  %v14743_v48 = vld [vmem:[#allocation3 + $0x8e] sm:$0x3] }
 0xba0   :  { %v14693_v25 = vmax.f32 %v14692_v1, 0.0  ;;  %v14742_v1 = vld [vmem:[#allocation3 + $0x8c] sm:$0x3] }
 0xba1   :  { %19565 = vmatpush3.bf16.msra.mxu0 %v24470_v31  ;;  %v24493_v31 = vld [vmem:[%s28969_s8 + $0x248] sm:$0xff]  }
 0xba2   :  { %19566 = vmatprep.subr.bf16.mxu0 %v24471_v54  ;;  %v14694_v32 = vpack.c.bf16 %v14693_v25, %v14693_v25  ;;  %v14739_v54 = vpack.c.bf16 %v14738_v52, %v14738_v52  ;;  %v14788_v25 = vld [vmem:[#allocation3 + $0x9a] sm:$0x3]  ;;  %v14741_v52 = vld [vmem:[#allocation3 + $0x72] sm:$0x3] }
 0xba5   :  { %19567 = vmatpush3.bf16.msra.mxu0 %v24472_v24  ;;  %v24496_v24 = vld [vmem:[%s28969_s8 + $0x210] sm:$0xff]  }
 0xba6   :  { %19568 = vmatprep.subr.bf16.mxu0 %v24473_v33  ;;  %v24497_v33 = vld [vmem:[%s28969_s8 + $0x258] sm:$0xff]  }
 0xba9   :  { %19569 = vmatpush3.bf16.msra.mxu0 %v24474_v3  ;;  %v14757_v3 = vld [vmem:[#allocation3 + $0x90] sm:$0x3] }
 0xbaa   :  { %19576 = vmatprep.subr.bf16.mxu0 %v24475_v44  ;;  %v14710_v44 = vld [vmem:[#allocation3 + $0x44] sm:$0x3] }
 0xbab   :  { %v14714_v7 = vmax.f32 %v14710_v44, %v14711_v38  ;;  %v14717_v27 = vmin.f32 %v14710_v44, %v14711_v38  ;;  %v24516_v44 = vld [vmem:[%s28969_s8 + $0x2a0] sm:$0xff]  }
 0xbac   :  { %16685 = vmatmul.mubr.bf16.vlgmr.msra.gmra.mrb[176].mxu0 %v14664_v49  ;;  %v14715_v49 = vmax.f32 %v14712_v21, %v14713_v40 }
 0xbad   :  { %19577 = vmatpush3.bf16.msra.mxu0 %v24476_v6  ;;  %16724 = vmatprep.mubr.bf16.mxu0 %v14709_v11  ;;  %v24498_v6 = vld [vmem:[%s28969_s8 + $0x218] sm:$0xff]  }
 0xbae   :  { %19578 = vmatprep.subr.bf16.mxu0 %v24477_v0  ;;  %v14718_v0 = vmin.f32 %v14712_v21, %v14713_v40  ;;  %v14755_v11 = vld [vmem:[#allocation3 + $0x74] sm:$0x3]  ;;  %v14716_v58 = vmax.f32 %v14714_v7, %v14715_v49  ;;  %v24517_v49 = vld [vmem:[%s28969_s8 + $0x2e8] sm:$0xff]  }
 0xbb1   :  { %19579 = vmatpush3.bf16.msra.mxu0 %v24478_v15  ;;  %v14756_v15 = vld [vmem:[#allocation3 + $0x76] sm:$0x3] }
 0xbb2   :  { %19580 = vmatprep.subr.bf16.mxu0 %v24479_v30  ;;  %v24499_v30 = vld [vmem:[%s28969_s8 + $0x260] sm:$0xff]   ;;  %v14759_v20 = vmax.f32 %v14755_v11, %v14756_v15  ;;  %v14762_v55 = vmin.f32 %v14755_v11, %v14756_v15 }
 0xbb5   :  { %19581 = vmatpush3.bf16.msra.mxu0 %v24480_v36  ;;  %v14760_v36 = vmax.f32 %v14757_v3, %v14758_v60 }
 0xbb6   :  { %19582 = vmatprep.subr.bf16.mxu0 %v24481_v5  ;;  %v14763_v5 = vmin.f32 %v14757_v3, %v14758_v60 }
 0xbb7   :  { %v14761_v26 = vmax.f32 %v14759_v20, %v14760_v36  ;;  %v24518_v36 = vld [vmem:[%s28969_s8 + $0x2a8] sm:$0xff]   ;;  %v24520_v20 = vld [vmem:[%s28969_s8 + $0x2b0] sm:$0xff]  }
 0xbb8   :  { %v14764_v41 = vmin.f32 %v14762_v55, %v14763_v5  ;;  %v24519_v5 = vld [vmem:[%s28969_s8 + $0x2f0] sm:$0xff]   ;;  %v24521_v55 = vld [vmem:[%s28969_s8 + $0x2f8] sm:$0xff]  }
 0xbb9   :  { %19583 = vmatpush3.bf16.msra.mxu0 %v24482_v4  ;;  %v14719_v4 = vmin.f32 %v14717_v27, %v14718_v0 }
 0xbba   :  { %19584 = vmatprep.subr.bf16.mxu0 %v24483_v2  ;;  %v14765_v2 = vsel %vm28194_vm7, %v14761_v26, %v14764_v41  ;;  %v24523_v26 = vld [vmem:[%s28969_s8 + $0x340] sm:$0xff]  }
 0xbbb   :  { %v14720_v8 = vsel %vm28194_vm7, %v14716_v58, %v14719_v4  ;;  %v14766_v14 = vmul.f32 %v14765_v2, %v28199_v43  ;;  %v24522_v4 = vld [vmem:[%s28969_s8 + $0x2b8] sm:$0xff]  }
 0xbbc   :  { %v14721_v59 = vmul.f32 %v14720_v8, %v28199_v43  ;;  %v24524_v8 = vld [vmem:[%s28969_s8 + $0x300] sm:$0xff]  }
 0xbbd   :  { %19585 = vmatpush3.bf16.msra.mxu0 %v24484_v9  ;;  %v14767_v57 = vadd.f32 %v14766_v14, %v28208_v50  ;;  %v24527_v14 = vld [vmem:[%s28969_s8 + $0x350] sm:$0xff]  }
 0xbbe   :  { %19586 = vmatprep.subr.bf16.mxu0 %v24485_v56  ;;  %v14722_v9 = vadd.f32 %v14721_v59, %v28208_v50  ;;  %v24526_v59 = vld [vmem:[%s28969_s8 + $0x308] sm:$0xff]  }
 0xbbf   :  { %v14768_v45 = vmax.f32 %v14767_v57, 0.0  ;;  %v14773_v57 = vld [vmem:[#allocation3 + $0x96] sm:$0x3] }
 0xbc0   :  { %v14723_v56 = vmax.f32 %v14722_v9, 0.0  ;;  %v14772_v9 = vld [vmem:[#allocation3 + $0x94] sm:$0x3] }
 0xbc1   :  { %19587 = vmatpush3.bf16.msra.mxu0 %v24486_v63  ;;  %v24509_v63 = vld [vmem:[%s28969_s8 + $0x2c8] sm:$0xff]  }
 0xbc2   :  { %19588 = vmatprep.subr.bf16.mxu0 %v24487_v13  ;;  %v14724_v51 = vpack.c.bf16 %v14723_v56, %v14723_v56  ;;  %v14769_v13 = vpack.c.bf16 %v14768_v45, %v14768_v45  ;;  %v14818_v56 = vld [vmem:[#allocation3 + $0xc6] sm:$0x3]  ;;  %v14771_v45 = vld [vmem:[#allocation3 + $0x7a] sm:$0x3] }
 0xbc5   :  { %19589 = vmatpush3.bf16.msra.mxu0 %v24488_v28  ;;  %v24512_v28 = vld [vmem:[%s28969_s8 + $0x290] sm:$0xff]  }
 0xbc6   :  { %19590 = vmatprep.subr.bf16.mxu0 %v24489_v53  ;;  %v24513_v53 = vld [vmem:[%s28969_s8 + $0x2d8] sm:$0xff]  }
 0xbc9   :  { %19591 = vmatpush3.bf16.msra.mxu0 %v24490_v10  ;;  %v14787_v10 = vld [vmem:[#allocation3 + $0x98] sm:$0x3] }
 0xbca   :  { %19598 = vmatprep.subr.bf16.mxu0 %v24491_v39  ;;  %v14740_v39 = vld [vmem:[#allocation3 + $0x70] sm:$0x3] }
 0xbcb   :  { %v14744_v21 = vmax.f32 %v14740_v39, %v14741_v52  ;;  %v14747_v40 = vmin.f32 %v14740_v39, %v14741_v52  ;;  %v24532_v39 = vld [vmem:[%s28969_s8 + $0x320] sm:$0xff]  }
 0xbcc   :  { %16725 = vmatmul.mubr.bf16.vlgmr.msra.gmra.mrb[180].mxu0 %v14694_v32  ;;  %v14745_v32 = vmax.f32 %v14742_v1, %v14743_v48 }
 0xbcd   :  { %19599 = vmatpush3.bf16.msra.mxu0 %v24492_v47  ;;  %16764 = vmatprep.mubr.bf16.mxu0 %v14739_v54  ;;  %v24514_v47 = vld [vmem:[%s28969_s8 + $0x298] sm:$0xff]   ;;  %v14785_v54 = vld [vmem:[#allocation3 + $0x7c] sm:$0x3] }
 0xbce   :  { %19600 = vmatprep.subr.bf16.mxu0 %v24493_v31  ;;  %v14748_v31 = vmin.f32 %v14742_v1, %v14743_v48  ;;  %v14746_v38 = vmax.f32 %v14744_v21, %v14745_v32  ;;  %v24533_v32 = vld [vmem:[%s28969_s8 + $0x368] sm:$0xff]  }
 0xbd1   :  { %19601 = vmatpush3.bf16.msra.mxu0 %v24494_v19  ;;  %v14786_v19 = vld [vmem:[#allocation3 + $0x7e] sm:$0x3] }
 0xbd2   :  { %19602 = vmatprep.subr.bf16.mxu0 %v24495_v18  ;;  %v24515_v18 = vld [vmem:[%s28969_s8 + $0x2e0] sm:$0xff]   ;;  %v14789_v3 = vmax.f32 %v14785_v54, %v14786_v19  ;;  %v14792_v60 = vmin.f32 %v14785_v54, %v14786_v19 }
 0xbd5   :  { %19603 = vmatpush3.bf16.msra.mxu0 %v24496_v24  ;;  %v14790_v24 = vmax.f32 %v14787_v10, %v14788_v25 }
 0xbd6   :  { %19604 = vmatprep.subr.bf16.mxu0 %v24497_v33  ;;  %v14793_v33 = vmin.f32 %v14787_v10, %v14788_v25 }
 0xbd7   :  { %v14791_v0 = vmax.f32 %v14789_v3, %v14790_v24  ;;  %v24534_v24 = vld [vmem:[%s28969_s8 + $0x328] sm:$0xff]   ;;  %v24536_v3 = vld [vmem:[%s28969_s8 + $0x330] sm:$0xff]  }
 0xbd8   :  { %v14794_v11 = vmin.f32 %v14792_v60, %v14793_v33  ;;  %v24535_v33 = vld [vmem:[%s28969_s8 + $0x370] sm:$0xff]   ;;  %v24537_v60 = vld [vmem:[%s28969_s8 + $0x378] sm:$0xff]  }
 0xbd9   :  { %19605 = vmatpush3.bf16.msra.mxu0 %v24498_v6  ;;  %v14749_v6 = vmin.f32 %v14747_v40, %v14748_v31 }
 0xbda   :  { %19606 = vmatprep.subr.bf16.mxu0 %v24499_v30  ;;  %v14795_v30 = vsel %vm28194_vm7, %v14791_v0, %v14794_v11  ;;  %v24539_v0 = vld [vmem:[%s28969_s8 + $0x3c0] sm:$0xff]  }
 0xbdb   :  { %v14750_v15 = vsel %vm28194_vm7, %v14746_v38, %v14749_v6  ;;  %v14796_v27 = vmul.f32 %v14795_v30, %v28199_v43  ;;  %v24538_v6 = vld [vmem:[%s28969_s8 + $0x338] sm:$0xff]  }
 0xbdc   :  { %v14751_v7 = vmul.f32 %v14750_v15, %v28199_v43  ;;  %v24540_v15 = vld [vmem:[%s28969_s8 + $0x380] sm:$0xff]  }
 0xbdd   :  { %19607 = vmatpush3.bf16.msra.mxu0 %v24500_v62  ;;  %v14797_v58 = vadd.f32 %v14796_v27, %v28208_v50  ;;  %v24543_v27 = vld [vmem:[%s28969_s8 + $0x3d0] sm:$0xff]  }
 0xbde   :  { %19608 = vmatprep.subr.bf16.mxu0 %v24501_v12  ;;  %v14752_v62 = vadd.f32 %v14751_v7, %v28208_v50  ;;  %v24542_v7 = vld [vmem:[%s28969_s8 + $0x388] sm:$0xff]  }
 0xbdf   :  { %v14798_v41 = vmax.f32 %v14797_v58, 0.0  ;;  %v14803_v58 = vld [vmem:[#allocation3 + $0x9e] sm:$0x3] }
 0xbe0   :  { %v14753_v12 = vmax.f32 %v14752_v62, 0.0  ;;  %v14802_v62 = vld [vmem:[#allocation3 + $0x9c] sm:$0x3] }
 0xbe1   :  { %19609 = vmatpush3.bf16.msra.mxu0 %v24502_v16  ;;  %v24525_v16 = vld [vmem:[%s28969_s8 + $0x348] sm:$0xff]  }
 0xbe2   :  { %19610 = vmatprep.subr.bf16.mxu0 %v24503_v35  ;;  %v14754_v2 = vpack.c.bf16 %v14753_v12, %v14753_v12  ;;  %v14799_v35 = vpack.c.bf16 %v14798_v41, %v14798_v41  ;;  %v14848_v12 = vld [vmem:[#allocation3 + $0xce] sm:$0x3]  ;;  %v14801_v41 = vld [vmem:[#allocation3 + $0x82] sm:$0x3] }
 0xbe5   :  { %19611 = vmatpush3.bf16.msra.mxu0 %v24504_v46  ;;  %v24528_v46 = vld [vmem:[%s28969_s8 + $0x310] sm:$0xff]  }
 0xbe6   :  { %19612 = vmatprep.subr.bf16.mxu0 %v24505_v22  ;;  %v24529_v22 = vld [vmem:[%s28969_s8 + $0x358] sm:$0xff]  }
 0xbe9   :  { %19613 = vmatpush3.bf16.msra.mxu0 %v24506_v34  ;;  %v14817_v34 = vld [vmem:[#allocation3 + $0xc4] sm:$0x3] }
 0xbea   :  { %19620 = vmatprep.subr.bf16.mxu0 %v24507_v61  ;;  %v14770_v61 = vld [vmem:[#allocation3 + $0x78] sm:$0x3] }
 0xbeb   :  { %v14774_v1 = vmax.f32 %v14770_v61, %v14771_v45  ;;  %v14777_v48 = vmin.f32 %v14770_v61, %v14771_v45  ;;  %v24548_v61 = vld [vmem:[%s28969_s8 + $0x3a0] sm:$0xff]  }
 0xbec   :  { %16765 = vmatmul.mubr.bf16.vlgmr.msra.gmra.mrb[184].mxu0 %v14724_v51  ;;  %v14775_v51 = vmax.f32 %v14772_v9, %v14773_v57 }
 0xbed   :  { %19621 = vmatpush3.bf16.msra.mxu0 %v24508_v42  ;;  %16804 = vmatprep.mubr.bf16.mxu0 %v14769_v13  ;;  %v24530_v42 = vld [vmem:[%s28969_s8 + $0x318] sm:$0xff]   ;;  %v14815_v13 = vld [vmem:[#allocation3 + $0xa8] sm:$0x3] }
 0xbee   :  { %19622 = vmatprep.subr.bf16.mxu0 %v24509_v63  ;;  %v14778_v63 = vmin.f32 %v14772_v9, %v14773_v57  ;;  %v14776_v52 = vmax.f32 %v14774_v1, %v14775_v51  ;;  %v24549_v51 = vld [vmem:[%s28969_s8 + $0x3e8] sm:$0xff]  }
 0xbf1   :  { %19623 = vmatpush3.bf16.msra.mxu0 %v24510_v17  ;;  %v14816_v17 = vld [vmem:[#allocation3 + $0xaa] sm:$0x3] }
 0xbf2   :  { %19624 = vmatprep.subr.bf16.mxu0 %v24511_v29  ;;  %v24531_v29 = vld [vmem:[%s28969_s8 + $0x360] sm:$0xff]   ;;  %v14819_v10 = vmax.f32 %v14815_v13, %v14816_v17  ;;  %v14822_v25 = vmin.f32 %v14815_v13, %v14816_v17 }
 0xbf5   :  { %19625 = vmatpush3.bf16.msra.mxu0 %v24512_v28  ;;  %v14820_v28 = vmax.f32 %v14817_v34, %v14818_v56 }
 0xbf6   :  { %19626 = vmatprep.subr.bf16.mxu0 %v24513_v53  ;;  %v14823_v53 = vmin.f32 %v14817_v34, %v14818_v56 }
 0xbf7   :  { %v14821_v31 = vmax.f32 %v14819_v10, %v14820_v28  ;;  %v24550_v28 = vld [vmem:[%s28969_s8 + $0x3a8] sm:$0xff]  }
 0xbf8   :  { %v14824_v54 = vmin.f32 %v14822_v25, %v14823_v53  ;;  %v24551_v53 = vld [vmem:[%s28969_s8 + $0x3f0] sm:$0xff]  }
 0xbf9   :  { %19627 = vmatpush3.bf16.msra.mxu0 %v24514_v47  ;;  %v14779_v47 = vmin.f32 %v14777_v48, %v14778_v63 }
 0xbfa   :  { %19628 = vmatprep.subr.bf16.mxu0 %v24515_v18  ;;  %v14825_v18 = vsel %vm28194_vm7, %v14821_v31, %v14824_v54  ;;  %v24553_v31 = vld [vmem:[%s28969_s8 + $0x3f8] sm:$0xff]  }
 0xbfb   :  { %v14780_v19 = vsel %vm28194_vm7, %v14776_v52, %v14779_v47  ;;  %v14826_v40 = vmul.f32 %v14825_v18, %v28199_v43  ;;  %v24552_v47 = vld [vmem:[%s28969_s8 + $0x3b0] sm:$0xff]   ;;  %v24554_v18 = vld [vmem:[%s28969_s8 + $0x3b8] sm:$0xff]  }
 0xbfc   :  { %v14781_v21 = vmul.f32 %v14780_v19, %v28199_v43 }
 0xbfd   :  { %19629 = vmatpush3.bf16.msra.mxu0 %v24516_v44  ;;  %v14827_v38 = vadd.f32 %v14826_v40, %v28208_v50  ;;  %v24556_v40 = vld [vmem:[%s28969_s8 + $0x400] sm:$0xff]  }
 0xbfe   :  { %19630 = vmatprep.subr.bf16.mxu0 %v24517_v49  ;;  %v14782_v44 = vadd.f32 %v14781_v21, %v28208_v50 }
 0xbff   :  { %v14828_v11 = vmax.f32 %v14827_v38, 0.0  ;;  %v24558_v38 = vld [vmem:[%s28969_s8 + $0x408] sm:$0xff]  }
 0xc00   :  { %v14783_v49 = vmax.f32 %v14782_v44, 0.0 }
 0xc01   :  { %19631 = vmatpush3.bf16.msra.mxu0 %v24518_v36  ;;  %v24541_v36 = vld [vmem:[%s28969_s8 + $0x3c8] sm:$0xff]  }
 0xc02   :  { %19632 = vmatprep.subr.bf16.mxu0 %v24519_v5  ;;  %v14784_v30 = vpack.c.bf16 %v14783_v49, %v14783_v49  ;;  %v14829_v5 = vpack.c.bf16 %v14828_v11, %v14828_v11  ;;  %v24560_v49 = vld [vmem:[%s28969_s8 + $0x410] sm:$0xff]   ;;  %v14832_v11 = vld [vmem:[#allocation3 + $0xc8] sm:$0x3] }
 0xc05   :  { %19633 = vmatpush3.bf16.msra.mxu0 %v24520_v20  ;;  %v24544_v20 = vld [vmem:[%s28969_s8 + $0x390] sm:$0xff]  }
 0xc06   :  { %19634 = vmatprep.subr.bf16.mxu0 %v24521_v55  ;;  %v24545_v55 = vld [vmem:[%s28969_s8 + $0x3d8] sm:$0xff]  }
 0xc09   :  { %19635 = vmatpush3.bf16.msra.mxu0 %v24522_v4  ;;  %v14847_v4 = vld [vmem:[#allocation3 + $0xcc] sm:$0x3] }
 0xc0a   :  { %19642 = vmatprep.subr.bf16.mxu0 %v24523_v26  ;;  %v14800_v26 = vld [vmem:[#allocation3 + $0x80] sm:$0x3] }
 0xc0b   :  { %v14804_v9 = vmax.f32 %v14800_v26, %v14801_v41  ;;  %v14807_v57 = vmin.f32 %v14800_v26, %v14801_v41 }
 0xc0c   :  { %16805 = vmatmul.mubr.bf16.vlgmr.msra.gmra.mrb[188].mxu0 %v14754_v2  ;;  %v14805_v2 = vmax.f32 %v14802_v62, %v14803_v58 }
 0xc0d   :  { %19643 = vmatpush3.bf16.msra.mxu0 %v24524_v8  ;;  %16844 = vmatprep.mubr.bf16.mxu0 %v14799_v35  ;;  %v24546_v8 = vld [vmem:[%s28969_s8 + $0x398] sm:$0xff]   ;;  %v14845_v35 = vld [vmem:[#allocation3 + $0xb0] sm:$0x3] }
 0xc0e   :  { %19644 = vmatprep.subr.bf16.mxu0 %v24525_v16  ;;  %v14808_v16 = vmin.f32 %v14802_v62, %v14803_v58  ;;  %v14806_v45 = vmax.f32 %v14804_v9, %v14805_v2  ;;  %v14875_v62 = vld [vmem:[#allocation3 + $0xb8] sm:$0x3]  ;;  %v14876_v58 = vld [vmem:[#allocation3 + $0xba] sm:$0x3] }
 0xc0f   :  { %v14879_v2 = vmax.f32 %v14875_v62, %v14876_v58 }
 0xc11   :  { %19645 = vmatpush3.bf16.msra.mxu0 %v24526_v59  ;;  %v14846_v59 = vld [vmem:[#allocation3 + $0xb2] sm:$0x3] }
 0xc12   :  { %19646 = vmatprep.subr.bf16.mxu0 %v24527_v14  ;;  %v24547_v14 = vld [vmem:[%s28969_s8 + $0x3e0] sm:$0xff]   ;;  %v14849_v34 = vmax.f32 %v14845_v35, %v14846_v59  ;;  %v14852_v56 = vmin.f32 %v14845_v35, %v14846_v59 }
 0xc13   :  { %v24564_v35 = vld [vmem:[%s28969_s8 + $0x420] sm:$0xff]  }
 0xc15   :  { %19647 = vmatpush3.bf16.msra.mxu0 %v24528_v46  ;;  %v14850_v46 = vmax.f32 %v14847_v4, %v14848_v12 }
 0xc16   :  { %19648 = vmatprep.subr.bf16.mxu0 %v24529_v22  ;;  %v14853_v22 = vmin.f32 %v14847_v4, %v14848_v12  ;;  %v24563_v4 = vld [vmem:[%s28969_s8 + $0x460] sm:$0xff]  }
 0xc17   :  { %v14851_v63 = vmax.f32 %v14849_v34, %v14850_v46  ;;  %v24565_v46 = vld [vmem:[%s28969_s8 + $0x468] sm:$0xff]  }
 0xc18   :  { %v14854_v13 = vmin.f32 %v14852_v56, %v14853_v22  ;;  %v24566_v56 = vld [vmem:[%s28969_s8 + $0x428] sm:$0xff]  }
 0xc19   :  { %19649 = vmatpush3.bf16.msra.mxu0 %v24530_v42  ;;  %v14809_v42 = vmin.f32 %v14807_v57, %v14808_v16  ;;  %v14882_v16 = vmin.f32 %v14875_v62, %v14876_v58 }
 0xc1a   :  { %19650 = vmatprep.subr.bf16.mxu0 %v24531_v29  ;;  %v14855_v29 = vsel %vm28194_vm7, %v14851_v63, %v14854_v13 }
 0xc1b   :  { %v14810_v17 = vsel %vm28194_vm7, %v14806_v45, %v14809_v42  ;;  %v14856_v10 = vmul.f32 %v14855_v29, %v28199_v43  ;;  %v24567_v45 = vld [vmem:[%s28969_s8 + $0x470] sm:$0xff]  }
 0xc1c   :  { %v14811_v1 = vmul.f32 %v14810_v17, %v28199_v43 }
 0xc1d   :  { %19651 = vmatpush3.bf16.msra.mxu0 %v24532_v39  ;;  %v14857_v19 = vadd.f32 %v14856_v10, %v28208_v50 }
 0xc1e   :  { %19652 = vmatprep.subr.bf16.mxu0 %v24533_v32  ;;  %v14812_v54 = vadd.f32 %v14811_v1, %v28208_v50 }
 0xc1f   :  { %v14858_v21 = vmax.f32 %v14857_v19, 0.0 }
 0xc21   :  { %19653 = vmatpush3.bf16.msra.mxu0 %v24534_v24  ;;  %v14813_v24 = vmax.f32 %v14812_v54, 0.0  ;;  %v14859_v44 = vpack.c.bf16 %v14858_v21, %v14858_v21  ;;  %v24572_v54 = vld [vmem:[%s28969_s8 + $0x480] sm:$0xff]   ;;  %v24575_v21 = vld [vmem:[%s28969_s8 + $0x4d0] sm:$0xff]  }
 0xc22   :  { %19654 = vmatprep.subr.bf16.mxu0 %v24535_v33  ;;  %v24555_v33 = vld [vmem:[%s28969_s8 + $0x440] sm:$0xff]  }
 0xc25   :  { %19655 = vmatpush3.bf16.msra.mxu0 %v24536_v3  ;;  %v14814_v3 = vpack.c.bf16 %v14813_v24, %v14813_v24 }
 0xc26   :  { %19656 = vmatprep.subr.bf16.mxu0 %v24537_v60  ;;  %v24557_v60 = vld [vmem:[%s28969_s8 + $0x448] sm:$0xff]  }
 0xc29   :  { %19657 = vmatpush3.bf16.msra.mxu0 %v24538_v6  ;;  %v24559_v6 = vld [vmem:[%s28969_s8 + $0x450] sm:$0xff]  }
 0xc2a   :  { %19664 = vmatprep.subr.bf16.mxu0 %v24539_v0  ;;  %v24561_v0 = vld [vmem:[%s28969_s8 + $0x458] sm:$0xff]  }
 0xc2c   :  { %16845 = vmatmul.mubr.bf16.vlgmr.msra.gmra.mrb[192].mxu0 %v14784_v30  ;;  %v14877_v30 = vld [vmem:[#allocation3 + $0xd4] sm:$0x3] }
 0xc2d   :  { %19665 = vmatpush3.bf16.msra.mxu0 %v24540_v15  ;;  %16884 = vmatprep.mubr.bf16.mxu0 %v14829_v5  ;;  %v14833_v15 = vld [vmem:[#allocation3 + $0xca] sm:$0x3]  ;;  %v14830_v5 = vld [vmem:[#allocation3 + $0xac] sm:$0x3] }
 0xc2e   :  { %19666 = vmatprep.subr.bf16.mxu0 %v24541_v36  ;;  %v14878_v36 = vld [vmem:[#allocation3 + $0xd6] sm:$0x3] }
 0xc2f   :  { %v14880_v12 = vmax.f32 %v14877_v30, %v14878_v36  ;;  %v14883_v26 = vmin.f32 %v14877_v30, %v14878_v36  ;;  %v14905_v36 = vld [vmem:[#allocation3 + $0xe4] sm:$0x3] }
 0xc31   :  { %19667 = vmatpush3.bf16.msra.mxu0 %v24542_v7  ;;  %v14831_v7 = vld [vmem:[#allocation3 + $0xae] sm:$0x3]  ;;  %v14881_v22 = vmax.f32 %v14879_v2, %v14880_v12  ;;  %v14884_v9 = vmin.f32 %v14882_v16, %v14883_v26  ;;  %v24580_v12 = vld [vmem:[%s28969_s8 + $0x4a0] sm:$0xff]  }
 0xc32   :  { %19668 = vmatprep.subr.bf16.mxu0 %v24543_v27  ;;  %v24562_v27 = vld [vmem:[%s28969_s8 + $0x418] sm:$0xff]   ;;  %v14834_v41 = vmax.f32 %v14830_v5, %v14831_v7 }
 0xc33   :  { %v14885_v34 = vsel %vm28194_vm7, %v14881_v22, %v14884_v9 }
 0xc34   :  { %v14886_v63 = vmul.f32 %v14885_v34, %v28199_v43 }
 0xc35   :  { %19669 = vmatpush3.bf16.msra.mxu0 %v24544_v20  ;;  %v14835_v20 = vmax.f32 %v14832_v11, %v14833_v15 }
 0xc36   :  { %19670 = vmatprep.subr.bf16.mxu0 %v24545_v55  ;;  %v14838_v55 = vmin.f32 %v14832_v11, %v14833_v15  ;;  %v24578_v11 = vld [vmem:[%s28969_s8 + $0x498] sm:$0xff]  }
 0xc37   :  { %v14836_v59 = vmax.f32 %v14834_v41, %v14835_v20 }
 0xc39   :  { %19671 = vmatpush3.bf16.msra.mxu0 %v24546_v8  ;;  %v14837_v8 = vmin.f32 %v14830_v5, %v14831_v7  ;;  %v14906_v5 = vld [vmem:[#allocation3 + $0xe6] sm:$0x3]  ;;  %v24579_v7 = vld [vmem:[%s28969_s8 + $0x4e0] sm:$0xff]  }
 0xc3a   :  { %19672 = vmatprep.subr.bf16.mxu0 %v24547_v14  ;;  %v14909_v58 = vmax.f32 %v14905_v36, %v14906_v5 }
 0xc3b   :  { %v14839_v14 = vmin.f32 %v14837_v8, %v14838_v55  ;;  %v24581_v8 = vld [vmem:[%s28969_s8 + $0x4e8] sm:$0xff]  }
 0xc3d   :  { %19673 = vmatpush3.bf16.msra.mxu0 %v24548_v61  ;;  %v14840_v57 = vsel %vm28194_vm7, %v14836_v59, %v14839_v14  ;;  %v18441_v61 = vld [vmem:[%s28970_s9] ss:$0 sm:$0xff]  ;;  %v24582_v14 = vld [vmem:[%s28969_s8 + $0x4a8] sm:$0xff]  }
 0xc3e   :  { %19674 = vmatprep.subr.bf16.mxu0 %v24549_v51  ;;  %v14841_v42 = vmul.f32 %v14840_v57, %v28199_v43 }
 0xc3f   :  { %v19526_v48 = vpop.f32.mrb[168].mxu0 }
 0xc40   :  { %v19527_v25 = vpop.f32.mrb[169].mxu0  ;;  %v14842_v10 = vadd.f32 %v14841_v42, %v28208_v50 }
 0xc41   :  { %v28594_v39 = vadd.f32 %v19527_v25, %v19526_v48  ;;  %19675 = vmatpush3.bf16.msra.mxu0 %v24550_v28  ;;  %v19529_v52 = vpop.f32.mrb[170].mxu0  ;;  %v24569_v48 = vld [vmem:[%s28969_s8 + $0x478] sm:$0xff]  }
 0xc42   :  { %v19530_v32 = vpop.f32.mrb[171].mxu0  ;;  %19676 = vmatprep.subr.bf16.mxu0 %v24551_v53  ;;  %v24568_v53 = vld [vmem:[%s28969_s8 + $0x430] sm:$0xff]   ;;  %v14887_v52 = vadd.f32 %v14886_v63, %v28208_v50 }
 0xc43   :  { %v16607_v17 = vadd.f32 %v28594_v39, %v18441_v61  ;;  %v24570_v39 = vld [vmem:[%s28969_s8 + $0x438] sm:$0xff]   ;;  %v24571_v32 = vld [vmem:[%s28969_s8 + $0x4c0] sm:$0xff]  }
 0xc45   :  { %19677 = vmatpush3.bf16.msra.mxu0 %v24552_v47  ;;  %v14843_v47 = vmax.f32 %v14842_v10, 0.0 }
 0xc46   :  { %19678 = vmatprep.subr.bf16.mxu0 %v24553_v31  ;;  %v14888_v31 = vmax.f32 %v14887_v52, 0.0 }
 0xc47   :  { %v14844_v19 = vpack.c.bf16 %v14843_v47, %v14843_v47  ;;  %v24591_v47 = vld [vmem:[%s28969_s8 + $0x550] sm:$0xff]  }
 0xc48   :  { %v14889_v24 = vpack.c.bf16 %v14888_v31, %v14888_v31  ;;  %v24593_v31 = vld [vmem:[%s28969_s8 + $0x558] sm:$0xff]  }
 0xc49   :  { %19679 = vmatpush3.bf16.msra.mxu0 %v24554_v18  ;;  %v24573_v18 = vld [vmem:[%s28969_s8 + $0x4c8] sm:$0xff]  }
 0xc4a   :  { %19686 = vmatprep.subr.bf16.mxu0 %v24555_v33  ;;  %v24574_v33 = vld [vmem:[%s28969_s8 + $0x488] sm:$0xff]  }
 0xc4c   :  { %16885 = vmatmul.mubr.bf16.vlgmr.msra.gmra.mrb[196].mxu0 %v14814_v3  ;;  %v24577_v3 = vld [vmem:[%s28969_s8 + $0x4d8] sm:$0xff]  }
 0xc4d   :  { %19687 = vmatpush3.bf16.msra.mxu0 %v24556_v40  ;;  %16924 = vmatprep.mubr.bf16.mxu0 %v14859_v44  ;;  %v24576_v40 = vld [vmem:[%s28969_s8 + $0x490] sm:$0xff]  }
 0xc4e   :  { %19688 = vmatprep.subr.bf16.mxu0 %v24557_v60  ;;  %v14862_v60 = vld [vmem:[#allocation3 + $0xd0] sm:$0x3]  ;;  %v14863_v44 = vld [vmem:[#allocation3 + $0xd2] sm:$0x3] }
 0xc4f   :  { %v14865_v15 = vmax.f32 %v14862_v60, %v14863_v44  ;;  %v14868_v30 = vmin.f32 %v14862_v60, %v14863_v44  ;;  %v14935_v44 = vld [vmem:[#allocation3 + $0xec] sm:$0x3] }
 0xc51   :  { %19689 = vmatpush3.bf16.msra.mxu0 %v24558_v38  ;;  %v14907_v38 = vld [vmem:[#allocation3 + $0x100] sm:$0x3] }
 0xc52   :  { %19690 = vmatprep.subr.bf16.mxu0 %v24559_v6  ;;  %v14908_v6 = vld [vmem:[#allocation3 + $0x102] sm:$0x3] }
 0xc53   :  { %v14913_v20 = vmin.f32 %v14907_v38, %v14908_v6 }
 0xc55   :  { %19691 = vmatpush3.bf16.msra.mxu0 %v24560_v49  ;;  %v14860_v49 = vld [vmem:[#allocation3 + $0xb4] sm:$0x3] }
 0xc56   :  { %19692 = vmatprep.subr.bf16.mxu0 %v24561_v0  ;;  %v14861_v0 = vld [vmem:[#allocation3 + $0xb6] sm:$0x3] }
 0xc57   :  { %v14864_v55 = vmax.f32 %v14860_v49, %v14861_v0  ;;  %v14867_v62 = vmin.f32 %v14860_v49, %v14861_v0 }
 0xc59   :  { %19693 = vmatpush3.bf16.msra.mxu0 %v24562_v27  ;;  %v14910_v27 = vmax.f32 %v14907_v38, %v14908_v6  ;;  %v14866_v26 = vmax.f32 %v14864_v55, %v14865_v15  ;;  %v14869_v41 = vmin.f32 %v14867_v62, %v14868_v30  ;;  %v14936_v38 = vld [vmem:[#allocation3 + $0xee] sm:$0x3]  ;;  %v24595_v6 = vld [vmem:[%s28969_s8 + $0x560] sm:$0xff]  }
 0xc5a   :  { %19694 = vmatprep.subr.bf16.mxu0 %v24563_v4  ;;  %v14912_v4 = vmin.f32 %v14905_v36, %v14906_v5  ;;  %v14939_v30 = vmax.f32 %v14935_v44, %v14936_v38  ;;  %v14942_v36 = vmin.f32 %v14935_v44, %v14936_v38  ;;  %v24596_v5 = vld [vmem:[%s28969_s8 + $0x520] sm:$0xff]  }
 0xc5b   :  { %v14911_v2 = vmax.f32 %v14909_v58, %v14910_v27 }
 0xc5c   :  { %v14914_v16 = vmin.f32 %v14912_v4, %v14913_v20  ;;  %v24597_v20 = vld [vmem:[%s28969_s8 + $0x568] sm:$0xff]  }
 0xc5d   :  { %19695 = vmatpush3.bf16.msra.mxu0 %v24564_v35  ;;  %v14870_v35 = vsel %vm28194_vm7, %v14866_v26, %v14869_v41  ;;  %v24599_v26 = vld [vmem:[%s28969_s8 + $0x570] sm:$0xff]  }
 0xc5e   :  { %19696 = vmatprep.subr.bf16.mxu0 %v24565_v46  ;;  %v14915_v59 = vsel %vm28194_vm7, %v14911_v2, %v14914_v16  ;;  %v24583_v46 = vld [vmem:[%s28969_s8 + $0x4f0] sm:$0xff]   ;;  %v14871_v22 = vmul.f32 %v14870_v35, %v28199_v43 }
 0xc5f   :  { %v19548_v51 = vpop.f32.mrb[172].mxu0  ;;  %v14916_v57 = vmul.f32 %v14915_v59, %v28199_v43 }
 0xc60   :  { %v19549_v13 = vpop.f32.mrb[173].mxu0  ;;  %v14872_v63 = vadd.f32 %v14871_v22, %v28208_v50  ;;  %v24601_v22 = vld [vmem:[%s28969_s8 + $0x578] sm:$0xff]  }
 0xc61   :  { %v19550_v29 = vadd.f32 %v19549_v13, %v19548_v51  ;;  %v19551_v28 = vpop.f32.mrb[174].mxu0  ;;  %19697 = vmatpush3.bf16.msra.mxu0 %v24566_v56  ;;  %v24585_v51 = vld [vmem:[%s28969_s8 + $0x4f8] sm:$0xff]  }
 0xc62   :  { %v19552_v1 = vpop.f32.mrb[175].mxu0  ;;  %19698 = vmatprep.subr.bf16.mxu0 %v24567_v45  ;;  %v24584_v45 = vld [vmem:[%s28969_s8 + $0x4b0] sm:$0xff]   ;;  %v14873_v28 = vmax.f32 %v14872_v63, 0.0 }
 0xc63   :  { %v28663_v25 = vadd.f32 %v19550_v29, %v16607_v17  ;;  %v14917_v17 = vadd.f32 %v14916_v57, %v28208_v50  ;;  %v24586_v29 = vld [vmem:[%s28969_s8 + $0x4b8] sm:$0xff]  }
 0xc64   :  { %v14874_v10 = vpack.c.bf16 %v14873_v28, %v14873_v28  ;;  %v24607_v28 = vld [vmem:[%s28969_s8 + $0x5d0] sm:$0xff]  }
 0xc65   :  { %19699 = vmatpush3.bf16.msra.mxu0 %v24568_v53  ;;  %v24587_v53 = vld [vmem:[%s28969_s8 + $0x540] sm:$0xff]   ;;  %v14918_v1 = vmax.f32 %v14917_v17, 0.0 }
 0xc66   :  { %19700 = vmatprep.subr.bf16.mxu0 %v24569_v48  ;;  %v24588_v48 = vld [vmem:[%s28969_s8 + $0x500] sm:$0xff]  }
 0xc67   :  { %v14919_v52 = vpack.c.bf16 %v14918_v1, %v14918_v1  ;;  %v24609_v1 = vld [vmem:[%s28969_s8 + $0x5d8] sm:$0xff]  }
 0xc69   :  { %19701 = vmatpush3.bf16.msra.mxu0 %v24570_v39  ;;  %v24590_v39 = vld [vmem:[%s28969_s8 + $0x508] sm:$0xff]  }
 0xc6a   :  { %19708 = vmatprep.subr.bf16.mxu0 %v24571_v32  ;;  %v24592_v32 = vld [vmem:[%s28969_s8 + $0x510] sm:$0xff]  }
 0xc6c   :  { %16925 = vmatmul.mubr.bf16.vlgmr.msra.gmra.mrb[200].mxu0 %v14844_v19  ;;  %v14893_v19 = vld [vmem:[#allocation3 + $0xfe] sm:$0x3] }
 0xc6d   :  { %19709 = vmatpush3.bf16.msra.mxu0 %v24572_v54  ;;  %16964 = vmatprep.mubr.bf16.mxu0 %v14889_v24  ;;  %v14892_v54 = vld [vmem:[#allocation3 + $0xfc] sm:$0x3]  ;;  %v14938_v24 = vld [vmem:[#allocation3 + $0x10a] sm:$0x3] }
 0xc6e   :  { %19710 = vmatprep.subr.bf16.mxu0 %v24573_v18  ;;  %v14937_v18 = vld [vmem:[#allocation3 + $0x108] sm:$0x3]  ;;  %v14898_v60 = vmin.f32 %v14892_v54, %v14893_v19 }
 0xc6f   :  { %v14940_v49 = vmax.f32 %v14937_v18, %v14938_v24  ;;  %v14943_v0 = vmin.f32 %v14937_v18, %v14938_v24  ;;  %v24612_v18 = vld [vmem:[%s28969_s8 + $0x5a0] sm:$0xff]  }
 0xc71   :  { %19711 = vmatpush3.bf16.msra.mxu0 %v24574_v33  ;;  %v14890_v33 = vld [vmem:[#allocation3 + $0xe0] sm:$0x3]  ;;  %v14941_v55 = vmax.f32 %v14939_v30, %v14940_v49  ;;  %v14944_v62 = vmin.f32 %v14942_v36, %v14943_v0  ;;  %v24617_v30 = vld [vmem:[%s28969_s8 + $0x5f8] sm:$0xff]  }
 0xc72   :  { %19712 = vmatprep.subr.bf16.mxu0 %v24575_v21  ;;  %v14891_v21 = vld [vmem:[#allocation3 + $0xe2] sm:$0x3] }
 0xc73   :  { %v14897_v15 = vmin.f32 %v14890_v33, %v14891_v21  ;;  %v14945_v4 = vsel %vm28194_vm7, %v14941_v55, %v14944_v62  ;;  %v24620_v62 = vld [vmem:[%s28969_s8 + $0x608] sm:$0xff]  }
 0xc74   :  { %v14946_v2 = vmul.f32 %v14945_v4, %v28199_v43  ;;  %v14952_v4 = vld [vmem:[#allocation3 + $0x10c] sm:$0x3] }
 0xc75   :  { %19713 = vmatpush3.bf16.msra.mxu0 %v24576_v40  ;;  %v24594_v40 = vld [vmem:[%s28969_s8 + $0x518] sm:$0xff]   ;;  %v14899_v27 = vmin.f32 %v14897_v15, %v14898_v60  ;;  %v24615_v60 = vld [vmem:[%s28969_s8 + $0x5f0] sm:$0xff]  }
 0xc76   :  { %19714 = vmatprep.subr.bf16.mxu0 %v24577_v3  ;;  %v14895_v3 = vmax.f32 %v14892_v54, %v14893_v19 }
 0xc79   :  { %19715 = vmatpush3.bf16.msra.mxu0 %v24578_v11  ;;  %v14894_v11 = vmax.f32 %v14890_v33, %v14891_v21  ;;  %v24613_v21 = vld [vmem:[%s28969_s8 + $0x5e8] sm:$0xff]  }
 0xc7a   :  { %19716 = vmatprep.subr.bf16.mxu0 %v24579_v7 }
 0xc7b   :  { %v14896_v7 = vmax.f32 %v14894_v11, %v14895_v3  ;;  %v24614_v3 = vld [vmem:[%s28969_s8 + $0x5a8] sm:$0xff]   ;;  %v24616_v11 = vld [vmem:[%s28969_s8 + $0x5b0] sm:$0xff]  }
 0xc7d   :  { %19717 = vmatpush3.bf16.msra.mxu0 %v24580_v12  ;;  %v14900_v58 = vsel %vm28194_vm7, %v14896_v7, %v14899_v27  ;;  %v24598_v12 = vld [vmem:[%s28969_s8 + $0x528] sm:$0xff]   ;;  %v24618_v7 = vld [vmem:[%s28969_s8 + $0x5b8] sm:$0xff]  }
 0xc7e   :  { %19718 = vmatprep.subr.bf16.mxu0 %v24581_v8  ;;  %v14901_v41 = vmul.f32 %v14900_v58, %v28199_v43  ;;  %v24621_v58 = vld [vmem:[%s28969_s8 + $0x610] sm:$0xff]  }
 0xc7f   :  { %v19570_v9 = vpop.f32.mrb[176].mxu0 }
 0xc80   :  { %v19571_v34 = vpop.f32.mrb[177].mxu0 }
 0xc81   :  { %v19572_v56 = vadd.f32 %v19571_v34, %v19570_v9  ;;  %v19573_v61 = vpop.f32.mrb[178].mxu0  ;;  %19719 = vmatpush3.bf16.msra.mxu0 %v24582_v14  ;;  %v24600_v14 = vld [vmem:[%s28969_s8 + $0x530] sm:$0xff]   ;;  %v14902_v9 = vadd.f32 %v14901_v41, %v28208_v50  ;;  %v14947_v34 = vadd.f32 %v14946_v2, %v28208_v50 }
 0xc82   :  { %v19574_v42 = vpop.f32.mrb[179].mxu0  ;;  %19720 = vmatprep.subr.bf16.mxu0 %v24583_v46  ;;  %v14951_v41 = vld [vmem:[#allocation3 + $0xf2] sm:$0x3] }
 0xc83   :  { %v28722_v13 = vadd.f32 %v19572_v56, %v28663_v25  ;;  %v24589_v25 = vld [vmem:[%s28969_s8 + $0x548] sm:$0xff]   ;;  %v24602_v56 = vld [vmem:[%s28969_s8 + $0x538] sm:$0xff]   ;;  %v14903_v61 = vmax.f32 %v14902_v9, 0.0  ;;  %v14948_v42 = vmax.f32 %v14947_v34, 0.0 }
 0xc85   :  { %19721 = vmatpush3.bf16.msra.mxu0 %v24584_v45  ;;  %v24603_v45 = vld [vmem:[%s28969_s8 + $0x5c0] sm:$0xff]   ;;  %v14904_v63 = vpack.c.bf16 %v14903_v61, %v14903_v61  ;;  %v14949_v17 = vpack.c.bf16 %v14948_v42, %v14948_v42 }
 0xc86   :  { %19722 = vmatprep.subr.bf16.mxu0 %v24585_v51  ;;  %v24604_v51 = vld [vmem:[%s28969_s8 + $0x580] sm:$0xff]  }
 0xc89   :  { %19723 = vmatpush3.bf16.msra.mxu0 %v24586_v29  ;;  %v24606_v29 = vld [vmem:[%s28969_s8 + $0x588] sm:$0xff]  }
 0xc8a   :  { %19730 = vmatprep.subr.bf16.mxu0 %v24587_v53  ;;  %v24608_v53 = vld [vmem:[%s28969_s8 + $0x590] sm:$0xff]  }
 0xc8c   :  { %16965 = vmatmul.mubr.bf16.vlgmr.msra.gmra.mrb[204].mxu0 %v14874_v10  ;;  %v14923_v10 = vld [vmem:[#allocation3 + $0x106] sm:$0x3] }
 0xc8d   :  { %19731 = vmatpush3.bf16.msra.mxu0 %v24588_v48  ;;  %17004 = vmatprep.mubr.bf16.mxu0 %v14919_v52  ;;  %v14922_v48 = vld [vmem:[#allocation3 + $0x104] sm:$0x3]  ;;  %v14921_v52 = vld [vmem:[#allocation3 + $0xea] sm:$0x3] }
 0xc8e   :  { %19732 = vmatprep.subr.bf16.mxu0 %v24589_v25  ;;  %v14920_v25 = vld [vmem:[#allocation3 + $0xe8] sm:$0x3] }
 0xc8f   :  { %v14924_v54 = vmax.f32 %v14920_v25, %v14921_v52  ;;  %v14927_v19 = vmin.f32 %v14920_v25, %v14921_v52 }
 0xc91   :  { %19733 = vmatpush3.bf16.msra.mxu0 %v24590_v39  ;;  %v24610_v39 = vld [vmem:[%s28969_s8 + $0x598] sm:$0xff]  }
 0xc92   :  { %19734 = vmatprep.subr.bf16.mxu0 %v24591_v47  ;;  %v14925_v47 = vmax.f32 %v14922_v48, %v14923_v10 }
 0xc94   :  { %v14926_v24 = vmax.f32 %v14924_v54, %v14925_v47 }
 0xc95   :  { %19735 = vmatpush3.bf16.msra.mxu0 %v24592_v32  ;;  %v14928_v32 = vmin.f32 %v14922_v48, %v14923_v10 }
 0xc96   :  { %19736 = vmatprep.subr.bf16.mxu0 %v24593_v31  ;;  %v24611_v31 = vld [vmem:[%s28969_s8 + $0x5e0] sm:$0xff]  }
 0xc97   :  { %v14929_v33 = vmin.f32 %v14927_v19, %v14928_v32  ;;  %v24628_v19 = vld [vmem:[%s28971_s10 + $0x8] sm:$0xff]  }
 0xc99   :  { %19737 = vmatpush3.bf16.msra.mxu0 %v24594_v40  ;;  %v14930_v40 = vsel %vm28194_vm7, %v14926_v24, %v14929_v33  ;;  %v24630_v24 = vld [vmem:[%s28971_s10 + $0x18] sm:$0xff]   ;;  %v24631_v33 = vld [vmem:[%s28971_s10 + $0x20] sm:$0xff]  }
 0xc9a   :  { %19738 = vmatprep.subr.bf16.mxu0 %v24595_v6  ;;  %v14931_v44 = vmul.f32 %v14930_v40, %v28199_v43 }
 0xc9c   :  { %v14932_v36 = vadd.f32 %v14931_v44, %v28208_v50 }
 0xc9d   :  { %19739 = vmatpush3.bf16.msra.mxu0 %v24596_v5 }
 0xc9e   :  { %19740 = vmatprep.subr.bf16.mxu0 %v24597_v20  ;;  %v14933_v27 = vmax.f32 %v14932_v36, 0.0  ;;  %v24619_v20 = vld [vmem:[%s28969_s8 + $0x600] sm:$0xff]  }
 0xc9f   :  { %v19592_v8 = vpop.f32.mrb[180].mxu0 }
 0xca0   :  { %v19593_v16 = vpop.f32.mrb[181].mxu0  ;;  %v14934_v55 = vpack.c.bf16 %v14933_v27, %v14933_v27 }
 0xca1   :  { %v19594_v35 = vadd.f32 %v19593_v16, %v19592_v8  ;;  %v19595_v59 = vpop.f32.mrb[182].mxu0  ;;  %19741 = vmatpush3.bf16.msra.mxu0 %v24598_v12  ;;  %v14953_v12 = vld [vmem:[#allocation3 + $0x10e] sm:$0x3]  ;;  %v24622_v8 = vld [vmem:[%s28969_s8 + $0x618] sm:$0xff]  }
 0xca2   :  { %v19596_v46 = vpop.f32.mrb[183].mxu0  ;;  %19742 = vmatprep.subr.bf16.mxu0 %v24599_v26  ;;  %v14950_v26 = vld [vmem:[#allocation3 + $0xf0] sm:$0x3]  ;;  %v14955_v2 = vmax.f32 %v14952_v4, %v14953_v12  ;;  %v14958_v16 = vmin.f32 %v14952_v4, %v14953_v12 }
 0xca3   :  { %v16727_v57 = vadd.f32 %v19594_v35, %v28722_v13  ;;  %v24605_v13 = vld [vmem:[%s28969_s8 + $0x5c8] sm:$0xff]   ;;  %v14954_v35 = vmax.f32 %v14950_v26, %v14951_v41  ;;  %v14957_v59 = vmin.f32 %v14950_v26, %v14951_v41 }
 0xca5   :  { %19743 = vmatpush3.bf16.msra.mxu0 %v24600_v14  ;;  %v24623_v14 = vld [vmem:[%s28969_s8 + $0x620] sm:$0xff]   ;;  %v14956_v46 = vmax.f32 %v14954_v35, %v14955_v2 }
 0xca6   :  { %19744 = vmatprep.subr.bf16.mxu0 %v24601_v22  ;;  %v14959_v22 = vmin.f32 %v14957_v59, %v14958_v16 }
 0xca8   :  { %v14960_v9 = vsel %vm28194_vm7, %v14956_v46, %v14959_v22 }
 0xca9   :  { %19745 = vmatpush3.bf16.msra.mxu0 %v24602_v56  ;;  %v14961_v34 = vmul.f32 %v14960_v9, %v28199_v43  ;;  %v24626_v43 = vld [vmem:[%s28969_s8 + $0x638] sm:$0xff]  }
 0xcaa   :  { %19752 = vmatprep.subr.bf16.mxu0 %v24603_v45 }
 0xcac   :  { %17005 = vmatmul.mubr.bf16.vlgmr.msra.gmra.mrb[208].mxu0 %v14904_v63  ;;  %v14962_v63 = vadd.f32 %v14961_v34, %v28208_v50 }
 0xcad   :  { %19753 = vmatpush3.bf16.msra.mxu0 %v24604_v51  ;;  %17044 = vmatprep.mubr.bf16.mxu0 %v14949_v17  ;;  %v24625_v51 = vld [vmem:[%s28969_s8 + $0x630] sm:$0xff]  }
 0xcae   :  { %19754 = vmatprep.subr.bf16.mxu0 %v24605_v13  ;;  %v14963_v17 = vmax.f32 %v14962_v63, 0.0  ;;  %v24642_v63 = vld [vmem:[%s28973_s12 + $0x38] sm:$0xff]  }
 0xcb1   :  { %19755 = vmatpush3.bf16.msra.mxu0 %v24606_v29  ;;  %v14964_v29 = vpack.c.bf16 %v14963_v17, %v14963_v17 }
 0xcb2   :  { %19756 = vmatprep.subr.bf16.mxu0 %v24607_v28 }
 0xcb5   :  { %19757 = vmatpush3.bf16.msra.mxu0 %v24608_v53 }
 0xcb6   :  { %19758 = vmatprep.subr.bf16.mxu0 %v24609_v1 }
 0xcb9   :  { %19759 = vmatpush3.bf16.msra.mxu0 %v24610_v39 }
 0xcba   :  { %19760 = vmatprep.subr.bf16.mxu0 %v24611_v31  ;;  %v24627_v31 = vld [vmem:[%s28971_s10] sm:$0xff]  }
 0xcbd   :  { %19761 = vmatpush3.bf16.msra.mxu0 %v24612_v18  ;;  %v24629_v18 = vld [vmem:[%s28971_s10 + $0x10] sm:$0xff]  }
 0xcbe   :  { %19762 = vmatprep.subr.bf16.mxu0 %v24613_v21  ;;  %v24632_v21 = vld [vmem:[%s28971_s10 + $0x28] sm:$0xff]  }
 0xcbf   :  { %v19614_v38 = vpop.f32.mrb[184].mxu0 }
 0xcc0   :  { %v19615_v6 = vpop.f32.mrb[185].mxu0 }
 0xcc1   :  { %v19616_v49 = vadd.f32 %v19615_v6, %v19614_v38  ;;  %v19617_v0 = vpop.f32.mrb[186].mxu0  ;;  %19763 = vmatpush3.bf16.msra.mxu0 %v24614_v3 }
 0xcc2   :  { %v19618_v15 = vpop.f32.mrb[187].mxu0  ;;  %19764 = vmatprep.subr.bf16.mxu0 %v24615_v60  ;;  %v24634_v0 = vld [vmem:[%s28971_s10 + $0x38] sm:$0xff]  }
 0xcc3   :  { %v16767_v5 = vadd.f32 %v19616_v49, %v16727_v57  ;;  %v24624_v57 = vld [vmem:[%s28969_s8 + $0x628] sm:$0xff]   ;;  %v24633_v49 = vld [vmem:[%s28971_s10 + $0x30] sm:$0xff]  }
 0xcc5   :  { %19765 = vmatpush3.bf16.msra.mxu0 %v24616_v11 }
 0xcc6   :  { %19766 = vmatprep.subr.bf16.mxu0 %v24617_v30 }
 0xcc9   :  { %19767 = vmatpush3.bf16.msra.mxu0 %v24618_v7 }
 0xcca   :  { %22017 = vmatprep.subr.bf16.mxu0 %v29087_v37 }
 0xccc   :  { %17045 = vmatmul.mubr.bf16.vlgmr.msra.gmra.mrb[212].mxu0 %v14934_v55 }
 0xccd   :  { %22018 = vmatpush3.bf16.msra.mxu0 %v24619_v20  ;;  %22033 = vmatprep.mubr.msk.bf16.mxu0 %vm24672_vm0, %v29087_v37 }
 0xcce   :  { %22019 = vmatprep.subr.bf16.mxu0 %v29087_v37 }
 0xcd1   :  { %22020 = vmatpush3.bf16.msra.mxu0 %v24620_v62 }
 0xcd2   :  { %22021 = vmatprep.subr.bf16.mxu0 %v29087_v37 }
 0xcd5   :  { %22022 = vmatpush3.bf16.msra.mxu0 %v24621_v58 }
 0xcd6   :  { %22023 = vmatprep.subr.bf16.mxu0 %v29087_v37 }
 0xcd9   :  { %22024 = vmatpush3.bf16.msra.mxu0 %v24622_v8 }
 0xcda   :  { %22025 = vmatprep.subr.bf16.mxu0 %v29087_v37 }
 0xcdd   :  { %22026 = vmatpush3.bf16.msra.mxu0 %v24623_v14 }
 0xcde   :  { %22027 = vmatprep.subr.bf16.mxu0 %v29087_v37 }
 0xcdf   :  { %v19636_v56 = vpop.f32.mrb[188].mxu0 }
 0xce0   :  { %v19637_v61 = vpop.f32.mrb[189].mxu0 }
 0xce1   :  { %v19638_v45 = vadd.f32 %v19637_v61, %v19636_v56  ;;  %v19639_v42 = vpop.f32.mrb[190].mxu0  ;;  %22028 = vmatpush3.bf16.msra.mxu0 %v24624_v57  ;;  %v24635_v57 = vld [vmem:[%s28973_s12] sm:$0xff]   ;;  %v24636_v56 = vld [vmem:[%s28973_s12 + $0x8] sm:$0xff]   ;;  %v24637_v61 = vld [vmem:[%s28973_s12 + $0x10] sm:$0xff]  }
 0xce2   :  { %v19640_v23 = vpop.f32.mrb[191].mxu0  ;;  %22029 = vmatprep.subr.bf16.mxu0 %v29087_v37  ;;  %v24639_v42 = vld [vmem:[%s28973_s12 + $0x20] sm:$0xff]  }
 0xce3   :  { %v16807_v13 = vadd.f32 %v19638_v45, %v16767_v5  ;;  %v24638_v45 = vld [vmem:[%s28973_s12 + $0x18] sm:$0xff]   ;;  %v24641_v23 = vld [vmem:[%s28973_s12 + $0x30] sm:$0xff]  }
 0xce5   :  { %22030 = vmatpush3.bf16.msra.mxu0 %v24625_v51  ;;  %v24640_v51 = vld [vmem:[%s28973_s12 + $0x28] sm:$0xff]   ;;  %s24677_s12 = smov [#allocation4]  }
 0xce6   :  { %22031 = vmatprep.subr.bf16.mxu0 %v29087_v37  ;;  %s17325_s15 = sshll.u32 %s24677_s12, 4  ;;  %s17326_s15 = int_to_ptr.vmem [resolvable:$true] %s17325_s15 }
 0xce7   :  { %p24652_p1 = scmp.lt.s32.totalorder %s17326_s15, %s17326_s15 }
 0xce9   :  { %22032 = vmatpush3.bf16.msra.mxu0 %v24626_v43 }
 0xcea   :  { %22037 = vmatprep.subr.bf16.mxu0 %v29087_v37 }
 0xcec   :  { %22034 = vmatmul.mubr.bf16.vlgmr.msra.gmra.mrb[216].mxu0 %v14964_v29 }
 0xced   :  { %22053 = vmatprep.mubr.msk.bf16.mxu0 %vm24672_vm0, %v29087_v37  ;;  %22038 = vmatpush3.bf16.msra.mxu0 %v24627_v31 }
 0xcee   :  { %22039 = vmatprep.subr.bf16.mxu0 %v29087_v37 }
 0xcf1   :  { %22040 = vmatpush3.bf16.msra.mxu0 %v24628_v19 }
 0xcf2   :  { %22041 = vmatprep.subr.bf16.mxu0 %v29087_v37 }
 0xcf5   :  { %22042 = vmatpush3.bf16.msra.mxu0 %v24629_v18 }
 0xcf6   :  { %22043 = vmatprep.subr.bf16.mxu0 %v29087_v37 }
 0xcf9   :  { %22044 = vmatpush3.bf16.msra.mxu0 %v24630_v24 }
 0xcfa   :  { %22045 = vmatprep.subr.bf16.mxu0 %v29087_v37 }
 0xcfd   :  { %22046 = vmatpush3.bf16.msra.mxu0 %v24631_v33 }
 0xcfe   :  { %22047 = vmatprep.subr.bf16.mxu0 %v29087_v37 }
 0xcff   :  { %v19658_v28 = vpop.f32.mrb[192].mxu0 }
 0xd00   :  { %v19659_v53 = vpop.f32.mrb[193].mxu0 }
 0xd01   :  { %v19660_v50 = vadd.f32 %v19659_v53, %v19658_v28  ;;  %v19661_v1 = vpop.f32.mrb[194].mxu0  ;;  %22048 = vmatpush3.bf16.msra.mxu0 %v24632_v21 }
 0xd02   :  { %v19662_v48 = vpop.f32.mrb[195].mxu0  ;;  %22049 = vmatprep.subr.bf16.mxu0 %v29087_v37 }
 0xd03   :  { %v16847_v10 = vadd.f32 %v19660_v50, %v16807_v13  ;;  %v18642_v13 = vld [vmem:[%s28972_s11] ss:$0 sm:$0xff]  ;;  %s24647_s11 = scalar_lea.vmem %s17326_s15, 32 }
 0xd04   :  { %v18651_v48 = vld [vmem:[%s28974_s13] ss:$0 sm:$0xff]  ;;  %p24648_p0 = scmp.ne.s32.totalorder %s17326_s15, %s24647_s11  ;;  %p24653_p2 = scmp.lt.s32.totalorder %s24647_s11, %s24647_s11 }
 0xd05   :  { %22050 = vmatpush3.bf16.msra.mxu0 %v24633_v49 }
 0xd06   :  { %22051 = vmatprep.subr.bf16.mxu0 %v29087_v37  ;;  %p24654_p3 = por %p24653_p2, %p24652_p1 }
 0xd08   :  { %p24655_p4 = pnand %p24654_p3, %p24648_p0 }
 0xd09   :  { %22052 = vmatpush3.bf16.msra.mxu0 %v24634_v0 }
 0xd0a   :  { %22057 = vmatprep.subr.bf16.mxu0 %v29087_v37 }
 0xd1f   :  { %v19680_v25 = vpop.f32.mrb[196].mxu0 }
 0xd20   :  { %v19681_v52 = vpop.f32.mrb[197].mxu0 }
 0xd21   :  { %v19682_v39 = vadd.f32 %v19681_v52, %v19680_v25  ;;  %v19683_v47 = vpop.f32.mrb[198].mxu0 }
 0xd22   :  { %v19684_v32 = vpop.f32.mrb[199].mxu0 }
 0xd23   :  { %v16887_v54 = vadd.f32 %v19682_v39, %v16847_v10 }
 0xd3f   :  { %v19702_v40 = vpop.f32.mrb[200].mxu0 }
 0xd40   :  { %v19703_v3 = vpop.f32.mrb[201].mxu0 }
 0xd41   :  { %v19704_v60 = vadd.f32 %v19703_v3, %v19702_v40  ;;  %v19705_v44 = vpop.f32.mrb[202].mxu0 }
 0xd42   :  { %v19706_v38 = vpop.f32.mrb[203].mxu0 }
 0xd43   :  { %v16927_v6 = vadd.f32 %v19704_v60, %v16887_v54 }
 0xd5f   :  { %v19724_v11 = vpop.f32.mrb[204].mxu0 }
 0xd60   :  { %v19725_v15 = vpop.f32.mrb[205].mxu0 }
 0xd61   :  { %v19726_v30 = vadd.f32 %v19725_v15, %v19724_v11  ;;  %v19727_v36 = vpop.f32.mrb[206].mxu0 }
 0xd62   :  { %v19728_v5 = vpop.f32.mrb[207].mxu0 }
 0xd63   :  { %v16967_v7 = vadd.f32 %v19726_v30, %v16927_v6 }
 0xd7f   :  { %v19746_v27 = vpop.f32.mrb[208].mxu0 }
 0xd80   :  { %v19747_v20 = vpop.f32.mrb[209].mxu0 }
 0xd81   :  { %v19748_v55 = vadd.f32 %v19747_v20, %v19746_v27  ;;  %v19749_v62 = vpop.f32.mrb[210].mxu0 }
 0xd82   :  { %v19750_v58 = vpop.f32.mrb[211].mxu0 }
 0xd83   :  { %v17007_v4 = vadd.f32 %v19748_v55, %v16967_v7 }
 0xd9f   :  { %v19768_v12 = vpop.f32.mrb[212].mxu0 }
 0xda0   :  { %v19769_v26 = vpop.f32.mrb[213].mxu0 }
 0xda1   :  { %v19770_v41 = vadd.f32 %v19769_v26, %v19768_v12  ;;  %v19771_v8 = vpop.f32.mrb[214].mxu0 }
 0xda2   :  { %v19772_v2 = vpop.f32.mrb[215].mxu0 }
 0xda3   :  { %v17047_v16 = vadd.f32 %v19770_v41, %v17007_v4 }
 0xdbf   :  { %v17086_v35 = vpop.f32.mrb[216].mxu0 }
 0xdc0   :  { %v17087_v59 = vadd.f32 %v17086_v35, %v17047_v16  ;;  %v22035_v14 = vpop.f32.mrb[217].mxu0 }
 0xdc1   :  { %v17089_v46 = vpop.f32.mrb[218].mxu0 }
 0xdc2   :  { %v17092_v22 = vmax.f32 %v17087_v59, 0.0  ;;  %v22036_v9 = vpop.f32.mrb[219].mxu0 }
 0xdc4   :  { %v17093_v34 = vpack.c.bf16 %v17092_v22, %v17092_v22 }
 0xdc6   :  { %22054 = vmatmul.mubr.bf16.vlgmr.msra.gmra.mrb[220].mxu0 %v17093_v34 }
 0xdc7   :  { %22058 = vmatpush3.bf16.msra.mxu0 %v24635_v57  ;;  %22073 = vmatprep.mubr.msk.bf16.mxu0 %vm24672_vm0, %v29087_v37 }
 0xdc8   :  { %22059 = vmatprep.subr.bf16.mxu0 %v29087_v37 }
 0xdcb   :  { %22060 = vmatpush3.bf16.msra.mxu0 %v24636_v56 }
 0xdcc   :  { %22061 = vmatprep.subr.bf16.mxu0 %v29087_v37 }
 0xdcf   :  { %22062 = vmatpush3.bf16.msra.mxu0 %v24637_v61 }
 0xdd0   :  { %22063 = vmatprep.subr.bf16.mxu0 %v29087_v37 }
 0xdd3   :  { %22064 = vmatpush3.bf16.msra.mxu0 %v24638_v45 }
 0xdd4   :  { %22065 = vmatprep.subr.bf16.mxu0 %v29087_v37 }
 0xdd7   :  { %22066 = vmatpush3.bf16.msra.mxu0 %v24639_v42 }
 0xdd8   :  { %22067 = vmatprep.subr.bf16.mxu0 %v29087_v37 }
 0xddb   :  { %22068 = vmatpush3.bf16.msra.mxu0 %v24640_v51 }
 0xddc   :  { %22069 = vmatprep.subr.bf16.mxu0 %v29087_v37 }
 0xddf   :  { %22070 = vmatpush3.bf16.msra.mxu0 %v24641_v23 }
 0xde0   :  { %22071 = vmatprep.subr.bf16.mxu0 %v29087_v37 }
 0xde3   :  { %22072 = vmatpush3.bf16.msra.mxu0 %v24642_v63 }
 0xe99   :  { %v17199_v43 = vpop.f32.mrb[220].mxu0 }
 0xe9a   :  { %v17200_v17 = vadd.f32 %v18642_v13, %v17199_v43  ;;  %v22055_v29 = vpop.f32.mrb[221].mxu0 }
 0xe9b   :  { %v17202_v28 = vpop.f32.mrb[222].mxu0 }
 0xe9c   :  { %v17205_v53 = vmax.f32 %v17200_v17, 0.0  ;;  %v22056_v50 = vpop.f32.mrb[223].mxu0 }
 0xe9e   :  { %v17206_v1 = vpack.c.bf16 %v17205_v53, %v17205_v53 }
 0xea0   :  { %22074 = vmatmul.mubr.bf16.vlgmr.msra.gmra.mrb[224].mxu0 %v17206_v1 }
 0xf73   :  { %v17312_v37 = vpop.f32.mrb[224].mxu0 }
 0xf74   :  { %v17313_v10 = vadd.f32 %v18651_v48, %v17312_v37  ;;  %v22075_v25 = vpop.f32.mrb[225].mxu0 }
 0xf75   :  { %v17315_v52 = vpop.f32.mrb[226].mxu0 }
 0xf76   :  { %17318 = vst [vmem:[#allocation4] sm:$0x3] %v17313_v10  ;;  %v22076_v39 = vpop.f32.mrb[227].mxu0 }
 0xf77   :  { %24658 = shalt.err (!%p24655_p4)
}
 0xf78   :  { %s24659_s13 = scalar_lea.hbm %s28975_s14, 32 }
 0xf79   :  { %p24660_p5 = scmp.ne.s32.totalorder %s28975_s14, %s24659_s13  ;;  %p24663_p6 = scmp.lt.u32.totalorder %s24659_s13, %s28975_s14 }
 0xf7b   :  { %p24665_p7 = pnand %p24663_p6, %p24660_p5 }
 0xf7d   :  { %24668 = shalt.err (!%p24665_p7)
}
 0xf7e   :  { %17328 = dma.vmem_to_hbm [thread:$0]  %s17326_s15, 32, %s28975_s14, [#allocation5]  }
 0xf7f   :  { %24669 = dma.done.wait [#allocation5], 32  }
 0xf80   :  { %24670 = vsyncadd [#allocation5], 4294967264 }
 0xf81   :  { %17332 = vsyncpa [#allocation5], 1 }

</bundles_post_ra>
